<compile_context>
chip_gen: v7x
topology: tpu7x:2x2x1
jax: 0.10.0
libtpu: 0.0.40
codegen_flags: <defaults>
</compile_context>

<pallas_src>
import functools

import jax
import jax.numpy as jnp
from jax import lax
from jax.experimental import pallas as pl
from jax.experimental.pallas import tpu as pltpu


# ----------------------------- Pallas kernel --------------------------------
def _gru2_recurrence_kernel(
    gi0_ref,     # (Tc, Bb, 3H)  precomputed layer-0 input gates [r|z|n] (+folded biases)
    whh0_ref,    # (H, 3H)       layer-0 hidden weights, gates concatenated, pre-transposed
    wih1_ref,    # (H, 3H)       layer-1 input  weights, gates concatenated, pre-transposed
    whh1_ref,    # (H, 3H)       layer-1 hidden weights, gates concatenated, pre-transposed
    bias_ref,    # (3, 1, 3H)    f32: [ [0|0|bhh0_n], [b1_r|b1_z|bih1_n], [0|0|bhh1_n] ]
    h1_out_ref,  # (Tc, Bb, H)   output: layer-1 hidden state per timestep (f32)
    h_scr,       # VMEM scratch (2, Bb, H) f32: carried hidden states (layer0, layer1)
):
    # NOTE: the cross-chunk hidden-state carry in h_scr is only correct because
    # the time-chunk axis is the innermost, sequentially executed ("arbitrary")
    # grid axis and it is reset at chunk == 0 for every batch block.
    chunk = pl.program_id(1)

    @pl.when(chunk == 0)
    def _():
        h_scr[...] = jnp.zeros_like(h_scr)

    tc = gi0_ref.shape[0]
    bb = h_scr.shape[1]
    H = h_scr.shape[2]

    # Hoisted once per chunk (NOT per timestep).
    whh0 = whh0_ref[...]
    wih1 = wih1_ref[...]
    whh1 = whh1_ref[...]
    cd = whh0.dtype  # MXU input dtype (bf16 on the fast path, f32 for validation)

    # Hoist the bias broadcasts out of the unrolled loop (no per-step broadcast_in_dim).
    bias_h0 = jnp.broadcast_to(bias_ref[0], (bb, 3 * H))
    bias_x1 = jnp.broadcast_to(bias_ref[1], (bb, 3 * H))
    bias_h1 = jnp.broadcast_to(bias_ref[2], (bb, 3 * H))

    def mm(a, w):
        # bf16 (or f32) MXU inputs, f32 accumulation.
        return jnp.dot(a.astype(cd), w, preferred_element_type=jnp.float32)

    def step(t, carry):
        h0, h1 = carry                                   # f32 (Bb, H)
        gi = gi0_ref[t].astype(jnp.float32)              # (Bb, 3H)

        # ---- layer 0 (x@W_ih + b_ih [+ b_hh for r,z] precomputed outside) ----
        gh0 = mm(h0, whh0) + bias_h0                     # (Bb, 3H): [r|z|n] hidden gates
        r0 = jax.nn.sigmoid(gi[:, :H] + gh0[:, :H])
        z0 = jax.nn.sigmoid(gi[:, H:2 * H] + gh0[:, H:2 * H])
        n0 = jnp.tanh(gi[:, 2 * H:] + r0 * gh0[:, 2 * H:])
        h0n = n0 + z0 * (h0 - n0)                        # == (1-z)*n + z*h

        # ---- layer 1 ----
        gx1 = mm(h0n, wih1) + bias_x1
        gh1 = mm(h1, whh1) + bias_h1
        r1 = jax.nn.sigmoid(gx1[:, :H] + gh1[:, :H])
        z1 = jax.nn.sigmoid(gx1[:, H:2 * H] + gh1[:, H:2 * H])
        n1 = jnp.tanh(gx1[:, 2 * H:] + r1 * gh1[:, 2 * H:])
        h1n = n1 + z1 * (h1 - n1)

        h1_out_ref[t] = h1n.astype(h1_out_ref.dtype)
        return (h0n, h1n)

    # Full unroll for small chunks; partial unroll for big chunks to keep live
    # ranges (weights + hidden states + gate temporaries) inside 64 vregs.
    unroll = True if tc <= 16 else 4
    h0_f, h1_f = lax.fori_loop(0, tc, step, (h_scr[0], h_scr[1]), unroll=unroll)
    h_scr[0] = h0_f
    h_scr[1] = h1_f


# --------------------------- parameter preparation ---------------------------
def _prepare_kernel_params(params, hidden_size, compute_dtype):
    """PyTorch-layout GRU params -> fused (D, 3H) kernel layout (gate order r,z,n)."""
    H = hidden_size
    cd = compute_dtype

    wih0_t = params["weight_ih_l0"].T.astype(cd)   # (F, 3H)
    whh0_t = params["weight_hh_l0"].T.astype(cd)   # (H, 3H)
    wih1_t = params["weight_ih_l1"].T.astype(cd)   # (H, 3H)
    whh1_t = params["weight_hh_l1"].T.astype(cd)   # (H, 3H)

    bih0 = params["bias_ih_l0"]
    bhh0 = params["bias_hh_l0"]
    bih1 = params["bias_ih_l1"]
    bhh1 = params["bias_hh_l1"]

    # Layer-0 input-side bias (folded into gi0): r/z also absorb the hh-bias,
    # the n hh-bias must stay separate (it sits inside r * (h@W_hn + b_hn)).
    gb0 = jnp.concatenate([bih0[:H] + bhh0[:H],
                           bih0[H:2 * H] + bhh0[H:2 * H],
                           bih0[2 * H:]])                          # (3H,)

    zeros_h = jnp.zeros((H,), jnp.float32)
    bias_h0 = jnp.concatenate([zeros_h, zeros_h, bhh0[2 * H:]])    # added to h0@Whh0
    bias_x1 = jnp.concatenate([bih1[:H] + bhh1[:H],
                               bih1[H:2 * H] + bhh1[H:2 * H],
                               bih1[2 * H:]])                      # added to h0'@Wih1
    bias_h1 = jnp.concatenate([zeros_h, zeros_h, bhh1[2 * H:]])    # added to h1@Whh1
    bias3 = jnp.stack([bias_h0, bias_x1, bias_h1])[:, None, :].astype(jnp.float32)

    return wih0_t, gb0.astype(jnp.float32), whh0_t, wih1_t, whh1_t, bias3


# --------------------------------- wrapper -----------------------------------
def sequence_model_forward(x_bft, params, *, time_chunk=16, batch_block=None,
                           compute_dtype=jnp.bfloat16):
    """x_bft: [B, F, T] float32  ->  [B, O, T] float32 (== PyTorch module output).

    compute_dtype: dtype fed to the MXU (weights / hidden states / gi0 stream).
    bf16 (default) is the fast path; f32 reproduces the reference to ~1e-5.
    """
    B, F, T = x_bft.shape
    H = params["weight_hh_l0"].shape[1]
    cd = jnp.dtype(compute_dtype)

    if batch_block is None:
        # Non-degenerate "parallel" axis (nb >= 2) so both v7x TensorCores get work.
        batch_block = B // 2 if (B % 16 == 0) else B
    assert B % batch_block == 0
    # (8,128) rule on the last-two block dims: either full dim or 8-multiple.
    assert batch_block == B or batch_block % 8 == 0
    nb = B // batch_block

    tc = max(1, min(time_chunk, T))
    nchunks = -(-T // tc)
    t_pad = nchunks * tc

    wih0_t, gb0, whh0_t, wih1_t, whh1_t, bias3 = _prepare_kernel_params(params, H, cd)

    # --- hoisted layer-0 input projection: one batched matmul over all T*B rows,
    #     lane-dense gate layout [r|z|n] on the last dim, stored in compute_dtype
    #     (bf16 halves the dominant HBM stream the kernel reads). ---
    xw = jnp.einsum("bft,fk->tbk", x_bft.astype(cd), wih0_t,
                    preferred_element_type=jnp.float32)
    gi0 = (xw + gb0[None, None, :]).astype(cd)                     # (T, B, 3H)
    if t_pad != T:
        # Causal recurrence + zero-padded tail: padded outputs are discarded below.
        gi0 = jnp.pad(gi0, ((0, t_pad - T), (0, 0), (0, 0)))

    h1_all = pl.pallas_call(
        _gru2_recurrence_kernel,
        out_shape=jax.ShapeDtypeStruct((t_pad, B, H), jnp.float32),
        grid=(nb, nchunks),
        in_specs=[
            pl.BlockSpec((tc, batch_block, 3 * H), lambda b, c: (c, b, 0)),  # gi0
            pl.BlockSpec((H, 3 * H), lambda b, c: (0, 0)),                   # whh0
            pl.BlockSpec((H, 3 * H), lambda b, c: (0, 0)),                   # wih1
            pl.BlockSpec((H, 3 * H), lambda b, c: (0, 0)),                   # whh1
            pl.BlockSpec((3, 1, 3 * H), lambda b, c: (0, 0, 0)),             # biases
        ],
        out_specs=pl.BlockSpec((tc, batch_block, H), lambda b, c: (c, b, 0)),
        scratch_shapes=[pltpu.VMEM((2, batch_block, H), jnp.float32)],
        compiler_params=pltpu.CompilerParams(
            # batch blocks are independent -> "parallel" (v7x 2-TC megacore);
            # the time-chunk axis carries the recurrence -> must stay "arbitrary"
            # and must remain the innermost grid axis (state carry in scratch).
            dimension_semantics=("parallel", "arbitrary"),
            # 48 MiB is safe on v7x (64 MiB physical); v5e/v6e (128 MiB) can go
            # higher if time_chunk / batch_block are scaled up.
            vmem_limit_bytes=48 * 1024 * 1024,
        ),
    )(gi0, whh0_t, wih1_t, whh1_t, bias3)

    h1 = h1_all[:T]  # (T, B, H) f32

    # --- hoisted fc_output_layer + Tanh: one batched matmul, emitted directly as
    #     [B, O, T] so no extra transpose / HBM round-trip is needed. ---
    out = jnp.tanh(
        jnp.einsum("tbh,oh->bot", h1.astype(cd), params["fc_weight"].astype(cd),
                   preferred_element_type=jnp.float32)
        + params["fc_bias"][None, :, None])
    return out


# --------------------------- pure-JAX reference -------------------------------
def sequence_model_reference(x_bft, params):
    """Straight port of the PyTorch module (GRU x2 -> Linear -> Tanh), f32."""
    B, F, T = x_bft.shape
    H = params["weight_hh_l0"].shape[1]
    x = jnp.transpose(x_bft, (2, 0, 1))  # [T, B, F]  (== x.permute(2,0,1))

    def run_layer(seq, wih, whh, bih, bhh):
        def step(h, xt):
            gi = xt @ wih.T + bih
            gh = h @ whh.T + bhh
            r = jax.nn.sigmoid(gi[:, :H] + gh[:, :H])
            z = jax.nn.sigmoid(gi[:, H:2 * H] + gh[:, H:2 * H])
            n = jnp.tanh(gi[:, 2 * H:] + r * gh[:, 2 * H:])
            h_new = (1.0 - z) * n + z * h
            return h_new, h_new

        h0 = jnp.zeros((seq.shape[1], H), jnp.float32)
        _, ys = lax.scan(step, h0, seq)
        return ys

    y = run_layer(x, params["weight_ih_l0"], params["weight_hh_l0"],
                  params["bias_ih_l0"], params["bias_hh_l0"])
    y = run_layer(y, params["weight_ih_l1"], params["weight_hh_l1"],
                  params["bias_ih_l1"], params["bias_hh_l1"])
    o = jnp.tanh(y @ params["fc_weight"].T + params["fc_bias"])
    return jnp.transpose(o, (1, 2, 0))  # [B, O, T]


# ------------------------------ param init ------------------------------------
def init_params(key, input_size, hidden_size, output_size):
    """PyTorch-layout params, U(-1/sqrt(H), 1/sqrt(H)) like nn.GRU / nn.Linear."""
    H = hidden_size
    k = 1.0 / jnp.sqrt(jnp.float32(H))
    keys = jax.random.split(key, 10)
    u = lambda kk, shape: jax.random.uniform(kk, shape, jnp.float32, -k, k)
    return {
        "weight_ih_l0": u(keys[0], (3 * H, input_size)),
        "weight_hh_l0": u(keys[1], (3 * H, H)),
        "bias_ih_l0": u(keys[2], (3 * H,)),
        "bias_hh_l0": u(keys[3], (3 * H,)),
        "weight_ih_l1": u(keys[4], (3 * H, H)),
        "weight_hh_l1": u(keys[5], (3 * H, H)),
        "bias_ih_l1": u(keys[6], (3 * H,)),
        "bias_hh_l1": u(keys[7], (3 * H,)),
        "fc_weight": u(keys[8], (output_size, H)),
        "fc_bias": u(keys[9], (output_size,)),
    }


# ---------------------------------- main ---------------------------------------
if __name__ == "__main__":
    # Only used by the validation harness: keeps the f32 path / reference matmuls
    # at full precision so the strict comparison is tight.  The bf16 fast path
    # casts its MXU inputs explicitly and is unaffected.
    jax.config.update("jax_default_matmul_precision", "highest")

    B, F, T = 2, 16, 32          # x: [B, F, T]   (small toy shapes)
    H = 32                       # hidden_size
    O = F                        # output_size == input_size (mask prediction)

    key = jax.random.PRNGKey(0)
    kx, kp = jax.random.split(key)
    x = jax.random.normal(kx, (B, F, T), jnp.float32)
    params = init_params(kp, F, H, O)

    ref = jax.block_until_ready(sequence_model_reference(x, params))

    # 1) exact-precision path: strict check against the pure-JAX module port.
    fwd_f32 = jax.jit(functools.partial(sequence_model_forward,
                                        compute_dtype=jnp.float32))
    out_f32 = jax.block_until_ready(fwd_f32(x, params))
    assert out_f32.shape == (B, O, T), out_f32.shape
    err32 = float(jnp.max(jnp.abs(out_f32 - ref)))
    assert err32 < 1e-4, f"f32 path max abs err {err32}"

    # 2) production path: bf16 MXU inputs (weights / hidden / gi0), f32 gate math.
    fwd_bf16 = jax.jit(functools.partial(sequence_model_forward,
                                         compute_dtype=jnp.bfloat16))
    out_bf16 = jax.block_until_ready(fwd_bf16(x, params))
    assert out_bf16.shape == (B, O, T), out_bf16.shape
    errbf = float(jnp.max(jnp.abs(out_bf16 - ref)))
    assert errbf < 0.2, f"bf16 path max abs err {errbf}"

    print("KERNEL_OK")
</pallas_src>

<mosaic_0001>
module attributes {stable_mosaic.version = 11 : i64} {
  func.func @_gru2_recurrence_kernel(%arg0: i32, %arg1: i32, %arg2: memref<16x2x96xf32, #tpu.memory_space<vmem>>, %arg3: memref<32x96xf32, #tpu.memory_space<vmem>>, %arg4: memref<32x96xf32, #tpu.memory_space<vmem>>, %arg5: memref<32x96xf32, #tpu.memory_space<vmem>>, %arg6: memref<3x1x96xf32, #tpu.memory_space<vmem>>, %arg7: memref<16x2x32xf32, #tpu.memory_space<vmem>>, %arg8: memref<2x2x32xf32, #tpu.memory_space<vmem>>) attributes {dimension_semantics = [#tpu.dimension_semantics<parallel>, #tpu.dimension_semantics<arbitrary>], iteration_bounds = array<i64: 1, 2>, scalar_prefetch = 0 : i64, scratch_operands = 1 : i64, tpu.core_type = #tpu.core_type<tc>, window_params = [{transform_indices = @transform_0, window_bounds = array<i64: 16, 2, 96>}, {pipeline_mode = #tpu.pipeline_mode<synchronous>, transform_indices = @transform_1, window_bounds = array<i64: 32, 96>}, {pipeline_mode = #tpu.pipeline_mode<synchronous>, transform_indices = @transform_2, window_bounds = array<i64: 32, 96>}, {pipeline_mode = #tpu.pipeline_mode<synchronous>, transform_indices = @transform_3, window_bounds = array<i64: 32, 96>}, {pipeline_mode = #tpu.pipeline_mode<synchronous>, transform_indices = @transform_4, window_bounds = array<i64: 3, 1, 96>}, {transform_indices = @transform_5, window_bounds = array<i64: 16, 2, 32>}]} {
    %c0_i32 = arith.constant 0 : i32
    %0 = arith.cmpi eq, %arg1, %c0_i32 : i32
    %1 = arith.extui %0 : i1 to i32
    %c0_i32_0 = arith.constant 0 : i32
    %2 = arith.cmpi ne, %1, %c0_i32_0 : i32
    scf.if %2 {
      %cst_201 = arith.constant 0.000000e+00 : f32
      %1004 = vector.broadcast %cst_201 : f32 to vector<2x2x32xf32>
      %c0_202 = arith.constant 0 : index
      %c0_203 = arith.constant 0 : index
      %c0_204 = arith.constant 0 : index
      %1005 = vector.load %arg8[%c0_202, %c0_203, %c0_204] : memref<2x2x32xf32, #tpu.memory_space<vmem>>, vector<2x2x32xf32>
      tpu.vector_store %arg8[%c0_202, %c0_203, %c0_204], %1004 {strides = array<i32>} : memref<2x2x32xf32, #tpu.memory_space<vmem>>, vector<2x2x32xf32>,
    } else {
    }
    %c0 = arith.constant 0 : index
    %c0_1 = arith.constant 0 : index
    %3 = vector.load %arg3[%c0, %c0_1] : memref<32x96xf32, #tpu.memory_space<vmem>>, vector<32x96xf32>
    %c0_2 = arith.constant 0 : index
    %c0_3 = arith.constant 0 : index
    %4 = vector.load %arg4[%c0_2, %c0_3] : memref<32x96xf32, #tpu.memory_space<vmem>>, vector<32x96xf32>
    %c0_4 = arith.constant 0 : index
    %c0_5 = arith.constant 0 : index
    %5 = vector.load %arg5[%c0_4, %c0_5] : memref<32x96xf32, #tpu.memory_space<vmem>>, vector<32x96xf32>
    %c0_6 = arith.constant 0 : index
    %c0_7 = arith.constant 0 : index
    %c0_8 = arith.constant 0 : index
    %6 = vector.load %arg6[%c0_6, %c0_7, %c0_8] : memref<3x1x96xf32, #tpu.memory_space<vmem>>, vector<1x1x96xf32>
    %7 = vector.shape_cast %6 : vector<1x1x96xf32> to vector<1x96xf32>
    %8 = vector.shape_cast %7 : vector<1x96xf32> to vector<1x96xf32>
    %9 = vector.broadcast %8 : vector<1x96xf32> to vector<2x96xf32>
    %c1 = arith.constant 1 : index
    %c0_9 = arith.constant 0 : index
    %c0_10 = arith.constant 0 : index
    %10 = vector.load %arg6[%c1, %c0_9, %c0_10] : memref<3x1x96xf32, #tpu.memory_space<vmem>>, vector<1x1x96xf32>
    %11 = vector.shape_cast %10 : vector<1x1x96xf32> to vector<1x96xf32>
    %12 = vector.shape_cast %11 : vector<1x96xf32> to vector<1x96xf32>
    %13 = vector.broadcast %12 : vector<1x96xf32> to vector<2x96xf32>
    %c2 = arith.constant 2 : index
    %c0_11 = arith.constant 0 : index
    %c0_12 = arith.constant 0 : index
    %14 = vector.load %arg6[%c2, %c0_11, %c0_12] : memref<3x1x96xf32, #tpu.memory_space<vmem>>, vector<1x1x96xf32>
    %15 = vector.shape_cast %14 : vector<1x1x96xf32> to vector<1x96xf32>
    %16 = vector.shape_cast %15 : vector<1x96xf32> to vector<1x96xf32>
    %17 = vector.broadcast %16 : vector<1x96xf32> to vector<2x96xf32>
    %c0_13 = arith.constant 0 : index
    %c0_14 = arith.constant 0 : index
    %c0_15 = arith.constant 0 : index
    %18 = vector.load %arg8[%c0_13, %c0_14, %c0_15] : memref<2x2x32xf32, #tpu.memory_space<vmem>>, vector<1x2x32xf32>
    %19 = vector.shape_cast %18 : vector<1x2x32xf32> to vector<2x32xf32>
    %c1_16 = arith.constant 1 : index
    %c0_17 = arith.constant 0 : index
    %c0_18 = arith.constant 0 : index
    %20 = vector.load %arg8[%c1_16, %c0_17, %c0_18] : memref<2x2x32xf32, #tpu.memory_space<vmem>>, vector<1x2x32xf32>
    %21 = vector.shape_cast %20 : vector<1x2x32xf32> to vector<2x32xf32>
    %c0_i32_19 = arith.constant 0 : i32
    %22 = arith.index_cast %c0_i32_19 : i32 to index
    %c0_20 = arith.constant 0 : index
    %c0_21 = arith.constant 0 : index
    %23 = vector.load %arg2[%22, %c0_20, %c0_21] : memref<16x2x96xf32, #tpu.memory_space<vmem>>, vector<1x2x96xf32>
    %24 = vector.shape_cast %23 : vector<1x2x96xf32> to vector<2x96xf32>
    %cst = arith.constant dense<0.000000e+00> : vector<2x96xf32>
    %25 = tpu.matmul %19, %3, %cst {dimension_numbers = #tpu.dot_dimension_numbers<[1], [0], [0], [1], [0, 0, 1, 1], [], []>, precision = #tpu.contract_precision<fp32>} : vector<2x32xf32>, vector<32x96xf32>, vector<2x96xf32> -> vector<2x96xf32>
    %26 = arith.addf %25, %9 : vector<2x96xf32>
    %27 = vector.extract_strided_slice %24 {offsets = [0, 0], sizes = [2, 32], strides = [1, 1]} : vector<2x96xf32> to vector<2x32xf32>
    %28 = vector.extract_strided_slice %26 {offsets = [0, 0], sizes = [2, 32], strides = [1, 1]} : vector<2x96xf32> to vector<2x32xf32>
    %29 = arith.addf %27, %28 : vector<2x32xf32>
    %30 = arith.negf %29 : vector<2x32xf32>
    %31 = math.exp %30 : vector<2x32xf32>
    %cst_22 = arith.constant 1.000000e+00 : f32
    %32 = vector.broadcast %cst_22 : f32 to vector<2x32xf32>
    %33 = arith.addf %32, %31 : vector<2x32xf32>
    %34 = arith.divf %32, %33 : vector<2x32xf32>
    %35 = vector.extract_strided_slice %24 {offsets = [0, 32], sizes = [2, 32], strides = [1, 1]} : vector<2x96xf32> to vector<2x32xf32>
    %36 = vector.extract_strided_slice %26 {offsets = [0, 32], sizes = [2, 32], strides = [1, 1]} : vector<2x96xf32> to vector<2x32xf32>
    %37 = arith.addf %35, %36 : vector<2x32xf32>
    %38 = arith.negf %37 : vector<2x32xf32>
    %39 = math.exp %38 : vector<2x32xf32>
    %cst_23 = arith.constant 1.000000e+00 : f32
    %40 = vector.broadcast %cst_23 : f32 to vector<2x32xf32>
    %41 = arith.addf %40, %39 : vector<2x32xf32>
    %42 = arith.divf %40, %41 : vector<2x32xf32>
    %43 = vector.extract_strided_slice %24 {offsets = [0, 64], sizes = [2, 32], strides = [1, 1]} : vector<2x96xf32> to vector<2x32xf32>
    %44 = vector.extract_strided_slice %26 {offsets = [0, 64], sizes = [2, 32], strides = [1, 1]} : vector<2x96xf32> to vector<2x32xf32>
    %45 = arith.mulf %34, %44 : vector<2x32xf32>
    %46 = arith.addf %43, %45 : vector<2x32xf32>
    %47 = math.tanh %46 : vector<2x32xf32>
    %48 = arith.subf %19, %47 : vector<2x32xf32>
    %49 = arith.mulf %42, %48 : vector<2x32xf32>
    %50 = arith.addf %47, %49 : vector<2x32xf32>
    %cst_24 = arith.constant dense<0.000000e+00> : vector<2x96xf32>
    %51 = tpu.matmul %50, %4, %cst_24 {dimension_numbers = #tpu.dot_dimension_numbers<[1], [0], [0], [1], [0, 0, 1, 1], [], []>, precision = #tpu.contract_precision<fp32>} : vector<2x32xf32>, vector<32x96xf32>, vector<2x96xf32> -> vector<2x96xf32>
    %52 = arith.addf %51, %13 : vector<2x96xf32>
    %cst_25 = arith.constant dense<0.000000e+00> : vector<2x96xf32>
    %53 = tpu.matmul %21, %5, %cst_25 {dimension_numbers = #tpu.dot_dimension_numbers<[1], [0], [0], [1], [0, 0, 1, 1], [], []>, precision = #tpu.contract_precision<fp32>} : vector<2x32xf32>, vector<32x96xf32>, vector<2x96xf32> -> vector<2x96xf32>
    %54 = arith.addf %53, %17 : vector<2x96xf32>
    %55 = vector.extract_strided_slice %52 {offsets = [0, 0], sizes = [2, 32], strides = [1, 1]} : vector<2x96xf32> to vector<2x32xf32>
    %56 = vector.extract_strided_slice %54 {offsets = [0, 0], sizes = [2, 32], strides = [1, 1]} : vector<2x96xf32> to vector<2x32xf32>
    %57 = arith.addf %55, %56 : vector<2x32xf32>
    %58 = arith.negf %57 : vector<2x32xf32>
    %59 = math.exp %58 : vector<2x32xf32>
    %cst_26 = arith.constant 1.000000e+00 : f32
    %60 = vector.broadcast %cst_26 : f32 to vector<2x32xf32>
    %61 = arith.addf %60, %59 : vector<2x32xf32>
    %62 = arith.divf %60, %61 : vector<2x32xf32>
    %63 = vector.extract_strided_slice %52 {offsets = [0, 32], sizes = [2, 32], strides = [1, 1]} : vector<2x96xf32> to vector<2x32xf32>
    %64 = vector.extract_strided_slice %54 {offsets = [0, 32], sizes = [2, 32], strides = [1, 1]} : vector<2x96xf32> to vector<2x32xf32>
    %65 = arith.addf %63, %64 : vector<2x32xf32>
    %66 = arith.negf %65 : vector<2x32xf32>
    %67 = math.exp %66 : vector<2x32xf32>
    %cst_27 = arith.constant 1.000000e+00 : f32
    %68 = vector.broadcast %cst_27 : f32 to vector<2x32xf32>
    %69 = arith.addf %68, %67 : vector<2x32xf32>
    %70 = arith.divf %68, %69 : vector<2x32xf32>
    %71 = vector.extract_strided_slice %52 {offsets = [0, 64], sizes = [2, 32], strides = [1, 1]} : vector<2x96xf32> to vector<2x32xf32>
    %72 = vector.extract_strided_slice %54 {offsets = [0, 64], sizes = [2, 32], strides = [1, 1]} : vector<2x96xf32> to vector<2x32xf32>
    %73 = arith.mulf %62, %72 : vector<2x32xf32>
    %74 = arith.addf %71, %73 : vector<2x32xf32>
    %75 = math.tanh %74 : vector<2x32xf32>
    %76 = arith.subf %21, %75 : vector<2x32xf32>
    %77 = arith.mulf %70, %76 : vector<2x32xf32>
    %78 = arith.addf %75, %77 : vector<2x32xf32>
    %79 = arith.index_cast %c0_i32_19 : i32 to index
    %c0_28 = arith.constant 0 : index
    %c0_29 = arith.constant 0 : index
    %80 = vector.load %arg7[%79, %c0_28, %c0_29] : memref<16x2x32xf32, #tpu.memory_space<vmem>>, vector<1x2x32xf32>
    %81 = vector.shape_cast %80 : vector<1x2x32xf32> to vector<2x32xf32>
    %82 = vector.shape_cast %78 : vector<2x32xf32> to vector<1x2x32xf32>
    tpu.vector_store %arg7[%79, %c0_28, %c0_29], %82 {strides = array<i32>} : memref<16x2x32xf32, #tpu.memory_space<vmem>>, vector<1x2x32xf32>,
    %c1_i32 = arith.constant 1 : i32
    %83 = arith.index_cast %c1_i32 : i32 to index
    %c0_30 = arith.constant 0 : index
    %c0_31 = arith.constant 0 : index
    %84 = vector.load %arg2[%83, %c0_30, %c0_31] : memref<16x2x96xf32, #tpu.memory_space<vmem>>, vector<1x2x96xf32>
    %85 = vector.shape_cast %84 : vector<1x2x96xf32> to vector<2x96xf32>
    %cst_32 = arith.constant dense<0.000000e+00> : vector<2x96xf32>
    %86 = tpu.matmul %50, %3, %cst_32 {dimension_numbers = #tpu.dot_dimension_numbers<[1], [0], [0], [1], [0, 0, 1, 1], [], []>, precision = #tpu.contract_precision<fp32>} : vector<2x32xf32>, vector<32x96xf32>, vector<2x96xf32> -> vector<2x96xf32>
    %87 = arith.addf %86, %9 : vector<2x96xf32>
    %88 = vector.extract_strided_slice %85 {offsets = [0, 0], sizes = [2, 32], strides = [1, 1]} : vector<2x96xf32> to vector<2x32xf32>
    %89 = vector.extract_strided_slice %87 {offsets = [0, 0], sizes = [2, 32], strides = [1, 1]} : vector<2x96xf32> to vector<2x32xf32>
    %90 = arith.addf %88, %89 : vector<2x32xf32>
    %91 = arith.negf %90 : vector<2x32xf32>
    %92 = math.exp %91 : vector<2x32xf32>
    %cst_33 = arith.constant 1.000000e+00 : f32
    %93 = vector.broadcast %cst_33 : f32 to vector<2x32xf32>
    %94 = arith.addf %93, %92 : vector<2x32xf32>
    %95 = arith.divf %93, %94 : vector<2x32xf32>
    %96 = vector.extract_strided_slice %85 {offsets = [0, 32], sizes = [2, 32], strides = [1, 1]} : vector<2x96xf32> to vector<2x32xf32>
    %97 = vector.extract_strided_slice %87 {offsets = [0, 32], sizes = [2, 32], strides = [1, 1]} : vector<2x96xf32> to vector<2x32xf32>
    %98 = arith.addf %96, %97 : vector<2x32xf32>
    %99 = arith.negf %98 : vector<2x32xf32>
    %100 = math.exp %99 : vector<2x32xf32>
    %cst_34 = arith.constant 1.000000e+00 : f32
    %101 = vector.broadcast %cst_34 : f32 to vector<2x32xf32>
    %102 = arith.addf %101, %100 : vector<2x32xf32>
    %103 = arith.divf %101, %102 : vector<2x32xf32>
    %104 = vector.extract_strided_slice %85 {offsets = [0, 64], sizes = [2, 32], strides = [1, 1]} : vector<2x96xf32> to vector<2x32xf32>
    %105 = vector.extract_strided_slice %87 {offsets = [0, 64], sizes = [2, 32], strides = [1, 1]} : vector<2x96xf32> to vector<2x32xf32>
    %106 = arith.mulf %95, %105 : vector<2x32xf32>
    %107 = arith.addf %104, %106 : vector<2x32xf32>
    %108 = math.tanh %107 : vector<2x32xf32>
    %109 = arith.subf %50, %108 : vector<2x32xf32>
    %110 = arith.mulf %103, %109 : vector<2x32xf32>
    %111 = arith.addf %108, %110 : vector<2x32xf32>
    %cst_35 = arith.constant dense<0.000000e+00> : vector<2x96xf32>
    %112 = tpu.matmul %111, %4, %cst_35 {dimension_numbers = #tpu.dot_dimension_numbers<[1], [0], [0], [1], [0, 0, 1, 1], [], []>, precision = #tpu.contract_precision<fp32>} : vector<2x32xf32>, vector<32x96xf32>, vector<2x96xf32> -> vector<2x96xf32>
    %113 = arith.addf %112, %13 : vector<2x96xf32>
    %cst_36 = arith.constant dense<0.000000e+00> : vector<2x96xf32>
    %114 = tpu.matmul %78, %5, %cst_36 {dimension_numbers = #tpu.dot_dimension_numbers<[1], [0], [0], [1], [0, 0, 1, 1], [], []>, precision = #tpu.contract_precision<fp32>} : vector<2x32xf32>, vector<32x96xf32>, vector<2x96xf32> -> vector<2x96xf32>
    %115 = arith.addf %114, %17 : vector<2x96xf32>
    %116 = vector.extract_strided_slice %113 {offsets = [0, 0], sizes = [2, 32], strides = [1, 1]} : vector<2x96xf32> to vector<2x32xf32>
    %117 = vector.extract_strided_slice %115 {offsets = [0, 0], sizes = [2, 32], strides = [1, 1]} : vector<2x96xf32> to vector<2x32xf32>
    %118 = arith.addf %116, %117 : vector<2x32xf32>
    %119 = arith.negf %118 : vector<2x32xf32>
    %120 = math.exp %119 : vector<2x32xf32>
    %cst_37 = arith.constant 1.000000e+00 : f32
    %121 = vector.broadcast %cst_37 : f32 to vector<2x32xf32>
    %122 = arith.addf %121, %120 : vector<2x32xf32>
    %123 = arith.divf %121, %122 : vector<2x32xf32>
    %124 = vector.extract_strided_slice %113 {offsets = [0, 32], sizes = [2, 32], strides = [1, 1]} : vector<2x96xf32> to vector<2x32xf32>
    %125 = vector.extract_strided_slice %115 {offsets = [0, 32], sizes = [2, 32], strides = [1, 1]} : vector<2x96xf32> to vector<2x32xf32>
    %126 = arith.addf %124, %125 : vector<2x32xf32>
    %127 = arith.negf %126 : vector<2x32xf32>
    %128 = math.exp %127 : vector<2x32xf32>
    %cst_38 = arith.constant 1.000000e+00 : f32
    %129 = vector.broadcast %cst_38 : f32 to vector<2x32xf32>
    %130 = arith.addf %129, %128 : vector<2x32xf32>
    %131 = arith.divf %129, %130 : vector<2x32xf32>
    %132 = vector.extract_strided_slice %113 {offsets = [0, 64], sizes = [2, 32], strides = [1, 1]} : vector<2x96xf32> to vector<2x32xf32>
    %133 = vector.extract_strided_slice %115 {offsets = [0, 64], sizes = [2, 32], strides = [1, 1]} : vector<2x96xf32> to vector<2x32xf32>
    %134 = arith.mulf %123, %133 : vector<2x32xf32>
    %135 = arith.addf %132, %134 : vector<2x32xf32>
    %136 = math.tanh %135 : vector<2x32xf32>
    %137 = arith.subf %78, %136 : vector<2x32xf32>
    %138 = arith.mulf %131, %137 : vector<2x32xf32>
    %139 = arith.addf %136, %138 : vector<2x32xf32>
    %140 = arith.index_cast %c1_i32 : i32 to index
    %c0_39 = arith.constant 0 : index
    %c0_40 = arith.constant 0 : index
    %141 = vector.load %arg7[%140, %c0_39, %c0_40] : memref<16x2x32xf32, #tpu.memory_space<vmem>>, vector<1x2x32xf32>
    %142 = vector.shape_cast %141 : vector<1x2x32xf32> to vector<2x32xf32>
    %143 = vector.shape_cast %139 : vector<2x32xf32> to vector<1x2x32xf32>
    tpu.vector_store %arg7[%140, %c0_39, %c0_40], %143 {strides = array<i32>} : memref<16x2x32xf32, #tpu.memory_space<vmem>>, vector<1x2x32xf32>,
    %c2_i32 = arith.constant 2 : i32
    %144 = arith.index_cast %c2_i32 : i32 to index
    %c0_41 = arith.constant 0 : index
    %c0_42 = arith.constant 0 : index
    %145 = vector.load %arg2[%144, %c0_41, %c0_42] : memref<16x2x96xf32, #tpu.memory_space<vmem>>, vector<1x2x96xf32>
    %146 = vector.shape_cast %145 : vector<1x2x96xf32> to vector<2x96xf32>
    %cst_43 = arith.constant dense<0.000000e+00> : vector<2x96xf32>
    %147 = tpu.matmul %111, %3, %cst_43 {dimension_numbers = #tpu.dot_dimension_numbers<[1], [0], [0], [1], [0, 0, 1, 1], [], []>, precision = #tpu.contract_precision<fp32>} : vector<2x32xf32>, vector<32x96xf32>, vector<2x96xf32> -> vector<2x96xf32>
    %148 = arith.addf %147, %9 : vector<2x96xf32>
    %149 = vector.extract_strided_slice %146 {offsets = [0, 0], sizes = [2, 32], strides = [1, 1]} : vector<2x96xf32> to vector<2x32xf32>
    %150 = vector.extract_strided_slice %148 {offsets = [0, 0], sizes = [2, 32], strides = [1, 1]} : vector<2x96xf32> to vector<2x32xf32>
    %151 = arith.addf %149, %150 : vector<2x32xf32>
    %152 = arith.negf %151 : vector<2x32xf32>
    %153 = math.exp %152 : vector<2x32xf32>
    %cst_44 = arith.constant 1.000000e+00 : f32
    %154 = vector.broadcast %cst_44 : f32 to vector<2x32xf32>
    %155 = arith.addf %154, %153 : vector<2x32xf32>
    %156 = arith.divf %154, %155 : vector<2x32xf32>
    %157 = vector.extract_strided_slice %146 {offsets = [0, 32], sizes = [2, 32], strides = [1, 1]} : vector<2x96xf32> to vector<2x32xf32>
    %158 = vector.extract_strided_slice %148 {offsets = [0, 32], sizes = [2, 32], strides = [1, 1]} : vector<2x96xf32> to vector<2x32xf32>
    %159 = arith.addf %157, %158 : vector<2x32xf32>
    %160 = arith.negf %159 : vector<2x32xf32>
    %161 = math.exp %160 : vector<2x32xf32>
    %cst_45 = arith.constant 1.000000e+00 : f32
    %162 = vector.broadcast %cst_45 : f32 to vector<2x32xf32>
    %163 = arith.addf %162, %161 : vector<2x32xf32>
    %164 = arith.divf %162, %163 : vector<2x32xf32>
    %165 = vector.extract_strided_slice %146 {offsets = [0, 64], sizes = [2, 32], strides = [1, 1]} : vector<2x96xf32> to vector<2x32xf32>
    %166 = vector.extract_strided_slice %148 {offsets = [0, 64], sizes = [2, 32], strides = [1, 1]} : vector<2x96xf32> to vector<2x32xf32>
    %167 = arith.mulf %156, %166 : vector<2x32xf32>
    %168 = arith.addf %165, %167 : vector<2x32xf32>
    %169 = math.tanh %168 : vector<2x32xf32>
    %170 = arith.subf %111, %169 : vector<2x32xf32>
    %171 = arith.mulf %164, %170 : vector<2x32xf32>
    %172 = arith.addf %169, %171 : vector<2x32xf32>
    %cst_46 = arith.constant dense<0.000000e+00> : vector<2x96xf32>
    %173 = tpu.matmul %172, %4, %cst_46 {dimension_numbers = #tpu.dot_dimension_numbers<[1], [0], [0], [1], [0, 0, 1, 1], [], []>, precision = #tpu.contract_precision<fp32>} : vector<2x32xf32>, vector<32x96xf32>, vector<2x96xf32> -> vector<2x96xf32>
    %174 = arith.addf %173, %13 : vector<2x96xf32>
    %cst_47 = arith.constant dense<0.000000e+00> : vector<2x96xf32>
    %175 = tpu.matmul %139, %5, %cst_47 {dimension_numbers = #tpu.dot_dimension_numbers<[1], [0], [0], [1], [0, 0, 1, 1], [], []>, precision = #tpu.contract_precision<fp32>} : vector<2x32xf32>, vector<32x96xf32>, vector<2x96xf32> -> vector<2x96xf32>
    %176 = arith.addf %175, %17 : vector<2x96xf32>
    %177 = vector.extract_strided_slice %174 {offsets = [0, 0], sizes = [2, 32], strides = [1, 1]} : vector<2x96xf32> to vector<2x32xf32>
    %178 = vector.extract_strided_slice %176 {offsets = [0, 0], sizes = [2, 32], strides = [1, 1]} : vector<2x96xf32> to vector<2x32xf32>
    %179 = arith.addf %177, %178 : vector<2x32xf32>
    %180 = arith.negf %179 : vector<2x32xf32>
    %181 = math.exp %180 : vector<2x32xf32>
    %cst_48 = arith.constant 1.000000e+00 : f32
    %182 = vector.broadcast %cst_48 : f32 to vector<2x32xf32>
    %183 = arith.addf %182, %181 : vector<2x32xf32>
    %184 = arith.divf %182, %183 : vector<2x32xf32>
    %185 = vector.extract_strided_slice %174 {offsets = [0, 32], sizes = [2, 32], strides = [1, 1]} : vector<2x96xf32> to vector<2x32xf32>
    %186 = vector.extract_strided_slice %176 {offsets = [0, 32], sizes = [2, 32], strides = [1, 1]} : vector<2x96xf32> to vector<2x32xf32>
    %187 = arith.addf %185, %186 : vector<2x32xf32>
    %188 = arith.negf %187 : vector<2x32xf32>
    %189 = math.exp %188 : vector<2x32xf32>
    %cst_49 = arith.constant 1.000000e+00 : f32
    %190 = vector.broadcast %cst_49 : f32 to vector<2x32xf32>
    %191 = arith.addf %190, %189 : vector<2x32xf32>
    %192 = arith.divf %190, %191 : vector<2x32xf32>
    %193 = vector.extract_strided_slice %174 {offsets = [0, 64], sizes = [2, 32], strides = [1, 1]} : vector<2x96xf32> to vector<2x32xf32>
    %194 = vector.extract_strided_slice %176 {offsets = [0, 64], sizes = [2, 32], strides = [1, 1]} : vector<2x96xf32> to vector<2x32xf32>
    %195 = arith.mulf %184, %194 : vector<2x32xf32>
    %196 = arith.addf %193, %195 : vector<2x32xf32>
    %197 = math.tanh %196 : vector<2x32xf32>
    %198 = arith.subf %139, %197 : vector<2x32xf32>
    %199 = arith.mulf %192, %198 : vector<2x32xf32>
    %200 = arith.addf %197, %199 : vector<2x32xf32>
    %201 = arith.index_cast %c2_i32 : i32 to index
    %c0_50 = arith.constant 0 : index
    %c0_51 = arith.constant 0 : index
    %202 = vector.load %arg7[%201, %c0_50, %c0_51] : memref<16x2x32xf32, #tpu.memory_space<vmem>>, vector<1x2x32xf32>
    %203 = vector.shape_cast %202 : vector<1x2x32xf32> to vector<2x32xf32>
    %204 = vector.shape_cast %200 : vector<2x32xf32> to vector<1x2x32xf32>
    tpu.vector_store %arg7[%201, %c0_50, %c0_51], %204 {strides = array<i32>} : memref<16x2x32xf32, #tpu.memory_space<vmem>>, vector<1x2x32xf32>,
    %c3_i32 = arith.constant 3 : i32
    %205 = arith.index_cast %c3_i32 : i32 to index
    %c0_52 = arith.constant 0 : index
    %c0_53 = arith.constant 0 : index
    %206 = vector.load %arg2[%205, %c0_52, %c0_53] : memref<16x2x96xf32, #tpu.memory_space<vmem>>, vector<1x2x96xf32>
    %207 = vector.shape_cast %206 : vector<1x2x96xf32> to vector<2x96xf32>
    %cst_54 = arith.constant dense<0.000000e+00> : vector<2x96xf32>
    %208 = tpu.matmul %172, %3, %cst_54 {dimension_numbers = #tpu.dot_dimension_numbers<[1], [0], [0], [1], [0, 0, 1, 1], [], []>, precision = #tpu.contract_precision<fp32>} : vector<2x32xf32>, vector<32x96xf32>, vector<2x96xf32> -> vector<2x96xf32>
    %209 = arith.addf %208, %9 : vector<2x96xf32>
    %210 = vector.extract_strided_slice %207 {offsets = [0, 0], sizes = [2, 32], strides = [1, 1]} : vector<2x96xf32> to vector<2x32xf32>
    %211 = vector.extract_strided_slice %209 {offsets = [0, 0], sizes = [2, 32], strides = [1, 1]} : vector<2x96xf32> to vector<2x32xf32>
    %212 = arith.addf %210, %211 : vector<2x32xf32>
    %213 = arith.negf %212 : vector<2x32xf32>
    %214 = math.exp %213 : vector<2x32xf32>
    %cst_55 = arith.constant 1.000000e+00 : f32
    %215 = vector.broadcast %cst_55 : f32 to vector<2x32xf32>
    %216 = arith.addf %215, %214 : vector<2x32xf32>
    %217 = arith.divf %215, %216 : vector<2x32xf32>
    %218 = vector.extract_strided_slice %207 {offsets = [0, 32], sizes = [2, 32], strides = [1, 1]} : vector<2x96xf32> to vector<2x32xf32>
    %219 = vector.extract_strided_slice %209 {offsets = [0, 32], sizes = [2, 32], strides = [1, 1]} : vector<2x96xf32> to vector<2x32xf32>
    %220 = arith.addf %218, %219 : vector<2x32xf32>
    %221 = arith.negf %220 : vector<2x32xf32>
    %222 = math.exp %221 : vector<2x32xf32>
    %cst_56 = arith.constant 1.000000e+00 : f32
    %223 = vector.broadcast %cst_56 : f32 to vector<2x32xf32>
    %224 = arith.addf %223, %222 : vector<2x32xf32>
    %225 = arith.divf %223, %224 : vector<2x32xf32>
    %226 = vector.extract_strided_slice %207 {offsets = [0, 64], sizes = [2, 32], strides = [1, 1]} : vector<2x96xf32> to vector<2x32xf32>
    %227 = vector.extract_strided_slice %209 {offsets = [0, 64], sizes = [2, 32], strides = [1, 1]} : vector<2x96xf32> to vector<2x32xf32>
    %228 = arith.mulf %217, %227 : vector<2x32xf32>
    %229 = arith.addf %226, %228 : vector<2x32xf32>
    %230 = math.tanh %229 : vector<2x32xf32>
    %231 = arith.subf %172, %230 : vector<2x32xf32>
    %232 = arith.mulf %225, %231 : vector<2x32xf32>
    %233 = arith.addf %230, %232 : vector<2x32xf32>
    %cst_57 = arith.constant dense<0.000000e+00> : vector<2x96xf32>
    %234 = tpu.matmul %233, %4, %cst_57 {dimension_numbers = #tpu.dot_dimension_numbers<[1], [0], [0], [1], [0, 0, 1, 1], [], []>, precision = #tpu.contract_precision<fp32>} : vector<2x32xf32>, vector<32x96xf32>, vector<2x96xf32> -> vector<2x96xf32>
    %235 = arith.addf %234, %13 : vector<2x96xf32>
    %cst_58 = arith.constant dense<0.000000e+00> : vector<2x96xf32>
    %236 = tpu.matmul %200, %5, %cst_58 {dimension_numbers = #tpu.dot_dimension_numbers<[1], [0], [0], [1], [0, 0, 1, 1], [], []>, precision = #tpu.contract_precision<fp32>} : vector<2x32xf32>, vector<32x96xf32>, vector<2x96xf32> -> vector<2x96xf32>
    %237 = arith.addf %236, %17 : vector<2x96xf32>
    %238 = vector.extract_strided_slice %235 {offsets = [0, 0], sizes = [2, 32], strides = [1, 1]} : vector<2x96xf32> to vector<2x32xf32>
    %239 = vector.extract_strided_slice %237 {offsets = [0, 0], sizes = [2, 32], strides = [1, 1]} : vector<2x96xf32> to vector<2x32xf32>
    %240 = arith.addf %238, %239 : vector<2x32xf32>
    %241 = arith.negf %240 : vector<2x32xf32>
    %242 = math.exp %241 : vector<2x32xf32>
    %cst_59 = arith.constant 1.000000e+00 : f32
    %243 = vector.broadcast %cst_59 : f32 to vector<2x32xf32>
    %244 = arith.addf %243, %242 : vector<2x32xf32>
    %245 = arith.divf %243, %244 : vector<2x32xf32>
    %246 = vector.extract_strided_slice %235 {offsets = [0, 32], sizes = [2, 32], strides = [1, 1]} : vector<2x96xf32> to vector<2x32xf32>
    %247 = vector.extract_strided_slice %237 {offsets = [0, 32], sizes = [2, 32], strides = [1, 1]} : vector<2x96xf32> to vector<2x32xf32>
    %248 = arith.addf %246, %247 : vector<2x32xf32>
    %249 = arith.negf %248 : vector<2x32xf32>
    %250 = math.exp %249 : vector<2x32xf32>
    %cst_60 = arith.constant 1.000000e+00 : f32
    %251 = vector.broadcast %cst_60 : f32 to vector<2x32xf32>
    %252 = arith.addf %251, %250 : vector<2x32xf32>
    %253 = arith.divf %251, %252 : vector<2x32xf32>
    %254 = vector.extract_strided_slice %235 {offsets = [0, 64], sizes = [2, 32], strides = [1, 1]} : vector<2x96xf32> to vector<2x32xf32>
    %255 = vector.extract_strided_slice %237 {offsets = [0, 64], sizes = [2, 32], strides = [1, 1]} : vector<2x96xf32> to vector<2x32xf32>
    %256 = arith.mulf %245, %255 : vector<2x32xf32>
    %257 = arith.addf %254, %256 : vector<2x32xf32>
    %258 = math.tanh %257 : vector<2x32xf32>
    %259 = arith.subf %200, %258 : vector<2x32xf32>
    %260 = arith.mulf %253, %259 : vector<2x32xf32>
    %261 = arith.addf %258, %260 : vector<2x32xf32>
    %262 = arith.index_cast %c3_i32 : i32 to index
    %c0_61 = arith.constant 0 : index
    %c0_62 = arith.constant 0 : index
    %263 = vector.load %arg7[%262, %c0_61, %c0_62] : memref<16x2x32xf32, #tpu.memory_space<vmem>>, vector<1x2x32xf32>
    %264 = vector.shape_cast %263 : vector<1x2x32xf32> to vector<2x32xf32>
    %265 = vector.shape_cast %261 : vector<2x32xf32> to vector<1x2x32xf32>
    tpu.vector_store %arg7[%262, %c0_61, %c0_62], %265 {strides = array<i32>} : memref<16x2x32xf32, #tpu.memory_space<vmem>>, vector<1x2x32xf32>,
    %c4_i32 = arith.constant 4 : i32
    %266 = arith.index_cast %c4_i32 : i32 to index
    %c0_63 = arith.constant 0 : index
    %c0_64 = arith.constant 0 : index
    %267 = vector.load %arg2[%266, %c0_63, %c0_64] : memref<16x2x96xf32, #tpu.memory_space<vmem>>, vector<1x2x96xf32>
    %268 = vector.shape_cast %267 : vector<1x2x96xf32> to vector<2x96xf32>
    %cst_65 = arith.constant dense<0.000000e+00> : vector<2x96xf32>
    %269 = tpu.matmul %233, %3, %cst_65 {dimension_numbers = #tpu.dot_dimension_numbers<[1], [0], [0], [1], [0, 0, 1, 1], [], []>, precision = #tpu.contract_precision<fp32>} : vector<2x32xf32>, vector<32x96xf32>, vector<2x96xf32> -> vector<2x96xf32>
    %270 = arith.addf %269, %9 : vector<2x96xf32>
    %271 = vector.extract_strided_slice %268 {offsets = [0, 0], sizes = [2, 32], strides = [1, 1]} : vector<2x96xf32> to vector<2x32xf32>
    %272 = vector.extract_strided_slice %270 {offsets = [0, 0], sizes = [2, 32], strides = [1, 1]} : vector<2x96xf32> to vector<2x32xf32>
    %273 = arith.addf %271, %272 : vector<2x32xf32>
    %274 = arith.negf %273 : vector<2x32xf32>
    %275 = math.exp %274 : vector<2x32xf32>
    %cst_66 = arith.constant 1.000000e+00 : f32
    %276 = vector.broadcast %cst_66 : f32 to vector<2x32xf32>
    %277 = arith.addf %276, %275 : vector<2x32xf32>
    %278 = arith.divf %276, %277 : vector<2x32xf32>
    %279 = vector.extract_strided_slice %268 {offsets = [0, 32], sizes = [2, 32], strides = [1, 1]} : vector<2x96xf32> to vector<2x32xf32>
    %280 = vector.extract_strided_slice %270 {offsets = [0, 32], sizes = [2, 32], strides = [1, 1]} : vector<2x96xf32> to vector<2x32xf32>
    %281 = arith.addf %279, %280 : vector<2x32xf32>
    %282 = arith.negf %281 : vector<2x32xf32>
    %283 = math.exp %282 : vector<2x32xf32>
    %cst_67 = arith.constant 1.000000e+00 : f32
    %284 = vector.broadcast %cst_67 : f32 to vector<2x32xf32>
    %285 = arith.addf %284, %283 : vector<2x32xf32>
    %286 = arith.divf %284, %285 : vector<2x32xf32>
    %287 = vector.extract_strided_slice %268 {offsets = [0, 64], sizes = [2, 32], strides = [1, 1]} : vector<2x96xf32> to vector<2x32xf32>
    %288 = vector.extract_strided_slice %270 {offsets = [0, 64], sizes = [2, 32], strides = [1, 1]} : vector<2x96xf32> to vector<2x32xf32>
    %289 = arith.mulf %278, %288 : vector<2x32xf32>
    %290 = arith.addf %287, %289 : vector<2x32xf32>
    %291 = math.tanh %290 : vector<2x32xf32>
    %292 = arith.subf %233, %291 : vector<2x32xf32>
    %293 = arith.mulf %286, %292 : vector<2x32xf32>
    %294 = arith.addf %291, %293 : vector<2x32xf32>
    %cst_68 = arith.constant dense<0.000000e+00> : vector<2x96xf32>
    %295 = tpu.matmul %294, %4, %cst_68 {dimension_numbers = #tpu.dot_dimension_numbers<[1], [0], [0], [1], [0, 0, 1, 1], [], []>, precision = #tpu.contract_precision<fp32>} : vector<2x32xf32>, vector<32x96xf32>, vector<2x96xf32> -> vector<2x96xf32>
    %296 = arith.addf %295, %13 : vector<2x96xf32>
    %cst_69 = arith.constant dense<0.000000e+00> : vector<2x96xf32>
    %297 = tpu.matmul %261, %5, %cst_69 {dimension_numbers = #tpu.dot_dimension_numbers<[1], [0], [0], [1], [0, 0, 1, 1], [], []>, precision = #tpu.contract_precision<fp32>} : vector<2x32xf32>, vector<32x96xf32>, vector<2x96xf32> -> vector<2x96xf32>
    %298 = arith.addf %297, %17 : vector<2x96xf32>
    %299 = vector.extract_strided_slice %296 {offsets = [0, 0], sizes = [2, 32], strides = [1, 1]} : vector<2x96xf32> to vector<2x32xf32>
    %300 = vector.extract_strided_slice %298 {offsets = [0, 0], sizes = [2, 32], strides = [1, 1]} : vector<2x96xf32> to vector<2x32xf32>
    %301 = arith.addf %299, %300 : vector<2x32xf32>
    %302 = arith.negf %301 : vector<2x32xf32>
    %303 = math.exp %302 : vector<2x32xf32>
    %cst_70 = arith.constant 1.000000e+00 : f32
    %304 = vector.broadcast %cst_70 : f32 to vector<2x32xf32>
    %305 = arith.addf %304, %303 : vector<2x32xf32>
    %306 = arith.divf %304, %305 : vector<2x32xf32>
    %307 = vector.extract_strided_slice %296 {offsets = [0, 32], sizes = [2, 32], strides = [1, 1]} : vector<2x96xf32> to vector<2x32xf32>
    %308 = vector.extract_strided_slice %298 {offsets = [0, 32], sizes = [2, 32], strides = [1, 1]} : vector<2x96xf32> to vector<2x32xf32>
    %309 = arith.addf %307, %308 : vector<2x32xf32>
    %310 = arith.negf %309 : vector<2x32xf32>
    %311 = math.exp %310 : vector<2x32xf32>
    %cst_71 = arith.constant 1.000000e+00 : f32
    %312 = vector.broadcast %cst_71 : f32 to vector<2x32xf32>
    %313 = arith.addf %312, %311 : vector<2x32xf32>
    %314 = arith.divf %312, %313 : vector<2x32xf32>
    %315 = vector.extract_strided_slice %296 {offsets = [0, 64], sizes = [2, 32], strides = [1, 1]} : vector<2x96xf32> to vector<2x32xf32>
    %316 = vector.extract_strided_slice %298 {offsets = [0, 64], sizes = [2, 32], strides = [1, 1]} : vector<2x96xf32> to vector<2x32xf32>
    %317 = arith.mulf %306, %316 : vector<2x32xf32>
    %318 = arith.addf %315, %317 : vector<2x32xf32>
    %319 = math.tanh %318 : vector<2x32xf32>
    %320 = arith.subf %261, %319 : vector<2x32xf32>
    %321 = arith.mulf %314, %320 : vector<2x32xf32>
    %322 = arith.addf %319, %321 : vector<2x32xf32>
    %323 = arith.index_cast %c4_i32 : i32 to index
    %c0_72 = arith.constant 0 : index
    %c0_73 = arith.constant 0 : index
    %324 = vector.load %arg7[%323, %c0_72, %c0_73] : memref<16x2x32xf32, #tpu.memory_space<vmem>>, vector<1x2x32xf32>
    %325 = vector.shape_cast %324 : vector<1x2x32xf32> to vector<2x32xf32>
    %326 = vector.shape_cast %322 : vector<2x32xf32> to vector<1x2x32xf32>
    tpu.vector_store %arg7[%323, %c0_72, %c0_73], %326 {strides = array<i32>} : memref<16x2x32xf32, #tpu.memory_space<vmem>>, vector<1x2x32xf32>,
    %c5_i32 = arith.constant 5 : i32
    %327 = arith.index_cast %c5_i32 : i32 to index
    %c0_74 = arith.constant 0 : index
    %c0_75 = arith.constant 0 : index
    %328 = vector.load %arg2[%327, %c0_74, %c0_75] : memref<16x2x96xf32, #tpu.memory_space<vmem>>, vector<1x2x96xf32>
    %329 = vector.shape_cast %328 : vector<1x2x96xf32> to vector<2x96xf32>
    %cst_76 = arith.constant dense<0.000000e+00> : vector<2x96xf32>
    %330 = tpu.matmul %294, %3, %cst_76 {dimension_numbers = #tpu.dot_dimension_numbers<[1], [0], [0], [1], [0, 0, 1, 1], [], []>, precision = #tpu.contract_precision<fp32>} : vector<2x32xf32>, vector<32x96xf32>, vector<2x96xf32> -> vector<2x96xf32>
    %331 = arith.addf %330, %9 : vector<2x96xf32>
    %332 = vector.extract_strided_slice %329 {offsets = [0, 0], sizes = [2, 32], strides = [1, 1]} : vector<2x96xf32> to vector<2x32xf32>
    %333 = vector.extract_strided_slice %331 {offsets = [0, 0], sizes = [2, 32], strides = [1, 1]} : vector<2x96xf32> to vector<2x32xf32>
    %334 = arith.addf %332, %333 : vector<2x32xf32>
    %335 = arith.negf %334 : vector<2x32xf32>
    %336 = math.exp %335 : vector<2x32xf32>
    %cst_77 = arith.constant 1.000000e+00 : f32
    %337 = vector.broadcast %cst_77 : f32 to vector<2x32xf32>
    %338 = arith.addf %337, %336 : vector<2x32xf32>
    %339 = arith.divf %337, %338 : vector<2x32xf32>
    %340 = vector.extract_strided_slice %329 {offsets = [0, 32], sizes = [2, 32], strides = [1, 1]} : vector<2x96xf32> to vector<2x32xf32>
    %341 = vector.extract_strided_slice %331 {offsets = [0, 32], sizes = [2, 32], strides = [1, 1]} : vector<2x96xf32> to vector<2x32xf32>
    %342 = arith.addf %340, %341 : vector<2x32xf32>
    %343 = arith.negf %342 : vector<2x32xf32>
    %344 = math.exp %343 : vector<2x32xf32>
    %cst_78 = arith.constant 1.000000e+00 : f32
    %345 = vector.broadcast %cst_78 : f32 to vector<2x32xf32>
    %346 = arith.addf %345, %344 : vector<2x32xf32>
    %347 = arith.divf %345, %346 : vector<2x32xf32>
    %348 = vector.extract_strided_slice %329 {offsets = [0, 64], sizes = [2, 32], strides = [1, 1]} : vector<2x96xf32> to vector<2x32xf32>
    %349 = vector.extract_strided_slice %331 {offsets = [0, 64], sizes = [2, 32], strides = [1, 1]} : vector<2x96xf32> to vector<2x32xf32>
    %350 = arith.mulf %339, %349 : vector<2x32xf32>
    %351 = arith.addf %348, %350 : vector<2x32xf32>
    %352 = math.tanh %351 : vector<2x32xf32>
    %353 = arith.subf %294, %352 : vector<2x32xf32>
    %354 = arith.mulf %347, %353 : vector<2x32xf32>
    %355 = arith.addf %352, %354 : vector<2x32xf32>
    %cst_79 = arith.constant dense<0.000000e+00> : vector<2x96xf32>
    %356 = tpu.matmul %355, %4, %cst_79 {dimension_numbers = #tpu.dot_dimension_numbers<[1], [0], [0], [1], [0, 0, 1, 1], [], []>, precision = #tpu.contract_precision<fp32>} : vector<2x32xf32>, vector<32x96xf32>, vector<2x96xf32> -> vector<2x96xf32>
    %357 = arith.addf %356, %13 : vector<2x96xf32>
    %cst_80 = arith.constant dense<0.000000e+00> : vector<2x96xf32>
    %358 = tpu.matmul %322, %5, %cst_80 {dimension_numbers = #tpu.dot_dimension_numbers<[1], [0], [0], [1], [0, 0, 1, 1], [], []>, precision = #tpu.contract_precision<fp32>} : vector<2x32xf32>, vector<32x96xf32>, vector<2x96xf32> -> vector<2x96xf32>
    %359 = arith.addf %358, %17 : vector<2x96xf32>
    %360 = vector.extract_strided_slice %357 {offsets = [0, 0], sizes = [2, 32], strides = [1, 1]} : vector<2x96xf32> to vector<2x32xf32>
    %361 = vector.extract_strided_slice %359 {offsets = [0, 0], sizes = [2, 32], strides = [1, 1]} : vector<2x96xf32> to vector<2x32xf32>
    %362 = arith.addf %360, %361 : vector<2x32xf32>
    %363 = arith.negf %362 : vector<2x32xf32>
    %364 = math.exp %363 : vector<2x32xf32>
    %cst_81 = arith.constant 1.000000e+00 : f32
    %365 = vector.broadcast %cst_81 : f32 to vector<2x32xf32>
    %366 = arith.addf %365, %364 : vector<2x32xf32>
    %367 = arith.divf %365, %366 : vector<2x32xf32>
    %368 = vector.extract_strided_slice %357 {offsets = [0, 32], sizes = [2, 32], strides = [1, 1]} : vector<2x96xf32> to vector<2x32xf32>
    %369 = vector.extract_strided_slice %359 {offsets = [0, 32], sizes = [2, 32], strides = [1, 1]} : vector<2x96xf32> to vector<2x32xf32>
    %370 = arith.addf %368, %369 : vector<2x32xf32>
    %371 = arith.negf %370 : vector<2x32xf32>
    %372 = math.exp %371 : vector<2x32xf32>
    %cst_82 = arith.constant 1.000000e+00 : f32
    %373 = vector.broadcast %cst_82 : f32 to vector<2x32xf32>
    %374 = arith.addf %373, %372 : vector<2x32xf32>
    %375 = arith.divf %373, %374 : vector<2x32xf32>
    %376 = vector.extract_strided_slice %357 {offsets = [0, 64], sizes = [2, 32], strides = [1, 1]} : vector<2x96xf32> to vector<2x32xf32>
    %377 = vector.extract_strided_slice %359 {offsets = [0, 64], sizes = [2, 32], strides = [1, 1]} : vector<2x96xf32> to vector<2x32xf32>
    %378 = arith.mulf %367, %377 : vector<2x32xf32>
    %379 = arith.addf %376, %378 : vector<2x32xf32>
    %380 = math.tanh %379 : vector<2x32xf32>
    %381 = arith.subf %322, %380 : vector<2x32xf32>
    %382 = arith.mulf %375, %381 : vector<2x32xf32>
    %383 = arith.addf %380, %382 : vector<2x32xf32>
    %384 = arith.index_cast %c5_i32 : i32 to index
    %c0_83 = arith.constant 0 : index
    %c0_84 = arith.constant 0 : index
    %385 = vector.load %arg7[%384, %c0_83, %c0_84] : memref<16x2x32xf32, #tpu.memory_space<vmem>>, vector<1x2x32xf32>
    %386 = vector.shape_cast %385 : vector<1x2x32xf32> to vector<2x32xf32>
    %387 = vector.shape_cast %383 : vector<2x32xf32> to vector<1x2x32xf32>
    tpu.vector_store %arg7[%384, %c0_83, %c0_84], %387 {strides = array<i32>} : memref<16x2x32xf32, #tpu.memory_space<vmem>>, vector<1x2x32xf32>,
    %c6_i32 = arith.constant 6 : i32
    %388 = arith.index_cast %c6_i32 : i32 to index
    %c0_85 = arith.constant 0 : index
    %c0_86 = arith.constant 0 : index
    %389 = vector.load %arg2[%388, %c0_85, %c0_86] : memref<16x2x96xf32, #tpu.memory_space<vmem>>, vector<1x2x96xf32>
    %390 = vector.shape_cast %389 : vector<1x2x96xf32> to vector<2x96xf32>
    %cst_87 = arith.constant dense<0.000000e+00> : vector<2x96xf32>
    %391 = tpu.matmul %355, %3, %cst_87 {dimension_numbers = #tpu.dot_dimension_numbers<[1], [0], [0], [1], [0, 0, 1, 1], [], []>, precision = #tpu.contract_precision<fp32>} : vector<2x32xf32>, vector<32x96xf32>, vector<2x96xf32> -> vector<2x96xf32>
    %392 = arith.addf %391, %9 : vector<2x96xf32>
    %393 = vector.extract_strided_slice %390 {offsets = [0, 0], sizes = [2, 32], strides = [1, 1]} : vector<2x96xf32> to vector<2x32xf32>
    %394 = vector.extract_strided_slice %392 {offsets = [0, 0], sizes = [2, 32], strides = [1, 1]} : vector<2x96xf32> to vector<2x32xf32>
    %395 = arith.addf %393, %394 : vector<2x32xf32>
    %396 = arith.negf %395 : vector<2x32xf32>
    %397 = math.exp %396 : vector<2x32xf32>
    %cst_88 = arith.constant 1.000000e+00 : f32
    %398 = vector.broadcast %cst_88 : f32 to vector<2x32xf32>
    %399 = arith.addf %398, %397 : vector<2x32xf32>
    %400 = arith.divf %398, %399 : vector<2x32xf32>
    %401 = vector.extract_strided_slice %390 {offsets = [0, 32], sizes = [2, 32], strides = [1, 1]} : vector<2x96xf32> to vector<2x32xf32>
    %402 = vector.extract_strided_slice %392 {offsets = [0, 32], sizes = [2, 32], strides = [1, 1]} : vector<2x96xf32> to vector<2x32xf32>
    %403 = arith.addf %401, %402 : vector<2x32xf32>
    %404 = arith.negf %403 : vector<2x32xf32>
    %405 = math.exp %404 : vector<2x32xf32>
    %cst_89 = arith.constant 1.000000e+00 : f32
    %406 = vector.broadcast %cst_89 : f32 to vector<2x32xf32>
    %407 = arith.addf %406, %405 : vector<2x32xf32>
    %408 = arith.divf %406, %407 : vector<2x32xf32>
    %409 = vector.extract_strided_slice %390 {offsets = [0, 64], sizes = [2, 32], strides = [1, 1]} : vector<2x96xf32> to vector<2x32xf32>
    %410 = vector.extract_strided_slice %392 {offsets = [0, 64], sizes = [2, 32], strides = [1, 1]} : vector<2x96xf32> to vector<2x32xf32>
    %411 = arith.mulf %400, %410 : vector<2x32xf32>
    %412 = arith.addf %409, %411 : vector<2x32xf32>
    %413 = math.tanh %412 : vector<2x32xf32>
    %414 = arith.subf %355, %413 : vector<2x32xf32>
    %415 = arith.mulf %408, %414 : vector<2x32xf32>
    %416 = arith.addf %413, %415 : vector<2x32xf32>
    %cst_90 = arith.constant dense<0.000000e+00> : vector<2x96xf32>
    %417 = tpu.matmul %416, %4, %cst_90 {dimension_numbers = #tpu.dot_dimension_numbers<[1], [0], [0], [1], [0, 0, 1, 1], [], []>, precision = #tpu.contract_precision<fp32>} : vector<2x32xf32>, vector<32x96xf32>, vector<2x96xf32> -> vector<2x96xf32>
    %418 = arith.addf %417, %13 : vector<2x96xf32>
    %cst_91 = arith.constant dense<0.000000e+00> : vector<2x96xf32>
    %419 = tpu.matmul %383, %5, %cst_91 {dimension_numbers = #tpu.dot_dimension_numbers<[1], [0], [0], [1], [0, 0, 1, 1], [], []>, precision = #tpu.contract_precision<fp32>} : vector<2x32xf32>, vector<32x96xf32>, vector<2x96xf32> -> vector<2x96xf32>
    %420 = arith.addf %419, %17 : vector<2x96xf32>
    %421 = vector.extract_strided_slice %418 {offsets = [0, 0], sizes = [2, 32], strides = [1, 1]} : vector<2x96xf32> to vector<2x32xf32>
    %422 = vector.extract_strided_slice %420 {offsets = [0, 0], sizes = [2, 32], strides = [1, 1]} : vector<2x96xf32> to vector<2x32xf32>
    %423 = arith.addf %421, %422 : vector<2x32xf32>
    %424 = arith.negf %423 : vector<2x32xf32>
    %425 = math.exp %424 : vector<2x32xf32>
    %cst_92 = arith.constant 1.000000e+00 : f32
    %426 = vector.broadcast %cst_92 : f32 to vector<2x32xf32>
    %427 = arith.addf %426, %425 : vector<2x32xf32>
    %428 = arith.divf %426, %427 : vector<2x32xf32>
    %429 = vector.extract_strided_slice %418 {offsets = [0, 32], sizes = [2, 32], strides = [1, 1]} : vector<2x96xf32> to vector<2x32xf32>
    %430 = vector.extract_strided_slice %420 {offsets = [0, 32], sizes = [2, 32], strides = [1, 1]} : vector<2x96xf32> to vector<2x32xf32>
    %431 = arith.addf %429, %430 : vector<2x32xf32>
    %432 = arith.negf %431 : vector<2x32xf32>
    %433 = math.exp %432 : vector<2x32xf32>
    %cst_93 = arith.constant 1.000000e+00 : f32
    %434 = vector.broadcast %cst_93 : f32 to vector<2x32xf32>
    %435 = arith.addf %434, %433 : vector<2x32xf32>
    %436 = arith.divf %434, %435 : vector<2x32xf32>
    %437 = vector.extract_strided_slice %418 {offsets = [0, 64], sizes = [2, 32], strides = [1, 1]} : vector<2x96xf32> to vector<2x32xf32>
    %438 = vector.extract_strided_slice %420 {offsets = [0, 64], sizes = [2, 32], strides = [1, 1]} : vector<2x96xf32> to vector<2x32xf32>
    %439 = arith.mulf %428, %438 : vector<2x32xf32>
    %440 = arith.addf %437, %439 : vector<2x32xf32>
    %441 = math.tanh %440 : vector<2x32xf32>
    %442 = arith.subf %383, %441 : vector<2x32xf32>
    %443 = arith.mulf %436, %442 : vector<2x32xf32>
    %444 = arith.addf %441, %443 : vector<2x32xf32>
    %445 = arith.index_cast %c6_i32 : i32 to index
    %c0_94 = arith.constant 0 : index
    %c0_95 = arith.constant 0 : index
    %446 = vector.load %arg7[%445, %c0_94, %c0_95] : memref<16x2x32xf32, #tpu.memory_space<vmem>>, vector<1x2x32xf32>
    %447 = vector.shape_cast %446 : vector<1x2x32xf32> to vector<2x32xf32>
    %448 = vector.shape_cast %444 : vector<2x32xf32> to vector<1x2x32xf32>
    tpu.vector_store %arg7[%445, %c0_94, %c0_95], %448 {strides = array<i32>} : memref<16x2x32xf32, #tpu.memory_space<vmem>>, vector<1x2x32xf32>,
    %c7_i32 = arith.constant 7 : i32
    %449 = arith.index_cast %c7_i32 : i32 to index
    %c0_96 = arith.constant 0 : index
    %c0_97 = arith.constant 0 : index
    %450 = vector.load %arg2[%449, %c0_96, %c0_97] : memref<16x2x96xf32, #tpu.memory_space<vmem>>, vector<1x2x96xf32>
    %451 = vector.shape_cast %450 : vector<1x2x96xf32> to vector<2x96xf32>
    %cst_98 = arith.constant dense<0.000000e+00> : vector<2x96xf32>
    %452 = tpu.matmul %416, %3, %cst_98 {dimension_numbers = #tpu.dot_dimension_numbers<[1], [0], [0], [1], [0, 0, 1, 1], [], []>, precision = #tpu.contract_precision<fp32>} : vector<2x32xf32>, vector<32x96xf32>, vector<2x96xf32> -> vector<2x96xf32>
    %453 = arith.addf %452, %9 : vector<2x96xf32>
    %454 = vector.extract_strided_slice %451 {offsets = [0, 0], sizes = [2, 32], strides = [1, 1]} : vector<2x96xf32> to vector<2x32xf32>
    %455 = vector.extract_strided_slice %453 {offsets = [0, 0], sizes = [2, 32], strides = [1, 1]} : vector<2x96xf32> to vector<2x32xf32>
    %456 = arith.addf %454, %455 : vector<2x32xf32>
    %457 = arith.negf %456 : vector<2x32xf32>
    %458 = math.exp %457 : vector<2x32xf32>
    %cst_99 = arith.constant 1.000000e+00 : f32
    %459 = vector.broadcast %cst_99 : f32 to vector<2x32xf32>
    %460 = arith.addf %459, %458 : vector<2x32xf32>
    %461 = arith.divf %459, %460 : vector<2x32xf32>
    %462 = vector.extract_strided_slice %451 {offsets = [0, 32], sizes = [2, 32], strides = [1, 1]} : vector<2x96xf32> to vector<2x32xf32>
    %463 = vector.extract_strided_slice %453 {offsets = [0, 32], sizes = [2, 32], strides = [1, 1]} : vector<2x96xf32> to vector<2x32xf32>
    %464 = arith.addf %462, %463 : vector<2x32xf32>
    %465 = arith.negf %464 : vector<2x32xf32>
    %466 = math.exp %465 : vector<2x32xf32>
    %cst_100 = arith.constant 1.000000e+00 : f32
    %467 = vector.broadcast %cst_100 : f32 to vector<2x32xf32>
    %468 = arith.addf %467, %466 : vector<2x32xf32>
    %469 = arith.divf %467, %468 : vector<2x32xf32>
    %470 = vector.extract_strided_slice %451 {offsets = [0, 64], sizes = [2, 32], strides = [1, 1]} : vector<2x96xf32> to vector<2x32xf32>
    %471 = vector.extract_strided_slice %453 {offsets = [0, 64], sizes = [2, 32], strides = [1, 1]} : vector<2x96xf32> to vector<2x32xf32>
    %472 = arith.mulf %461, %471 : vector<2x32xf32>
    %473 = arith.addf %470, %472 : vector<2x32xf32>
    %474 = math.tanh %473 : vector<2x32xf32>
    %475 = arith.subf %416, %474 : vector<2x32xf32>
    %476 = arith.mulf %469, %475 : vector<2x32xf32>
    %477 = arith.addf %474, %476 : vector<2x32xf32>
    %cst_101 = arith.constant dense<0.000000e+00> : vector<2x96xf32>
    %478 = tpu.matmul %477, %4, %cst_101 {dimension_numbers = #tpu.dot_dimension_numbers<[1], [0], [0], [1], [0, 0, 1, 1], [], []>, precision = #tpu.contract_precision<fp32>} : vector<2x32xf32>, vector<32x96xf32>, vector<2x96xf32> -> vector<2x96xf32>
    %479 = arith.addf %478, %13 : vector<2x96xf32>
    %cst_102 = arith.constant dense<0.000000e+00> : vector<2x96xf32>
    %480 = tpu.matmul %444, %5, %cst_102 {dimension_numbers = #tpu.dot_dimension_numbers<[1], [0], [0], [1], [0, 0, 1, 1], [], []>, precision = #tpu.contract_precision<fp32>} : vector<2x32xf32>, vector<32x96xf32>, vector<2x96xf32> -> vector<2x96xf32>
    %481 = arith.addf %480, %17 : vector<2x96xf32>
    %482 = vector.extract_strided_slice %479 {offsets = [0, 0], sizes = [2, 32], strides = [1, 1]} : vector<2x96xf32> to vector<2x32xf32>
    %483 = vector.extract_strided_slice %481 {offsets = [0, 0], sizes = [2, 32], strides = [1, 1]} : vector<2x96xf32> to vector<2x32xf32>
    %484 = arith.addf %482, %483 : vector<2x32xf32>
    %485 = arith.negf %484 : vector<2x32xf32>
    %486 = math.exp %485 : vector<2x32xf32>
    %cst_103 = arith.constant 1.000000e+00 : f32
    %487 = vector.broadcast %cst_103 : f32 to vector<2x32xf32>
    %488 = arith.addf %487, %486 : vector<2x32xf32>
    %489 = arith.divf %487, %488 : vector<2x32xf32>
    %490 = vector.extract_strided_slice %479 {offsets = [0, 32], sizes = [2, 32], strides = [1, 1]} : vector<2x96xf32> to vector<2x32xf32>
    %491 = vector.extract_strided_slice %481 {offsets = [0, 32], sizes = [2, 32], strides = [1, 1]} : vector<2x96xf32> to vector<2x32xf32>
    %492 = arith.addf %490, %491 : vector<2x32xf32>
    %493 = arith.negf %492 : vector<2x32xf32>
    %494 = math.exp %493 : vector<2x32xf32>
    %cst_104 = arith.constant 1.000000e+00 : f32
    %495 = vector.broadcast %cst_104 : f32 to vector<2x32xf32>
    %496 = arith.addf %495, %494 : vector<2x32xf32>
    %497 = arith.divf %495, %496 : vector<2x32xf32>
    %498 = vector.extract_strided_slice %479 {offsets = [0, 64], sizes = [2, 32], strides = [1, 1]} : vector<2x96xf32> to vector<2x32xf32>
    %499 = vector.extract_strided_slice %481 {offsets = [0, 64], sizes = [2, 32], strides = [1, 1]} : vector<2x96xf32> to vector<2x32xf32>
    %500 = arith.mulf %489, %499 : vector<2x32xf32>
    %501 = arith.addf %498, %500 : vector<2x32xf32>
    %502 = math.tanh %501 : vector<2x32xf32>
    %503 = arith.subf %444, %502 : vector<2x32xf32>
    %504 = arith.mulf %497, %503 : vector<2x32xf32>
    %505 = arith.addf %502, %504 : vector<2x32xf32>
    %506 = arith.index_cast %c7_i32 : i32 to index
    %c0_105 = arith.constant 0 : index
    %c0_106 = arith.constant 0 : index
    %507 = vector.load %arg7[%506, %c0_105, %c0_106] : memref<16x2x32xf32, #tpu.memory_space<vmem>>, vector<1x2x32xf32>
    %508 = vector.shape_cast %507 : vector<1x2x32xf32> to vector<2x32xf32>
    %509 = vector.shape_cast %505 : vector<2x32xf32> to vector<1x2x32xf32>
    tpu.vector_store %arg7[%506, %c0_105, %c0_106], %509 {strides = array<i32>} : memref<16x2x32xf32, #tpu.memory_space<vmem>>, vector<1x2x32xf32>,
    %c8_i32 = arith.constant 8 : i32
    %510 = arith.index_cast %c8_i32 : i32 to index
    %c0_107 = arith.constant 0 : index
    %c0_108 = arith.constant 0 : index
    %511 = vector.load %arg2[%510, %c0_107, %c0_108] : memref<16x2x96xf32, #tpu.memory_space<vmem>>, vector<1x2x96xf32>
    %512 = vector.shape_cast %511 : vector<1x2x96xf32> to vector<2x96xf32>
    %cst_109 = arith.constant dense<0.000000e+00> : vector<2x96xf32>
    %513 = tpu.matmul %477, %3, %cst_109 {dimension_numbers = #tpu.dot_dimension_numbers<[1], [0], [0], [1], [0, 0, 1, 1], [], []>, precision = #tpu.contract_precision<fp32>} : vector<2x32xf32>, vector<32x96xf32>, vector<2x96xf32> -> vector<2x96xf32>
    %514 = arith.addf %513, %9 : vector<2x96xf32>
    %515 = vector.extract_strided_slice %512 {offsets = [0, 0], sizes = [2, 32], strides = [1, 1]} : vector<2x96xf32> to vector<2x32xf32>
    %516 = vector.extract_strided_slice %514 {offsets = [0, 0], sizes = [2, 32], strides = [1, 1]} : vector<2x96xf32> to vector<2x32xf32>
    %517 = arith.addf %515, %516 : vector<2x32xf32>
    %518 = arith.negf %517 : vector<2x32xf32>
    %519 = math.exp %518 : vector<2x32xf32>
    %cst_110 = arith.constant 1.000000e+00 : f32
    %520 = vector.broadcast %cst_110 : f32 to vector<2x32xf32>
    %521 = arith.addf %520, %519 : vector<2x32xf32>
    %522 = arith.divf %520, %521 : vector<2x32xf32>
    %523 = vector.extract_strided_slice %512 {offsets = [0, 32], sizes = [2, 32], strides = [1, 1]} : vector<2x96xf32> to vector<2x32xf32>
    %524 = vector.extract_strided_slice %514 {offsets = [0, 32], sizes = [2, 32], strides = [1, 1]} : vector<2x96xf32> to vector<2x32xf32>
    %525 = arith.addf %523, %524 : vector<2x32xf32>
    %526 = arith.negf %525 : vector<2x32xf32>
    %527 = math.exp %526 : vector<2x32xf32>
    %cst_111 = arith.constant 1.000000e+00 : f32
    %528 = vector.broadcast %cst_111 : f32 to vector<2x32xf32>
    %529 = arith.addf %528, %527 : vector<2x32xf32>
    %530 = arith.divf %528, %529 : vector<2x32xf32>
    %531 = vector.extract_strided_slice %512 {offsets = [0, 64], sizes = [2, 32], strides = [1, 1]} : vector<2x96xf32> to vector<2x32xf32>
    %532 = vector.extract_strided_slice %514 {offsets = [0, 64], sizes = [2, 32], strides = [1, 1]} : vector<2x96xf32> to vector<2x32xf32>
    %533 = arith.mulf %522, %532 : vector<2x32xf32>
    %534 = arith.addf %531, %533 : vector<2x32xf32>
    %535 = math.tanh %534 : vector<2x32xf32>
    %536 = arith.subf %477, %535 : vector<2x32xf32>
    %537 = arith.mulf %530, %536 : vector<2x32xf32>
    %538 = arith.addf %535, %537 : vector<2x32xf32>
    %cst_112 = arith.constant dense<0.000000e+00> : vector<2x96xf32>
    %539 = tpu.matmul %538, %4, %cst_112 {dimension_numbers = #tpu.dot_dimension_numbers<[1], [0], [0], [1], [0, 0, 1, 1], [], []>, precision = #tpu.contract_precision<fp32>} : vector<2x32xf32>, vector<32x96xf32>, vector<2x96xf32> -> vector<2x96xf32>
    %540 = arith.addf %539, %13 : vector<2x96xf32>
    %cst_113 = arith.constant dense<0.000000e+00> : vector<2x96xf32>
    %541 = tpu.matmul %505, %5, %cst_113 {dimension_numbers = #tpu.dot_dimension_numbers<[1], [0], [0], [1], [0, 0, 1, 1], [], []>, precision = #tpu.contract_precision<fp32>} : vector<2x32xf32>, vector<32x96xf32>, vector<2x96xf32> -> vector<2x96xf32>
    %542 = arith.addf %541, %17 : vector<2x96xf32>
    %543 = vector.extract_strided_slice %540 {offsets = [0, 0], sizes = [2, 32], strides = [1, 1]} : vector<2x96xf32> to vector<2x32xf32>
    %544 = vector.extract_strided_slice %542 {offsets = [0, 0], sizes = [2, 32], strides = [1, 1]} : vector<2x96xf32> to vector<2x32xf32>
    %545 = arith.addf %543, %544 : vector<2x32xf32>
    %546 = arith.negf %545 : vector<2x32xf32>
    %547 = math.exp %546 : vector<2x32xf32>
    %cst_114 = arith.constant 1.000000e+00 : f32
    %548 = vector.broadcast %cst_114 : f32 to vector<2x32xf32>
    %549 = arith.addf %548, %547 : vector<2x32xf32>
    %550 = arith.divf %548, %549 : vector<2x32xf32>
    %551 = vector.extract_strided_slice %540 {offsets = [0, 32], sizes = [2, 32], strides = [1, 1]} : vector<2x96xf32> to vector<2x32xf32>
    %552 = vector.extract_strided_slice %542 {offsets = [0, 32], sizes = [2, 32], strides = [1, 1]} : vector<2x96xf32> to vector<2x32xf32>
    %553 = arith.addf %551, %552 : vector<2x32xf32>
    %554 = arith.negf %553 : vector<2x32xf32>
    %555 = math.exp %554 : vector<2x32xf32>
    %cst_115 = arith.constant 1.000000e+00 : f32
    %556 = vector.broadcast %cst_115 : f32 to vector<2x32xf32>
    %557 = arith.addf %556, %555 : vector<2x32xf32>
    %558 = arith.divf %556, %557 : vector<2x32xf32>
    %559 = vector.extract_strided_slice %540 {offsets = [0, 64], sizes = [2, 32], strides = [1, 1]} : vector<2x96xf32> to vector<2x32xf32>
    %560 = vector.extract_strided_slice %542 {offsets = [0, 64], sizes = [2, 32], strides = [1, 1]} : vector<2x96xf32> to vector<2x32xf32>
    %561 = arith.mulf %550, %560 : vector<2x32xf32>
    %562 = arith.addf %559, %561 : vector<2x32xf32>
    %563 = math.tanh %562 : vector<2x32xf32>
    %564 = arith.subf %505, %563 : vector<2x32xf32>
    %565 = arith.mulf %558, %564 : vector<2x32xf32>
    %566 = arith.addf %563, %565 : vector<2x32xf32>
    %567 = arith.index_cast %c8_i32 : i32 to index
    %c0_116 = arith.constant 0 : index
    %c0_117 = arith.constant 0 : index
    %568 = vector.load %arg7[%567, %c0_116, %c0_117] : memref<16x2x32xf32, #tpu.memory_space<vmem>>, vector<1x2x32xf32>
    %569 = vector.shape_cast %568 : vector<1x2x32xf32> to vector<2x32xf32>
    %570 = vector.shape_cast %566 : vector<2x32xf32> to vector<1x2x32xf32>
    tpu.vector_store %arg7[%567, %c0_116, %c0_117], %570 {strides = array<i32>} : memref<16x2x32xf32, #tpu.memory_space<vmem>>, vector<1x2x32xf32>,
    %c9_i32 = arith.constant 9 : i32
    %571 = arith.index_cast %c9_i32 : i32 to index
    %c0_118 = arith.constant 0 : index
    %c0_119 = arith.constant 0 : index
    %572 = vector.load %arg2[%571, %c0_118, %c0_119] : memref<16x2x96xf32, #tpu.memory_space<vmem>>, vector<1x2x96xf32>
    %573 = vector.shape_cast %572 : vector<1x2x96xf32> to vector<2x96xf32>
    %cst_120 = arith.constant dense<0.000000e+00> : vector<2x96xf32>
    %574 = tpu.matmul %538, %3, %cst_120 {dimension_numbers = #tpu.dot_dimension_numbers<[1], [0], [0], [1], [0, 0, 1, 1], [], []>, precision = #tpu.contract_precision<fp32>} : vector<2x32xf32>, vector<32x96xf32>, vector<2x96xf32> -> vector<2x96xf32>
    %575 = arith.addf %574, %9 : vector<2x96xf32>
    %576 = vector.extract_strided_slice %573 {offsets = [0, 0], sizes = [2, 32], strides = [1, 1]} : vector<2x96xf32> to vector<2x32xf32>
    %577 = vector.extract_strided_slice %575 {offsets = [0, 0], sizes = [2, 32], strides = [1, 1]} : vector<2x96xf32> to vector<2x32xf32>
    %578 = arith.addf %576, %577 : vector<2x32xf32>
    %579 = arith.negf %578 : vector<2x32xf32>
    %580 = math.exp %579 : vector<2x32xf32>
    %cst_121 = arith.constant 1.000000e+00 : f32
    %581 = vector.broadcast %cst_121 : f32 to vector<2x32xf32>
    %582 = arith.addf %581, %580 : vector<2x32xf32>
    %583 = arith.divf %581, %582 : vector<2x32xf32>
    %584 = vector.extract_strided_slice %573 {offsets = [0, 32], sizes = [2, 32], strides = [1, 1]} : vector<2x96xf32> to vector<2x32xf32>
    %585 = vector.extract_strided_slice %575 {offsets = [0, 32], sizes = [2, 32], strides = [1, 1]} : vector<2x96xf32> to vector<2x32xf32>
    %586 = arith.addf %584, %585 : vector<2x32xf32>
    %587 = arith.negf %586 : vector<2x32xf32>
    %588 = math.exp %587 : vector<2x32xf32>
    %cst_122 = arith.constant 1.000000e+00 : f32
    %589 = vector.broadcast %cst_122 : f32 to vector<2x32xf32>
    %590 = arith.addf %589, %588 : vector<2x32xf32>
    %591 = arith.divf %589, %590 : vector<2x32xf32>
    %592 = vector.extract_strided_slice %573 {offsets = [0, 64], sizes = [2, 32], strides = [1, 1]} : vector<2x96xf32> to vector<2x32xf32>
    %593 = vector.extract_strided_slice %575 {offsets = [0, 64], sizes = [2, 32], strides = [1, 1]} : vector<2x96xf32> to vector<2x32xf32>
    %594 = arith.mulf %583, %593 : vector<2x32xf32>
    %595 = arith.addf %592, %594 : vector<2x32xf32>
    %596 = math.tanh %595 : vector<2x32xf32>
    %597 = arith.subf %538, %596 : vector<2x32xf32>
    %598 = arith.mulf %591, %597 : vector<2x32xf32>
    %599 = arith.addf %596, %598 : vector<2x32xf32>
    %cst_123 = arith.constant dense<0.000000e+00> : vector<2x96xf32>
    %600 = tpu.matmul %599, %4, %cst_123 {dimension_numbers = #tpu.dot_dimension_numbers<[1], [0], [0], [1], [0, 0, 1, 1], [], []>, precision = #tpu.contract_precision<fp32>} : vector<2x32xf32>, vector<32x96xf32>, vector<2x96xf32> -> vector<2x96xf32>
    %601 = arith.addf %600, %13 : vector<2x96xf32>
    %cst_124 = arith.constant dense<0.000000e+00> : vector<2x96xf32>
    %602 = tpu.matmul %566, %5, %cst_124 {dimension_numbers = #tpu.dot_dimension_numbers<[1], [0], [0], [1], [0, 0, 1, 1], [], []>, precision = #tpu.contract_precision<fp32>} : vector<2x32xf32>, vector<32x96xf32>, vector<2x96xf32> -> vector<2x96xf32>
    %603 = arith.addf %602, %17 : vector<2x96xf32>
    %604 = vector.extract_strided_slice %601 {offsets = [0, 0], sizes = [2, 32], strides = [1, 1]} : vector<2x96xf32> to vector<2x32xf32>
    %605 = vector.extract_strided_slice %603 {offsets = [0, 0], sizes = [2, 32], strides = [1, 1]} : vector<2x96xf32> to vector<2x32xf32>
    %606 = arith.addf %604, %605 : vector<2x32xf32>
    %607 = arith.negf %606 : vector<2x32xf32>
    %608 = math.exp %607 : vector<2x32xf32>
    %cst_125 = arith.constant 1.000000e+00 : f32
    %609 = vector.broadcast %cst_125 : f32 to vector<2x32xf32>
    %610 = arith.addf %609, %608 : vector<2x32xf32>
    %611 = arith.divf %609, %610 : vector<2x32xf32>
    %612 = vector.extract_strided_slice %601 {offsets = [0, 32], sizes = [2, 32], strides = [1, 1]} : vector<2x96xf32> to vector<2x32xf32>
    %613 = vector.extract_strided_slice %603 {offsets = [0, 32], sizes = [2, 32], strides = [1, 1]} : vector<2x96xf32> to vector<2x32xf32>
    %614 = arith.addf %612, %613 : vector<2x32xf32>
    %615 = arith.negf %614 : vector<2x32xf32>
    %616 = math.exp %615 : vector<2x32xf32>
    %cst_126 = arith.constant 1.000000e+00 : f32
    %617 = vector.broadcast %cst_126 : f32 to vector<2x32xf32>
    %618 = arith.addf %617, %616 : vector<2x32xf32>
    %619 = arith.divf %617, %618 : vector<2x32xf32>
    %620 = vector.extract_strided_slice %601 {offsets = [0, 64], sizes = [2, 32], strides = [1, 1]} : vector<2x96xf32> to vector<2x32xf32>
    %621 = vector.extract_strided_slice %603 {offsets = [0, 64], sizes = [2, 32], strides = [1, 1]} : vector<2x96xf32> to vector<2x32xf32>
    %622 = arith.mulf %611, %621 : vector<2x32xf32>
    %623 = arith.addf %620, %622 : vector<2x32xf32>
    %624 = math.tanh %623 : vector<2x32xf32>
    %625 = arith.subf %566, %624 : vector<2x32xf32>
    %626 = arith.mulf %619, %625 : vector<2x32xf32>
    %627 = arith.addf %624, %626 : vector<2x32xf32>
    %628 = arith.index_cast %c9_i32 : i32 to index
    %c0_127 = arith.constant 0 : index
    %c0_128 = arith.constant 0 : index
    %629 = vector.load %arg7[%628, %c0_127, %c0_128] : memref<16x2x32xf32, #tpu.memory_space<vmem>>, vector<1x2x32xf32>
    %630 = vector.shape_cast %629 : vector<1x2x32xf32> to vector<2x32xf32>
    %631 = vector.shape_cast %627 : vector<2x32xf32> to vector<1x2x32xf32>
    tpu.vector_store %arg7[%628, %c0_127, %c0_128], %631 {strides = array<i32>} : memref<16x2x32xf32, #tpu.memory_space<vmem>>, vector<1x2x32xf32>,
    %c10_i32 = arith.constant 10 : i32
    %632 = arith.index_cast %c10_i32 : i32 to index
    %c0_129 = arith.constant 0 : index
    %c0_130 = arith.constant 0 : index
    %633 = vector.load %arg2[%632, %c0_129, %c0_130] : memref<16x2x96xf32, #tpu.memory_space<vmem>>, vector<1x2x96xf32>
    %634 = vector.shape_cast %633 : vector<1x2x96xf32> to vector<2x96xf32>
    %cst_131 = arith.constant dense<0.000000e+00> : vector<2x96xf32>
    %635 = tpu.matmul %599, %3, %cst_131 {dimension_numbers = #tpu.dot_dimension_numbers<[1], [0], [0], [1], [0, 0, 1, 1], [], []>, precision = #tpu.contract_precision<fp32>} : vector<2x32xf32>, vector<32x96xf32>, vector<2x96xf32> -> vector<2x96xf32>
    %636 = arith.addf %635, %9 : vector<2x96xf32>
    %637 = vector.extract_strided_slice %634 {offsets = [0, 0], sizes = [2, 32], strides = [1, 1]} : vector<2x96xf32> to vector<2x32xf32>
    %638 = vector.extract_strided_slice %636 {offsets = [0, 0], sizes = [2, 32], strides = [1, 1]} : vector<2x96xf32> to vector<2x32xf32>
    %639 = arith.addf %637, %638 : vector<2x32xf32>
    %640 = arith.negf %639 : vector<2x32xf32>
    %641 = math.exp %640 : vector<2x32xf32>
    %cst_132 = arith.constant 1.000000e+00 : f32
    %642 = vector.broadcast %cst_132 : f32 to vector<2x32xf32>
    %643 = arith.addf %642, %641 : vector<2x32xf32>
    %644 = arith.divf %642, %643 : vector<2x32xf32>
    %645 = vector.extract_strided_slice %634 {offsets = [0, 32], sizes = [2, 32], strides = [1, 1]} : vector<2x96xf32> to vector<2x32xf32>
    %646 = vector.extract_strided_slice %636 {offsets = [0, 32], sizes = [2, 32], strides = [1, 1]} : vector<2x96xf32> to vector<2x32xf32>
    %647 = arith.addf %645, %646 : vector<2x32xf32>
    %648 = arith.negf %647 : vector<2x32xf32>
    %649 = math.exp %648 : vector<2x32xf32>
    %cst_133 = arith.constant 1.000000e+00 : f32
    %650 = vector.broadcast %cst_133 : f32 to vector<2x32xf32>
    %651 = arith.addf %650, %649 : vector<2x32xf32>
    %652 = arith.divf %650, %651 : vector<2x32xf32>
    %653 = vector.extract_strided_slice %634 {offsets = [0, 64], sizes = [2, 32], strides = [1, 1]} : vector<2x96xf32> to vector<2x32xf32>
    %654 = vector.extract_strided_slice %636 {offsets = [0, 64], sizes = [2, 32], strides = [1, 1]} : vector<2x96xf32> to vector<2x32xf32>
    %655 = arith.mulf %644, %654 : vector<2x32xf32>
    %656 = arith.addf %653, %655 : vector<2x32xf32>
    %657 = math.tanh %656 : vector<2x32xf32>
    %658 = arith.subf %599, %657 : vector<2x32xf32>
    %659 = arith.mulf %652, %658 : vector<2x32xf32>
    %660 = arith.addf %657, %659 : vector<2x32xf32>
    %cst_134 = arith.constant dense<0.000000e+00> : vector<2x96xf32>
    %661 = tpu.matmul %660, %4, %cst_134 {dimension_numbers = #tpu.dot_dimension_numbers<[1], [0], [0], [1], [0, 0, 1, 1], [], []>, precision = #tpu.contract_precision<fp32>} : vector<2x32xf32>, vector<32x96xf32>, vector<2x96xf32> -> vector<2x96xf32>
    %662 = arith.addf %661, %13 : vector<2x96xf32>
    %cst_135 = arith.constant dense<0.000000e+00> : vector<2x96xf32>
    %663 = tpu.matmul %627, %5, %cst_135 {dimension_numbers = #tpu.dot_dimension_numbers<[1], [0], [0], [1], [0, 0, 1, 1], [], []>, precision = #tpu.contract_precision<fp32>} : vector<2x32xf32>, vector<32x96xf32>, vector<2x96xf32> -> vector<2x96xf32>
    %664 = arith.addf %663, %17 : vector<2x96xf32>
    %665 = vector.extract_strided_slice %662 {offsets = [0, 0], sizes = [2, 32], strides = [1, 1]} : vector<2x96xf32> to vector<2x32xf32>
    %666 = vector.extract_strided_slice %664 {offsets = [0, 0], sizes = [2, 32], strides = [1, 1]} : vector<2x96xf32> to vector<2x32xf32>
    %667 = arith.addf %665, %666 : vector<2x32xf32>
    %668 = arith.negf %667 : vector<2x32xf32>
    %669 = math.exp %668 : vector<2x32xf32>
    %cst_136 = arith.constant 1.000000e+00 : f32
    %670 = vector.broadcast %cst_136 : f32 to vector<2x32xf32>
    %671 = arith.addf %670, %669 : vector<2x32xf32>
    %672 = arith.divf %670, %671 : vector<2x32xf32>
    %673 = vector.extract_strided_slice %662 {offsets = [0, 32], sizes = [2, 32], strides = [1, 1]} : vector<2x96xf32> to vector<2x32xf32>
    %674 = vector.extract_strided_slice %664 {offsets = [0, 32], sizes = [2, 32], strides = [1, 1]} : vector<2x96xf32> to vector<2x32xf32>
    %675 = arith.addf %673, %674 : vector<2x32xf32>
    %676 = arith.negf %675 : vector<2x32xf32>
    %677 = math.exp %676 : vector<2x32xf32>
    %cst_137 = arith.constant 1.000000e+00 : f32
    %678 = vector.broadcast %cst_137 : f32 to vector<2x32xf32>
    %679 = arith.addf %678, %677 : vector<2x32xf32>
    %680 = arith.divf %678, %679 : vector<2x32xf32>
    %681 = vector.extract_strided_slice %662 {offsets = [0, 64], sizes = [2, 32], strides = [1, 1]} : vector<2x96xf32> to vector<2x32xf32>
    %682 = vector.extract_strided_slice %664 {offsets = [0, 64], sizes = [2, 32], strides = [1, 1]} : vector<2x96xf32> to vector<2x32xf32>
    %683 = arith.mulf %672, %682 : vector<2x32xf32>
    %684 = arith.addf %681, %683 : vector<2x32xf32>
    %685 = math.tanh %684 : vector<2x32xf32>
    %686 = arith.subf %627, %685 : vector<2x32xf32>
    %687 = arith.mulf %680, %686 : vector<2x32xf32>
    %688 = arith.addf %685, %687 : vector<2x32xf32>
    %689 = arith.index_cast %c10_i32 : i32 to index
    %c0_138 = arith.constant 0 : index
    %c0_139 = arith.constant 0 : index
    %690 = vector.load %arg7[%689, %c0_138, %c0_139] : memref<16x2x32xf32, #tpu.memory_space<vmem>>, vector<1x2x32xf32>
    %691 = vector.shape_cast %690 : vector<1x2x32xf32> to vector<2x32xf32>
    %692 = vector.shape_cast %688 : vector<2x32xf32> to vector<1x2x32xf32>
    tpu.vector_store %arg7[%689, %c0_138, %c0_139], %692 {strides = array<i32>} : memref<16x2x32xf32, #tpu.memory_space<vmem>>, vector<1x2x32xf32>,
    %c11_i32 = arith.constant 11 : i32
    %693 = arith.index_cast %c11_i32 : i32 to index
    %c0_140 = arith.constant 0 : index
    %c0_141 = arith.constant 0 : index
    %694 = vector.load %arg2[%693, %c0_140, %c0_141] : memref<16x2x96xf32, #tpu.memory_space<vmem>>, vector<1x2x96xf32>
    %695 = vector.shape_cast %694 : vector<1x2x96xf32> to vector<2x96xf32>
    %cst_142 = arith.constant dense<0.000000e+00> : vector<2x96xf32>
    %696 = tpu.matmul %660, %3, %cst_142 {dimension_numbers = #tpu.dot_dimension_numbers<[1], [0], [0], [1], [0, 0, 1, 1], [], []>, precision = #tpu.contract_precision<fp32>} : vector<2x32xf32>, vector<32x96xf32>, vector<2x96xf32> -> vector<2x96xf32>
    %697 = arith.addf %696, %9 : vector<2x96xf32>
    %698 = vector.extract_strided_slice %695 {offsets = [0, 0], sizes = [2, 32], strides = [1, 1]} : vector<2x96xf32> to vector<2x32xf32>
    %699 = vector.extract_strided_slice %697 {offsets = [0, 0], sizes = [2, 32], strides = [1, 1]} : vector<2x96xf32> to vector<2x32xf32>
    %700 = arith.addf %698, %699 : vector<2x32xf32>
    %701 = arith.negf %700 : vector<2x32xf32>
    %702 = math.exp %701 : vector<2x32xf32>
    %cst_143 = arith.constant 1.000000e+00 : f32
    %703 = vector.broadcast %cst_143 : f32 to vector<2x32xf32>
    %704 = arith.addf %703, %702 : vector<2x32xf32>
    %705 = arith.divf %703, %704 : vector<2x32xf32>
    %706 = vector.extract_strided_slice %695 {offsets = [0, 32], sizes = [2, 32], strides = [1, 1]} : vector<2x96xf32> to vector<2x32xf32>
    %707 = vector.extract_strided_slice %697 {offsets = [0, 32], sizes = [2, 32], strides = [1, 1]} : vector<2x96xf32> to vector<2x32xf32>
    %708 = arith.addf %706, %707 : vector<2x32xf32>
    %709 = arith.negf %708 : vector<2x32xf32>
    %710 = math.exp %709 : vector<2x32xf32>
    %cst_144 = arith.constant 1.000000e+00 : f32
    %711 = vector.broadcast %cst_144 : f32 to vector<2x32xf32>
    %712 = arith.addf %711, %710 : vector<2x32xf32>
    %713 = arith.divf %711, %712 : vector<2x32xf32>
    %714 = vector.extract_strided_slice %695 {offsets = [0, 64], sizes = [2, 32], strides = [1, 1]} : vector<2x96xf32> to vector<2x32xf32>
    %715 = vector.extract_strided_slice %697 {offsets = [0, 64], sizes = [2, 32], strides = [1, 1]} : vector<2x96xf32> to vector<2x32xf32>
    %716 = arith.mulf %705, %715 : vector<2x32xf32>
    %717 = arith.addf %714, %716 : vector<2x32xf32>
    %718 = math.tanh %717 : vector<2x32xf32>
    %719 = arith.subf %660, %718 : vector<2x32xf32>
    %720 = arith.mulf %713, %719 : vector<2x32xf32>
    %721 = arith.addf %718, %720 : vector<2x32xf32>
    %cst_145 = arith.constant dense<0.000000e+00> : vector<2x96xf32>
    %722 = tpu.matmul %721, %4, %cst_145 {dimension_numbers = #tpu.dot_dimension_numbers<[1], [0], [0], [1], [0, 0, 1, 1], [], []>, precision = #tpu.contract_precision<fp32>} : vector<2x32xf32>, vector<32x96xf32>, vector<2x96xf32> -> vector<2x96xf32>
    %723 = arith.addf %722, %13 : vector<2x96xf32>
    %cst_146 = arith.constant dense<0.000000e+00> : vector<2x96xf32>
    %724 = tpu.matmul %688, %5, %cst_146 {dimension_numbers = #tpu.dot_dimension_numbers<[1], [0], [0], [1], [0, 0, 1, 1], [], []>, precision = #tpu.contract_precision<fp32>} : vector<2x32xf32>, vector<32x96xf32>, vector<2x96xf32> -> vector<2x96xf32>
    %725 = arith.addf %724, %17 : vector<2x96xf32>
    %726 = vector.extract_strided_slice %723 {offsets = [0, 0], sizes = [2, 32], strides = [1, 1]} : vector<2x96xf32> to vector<2x32xf32>
    %727 = vector.extract_strided_slice %725 {offsets = [0, 0], sizes = [2, 32], strides = [1, 1]} : vector<2x96xf32> to vector<2x32xf32>
    %728 = arith.addf %726, %727 : vector<2x32xf32>
    %729 = arith.negf %728 : vector<2x32xf32>
    %730 = math.exp %729 : vector<2x32xf32>
    %cst_147 = arith.constant 1.000000e+00 : f32
    %731 = vector.broadcast %cst_147 : f32 to vector<2x32xf32>
    %732 = arith.addf %731, %730 : vector<2x32xf32>
    %733 = arith.divf %731, %732 : vector<2x32xf32>
    %734 = vector.extract_strided_slice %723 {offsets = [0, 32], sizes = [2, 32], strides = [1, 1]} : vector<2x96xf32> to vector<2x32xf32>
    %735 = vector.extract_strided_slice %725 {offsets = [0, 32], sizes = [2, 32], strides = [1, 1]} : vector<2x96xf32> to vector<2x32xf32>
    %736 = arith.addf %734, %735 : vector<2x32xf32>
    %737 = arith.negf %736 : vector<2x32xf32>
    %738 = math.exp %737 : vector<2x32xf32>
    %cst_148 = arith.constant 1.000000e+00 : f32
    %739 = vector.broadcast %cst_148 : f32 to vector<2x32xf32>
    %740 = arith.addf %739, %738 : vector<2x32xf32>
    %741 = arith.divf %739, %740 : vector<2x32xf32>
    %742 = vector.extract_strided_slice %723 {offsets = [0, 64], sizes = [2, 32], strides = [1, 1]} : vector<2x96xf32> to vector<2x32xf32>
    %743 = vector.extract_strided_slice %725 {offsets = [0, 64], sizes = [2, 32], strides = [1, 1]} : vector<2x96xf32> to vector<2x32xf32>
    %744 = arith.mulf %733, %743 : vector<2x32xf32>
    %745 = arith.addf %742, %744 : vector<2x32xf32>
    %746 = math.tanh %745 : vector<2x32xf32>
    %747 = arith.subf %688, %746 : vector<2x32xf32>
    %748 = arith.mulf %741, %747 : vector<2x32xf32>
    %749 = arith.addf %746, %748 : vector<2x32xf32>
    %750 = arith.index_cast %c11_i32 : i32 to index
    %c0_149 = arith.constant 0 : index
    %c0_150 = arith.constant 0 : index
    %751 = vector.load %arg7[%750, %c0_149, %c0_150] : memref<16x2x32xf32, #tpu.memory_space<vmem>>, vector<1x2x32xf32>
    %752 = vector.shape_cast %751 : vector<1x2x32xf32> to vector<2x32xf32>
    %753 = vector.shape_cast %749 : vector<2x32xf32> to vector<1x2x32xf32>
    tpu.vector_store %arg7[%750, %c0_149, %c0_150], %753 {strides = array<i32>} : memref<16x2x32xf32, #tpu.memory_space<vmem>>, vector<1x2x32xf32>,
    %c12_i32 = arith.constant 12 : i32
    %754 = arith.index_cast %c12_i32 : i32 to index
    %c0_151 = arith.constant 0 : index
    %c0_152 = arith.constant 0 : index
    %755 = vector.load %arg2[%754, %c0_151, %c0_152] : memref<16x2x96xf32, #tpu.memory_space<vmem>>, vector<1x2x96xf32>
    %756 = vector.shape_cast %755 : vector<1x2x96xf32> to vector<2x96xf32>
    %cst_153 = arith.constant dense<0.000000e+00> : vector<2x96xf32>
    %757 = tpu.matmul %721, %3, %cst_153 {dimension_numbers = #tpu.dot_dimension_numbers<[1], [0], [0], [1], [0, 0, 1, 1], [], []>, precision = #tpu.contract_precision<fp32>} : vector<2x32xf32>, vector<32x96xf32>, vector<2x96xf32> -> vector<2x96xf32>
    %758 = arith.addf %757, %9 : vector<2x96xf32>
    %759 = vector.extract_strided_slice %756 {offsets = [0, 0], sizes = [2, 32], strides = [1, 1]} : vector<2x96xf32> to vector<2x32xf32>
    %760 = vector.extract_strided_slice %758 {offsets = [0, 0], sizes = [2, 32], strides = [1, 1]} : vector<2x96xf32> to vector<2x32xf32>
    %761 = arith.addf %759, %760 : vector<2x32xf32>
    %762 = arith.negf %761 : vector<2x32xf32>
    %763 = math.exp %762 : vector<2x32xf32>
    %cst_154 = arith.constant 1.000000e+00 : f32
    %764 = vector.broadcast %cst_154 : f32 to vector<2x32xf32>
    %765 = arith.addf %764, %763 : vector<2x32xf32>
    %766 = arith.divf %764, %765 : vector<2x32xf32>
    %767 = vector.extract_strided_slice %756 {offsets = [0, 32], sizes = [2, 32], strides = [1, 1]} : vector<2x96xf32> to vector<2x32xf32>
    %768 = vector.extract_strided_slice %758 {offsets = [0, 32], sizes = [2, 32], strides = [1, 1]} : vector<2x96xf32> to vector<2x32xf32>
    %769 = arith.addf %767, %768 : vector<2x32xf32>
    %770 = arith.negf %769 : vector<2x32xf32>
    %771 = math.exp %770 : vector<2x32xf32>
    %cst_155 = arith.constant 1.000000e+00 : f32
    %772 = vector.broadcast %cst_155 : f32 to vector<2x32xf32>
    %773 = arith.addf %772, %771 : vector<2x32xf32>
    %774 = arith.divf %772, %773 : vector<2x32xf32>
    %775 = vector.extract_strided_slice %756 {offsets = [0, 64], sizes = [2, 32], strides = [1, 1]} : vector<2x96xf32> to vector<2x32xf32>
    %776 = vector.extract_strided_slice %758 {offsets = [0, 64], sizes = [2, 32], strides = [1, 1]} : vector<2x96xf32> to vector<2x32xf32>
    %777 = arith.mulf %766, %776 : vector<2x32xf32>
    %778 = arith.addf %775, %777 : vector<2x32xf32>
    %779 = math.tanh %778 : vector<2x32xf32>
    %780 = arith.subf %721, %779 : vector<2x32xf32>
    %781 = arith.mulf %774, %780 : vector<2x32xf32>
    %782 = arith.addf %779, %781 : vector<2x32xf32>
    %cst_156 = arith.constant dense<0.000000e+00> : vector<2x96xf32>
    %783 = tpu.matmul %782, %4, %cst_156 {dimension_numbers = #tpu.dot_dimension_numbers<[1], [0], [0], [1], [0, 0, 1, 1], [], []>, precision = #tpu.contract_precision<fp32>} : vector<2x32xf32>, vector<32x96xf32>, vector<2x96xf32> -> vector<2x96xf32>
    %784 = arith.addf %783, %13 : vector<2x96xf32>
    %cst_157 = arith.constant dense<0.000000e+00> : vector<2x96xf32>
    %785 = tpu.matmul %749, %5, %cst_157 {dimension_numbers = #tpu.dot_dimension_numbers<[1], [0], [0], [1], [0, 0, 1, 1], [], []>, precision = #tpu.contract_precision<fp32>} : vector<2x32xf32>, vector<32x96xf32>, vector<2x96xf32> -> vector<2x96xf32>
    %786 = arith.addf %785, %17 : vector<2x96xf32>
    %787 = vector.extract_strided_slice %784 {offsets = [0, 0], sizes = [2, 32], strides = [1, 1]} : vector<2x96xf32> to vector<2x32xf32>
    %788 = vector.extract_strided_slice %786 {offsets = [0, 0], sizes = [2, 32], strides = [1, 1]} : vector<2x96xf32> to vector<2x32xf32>
    %789 = arith.addf %787, %788 : vector<2x32xf32>
    %790 = arith.negf %789 : vector<2x32xf32>
    %791 = math.exp %790 : vector<2x32xf32>
    %cst_158 = arith.constant 1.000000e+00 : f32
    %792 = vector.broadcast %cst_158 : f32 to vector<2x32xf32>
    %793 = arith.addf %792, %791 : vector<2x32xf32>
    %794 = arith.divf %792, %793 : vector<2x32xf32>
    %795 = vector.extract_strided_slice %784 {offsets = [0, 32], sizes = [2, 32], strides = [1, 1]} : vector<2x96xf32> to vector<2x32xf32>
    %796 = vector.extract_strided_slice %786 {offsets = [0, 32], sizes = [2, 32], strides = [1, 1]} : vector<2x96xf32> to vector<2x32xf32>
    %797 = arith.addf %795, %796 : vector<2x32xf32>
    %798 = arith.negf %797 : vector<2x32xf32>
    %799 = math.exp %798 : vector<2x32xf32>
    %cst_159 = arith.constant 1.000000e+00 : f32
    %800 = vector.broadcast %cst_159 : f32 to vector<2x32xf32>
    %801 = arith.addf %800, %799 : vector<2x32xf32>
    %802 = arith.divf %800, %801 : vector<2x32xf32>
    %803 = vector.extract_strided_slice %784 {offsets = [0, 64], sizes = [2, 32], strides = [1, 1]} : vector<2x96xf32> to vector<2x32xf32>
    %804 = vector.extract_strided_slice %786 {offsets = [0, 64], sizes = [2, 32], strides = [1, 1]} : vector<2x96xf32> to vector<2x32xf32>
    %805 = arith.mulf %794, %804 : vector<2x32xf32>
    %806 = arith.addf %803, %805 : vector<2x32xf32>
    %807 = math.tanh %806 : vector<2x32xf32>
    %808 = arith.subf %749, %807 : vector<2x32xf32>
    %809 = arith.mulf %802, %808 : vector<2x32xf32>
    %810 = arith.addf %807, %809 : vector<2x32xf32>
    %811 = arith.index_cast %c12_i32 : i32 to index
    %c0_160 = arith.constant 0 : index
    %c0_161 = arith.constant 0 : index
    %812 = vector.load %arg7[%811, %c0_160, %c0_161] : memref<16x2x32xf32, #tpu.memory_space<vmem>>, vector<1x2x32xf32>
    %813 = vector.shape_cast %812 : vector<1x2x32xf32> to vector<2x32xf32>
    %814 = vector.shape_cast %810 : vector<2x32xf32> to vector<1x2x32xf32>
    tpu.vector_store %arg7[%811, %c0_160, %c0_161], %814 {strides = array<i32>} : memref<16x2x32xf32, #tpu.memory_space<vmem>>, vector<1x2x32xf32>,
    %c13_i32 = arith.constant 13 : i32
    %815 = arith.index_cast %c13_i32 : i32 to index
    %c0_162 = arith.constant 0 : index
    %c0_163 = arith.constant 0 : index
    %816 = vector.load %arg2[%815, %c0_162, %c0_163] : memref<16x2x96xf32, #tpu.memory_space<vmem>>, vector<1x2x96xf32>
    %817 = vector.shape_cast %816 : vector<1x2x96xf32> to vector<2x96xf32>
    %cst_164 = arith.constant dense<0.000000e+00> : vector<2x96xf32>
    %818 = tpu.matmul %782, %3, %cst_164 {dimension_numbers = #tpu.dot_dimension_numbers<[1], [0], [0], [1], [0, 0, 1, 1], [], []>, precision = #tpu.contract_precision<fp32>} : vector<2x32xf32>, vector<32x96xf32>, vector<2x96xf32> -> vector<2x96xf32>
    %819 = arith.addf %818, %9 : vector<2x96xf32>
    %820 = vector.extract_strided_slice %817 {offsets = [0, 0], sizes = [2, 32], strides = [1, 1]} : vector<2x96xf32> to vector<2x32xf32>
    %821 = vector.extract_strided_slice %819 {offsets = [0, 0], sizes = [2, 32], strides = [1, 1]} : vector<2x96xf32> to vector<2x32xf32>
    %822 = arith.addf %820, %821 : vector<2x32xf32>
    %823 = arith.negf %822 : vector<2x32xf32>
    %824 = math.exp %823 : vector<2x32xf32>
    %cst_165 = arith.constant 1.000000e+00 : f32
    %825 = vector.broadcast %cst_165 : f32 to vector<2x32xf32>
    %826 = arith.addf %825, %824 : vector<2x32xf32>
    %827 = arith.divf %825, %826 : vector<2x32xf32>
    %828 = vector.extract_strided_slice %817 {offsets = [0, 32], sizes = [2, 32], strides = [1, 1]} : vector<2x96xf32> to vector<2x32xf32>
    %829 = vector.extract_strided_slice %819 {offsets = [0, 32], sizes = [2, 32], strides = [1, 1]} : vector<2x96xf32> to vector<2x32xf32>
    %830 = arith.addf %828, %829 : vector<2x32xf32>
    %831 = arith.negf %830 : vector<2x32xf32>
    %832 = math.exp %831 : vector<2x32xf32>
    %cst_166 = arith.constant 1.000000e+00 : f32
    %833 = vector.broadcast %cst_166 : f32 to vector<2x32xf32>
    %834 = arith.addf %833, %832 : vector<2x32xf32>
    %835 = arith.divf %833, %834 : vector<2x32xf32>
    %836 = vector.extract_strided_slice %817 {offsets = [0, 64], sizes = [2, 32], strides = [1, 1]} : vector<2x96xf32> to vector<2x32xf32>
    %837 = vector.extract_strided_slice %819 {offsets = [0, 64], sizes = [2, 32], strides = [1, 1]} : vector<2x96xf32> to vector<2x32xf32>
    %838 = arith.mulf %827, %837 : vector<2x32xf32>
    %839 = arith.addf %836, %838 : vector<2x32xf32>
    %840 = math.tanh %839 : vector<2x32xf32>
    %841 = arith.subf %782, %840 : vector<2x32xf32>
    %842 = arith.mulf %835, %841 : vector<2x32xf32>
    %843 = arith.addf %840, %842 : vector<2x32xf32>
    %cst_167 = arith.constant dense<0.000000e+00> : vector<2x96xf32>
    %844 = tpu.matmul %843, %4, %cst_167 {dimension_numbers = #tpu.dot_dimension_numbers<[1], [0], [0], [1], [0, 0, 1, 1], [], []>, precision = #tpu.contract_precision<fp32>} : vector<2x32xf32>, vector<32x96xf32>, vector<2x96xf32> -> vector<2x96xf32>
    %845 = arith.addf %844, %13 : vector<2x96xf32>
    %cst_168 = arith.constant dense<0.000000e+00> : vector<2x96xf32>
    %846 = tpu.matmul %810, %5, %cst_168 {dimension_numbers = #tpu.dot_dimension_numbers<[1], [0], [0], [1], [0, 0, 1, 1], [], []>, precision = #tpu.contract_precision<fp32>} : vector<2x32xf32>, vector<32x96xf32>, vector<2x96xf32> -> vector<2x96xf32>
    %847 = arith.addf %846, %17 : vector<2x96xf32>
    %848 = vector.extract_strided_slice %845 {offsets = [0, 0], sizes = [2, 32], strides = [1, 1]} : vector<2x96xf32> to vector<2x32xf32>
    %849 = vector.extract_strided_slice %847 {offsets = [0, 0], sizes = [2, 32], strides = [1, 1]} : vector<2x96xf32> to vector<2x32xf32>
    %850 = arith.addf %848, %849 : vector<2x32xf32>
    %851 = arith.negf %850 : vector<2x32xf32>
    %852 = math.exp %851 : vector<2x32xf32>
    %cst_169 = arith.constant 1.000000e+00 : f32
    %853 = vector.broadcast %cst_169 : f32 to vector<2x32xf32>
    %854 = arith.addf %853, %852 : vector<2x32xf32>
    %855 = arith.divf %853, %854 : vector<2x32xf32>
    %856 = vector.extract_strided_slice %845 {offsets = [0, 32], sizes = [2, 32], strides = [1, 1]} : vector<2x96xf32> to vector<2x32xf32>
    %857 = vector.extract_strided_slice %847 {offsets = [0, 32], sizes = [2, 32], strides = [1, 1]} : vector<2x96xf32> to vector<2x32xf32>
    %858 = arith.addf %856, %857 : vector<2x32xf32>
    %859 = arith.negf %858 : vector<2x32xf32>
    %860 = math.exp %859 : vector<2x32xf32>
    %cst_170 = arith.constant 1.000000e+00 : f32
    %861 = vector.broadcast %cst_170 : f32 to vector<2x32xf32>
    %862 = arith.addf %861, %860 : vector<2x32xf32>
    %863 = arith.divf %861, %862 : vector<2x32xf32>
    %864 = vector.extract_strided_slice %845 {offsets = [0, 64], sizes = [2, 32], strides = [1, 1]} : vector<2x96xf32> to vector<2x32xf32>
    %865 = vector.extract_strided_slice %847 {offsets = [0, 64], sizes = [2, 32], strides = [1, 1]} : vector<2x96xf32> to vector<2x32xf32>
    %866 = arith.mulf %855, %865 : vector<2x32xf32>
    %867 = arith.addf %864, %866 : vector<2x32xf32>
    %868 = math.tanh %867 : vector<2x32xf32>
    %869 = arith.subf %810, %868 : vector<2x32xf32>
    %870 = arith.mulf %863, %869 : vector<2x32xf32>
    %871 = arith.addf %868, %870 : vector<2x32xf32>
    %872 = arith.index_cast %c13_i32 : i32 to index
    %c0_171 = arith.constant 0 : index
    %c0_172 = arith.constant 0 : index
    %873 = vector.load %arg7[%872, %c0_171, %c0_172] : memref<16x2x32xf32, #tpu.memory_space<vmem>>, vector<1x2x32xf32>
    %874 = vector.shape_cast %873 : vector<1x2x32xf32> to vector<2x32xf32>
    %875 = vector.shape_cast %871 : vector<2x32xf32> to vector<1x2x32xf32>
    tpu.vector_store %arg7[%872, %c0_171, %c0_172], %875 {strides = array<i32>} : memref<16x2x32xf32, #tpu.memory_space<vmem>>, vector<1x2x32xf32>,
    %c14_i32 = arith.constant 14 : i32
    %876 = arith.index_cast %c14_i32 : i32 to index
    %c0_173 = arith.constant 0 : index
    %c0_174 = arith.constant 0 : index
    %877 = vector.load %arg2[%876, %c0_173, %c0_174] : memref<16x2x96xf32, #tpu.memory_space<vmem>>, vector<1x2x96xf32>
    %878 = vector.shape_cast %877 : vector<1x2x96xf32> to vector<2x96xf32>
    %cst_175 = arith.constant dense<0.000000e+00> : vector<2x96xf32>
    %879 = tpu.matmul %843, %3, %cst_175 {dimension_numbers = #tpu.dot_dimension_numbers<[1], [0], [0], [1], [0, 0, 1, 1], [], []>, precision = #tpu.contract_precision<fp32>} : vector<2x32xf32>, vector<32x96xf32>, vector<2x96xf32> -> vector<2x96xf32>
    %880 = arith.addf %879, %9 : vector<2x96xf32>
    %881 = vector.extract_strided_slice %878 {offsets = [0, 0], sizes = [2, 32], strides = [1, 1]} : vector<2x96xf32> to vector<2x32xf32>
    %882 = vector.extract_strided_slice %880 {offsets = [0, 0], sizes = [2, 32], strides = [1, 1]} : vector<2x96xf32> to vector<2x32xf32>
    %883 = arith.addf %881, %882 : vector<2x32xf32>
    %884 = arith.negf %883 : vector<2x32xf32>
    %885 = math.exp %884 : vector<2x32xf32>
    %cst_176 = arith.constant 1.000000e+00 : f32
    %886 = vector.broadcast %cst_176 : f32 to vector<2x32xf32>
    %887 = arith.addf %886, %885 : vector<2x32xf32>
    %888 = arith.divf %886, %887 : vector<2x32xf32>
    %889 = vector.extract_strided_slice %878 {offsets = [0, 32], sizes = [2, 32], strides = [1, 1]} : vector<2x96xf32> to vector<2x32xf32>
    %890 = vector.extract_strided_slice %880 {offsets = [0, 32], sizes = [2, 32], strides = [1, 1]} : vector<2x96xf32> to vector<2x32xf32>
    %891 = arith.addf %889, %890 : vector<2x32xf32>
    %892 = arith.negf %891 : vector<2x32xf32>
    %893 = math.exp %892 : vector<2x32xf32>
    %cst_177 = arith.constant 1.000000e+00 : f32
    %894 = vector.broadcast %cst_177 : f32 to vector<2x32xf32>
    %895 = arith.addf %894, %893 : vector<2x32xf32>
    %896 = arith.divf %894, %895 : vector<2x32xf32>
    %897 = vector.extract_strided_slice %878 {offsets = [0, 64], sizes = [2, 32], strides = [1, 1]} : vector<2x96xf32> to vector<2x32xf32>
    %898 = vector.extract_strided_slice %880 {offsets = [0, 64], sizes = [2, 32], strides = [1, 1]} : vector<2x96xf32> to vector<2x32xf32>
    %899 = arith.mulf %888, %898 : vector<2x32xf32>
    %900 = arith.addf %897, %899 : vector<2x32xf32>
    %901 = math.tanh %900 : vector<2x32xf32>
    %902 = arith.subf %843, %901 : vector<2x32xf32>
    %903 = arith.mulf %896, %902 : vector<2x32xf32>
    %904 = arith.addf %901, %903 : vector<2x32xf32>
    %cst_178 = arith.constant dense<0.000000e+00> : vector<2x96xf32>
    %905 = tpu.matmul %904, %4, %cst_178 {dimension_numbers = #tpu.dot_dimension_numbers<[1], [0], [0], [1], [0, 0, 1, 1], [], []>, precision = #tpu.contract_precision<fp32>} : vector<2x32xf32>, vector<32x96xf32>, vector<2x96xf32> -> vector<2x96xf32>
    %906 = arith.addf %905, %13 : vector<2x96xf32>
    %cst_179 = arith.constant dense<0.000000e+00> : vector<2x96xf32>
    %907 = tpu.matmul %871, %5, %cst_179 {dimension_numbers = #tpu.dot_dimension_numbers<[1], [0], [0], [1], [0, 0, 1, 1], [], []>, precision = #tpu.contract_precision<fp32>} : vector<2x32xf32>, vector<32x96xf32>, vector<2x96xf32> -> vector<2x96xf32>
    %908 = arith.addf %907, %17 : vector<2x96xf32>
    %909 = vector.extract_strided_slice %906 {offsets = [0, 0], sizes = [2, 32], strides = [1, 1]} : vector<2x96xf32> to vector<2x32xf32>
    %910 = vector.extract_strided_slice %908 {offsets = [0, 0], sizes = [2, 32], strides = [1, 1]} : vector<2x96xf32> to vector<2x32xf32>
    %911 = arith.addf %909, %910 : vector<2x32xf32>
    %912 = arith.negf %911 : vector<2x32xf32>
    %913 = math.exp %912 : vector<2x32xf32>
    %cst_180 = arith.constant 1.000000e+00 : f32
    %914 = vector.broadcast %cst_180 : f32 to vector<2x32xf32>
    %915 = arith.addf %914, %913 : vector<2x32xf32>
    %916 = arith.divf %914, %915 : vector<2x32xf32>
    %917 = vector.extract_strided_slice %906 {offsets = [0, 32], sizes = [2, 32], strides = [1, 1]} : vector<2x96xf32> to vector<2x32xf32>
    %918 = vector.extract_strided_slice %908 {offsets = [0, 32], sizes = [2, 32], strides = [1, 1]} : vector<2x96xf32> to vector<2x32xf32>
    %919 = arith.addf %917, %918 : vector<2x32xf32>
    %920 = arith.negf %919 : vector<2x32xf32>
    %921 = math.exp %920 : vector<2x32xf32>
    %cst_181 = arith.constant 1.000000e+00 : f32
    %922 = vector.broadcast %cst_181 : f32 to vector<2x32xf32>
    %923 = arith.addf %922, %921 : vector<2x32xf32>
    %924 = arith.divf %922, %923 : vector<2x32xf32>
    %925 = vector.extract_strided_slice %906 {offsets = [0, 64], sizes = [2, 32], strides = [1, 1]} : vector<2x96xf32> to vector<2x32xf32>
    %926 = vector.extract_strided_slice %908 {offsets = [0, 64], sizes = [2, 32], strides = [1, 1]} : vector<2x96xf32> to vector<2x32xf32>
    %927 = arith.mulf %916, %926 : vector<2x32xf32>
    %928 = arith.addf %925, %927 : vector<2x32xf32>
    %929 = math.tanh %928 : vector<2x32xf32>
    %930 = arith.subf %871, %929 : vector<2x32xf32>
    %931 = arith.mulf %924, %930 : vector<2x32xf32>
    %932 = arith.addf %929, %931 : vector<2x32xf32>
    %933 = arith.index_cast %c14_i32 : i32 to index
    %c0_182 = arith.constant 0 : index
    %c0_183 = arith.constant 0 : index
    %934 = vector.load %arg7[%933, %c0_182, %c0_183] : memref<16x2x32xf32, #tpu.memory_space<vmem>>, vector<1x2x32xf32>
    %935 = vector.shape_cast %934 : vector<1x2x32xf32> to vector<2x32xf32>
    %936 = vector.shape_cast %932 : vector<2x32xf32> to vector<1x2x32xf32>
    tpu.vector_store %arg7[%933, %c0_182, %c0_183], %936 {strides = array<i32>} : memref<16x2x32xf32, #tpu.memory_space<vmem>>, vector<1x2x32xf32>,
    %c15_i32 = arith.constant 15 : i32
    %937 = arith.index_cast %c15_i32 : i32 to index
    %c0_184 = arith.constant 0 : index
    %c0_185 = arith.constant 0 : index
    %938 = vector.load %arg2[%937, %c0_184, %c0_185] : memref<16x2x96xf32, #tpu.memory_space<vmem>>, vector<1x2x96xf32>
    %939 = vector.shape_cast %938 : vector<1x2x96xf32> to vector<2x96xf32>
    %cst_186 = arith.constant dense<0.000000e+00> : vector<2x96xf32>
    %940 = tpu.matmul %904, %3, %cst_186 {dimension_numbers = #tpu.dot_dimension_numbers<[1], [0], [0], [1], [0, 0, 1, 1], [], []>, precision = #tpu.contract_precision<fp32>} : vector<2x32xf32>, vector<32x96xf32>, vector<2x96xf32> -> vector<2x96xf32>
    %941 = arith.addf %940, %9 : vector<2x96xf32>
    %942 = vector.extract_strided_slice %939 {offsets = [0, 0], sizes = [2, 32], strides = [1, 1]} : vector<2x96xf32> to vector<2x32xf32>
    %943 = vector.extract_strided_slice %941 {offsets = [0, 0], sizes = [2, 32], strides = [1, 1]} : vector<2x96xf32> to vector<2x32xf32>
    %944 = arith.addf %942, %943 : vector<2x32xf32>
    %945 = arith.negf %944 : vector<2x32xf32>
    %946 = math.exp %945 : vector<2x32xf32>
    %cst_187 = arith.constant 1.000000e+00 : f32
    %947 = vector.broadcast %cst_187 : f32 to vector<2x32xf32>
    %948 = arith.addf %947, %946 : vector<2x32xf32>
    %949 = arith.divf %947, %948 : vector<2x32xf32>
    %950 = vector.extract_strided_slice %939 {offsets = [0, 32], sizes = [2, 32], strides = [1, 1]} : vector<2x96xf32> to vector<2x32xf32>
    %951 = vector.extract_strided_slice %941 {offsets = [0, 32], sizes = [2, 32], strides = [1, 1]} : vector<2x96xf32> to vector<2x32xf32>
    %952 = arith.addf %950, %951 : vector<2x32xf32>
    %953 = arith.negf %952 : vector<2x32xf32>
    %954 = math.exp %953 : vector<2x32xf32>
    %cst_188 = arith.constant 1.000000e+00 : f32
    %955 = vector.broadcast %cst_188 : f32 to vector<2x32xf32>
    %956 = arith.addf %955, %954 : vector<2x32xf32>
    %957 = arith.divf %955, %956 : vector<2x32xf32>
    %958 = vector.extract_strided_slice %939 {offsets = [0, 64], sizes = [2, 32], strides = [1, 1]} : vector<2x96xf32> to vector<2x32xf32>
    %959 = vector.extract_strided_slice %941 {offsets = [0, 64], sizes = [2, 32], strides = [1, 1]} : vector<2x96xf32> to vector<2x32xf32>
    %960 = arith.mulf %949, %959 : vector<2x32xf32>
    %961 = arith.addf %958, %960 : vector<2x32xf32>
    %962 = math.tanh %961 : vector<2x32xf32>
    %963 = arith.subf %904, %962 : vector<2x32xf32>
    %964 = arith.mulf %957, %963 : vector<2x32xf32>
    %965 = arith.addf %962, %964 : vector<2x32xf32>
    %cst_189 = arith.constant dense<0.000000e+00> : vector<2x96xf32>
    %966 = tpu.matmul %965, %4, %cst_189 {dimension_numbers = #tpu.dot_dimension_numbers<[1], [0], [0], [1], [0, 0, 1, 1], [], []>, precision = #tpu.contract_precision<fp32>} : vector<2x32xf32>, vector<32x96xf32>, vector<2x96xf32> -> vector<2x96xf32>
    %967 = arith.addf %966, %13 : vector<2x96xf32>
    %cst_190 = arith.constant dense<0.000000e+00> : vector<2x96xf32>
    %968 = tpu.matmul %932, %5, %cst_190 {dimension_numbers = #tpu.dot_dimension_numbers<[1], [0], [0], [1], [0, 0, 1, 1], [], []>, precision = #tpu.contract_precision<fp32>} : vector<2x32xf32>, vector<32x96xf32>, vector<2x96xf32> -> vector<2x96xf32>
    %969 = arith.addf %968, %17 : vector<2x96xf32>
    %970 = vector.extract_strided_slice %967 {offsets = [0, 0], sizes = [2, 32], strides = [1, 1]} : vector<2x96xf32> to vector<2x32xf32>
    %971 = vector.extract_strided_slice %969 {offsets = [0, 0], sizes = [2, 32], strides = [1, 1]} : vector<2x96xf32> to vector<2x32xf32>
    %972 = arith.addf %970, %971 : vector<2x32xf32>
    %973 = arith.negf %972 : vector<2x32xf32>
    %974 = math.exp %973 : vector<2x32xf32>
    %cst_191 = arith.constant 1.000000e+00 : f32
    %975 = vector.broadcast %cst_191 : f32 to vector<2x32xf32>
    %976 = arith.addf %975, %974 : vector<2x32xf32>
    %977 = arith.divf %975, %976 : vector<2x32xf32>
    %978 = vector.extract_strided_slice %967 {offsets = [0, 32], sizes = [2, 32], strides = [1, 1]} : vector<2x96xf32> to vector<2x32xf32>
    %979 = vector.extract_strided_slice %969 {offsets = [0, 32], sizes = [2, 32], strides = [1, 1]} : vector<2x96xf32> to vector<2x32xf32>
    %980 = arith.addf %978, %979 : vector<2x32xf32>
    %981 = arith.negf %980 : vector<2x32xf32>
    %982 = math.exp %981 : vector<2x32xf32>
    %cst_192 = arith.constant 1.000000e+00 : f32
    %983 = vector.broadcast %cst_192 : f32 to vector<2x32xf32>
    %984 = arith.addf %983, %982 : vector<2x32xf32>
    %985 = arith.divf %983, %984 : vector<2x32xf32>
    %986 = vector.extract_strided_slice %967 {offsets = [0, 64], sizes = [2, 32], strides = [1, 1]} : vector<2x96xf32> to vector<2x32xf32>
    %987 = vector.extract_strided_slice %969 {offsets = [0, 64], sizes = [2, 32], strides = [1, 1]} : vector<2x96xf32> to vector<2x32xf32>
    %988 = arith.mulf %977, %987 : vector<2x32xf32>
    %989 = arith.addf %986, %988 : vector<2x32xf32>
    %990 = math.tanh %989 : vector<2x32xf32>
    %991 = arith.subf %932, %990 : vector<2x32xf32>
    %992 = arith.mulf %985, %991 : vector<2x32xf32>
    %993 = arith.addf %990, %992 : vector<2x32xf32>
    %994 = arith.index_cast %c15_i32 : i32 to index
    %c0_193 = arith.constant 0 : index
    %c0_194 = arith.constant 0 : index
    %995 = vector.load %arg7[%994, %c0_193, %c0_194] : memref<16x2x32xf32, #tpu.memory_space<vmem>>, vector<1x2x32xf32>
    %996 = vector.shape_cast %995 : vector<1x2x32xf32> to vector<2x32xf32>
    %997 = vector.shape_cast %993 : vector<2x32xf32> to vector<1x2x32xf32>
    tpu.vector_store %arg7[%994, %c0_193, %c0_194], %997 {strides = array<i32>} : memref<16x2x32xf32, #tpu.memory_space<vmem>>, vector<1x2x32xf32>,
    %c16_i32 = arith.constant 16 : i32
    %c0_195 = arith.constant 0 : index
    %c0_196 = arith.constant 0 : index
    %c0_197 = arith.constant 0 : index
    %998 = vector.load %arg8[%c0_195, %c0_196, %c0_197] : memref<2x2x32xf32, #tpu.memory_space<vmem>>, vector<1x2x32xf32>
    %999 = vector.shape_cast %998 : vector<1x2x32xf32> to vector<2x32xf32>
    %1000 = vector.shape_cast %965 : vector<2x32xf32> to vector<1x2x32xf32>
    tpu.vector_store %arg8[%c0_195, %c0_196, %c0_197], %1000 {strides = array<i32>} : memref<2x2x32xf32, #tpu.memory_space<vmem>>, vector<1x2x32xf32>,
    %c1_198 = arith.constant 1 : index
    %c0_199 = arith.constant 0 : index
    %c0_200 = arith.constant 0 : index
    %1001 = vector.load %arg8[%c1_198, %c0_199, %c0_200] : memref<2x2x32xf32, #tpu.memory_space<vmem>>, vector<1x2x32xf32>
    %1002 = vector.shape_cast %1001 : vector<1x2x32xf32> to vector<2x32xf32>
    %1003 = vector.shape_cast %993 : vector<2x32xf32> to vector<1x2x32xf32>
    tpu.vector_store %arg8[%c1_198, %c0_199, %c0_200], %1003 {strides = array<i32>} : memref<2x2x32xf32, #tpu.memory_space<vmem>>, vector<1x2x32xf32>,
    return
  }
  func.func @transform_0(%arg0: i32, %arg1: i32) -> (i32, i32, i32) {
    %c0_i32 = arith.constant 0 : i32
    %c0_i32_0 = arith.constant 0 : i32
    return %arg1, %arg0, %c0_i32 : i32, i32, i32
  }
  func.func @transform_1(%arg0: i32, %arg1: i32) -> (i32, i32) {
    %c0_i32 = arith.constant 0 : i32
    %c0_i32_0 = arith.constant 0 : i32
    %c0_i32_1 = arith.constant 0 : i32
    return %c0_i32, %c0_i32_0 : i32, i32
  }
  func.func @transform_2(%arg0: i32, %arg1: i32) -> (i32, i32) {
    %c0_i32 = arith.constant 0 : i32
    %c0_i32_0 = arith.constant 0 : i32
    %c0_i32_1 = arith.constant 0 : i32
    return %c0_i32, %c0_i32_0 : i32, i32
  }
  func.func @transform_3(%arg0: i32, %arg1: i32) -> (i32, i32) {
    %c0_i32 = arith.constant 0 : i32
    %c0_i32_0 = arith.constant 0 : i32
    %c0_i32_1 = arith.constant 0 : i32
    return %c0_i32, %c0_i32_0 : i32, i32
  }
  func.func @transform_4(%arg0: i32, %arg1: i32) -> (i32, i32, i32) {
    %c0_i32 = arith.constant 0 : i32
    %c0_i32_0 = arith.constant 0 : i32
    %c0_i32_1 = arith.constant 0 : i32
    %c0_i32_2 = arith.constant 0 : i32
    return %c0_i32, %c0_i32_0, %c0_i32_1 : i32, i32, i32
  }
  func.func @transform_5(%arg0: i32, %arg1: i32) -> (i32, i32, i32) {
    %c0_i32 = arith.constant 0 : i32
    %c0_i32_0 = arith.constant 0 : i32
    return %arg1, %arg0, %c0_i32 : i32, i32, i32
  }
}

</mosaic_0001>

<bundles_post_ra>
// kernel: sequence_model_forward.1
= control target key start
LH: loop header
LB: loop body
LE: loop exit
PB: predicated region body
PF: predicated region fallthrough
CT: control target
= control target key end

     0   :  { %s32085_s18 = smov 0   ;;  %s32087_s19 = smov 0   ;;  %s34724_s0 = inlined_call_operand.vmem [shape: f32[32,2,96], index: 0, kind: input, shape index: {}]   ;;  %s34725_s1 = inlined_call_operand.vmem [shape: f32[32,96], index: 1, kind: input, shape index: {}]   ;;  %s34726_s2 = inlined_call_operand.vmem [shape: f32[32,96], index: 2, kind: input, shape index: {}]   ;;  %s34727_s3 = inlined_call_operand.vmem [shape: f32[32,96], index: 3, kind: input, shape index: {}]   ;;  %s34728_s4 = inlined_call_operand.vmem [shape: f32[3,1,96], index: 4, kind: input, shape index: {}]   ;;  %s34729_s5 = inlined_call_operand.vmem [shape: f32[32,2,32], index: 5, kind: output, shape index: {}]  }
   0x1   :  { %s32089_s20 = smov 0  }
   0x2 LB: > { %s24_s21 = sadd.s32 1, %s32042_s19  ;;  %p24849_p0 = scmp.ge.s32.totalorder %s32046_s20, 1  ;;  %s32046_s20 = sphi %s32089_s20, %s15_s20   ;;  %s32042_s19 = sphi %s32087_s19, %s34731_s19   ;;  %s32038_s18 = sphi %s32085_s18, %s34730_s18  }
   0x3   : > { %p25_p1 = scmp.ge.s32.totalorder %s24_s21, 2  ;;  %p207_p2 = scmp.lt.s32.totalorder %s32046_s20, 3 }
   0x5   : > { %s34733_s21 = smov (%p25_p1, %s24_s21), 0  ;;  %p208_p3 = pnand %p24849_p0, %p207_p2 }
   0x6   : > { %s24850_s22 = sshll.u32 (!%p208_p3), %s32038_s18, 4  ;;  %p24854_p5 = scmp.ne.s32.totalorder (!%p208_p3), %s32038_s18, 0 }
   0x7   : > { %211 = sbr.rel (%p208_p3) target bundleno = 15531 (0x3cab), region = 40  ;;  %p242_p4 = scmp.lt.s32.totalorder (!%p208_p3), %s24850_s22, 31 }
   0xe   : > { %s34735_s22 = smov (!%p242_p4, %s24850_s22), 31  ;;  %262 = sbr.rel (%p24854_p5) target bundleno = 21 (0x15), region = 44 }
   0xf   : > { %s24851_s23 = sshll.u32 %s34735_s22, 1  ;;  %vm263_vm0 = vcmask (!%p24854_p5), 254976   ;;  %v32048_v0 = vmov (!%p24854_p5), 0.0  }
  0x10   : > { %s32106_s26 = scalar_lea.vmem %s34724_s0, %s24851_s23  ;;  %s32111_s29 = scalar_lea.vmem %s34729_s5, %s24851_s23  ;;  %264 = vst.msk [vmem:[#allocation2] sm:$0x3] (!%p24854_p5), %vm263_vm0, %v32048_v0  ;;  %265 = vst.msk [vmem:[#allocation2 + $0x2] sm:$0x3] (!%p24854_p5), %vm263_vm0, %v32048_v0 }
  0x15 PF: > { %v266_v1 = vld [vmem:[%s34725_s1] sm:$0xff]  ;;  %v267_v2 = vld [vmem:[%s34725_s1 + $0x8] sm:$0xff]  ;;  %v268_v3 = vld [vmem:[%s34725_s1 + $0x10] sm:$0xff]  ;;  %v32049_v4 = vmov 0.0|0.0   ;;  %vm32050_vm1 = vmmov 0   ;;  %v32051_v9 = vmov 0.0  }
  0x16   : > { %29532 = vmatprep.subr.bf16.mxu0 %v32049_v4  ;;  %v310_v5 = vand.u32 4294901760, %v266_v1  ;;  %v313_v6 = vand.u32 4294901760, %v267_v2  ;;  %v269_v7 = vld [vmem:[%s34725_s1 + $0x18] sm:$0xff]  ;;  %v316_v8 = vand.u32 4294901760, %v268_v3  ;;  %26372 = vmatprep.mubr.msk.f32.mxu0 %vm32050_vm1, %v32051_v9  ;;  %vm305_vm2 = vcmask 261120   ;;  %s32052_s15 = smov 64  }
  0x17   : > { %v32128_v10 = vld [vmem:[#allocation2] sm:$0x3]  ;;  %v319_v11 = vand.u32 4294901760, %v269_v7  ;;  %29568 = vmatprep.subr.bf16.mxu1 %v32049_v4  ;;  %26438 = vmatprep.mubr.msk.f32.mxu1 %vm32050_vm1, %v32051_v9  ;;  %s32053_s16 = smov 32   ;;  %v271_v62 = vld [vmem:[%s34726_s2 + $0x8] sm:$0xff]  ;;  %s32054_s13 = smov 96  }
  0x18   : > { %v32133_v12 = vpack.c.bf16 %v313_v6, %v310_v5  ;;  %v307_v13 = vsel %vm305_vm2, %v32128_v10, 0  ;;  %v390_v14 = vsub.f32 %v266_v1, %v310_v5  ;;  %v397_v15 = vsub.f32 %v267_v2, %v313_v6  ;;  %v32190_v42 = vld [vmem:[%s34728_s4] ss:$0 sm:$0xff]  ;;  %v275_v2 = vld [vmem:[%s34727_s3 + $0x8] sm:$0xff]  ;;  %v32215_v6 = vld [vmem:[#allocation2 + $0x2] sm:$0x3] }
  0x19   : > { %v378_v16 = vand.u32 4294901760, %v307_v13  ;;  %v404_v17 = vsub.f32 %v268_v3, %v316_v8  ;;  %v411_v18 = vsub.f32 %v269_v7, %v319_v11  ;;  %v32138_v19 = vpack.c.bf16 %v319_v11, %v316_v8  ;;  %v304_v46 = vld [vmem:[%s32106_s26] sm:$0x3] }
  0x1a   : > { %29534 = vmatpush3.bf16.msra.mxu0 %v32133_v12  ;;  %v391_v20 = vand.u32 4294901760, %v390_v14  ;;  %v398_v21 = vand.u32 4294901760, %v397_v15  ;;  %v32152_v38 = vpack.c.bf16 %v397_v15, %v390_v14  ;;  %v270_v61 = vld [vmem:[%s34726_s2] sm:$0xff]  ;;  %v836_v0 = vand.u32 4294901760, %v271_v62 }
  0x1b   : > { %29535 = vmatprep.subr.bf16.mxu0 %v32049_v4  ;;  %v379_v22 = vsub.f32 %v307_v13, %v378_v16  ;;  %v405_v23 = vand.u32 4294901760, %v404_v17  ;;  %v412_v24 = vand.u32 4294901760, %v411_v18  ;;  %v32156_v39 = vpack.c.bf16 %v411_v18, %v404_v17  ;;  %v274_v1 = vld [vmem:[%s34727_s3] sm:$0xff] }
  0x1c   : > { %v392_v25 = vsub.f32 %v390_v14, %v391_v20  ;;  %v399_v26 = vsub.f32 %v397_v15, %v398_v21  ;;  %v32168_v40 = vpack.c.bf16 %v398_v21, %v391_v20  ;;  %v833_v63 = vand.u32 4294901760, %v270_v61  ;;  %v272_v14 = vld [vmem:[%s34726_s2 + $0x10] sm:$0xff]  ;;  %v273_v15 = vld [vmem:[%s34726_s2 + $0x18] sm:$0xff] }
  0x1d   : > { %v380_v27 = vand.u32 4294901760, %v379_v22  ;;  %v406_v28 = vsub.f32 %v404_v17, %v405_v23  ;;  %v413_v29 = vsub.f32 %v411_v18, %v412_v24  ;;  %v32172_v41 = vpack.c.bf16 %v412_v24, %v405_v23  ;;  %v276_v20 = vld [vmem:[%s34727_s3 + $0x10] sm:$0xff]  ;;  %v277_v21 = vld [vmem:[%s34727_s3 + $0x18] sm:$0xff] }
  0x1e   : > { %29537 = vmatpush3.bf16.msra.mxu0 %v32138_v19  ;;  %v393_v30 = vand.u32 4294901760, %v392_v25  ;;  %v400_v31 = vand.u32 4294901760, %v399_v26  ;;  %v1321_v3 = vand.u32 4294901760, %v274_v1  ;;  %v1324_v5 = vand.u32 4294901760, %v275_v2 }
  0x1f   : > { %v381_v32 = vsub.f32 %v379_v22, %v380_v27  ;;  %29538 = vmatprep.subr.bf16.mxu0 %v32049_v4  ;;  %v407_v34 = vand.u32 4294901760, %v406_v28  ;;  %v414_v35 = vand.u32 4294901760, %v413_v29  ;;  %v32217_v7 = vpack.c.bf16 %v836_v0, %v833_v63 }
  0x20   : > { %v32143_v33 = vpack.c.bf16 %v400_v31, %v393_v30  ;;  %v32219_v8 = vsub.f32 %v270_v61, %v833_v63  ;;  %v1318_v11 = vsel %vm305_vm2, %v32215_v6, 0  ;;  %v32225_v13 = vpack.c.bf16 %v1324_v5, %v1321_v3 }
  0x21   : > { %v382_v36 = vand.u32 4294901760, %v381_v32  ;;  %v32146_v37 = vpack.c.bf16 %v414_v35, %v407_v34  ;;  %29570 = vmatpush3.bf16.msra.mxu1 %v32217_v7  ;;  %v839_v17 = vand.u32 4294901760, %v272_v14  ;;  %v842_v18 = vand.u32 4294901760, %v273_v15 }
  0x22   : > { %29571 = vmatprep.subr.bf16.mxu1 %v32049_v4  ;;  %v1327_v24 = vand.u32 4294901760, %v276_v20  ;;  %v1330_v25 = vand.u32 4294901760, %v277_v21  ;;  %v32260_v31 = vsub.f32 %v275_v2, %v1324_v5  ;;  %vm1842_vm3 = vcmask 254976  }
  0x23   : > { %26373 = vmatmul.mubr.f32.vlgmr.msra.gmra.mrb[0].mxu0 %v382_v36  ;;  %v32251_v28 = vpack.c.bf16 %v842_v18, %v839_v17  ;;  %v927_v36 = vsub.f32 %v272_v14, %v839_v17 }
  0x24   : > { %29540 = vmatpush3.bf16.msra.mxu0 %v32143_v33  ;;  %26383 = vmatprep.mubr.msk.f32.mxu0 %vm32050_vm1, %v32051_v9  ;;  %v32262_v32 = vpack.c.bf16 %v1330_v25, %v1327_v24 }
  0x25   : > { %29541 = vmatprep.subr.bf16.mxu0 %v32049_v4  ;;  %29573 = vmatpush3.bf16.msra.mxu1 %v32251_v28 }
  0x26   : > { %29574 = vmatprep.subr.bf16.mxu1 %v32049_v4 }
  0x28   : > { %29543 = vmatpush3.bf16.msra.mxu0 %v32146_v37 }
  0x29   : > { %29544 = vmatprep.subr.bf16.mxu0 %v32049_v4 }
  0x2b   : > { %26384 = vmatmul.mubr.f32.vlgmr.msra.gmra.mrb[0].mxu0 %v378_v16 }
  0x2c   : > { %29546 = vmatpush3.bf16.msra.mxu0 %v32152_v38  ;;  %26394 = vmatprep.mubr.msk.f32.mxu0 %vm32050_vm1, %v32051_v9 }
  0x2d   : > { %29547 = vmatprep.subr.bf16.mxu0 %v32049_v4 }
  0x30   : > { %29549 = vmatpush3.bf16.msra.mxu0 %v32156_v39 }
  0x31   : > { %29550 = vmatprep.subr.bf16.mxu0 %v32049_v4 }
  0x33   : > { %26395 = vmatmul.mubr.f32.vlgmr.msra.gmra.mrb[0].mxu0 %v379_v22  ;;  %v914_v22 = vand.u32 4294901760, %v32219_v8 }
  0x34   : > { %29552 = vmatpush3.bf16.msra.mxu0 %v32133_v12  ;;  %26405 = vmatprep.mubr.msk.f32.mxu0 %vm32050_vm1, %v32051_v9 }
  0x35   : > { %29553 = vmatprep.subr.bf16.mxu0 %v32049_v4  ;;  %v915_v29 = vsub.f32 %v32219_v8, %v914_v22 }
  0x38   : > { %29555 = vmatpush3.bf16.msra.mxu0 %v32138_v19 }
  0x39   : > { %29556 = vmatprep.subr.bf16.mxu0 %v32049_v4 }
  0x3b   : > { %26406 = vmatmul.mubr.f32.vlgmr.msra.gmra.mrb[0].mxu0 %v380_v27  ;;  %v32249_v27 = vsub.f32 %v274_v1, %v1321_v3 }
  0x3c   : > { %29558 = vmatpush3.bf16.msra.mxu0 %v32168_v40  ;;  %26416 = vmatprep.mubr.msk.f32.mxu0 %vm32050_vm1, %v32051_v9 }
  0x3d   : > { %29559 = vmatprep.subr.bf16.mxu0 %v32049_v4  ;;  %v1402_v35 = vand.u32 4294901760, %v32249_v27 }
  0x40   : > { %29561 = vmatpush3.bf16.msra.mxu0 %v32172_v41 }
  0x41   : > { %29562 = vmatprep.subr.bf16.mxu0 %v32049_v4 }
  0x43   : > { %26417 = vmatmul.mubr.f32.vlgmr.msra.gmra.mrb[0].mxu0 %v378_v16 }
  0x44   : > { %29564 = vmatpush3.bf16.msra.mxu0 %v32133_v12  ;;  %26427 = vmatprep.mubr.msk.f32.mxu0 %vm32050_vm1, %v32051_v9 }
  0x45   : > { %29565 = vmatprep.subr.bf16.mxu0 %v32049_v4 }
  0x48   : > { %29567 = vmatpush3.bf16.msra.mxu0 %v32138_v19 }
  0x49   : > { %29604 = vmatprep.subr.bf16.mxu0 %v32049_v4 }
  0x4b   : > { %26428 = vmatmul.mubr.f32.vlgmr.msra.gmra.mrb[0].mxu0 %v378_v16  ;;  %v32233_v16 = vand.u32 4294901760, %v1318_v11 }
  0x4c   : > { %26504 = vmatprep.mubr.msk.f32.mxu0 %vm32050_vm1, %v32051_v9  ;;  %29606 = vmatpush3.bf16.msra.mxu0 %v32225_v13 }
  0x4d   : > { %v32247_v26 = vsub.f32 %v1318_v11, %v32233_v16  ;;  %29607 = vmatprep.subr.bf16.mxu0 %v32049_v4 }
  0x4f   : > { %v1391_v34 = vand.u32 4294901760, %v32247_v26 }
  0x50   : > { %29609 = vmatpush3.bf16.msra.mxu0 %v32262_v32 }
  0x51   : > { %29610 = vmatprep.subr.bf16.mxu0 %v32049_v4 }
 0x11e   : > { %v790_v43 = vpop.f32.mrb[0].mxu0 }
 0x11f   : > { %v31260_v44 = vadd.f32 %v32190_v42, %v790_v43  ;;  %v26429_v45 = vpop.f32.mrb[1].mxu0  ;;  %v916_v43 = vand.u32 4294901760, %v915_v29 }
 0x120   : > { %v1409_v45 = vand.u32 4294901760, %v32260_v31 }
 0x121   : > { %802 = vrot.lane.b32.xlu0 %v31260_v44, %s32052_s15  ;;  %v794_v47 = vadd.f32 %v31260_v44, %v304_v46 }
 0x123   : > { %v24860_v48 = vmul.f32 -1.442695, %v794_v47  ;;  %v1392_v47 = vsub.f32 %v32247_v26, %v1391_v34 }
 0x125   : > { %31819 = vpow2.f32 %v24860_v48  ;;  %v1403_v48 = vsub.f32 %v32249_v27, %v1402_v35 }
 0x12f   : > { %v31820_v49 = vpop.eup %31819 }
 0x130   : > { %v798_v50 = vadd.f32 1.0, %v31820_v49  ;;  %v928_v49 = vand.u32 4294901760, %v927_v36 }
 0x132   : > { %31821 = vrcp.f32 %v798_v50  ;;  %v1415_v50 = vsub.f32 %v276_v20, %v1327_v24  ;;  %v32300_v20 = vpack.c.bf16 %v32260_v31, %v32249_v27  ;;  %v32326_v27 = vpack.c.bf16 %v1409_v45, %v1402_v35 }
 0x13c   : > { %v31822_v51 = vpop.eup %31821 }
 0x193   : > { %v803_v52 = vpop.permute.xlu0 %802 }
 0x194   : > { %v805_v53 = vmul.f32 %v31822_v51, %v803_v52  ;;  %v1410_v52 = vsub.f32 %v32260_v31, %v1409_v45 }
 0x196   : > { %807 = vrot.lane.b32.xlu0 %v805_v53, %s32052_s15 }
 0x208   : > { %v808_v54 = vpop.permute.xlu0 %807 }
 0x209   : > { %v810_v55 = vadd.f32 %v808_v54, %v304_v46  ;;  %v934_v46 = vsub.f32 %v273_v15, %v842_v18  ;;  %v1422_v54 = vsub.f32 %v277_v21, %v1330_v25 }
 0x20b   : > { %31823 = vtanh.f32 %v810_v55  ;;  %v935_v53 = vand.u32 4294901760, %v934_v46  ;;  %v32303_v21 = vpack.c.bf16 %v934_v46, %v927_v36  ;;  %v32307_v24 = vpack.c.bf16 %v1422_v54, %v1415_v50 }
 0x20d   : > { %v936_v63 = vsub.f32 %v934_v46, %v935_v53  ;;  %v32329_v29 = vpack.c.bf16 %v935_v53, %v928_v49 }
 0x20f   : > { %v937_v5 = vand.u32 4294901760, %v936_v63 }
 0x215   : > { %v32196_v56 = vpop.eup %31823 }
 0x216   : > { %813 = vrot.lane.b32.xlu1 %v32196_v56, %s32052_s15 }
 0x288   : > { %v814_v57 = vpop.permute.xlu1 %813 }
 0x289   : > { %v816_v58 = vsub.f32 %v32128_v10, %v814_v57  ;;  %v32221_v10 = vsub.f32 %v271_v62, %v836_v0  ;;  %v1393_v57 = vand.u32 4294901760, %v1392_v47  ;;  %v1411_v62 = vand.u32 4294901760, %v1410_v52  ;;  %v24862_v47 = vld [vmem:[%s32106_s26 + $0x2] sm:$0x3] }
 0x28a   : > { %v1423_v0 = vand.u32 4294901760, %v1422_v54 }
 0x28b   : > { %818 = vrot.lane.b32.xlu1 %v816_v58, %s32053_s16  ;;  %v921_v23 = vand.u32 4294901760, %v32221_v10  ;;  %v1404_v58 = vand.u32 4294901760, %v1403_v48  ;;  %26505 = vmatmul.mubr.f32.vlgmr.msra.gmra.mrb[2].mxu0 %v1393_v57  ;;  %v32295_v18 = vpack.c.bf16 %v32221_v10, %v32219_v8 }
 0x28c   : > { %v1424_v11 = vsub.f32 %v1422_v54, %v1423_v0  ;;  %26515 = vmatprep.mubr.msk.f32.mxu0 %vm32050_vm1, %v32051_v9 }
 0x28d   : > { %v922_v30 = vsub.f32 %v32221_v10, %v921_v23  ;;  %v32283_v3 = vpack.c.bf16 %v1411_v62, %v1404_v58  ;;  %v32323_v25 = vpack.c.bf16 %v921_v23, %v914_v22 }
 0x28e   : > { %v1425_v15 = vand.u32 4294901760, %v1424_v11 }
 0x28f   : > { %v923_v44 = vand.u32 4294901760, %v922_v30  ;;  %29612 = vmatpush3.bf16.msra.mxu0 %v32283_v3 }
 0x290   : > { %29613 = vmatprep.subr.bf16.mxu0 %v32049_v4 }
 0x2fd   : > { %v819_v59 = vpop.permute.xlu1 %818 }
 0x2fe   : > { %v821_v60 = vmul.f32 %v31822_v51, %v819_v59  ;;  %v32274_v51 = vpack.c.bf16 %v923_v44, %v916_v43  ;;  %v929_v59 = vsub.f32 %v927_v36, %v928_v49 }
 0x300   : > { %823 = vrot.lane.b32.xlu0 %v821_v60, %s32053_s16  ;;  %v1416_v60 = vand.u32 4294901760, %v1415_v50  ;;  %v930_v1 = vand.u32 4294901760, %v929_v59 }
 0x302   : > { %v1417_v2 = vsub.f32 %v1415_v50, %v1416_v60  ;;  %v32334_v30 = vpack.c.bf16 %v1423_v0, %v1416_v60  ;;  %v32446_v0 = vld [vmem:[%s34728_s4 + $0x2] ss:$0 sm:$0xff] }
 0x304   : > { %v1418_v14 = vand.u32 4294901760, %v1417_v2 }
 0x306   : > { %v32291_v17 = vpack.c.bf16 %v1425_v15, %v1418_v14 }
 0x308   : > { %29615 = vmatpush3.bf16.msra.mxu0 %v32291_v17 }
 0x309   : > { %29616 = vmatprep.subr.bf16.mxu0 %v32049_v4 }
 0x30b   : > { %26516 = vmatmul.mubr.f32.vlgmr.msra.gmra.mrb[2].mxu0 %v32233_v16 }
 0x30c   : > { %29618 = vmatpush3.bf16.msra.mxu0 %v32300_v20  ;;  %26526 = vmatprep.mubr.msk.f32.mxu0 %vm32050_vm1, %v32051_v9 }
 0x30d   : > { %29619 = vmatprep.subr.bf16.mxu0 %v32049_v4 }
 0x310   : > { %29621 = vmatpush3.bf16.msra.mxu0 %v32307_v24 }
 0x311   : > { %29622 = vmatprep.subr.bf16.mxu0 %v32049_v4 }
 0x313   : > { %26527 = vmatmul.mubr.f32.vlgmr.msra.gmra.mrb[2].mxu0 %v32247_v26 }
 0x314   : > { %29624 = vmatpush3.bf16.msra.mxu0 %v32225_v13  ;;  %26537 = vmatprep.mubr.msk.f32.mxu0 %vm32050_vm1, %v32051_v9 }
 0x315   : > { %29625 = vmatprep.subr.bf16.mxu0 %v32049_v4 }
 0x318   : > { %29627 = vmatpush3.bf16.msra.mxu0 %v32262_v32 }
 0x319   : > { %29628 = vmatprep.subr.bf16.mxu0 %v32049_v4 }
 0x31b   : > { %26538 = vmatmul.mubr.f32.vlgmr.msra.gmra.mrb[2].mxu0 %v1391_v34 }
 0x31c   : > { %29630 = vmatpush3.bf16.msra.mxu0 %v32326_v27  ;;  %26548 = vmatprep.mubr.msk.f32.mxu0 %vm32050_vm1, %v32051_v9 }
 0x31d   : > { %29631 = vmatprep.subr.bf16.mxu0 %v32049_v4 }
 0x320   : > { %29633 = vmatpush3.bf16.msra.mxu0 %v32334_v30 }
 0x321   : > { %29634 = vmatprep.subr.bf16.mxu0 %v32049_v4 }
 0x323   : > { %26549 = vmatmul.mubr.f32.vlgmr.msra.gmra.mrb[2].mxu0 %v32233_v16 }
 0x324   : > { %29636 = vmatpush3.bf16.msra.mxu0 %v32225_v13  ;;  %26559 = vmatprep.mubr.msk.f32.mxu0 %vm32050_vm1, %v32051_v9 }
 0x325   : > { %29637 = vmatprep.subr.bf16.mxu0 %v32049_v4 }
 0x328   : > { %29639 = vmatpush3.bf16.msra.mxu0 %v32262_v32 }
 0x329   : > { %29676 = vmatprep.subr.bf16.mxu0 %v32049_v4 }
 0x32b   : > { %26560 = vmatmul.mubr.f32.vlgmr.msra.gmra.mrb[2].mxu0 %v32233_v16 }
 0x32c   : > { %29678 = vmatpush3.bf16.msra.mxu0 %v32217_v7  ;;  %26636 = vmatprep.mubr.msk.f32.mxu0 %vm32050_vm1, %v32051_v9 }
 0x32d   : > { %29679 = vmatprep.subr.bf16.mxu0 %v32049_v4 }
 0x330   : > { %29681 = vmatpush3.bf16.msra.mxu0 %v32251_v28 }
 0x331   : > { %29682 = vmatprep.subr.bf16.mxu0 %v32049_v4 }
 0x372   : > { %v824_v55 = vpop.permute.xlu0 %823 }
 0x373   : > { %v32279_v61 = vadd.f32 %v32196_v56, %v824_v55  ;;  %v32288_v56 = vpack.c.bf16 %v937_v5, %v930_v1 }
 0x375   : > { %828 = vrot.lane.b32.xlu1 %v32279_v61, %s32052_s15 }
 0x3e7   : > { %v829_v8 = vpop.permute.xlu1 %828 }
 0x3e8   : > { %v830_v10 = vsel %vm305_vm2, %v829_v8, 0 }
 0x3e9   : > { %v32356_v22 = vand.u32 4294901760, %v830_v10 }
 0x3eb   : > { %v902_v23 = vsub.f32 %v830_v10, %v32356_v22 }
 0x3ed   : > { %v903_v26 = vand.u32 4294901760, %v902_v23 }
 0x3ef   : > { %v904_v16 = vsub.f32 %v902_v23, %v903_v26 }
 0x3f1   : > { %v905_v31 = vand.u32 4294901760, %v904_v16 }
 0x3f3   : > { %26439 = vmatmul.mubr.f32.vlgmr.msra.gmra.mrb[0].mxu1 %v905_v31 }
 0x3f4   : > { %29576 = vmatpush3.bf16.msra.mxu1 %v32274_v51  ;;  %26449 = vmatprep.mubr.msk.f32.mxu1 %vm32050_vm1, %v32051_v9 }
 0x3f5   : > { %29577 = vmatprep.subr.bf16.mxu1 %v32049_v4 }
 0x3f8   : > { %29579 = vmatpush3.bf16.msra.mxu1 %v32288_v56 }
 0x3f9   : > { %29580 = vmatprep.subr.bf16.mxu1 %v32049_v4 }
 0x3fb   : > { %26450 = vmatmul.mubr.f32.vlgmr.msra.gmra.mrb[0].mxu1 %v32356_v22 }
 0x3fc   : > { %29582 = vmatpush3.bf16.msra.mxu1 %v32295_v18  ;;  %26460 = vmatprep.mubr.msk.f32.mxu1 %vm32050_vm1, %v32051_v9 }
 0x3fd   : > { %29583 = vmatprep.subr.bf16.mxu1 %v32049_v4 }
 0x3fe   : > { %v1801_v34 = vpop.f32.mrb[2].mxu0 }
 0x3ff   : > { %v26561_v35 = vpop.f32.mrb[3].mxu0  ;;  %v31262_v1 = vadd.f32 %v32446_v0, %v1801_v34 }
 0x400   : > { %29585 = vmatpush3.bf16.msra.mxu1 %v32303_v21 }
 0x401   : > { %29586 = vmatprep.subr.bf16.mxu1 %v32049_v4 }
 0x403   : > { %26461 = vmatmul.mubr.f32.vlgmr.msra.gmra.mrb[0].mxu1 %v902_v23 }
 0x404   : > { %29588 = vmatpush3.bf16.msra.mxu1 %v32217_v7  ;;  %26471 = vmatprep.mubr.msk.f32.mxu1 %vm32050_vm1, %v32051_v9 }
 0x405   : > { %29589 = vmatprep.subr.bf16.mxu1 %v32049_v4 }
 0x408   : > { %29591 = vmatpush3.bf16.msra.mxu1 %v32251_v28 }
 0x409   : > { %29592 = vmatprep.subr.bf16.mxu1 %v32049_v4 }
 0x40b   : > { %26472 = vmatmul.mubr.f32.vlgmr.msra.gmra.mrb[0].mxu1 %v903_v26 }
 0x40c   : > { %29594 = vmatpush3.bf16.msra.mxu1 %v32323_v25  ;;  %26482 = vmatprep.mubr.msk.f32.mxu1 %vm32050_vm1, %v32051_v9 }
 0x40d   : > { %29595 = vmatprep.subr.bf16.mxu1 %v32049_v4 }
 0x410   : > { %29597 = vmatpush3.bf16.msra.mxu1 %v32329_v29 }
 0x411   : > { %29598 = vmatprep.subr.bf16.mxu1 %v32049_v4 }
 0x413   : > { %26483 = vmatmul.mubr.f32.vlgmr.msra.gmra.mrb[0].mxu1 %v32356_v22 }
 0x414   : > { %29600 = vmatpush3.bf16.msra.mxu1 %v32217_v7  ;;  %26493 = vmatprep.mubr.msk.f32.mxu1 %vm32050_vm1, %v32051_v9 }
 0x415   : > { %29601 = vmatprep.subr.bf16.mxu1 %v32049_v4 }
 0x418   : > { %29603 = vmatpush3.bf16.msra.mxu1 %v32251_v28 }
 0x419   : > { %29640 = vmatprep.subr.bf16.mxu1 %v32049_v4 }
 0x41b   : > { %26494 = vmatmul.mubr.f32.vlgmr.msra.gmra.mrb[0].mxu1 %v32356_v22 }
 0x41c   : > { %29642 = vmatpush3.bf16.msra.mxu1 %v32133_v12  ;;  %26570 = vmatprep.mubr.msk.f32.mxu1 %vm32050_vm1, %v32051_v9 }
 0x41d   : > { %29643 = vmatprep.subr.bf16.mxu1 %v32049_v4 }
 0x420   : > { %29645 = vmatpush3.bf16.msra.mxu1 %v32138_v19 }
 0x421   : > { %29646 = vmatprep.subr.bf16.mxu1 %v32049_v4 }
 0x423   : > { %26571 = vmatmul.mubr.f32.vlgmr.msra.gmra.mrb[2].mxu1 %v905_v31 }
 0x424   : > { %29648 = vmatpush3.bf16.msra.mxu1 %v32143_v33  ;;  %26581 = vmatprep.mubr.msk.f32.mxu1 %vm32050_vm1, %v32051_v9 }
 0x425   : > { %29649 = vmatprep.subr.bf16.mxu1 %v32049_v4 }
 0x428   : > { %29651 = vmatpush3.bf16.msra.mxu1 %v32146_v37 }
 0x429   : > { %29652 = vmatprep.subr.bf16.mxu1 %v32049_v4 }
 0x42b   : > { %26582 = vmatmul.mubr.f32.vlgmr.msra.gmra.mrb[2].mxu1 %v32356_v22 }
 0x42c   : > { %29654 = vmatpush3.bf16.msra.mxu1 %v32152_v38  ;;  %26592 = vmatprep.mubr.msk.f32.mxu1 %vm32050_vm1, %v32051_v9 }
 0x42d   : > { %29655 = vmatprep.subr.bf16.mxu1 %v32049_v4 }
 0x430   : > { %29657 = vmatpush3.bf16.msra.mxu1 %v32156_v39 }
 0x431   : > { %29658 = vmatprep.subr.bf16.mxu1 %v32049_v4 }
 0x433   : > { %26593 = vmatmul.mubr.f32.vlgmr.msra.gmra.mrb[2].mxu1 %v902_v23 }
 0x434   : > { %29660 = vmatpush3.bf16.msra.mxu1 %v32133_v12  ;;  %26603 = vmatprep.mubr.msk.f32.mxu1 %vm32050_vm1, %v32051_v9 }
 0x435   : > { %29661 = vmatprep.subr.bf16.mxu1 %v32049_v4 }
 0x438   : > { %29663 = vmatpush3.bf16.msra.mxu1 %v32138_v19 }
 0x439   : > { %29664 = vmatprep.subr.bf16.mxu1 %v32049_v4 }
 0x43b   : > { %26604 = vmatmul.mubr.f32.vlgmr.msra.gmra.mrb[2].mxu1 %v903_v26 }
 0x43c   : > { %29666 = vmatpush3.bf16.msra.mxu1 %v32168_v40  ;;  %26614 = vmatprep.mubr.msk.f32.mxu1 %vm32050_vm1, %v32051_v9 }
 0x43d   : > { %29667 = vmatprep.subr.bf16.mxu1 %v32049_v4 }
 0x440   : > { %29669 = vmatpush3.bf16.msra.mxu1 %v32172_v41 }
 0x441   : > { %29670 = vmatprep.subr.bf16.mxu1 %v32049_v4 }
 0x443   : > { %26615 = vmatmul.mubr.f32.vlgmr.msra.gmra.mrb[2].mxu1 %v32356_v22 }
 0x444   : > { %29672 = vmatpush3.bf16.msra.mxu1 %v32133_v12  ;;  %26625 = vmatprep.mubr.msk.f32.mxu1 %vm32050_vm1, %v32051_v9 }
 0x445   : > { %29673 = vmatprep.subr.bf16.mxu1 %v32049_v4 }
 0x448   : > { %29675 = vmatpush3.bf16.msra.mxu1 %v32138_v19 }
 0x449   : > { %29712 = vmatprep.subr.bf16.mxu1 %v32049_v4 }
 0x44b   : > { %26626 = vmatmul.mubr.f32.vlgmr.msra.gmra.mrb[2].mxu1 %v32356_v22 }
 0x44c   : > { %29714 = vmatpush3.bf16.msra.mxu1 %v32225_v13  ;;  %26702 = vmatprep.mubr.msk.f32.mxu1 %vm32050_vm1, %v32051_v9 }
 0x44d   : > { %29715 = vmatprep.subr.bf16.mxu1 %v32049_v4 }
 0x450   : > { %29717 = vmatpush3.bf16.msra.mxu1 %v32262_v32 }
 0x451   : > { %29718 = vmatprep.subr.bf16.mxu1 %v32049_v4 }
 0x4ee   : > { %v1313_v36 = vpop.f32.mrb[0].mxu1 }
 0x4ef   : > { %v26495_v43 = vpop.f32.mrb[1].mxu1 }
 0x51e   : > { %v2327_v44 = vpop.f32.mrb[2].mxu1 }
 0x51f   : > { %v31263_v45 = vadd.f32 %v32190_v42, %v2327_v44  ;;  %v26627_v46 = vpop.f32.mrb[3].mxu1 }
 0x521   : > { %2339 = vrot.lane.b32.xlu0 %v31263_v45, %s32052_s15  ;;  %v2331_v48 = vadd.f32 %v31263_v45, %v24862_v47 }
 0x523   : > { %v24863_v49 = vmul.f32 -1.442695, %v2331_v48 }
 0x525   : > { %31825 = vpow2.f32 %v24863_v49 }
 0x52f   : > { %v31826_v50 = vpop.eup %31825 }
 0x530   : > { %v2335_v52 = vadd.f32 1.0, %v31826_v50 }
 0x532   : > { %31827 = vrcp.f32 %v2335_v52 }
 0x53c   : > { %v31828_v53 = vpop.eup %31827 }
 0x593   : > { %v2340_v54 = vpop.permute.xlu0 %2339 }
 0x594   : > { %v2342_v55 = vmul.f32 %v31828_v53, %v2340_v54 }
 0x596   : > { %2344 = vrot.lane.b32.xlu1 %v2342_v55, %s32052_s15 }
 0x608   : > { %v2345_v57 = vpop.permute.xlu1 %2344 }
 0x609   : > { %v2347_v58 = vadd.f32 %v24862_v47, %v2345_v57 }
 0x60b   : > { %31829 = vtanh.f32 %v2347_v58 }
 0x615   : > { %v31830_v59 = vpop.eup %31829 }
 0x616   : > { %v2349_v60 = vsub.f32 %v32279_v61, %v31830_v59  ;;  %v32454_v61 = vld [vmem:[%s34728_s4 + $0x1] ss:$0 sm:$0xff] }
 0x617   : > { %v31261_v2 = vadd.f32 %v32454_v61, %v1313_v36 }
 0x618   : > { %2351 = vrot.lane.b32.xlu0 %v2349_v60, %s32054_s13  ;;  %v24866_v60 = vld [vmem:[%s32106_s26 + $0x4] sm:$0x3] }
 0x619   : > { %v1805_v5 = vadd.f32 %v31262_v1, %v31261_v2 }
 0x61b   : > { %v24861_v11 = vmul.f32 -1.442695, %v1805_v5 }
 0x61d   : > { %31831 = vpow2.f32 %v24861_v11 }
 0x627   : > { %v31832_v14 = vpop.eup %31831 }
 0x628   : > { %v1809_v15 = vadd.f32 1.0, %v31832_v14 }
 0x62a   : > { %31833 = vrcp.f32 %v1809_v15 }
 0x634   : > { %v32461_v22 = vpop.eup %31833 }
 0x68a   : > { %v2352_v62 = vpop.permute.xlu0 %2351 }
 0x68b   : > { %v2354_v63 = vmul.f32 %v31828_v53, %v2352_v62 }
 0x68d   : > { %2356 = vrot.lane.b32.xlu1 %v2354_v63, %s32053_s16 }
 0x691   : > { %1813 = vrot.lane.b32.xlu1 %v31262_v1, %s32052_s15 }
 0x6ff   : > { %v2357_v8 = vpop.permute.xlu1 %2356 }
 0x700   : > { %v32457_v10 = vadd.f32 %v31830_v59, %v2357_v8 }
 0x702   : > { %2361 = vrot.lane.b32.xlu0 %v32457_v10, %s32052_s15 }
 0x703   : > { %v1814_v23 = vpop.permute.xlu1 %1813 }
 0x704   : > { %v1816_v26 = vmul.f32 %v32461_v22, %v1814_v23 }
 0x706   : > { %1818 = vrot.lane.b32.xlu0 %v1816_v26, %s32052_s15 }
 0x774   : > { %v2362_v16 = vpop.permute.xlu0 %2361 }
 0x775   : > { %v2363_v31 = vsel %vm305_vm2, %v2362_v16, 0 }
 0x776   : > { %v32466_v34 = vand.u32 4294901760, %v2363_v31 }
 0x778   : > { %v2435_v35 = vsub.f32 %v2363_v31, %v32466_v34  ;;  %v1819_v36 = vpop.permute.xlu0 %1818 }
 0x779   : > { %v1821_v43 = vadd.f32 %v31261_v2, %v1819_v36 }
 0x77a   : > { %v2436_v44 = vand.u32 4294901760, %v2435_v35 }
 0x77b   : > { %31835 = vtanh.f32 %v1821_v43 }
 0x77c   : > { %v2437_v45 = vsub.f32 %v2435_v35, %v2436_v44 }
 0x77e   : > { %v2438_v46 = vand.u32 4294901760, %v2437_v45 }
 0x780   : > { %26637 = vmatmul.mubr.f32.vlgmr.msra.gmra.mrb[4].mxu0 %v2438_v46 }
 0x781   : > { %29684 = vmatpush3.bf16.msra.mxu0 %v32274_v51  ;;  %26647 = vmatprep.mubr.msk.f32.mxu0 %vm32050_vm1, %v32051_v9 }
 0x782   : > { %29685 = vmatprep.subr.bf16.mxu0 %v32049_v4 }
 0x785   : > { %v32473_v47 = vpop.eup %31835  ;;  %29687 = vmatpush3.bf16.msra.mxu0 %v32288_v56 }
 0x786   : > { %1824 = vrot.lane.b32.xlu0 %v32473_v47, %s32052_s15  ;;  %29688 = vmatprep.subr.bf16.mxu0 %v32049_v4 }
 0x788   : > { %26648 = vmatmul.mubr.f32.vlgmr.msra.gmra.mrb[4].mxu0 %v32466_v34 }
 0x789   : > { %29690 = vmatpush3.bf16.msra.mxu0 %v32295_v18  ;;  %26658 = vmatprep.mubr.msk.f32.mxu0 %vm32050_vm1, %v32051_v9 }
 0x78a   : > { %29691 = vmatprep.subr.bf16.mxu0 %v32049_v4 }
 0x78d   : > { %29693 = vmatpush3.bf16.msra.mxu0 %v32303_v21 }
 0x78e   : > { %29694 = vmatprep.subr.bf16.mxu0 %v32049_v4 }
 0x790   : > { %26659 = vmatmul.mubr.f32.vlgmr.msra.gmra.mrb[4].mxu0 %v2435_v35 }
 0x791   : > { %29696 = vmatpush3.bf16.msra.mxu0 %v32217_v7  ;;  %26669 = vmatprep.mubr.msk.f32.mxu0 %vm32050_vm1, %v32051_v9 }
 0x792   : > { %29697 = vmatprep.subr.bf16.mxu0 %v32049_v4 }
 0x795   : > { %29699 = vmatpush3.bf16.msra.mxu0 %v32251_v28 }
 0x796   : > { %29700 = vmatprep.subr.bf16.mxu0 %v32049_v4 }
 0x798   : > { %26670 = vmatmul.mubr.f32.vlgmr.msra.gmra.mrb[4].mxu0 %v2436_v44 }
 0x799   : > { %29702 = vmatpush3.bf16.msra.mxu0 %v32323_v25  ;;  %26680 = vmatprep.mubr.msk.f32.mxu0 %vm32050_vm1, %v32051_v9 }
 0x79a   : > { %29703 = vmatprep.subr.bf16.mxu0 %v32049_v4 }
 0x79d   : > { %29705 = vmatpush3.bf16.msra.mxu0 %v32329_v29 }
 0x79e   : > { %29706 = vmatprep.subr.bf16.mxu0 %v32049_v4 }
 0x7a0   : > { %26681 = vmatmul.mubr.f32.vlgmr.msra.gmra.mrb[4].mxu0 %v32466_v34 }
 0x7a1   : > { %29708 = vmatpush3.bf16.msra.mxu0 %v32217_v7  ;;  %26691 = vmatprep.mubr.msk.f32.mxu0 %vm32050_vm1, %v32051_v9 }
 0x7a2   : > { %29709 = vmatprep.subr.bf16.mxu0 %v32049_v4 }
 0x7a5   : > { %29711 = vmatpush3.bf16.msra.mxu0 %v32251_v28 }
 0x7a6   : > { %29748 = vmatprep.subr.bf16.mxu0 %v32049_v4 }
 0x7a8   : > { %26692 = vmatmul.mubr.f32.vlgmr.msra.gmra.mrb[4].mxu0 %v32466_v34 }
 0x7a9   : > { %29750 = vmatpush3.bf16.msra.mxu0 %v32133_v12  ;;  %26768 = vmatprep.mubr.msk.f32.mxu0 %vm32050_vm1, %v32051_v9 }
 0x7aa   : > { %29751 = vmatprep.subr.bf16.mxu0 %v32049_v4 }
 0x7ad   : > { %29753 = vmatpush3.bf16.msra.mxu0 %v32138_v19 }
 0x7ae   : > { %29754 = vmatprep.subr.bf16.mxu0 %v32049_v4 }
 0x7b0   : > { %26769 = vmatmul.mubr.f32.vlgmr.msra.gmra.mrb[6].mxu0 %v2438_v46 }
 0x7b1   : > { %29756 = vmatpush3.bf16.msra.mxu0 %v32143_v33  ;;  %26779 = vmatprep.mubr.msk.f32.mxu0 %vm32050_vm1, %v32051_v9 }
 0x7b2   : > { %29757 = vmatprep.subr.bf16.mxu0 %v32049_v4 }
 0x7b5   : > { %29759 = vmatpush3.bf16.msra.mxu0 %v32146_v37 }
 0x7b6   : > { %29760 = vmatprep.subr.bf16.mxu0 %v32049_v4 }
 0x7b8   : > { %26780 = vmatmul.mubr.f32.vlgmr.msra.gmra.mrb[6].mxu0 %v32466_v34 }
 0x7b9   : > { %29762 = vmatpush3.bf16.msra.mxu0 %v32152_v38  ;;  %26790 = vmatprep.mubr.msk.f32.mxu0 %vm32050_vm1, %v32051_v9 }
 0x7ba   : > { %29763 = vmatprep.subr.bf16.mxu0 %v32049_v4 }
 0x7bd   : > { %29765 = vmatpush3.bf16.msra.mxu0 %v32156_v39 }
 0x7be   : > { %29766 = vmatprep.subr.bf16.mxu0 %v32049_v4 }
 0x7c0   : > { %26791 = vmatmul.mubr.f32.vlgmr.msra.gmra.mrb[6].mxu0 %v2435_v35 }
 0x7c1   : > { %29768 = vmatpush3.bf16.msra.mxu0 %v32133_v12  ;;  %26801 = vmatprep.mubr.msk.f32.mxu0 %vm32050_vm1, %v32051_v9 }
 0x7c2   : > { %29769 = vmatprep.subr.bf16.mxu0 %v32049_v4 }
 0x7c5   : > { %29771 = vmatpush3.bf16.msra.mxu0 %v32138_v19 }
 0x7c6   : > { %29772 = vmatprep.subr.bf16.mxu0 %v32049_v4 }
 0x7c8   : > { %26802 = vmatmul.mubr.f32.vlgmr.msra.gmra.mrb[6].mxu0 %v2436_v44 }
 0x7c9   : > { %29774 = vmatpush3.bf16.msra.mxu0 %v32168_v40  ;;  %26812 = vmatprep.mubr.msk.f32.mxu0 %vm32050_vm1, %v32051_v9 }
 0x7ca   : > { %29775 = vmatprep.subr.bf16.mxu0 %v32049_v4 }
 0x7cd   : > { %29777 = vmatpush3.bf16.msra.mxu0 %v32172_v41 }
 0x7ce   : > { %29778 = vmatprep.subr.bf16.mxu0 %v32049_v4 }
 0x7d0   : > { %26813 = vmatmul.mubr.f32.vlgmr.msra.gmra.mrb[6].mxu0 %v32466_v34 }
 0x7d1   : > { %29780 = vmatpush3.bf16.msra.mxu0 %v32133_v12  ;;  %26823 = vmatprep.mubr.msk.f32.mxu0 %vm32050_vm1, %v32051_v9 }
 0x7d2   : > { %29781 = vmatprep.subr.bf16.mxu0 %v32049_v4 }
 0x7d5   : > { %29783 = vmatpush3.bf16.msra.mxu0 %v32138_v19 }
 0x7d6   : > { %29820 = vmatprep.subr.bf16.mxu0 %v32049_v4 }
 0x7d8   : > { %26824 = vmatmul.mubr.f32.vlgmr.msra.gmra.mrb[6].mxu0 %v32466_v34 }
 0x7d9   : > { %29822 = vmatpush3.bf16.msra.mxu0 %v32225_v13  ;;  %26900 = vmatprep.mubr.msk.f32.mxu0 %vm32050_vm1, %v32051_v9 }
 0x7da   : > { %29823 = vmatprep.subr.bf16.mxu0 %v32049_v4 }
 0x7dd   : > { %29825 = vmatpush3.bf16.msra.mxu0 %v32262_v32 }
 0x7de   : > { %29826 = vmatprep.subr.bf16.mxu0 %v32049_v4 }
 0x7f8   : > { %v1825_v48 = vpop.permute.xlu0 %1824 }
 0x7f9   : > { %v1827_v49 = vsub.f32 %v32215_v6, %v1825_v48 }
 0x7fb   : > { %1829 = vrot.lane.b32.xlu0 %v1827_v49, %s32053_s16 }
 0x86d   : > { %v1830_v50 = vpop.permute.xlu0 %1829 }
 0x86e   : > { %v1832_v52 = vmul.f32 %v32461_v22, %v1830_v50 }
 0x870   : > { %1834 = vrot.lane.b32.xlu0 %v1832_v52, %s32053_s16 }
 0x87b   : > { %v32555_v53 = vpop.f32.mrb[4].mxu0 }
 0x87c   : > { %v26693_v54 = vpop.f32.mrb[5].mxu0 }
 0x8ab   : > { %v3855_v55 = vpop.f32.mrb[6].mxu0 }
 0x8ac   : > { %v31266_v57 = vadd.f32 %v32190_v42, %v3855_v55  ;;  %v26825_v58 = vpop.f32.mrb[7].mxu0 }
 0x8ae   : > { %3867 = vrot.lane.b32.xlu1 %v31266_v57, %s32052_s15  ;;  %v3859_v62 = vadd.f32 %v31266_v57, %v24866_v60 }
 0x8b0   : > { %v24867_v63 = vmul.f32 -1.442695, %v3859_v62 }
 0x8b2   : > { %31837 = vpow2.f32 %v24867_v63 }
 0x8bc   : > { %v31838_v1 = vpop.eup %31837 }
 0x8bd   : > { %v3863_v2 = vadd.f32 1.0, %v31838_v1 }
 0x8bf   : > { %31839 = vrcp.f32 %v3863_v2 }
 0x8c9   : > { %v31840_v5 = vpop.eup %31839 }
 0x8e2   : > { %v1835_v59 = vpop.permute.xlu0 %1834 }
 0x8e3   : > { %v32560_v6 = vadd.f32 %v32473_v47, %v1835_v59 }
 0x8e5   : > { %1839 = vrot.lane.b32.xlu0 %v32560_v6, %s32052_s15 }
 0x920   : > { %v3868_v42 = vpop.permute.xlu1 %3867 }
 0x921   : > { %v3870_v11 = vmul.f32 %v31840_v5, %v3868_v42 }
 0x923   : > { %3872 = vrot.lane.b32.xlu1 %v3870_v11, %s32052_s15 }
 0x957   : > { %v1840_v14 = vpop.permute.xlu0 %1839 }
 0x958   : > { %1843 = vst.msk [vmem:[%s32111_s29] sm:$0x3] %vm1842_vm3, %v1840_v14  ;;  %v2850_v15 = vsel %vm305_vm2, %v1840_v14, 0 }
 0x959   : > { %v2921_v8 = vand.u32 4294901760, %v2850_v15 }
 0x95b   : > { %v2922_v22 = vsub.f32 %v2850_v15, %v2921_v8 }
 0x95d   : > { %v2923_v23 = vand.u32 4294901760, %v2922_v22 }
 0x95f   : > { %v2924_v26 = vsub.f32 %v2922_v22, %v2923_v23 }
 0x961   : > { %v2925_v16 = vand.u32 4294901760, %v2924_v26 }
 0x963   : > { %26703 = vmatmul.mubr.f32.vlgmr.msra.gmra.mrb[4].mxu1 %v2925_v16  ;;  %v32715_v16 = vld [vmem:[%s34728_s4] ss:$0 sm:$0xff] }
 0x964   : > { %29720 = vmatpush3.bf16.msra.mxu1 %v32283_v3  ;;  %26713 = vmatprep.mubr.msk.f32.mxu1 %vm32050_vm1, %v32051_v9 }
 0x965   : > { %29721 = vmatprep.subr.bf16.mxu1 %v32049_v4 }
 0x968   : > { %29723 = vmatpush3.bf16.msra.mxu1 %v32291_v17 }
 0x969   : > { %29724 = vmatprep.subr.bf16.mxu1 %v32049_v4 }
 0x96b   : > { %26714 = vmatmul.mubr.f32.vlgmr.msra.gmra.mrb[4].mxu1 %v2921_v8 }
 0x96c   : > { %29726 = vmatpush3.bf16.msra.mxu1 %v32300_v20  ;;  %26724 = vmatprep.mubr.msk.f32.mxu1 %vm32050_vm1, %v32051_v9 }
 0x96d   : > { %29727 = vmatprep.subr.bf16.mxu1 %v32049_v4 }
 0x970   : > { %29729 = vmatpush3.bf16.msra.mxu1 %v32307_v24 }
 0x971   : > { %29730 = vmatprep.subr.bf16.mxu1 %v32049_v4 }
 0x973   : > { %26725 = vmatmul.mubr.f32.vlgmr.msra.gmra.mrb[4].mxu1 %v2922_v22 }
 0x974   : > { %29732 = vmatpush3.bf16.msra.mxu1 %v32225_v13  ;;  %26735 = vmatprep.mubr.msk.f32.mxu1 %vm32050_vm1, %v32051_v9 }
 0x975   : > { %29733 = vmatprep.subr.bf16.mxu1 %v32049_v4 }
 0x978   : > { %29735 = vmatpush3.bf16.msra.mxu1 %v32262_v32 }
 0x979   : > { %29736 = vmatprep.subr.bf16.mxu1 %v32049_v4 }
 0x97b   : > { %26736 = vmatmul.mubr.f32.vlgmr.msra.gmra.mrb[4].mxu1 %v2923_v23 }
 0x97c   : > { %29738 = vmatpush3.bf16.msra.mxu1 %v32326_v27  ;;  %26746 = vmatprep.mubr.msk.f32.mxu1 %vm32050_vm1, %v32051_v9 }
 0x97d   : > { %29739 = vmatprep.subr.bf16.mxu1 %v32049_v4 }
 0x980   : > { %29741 = vmatpush3.bf16.msra.mxu1 %v32334_v30 }
 0x981   : > { %29742 = vmatprep.subr.bf16.mxu1 %v32049_v4 }
 0x983   : > { %26747 = vmatmul.mubr.f32.vlgmr.msra.gmra.mrb[4].mxu1 %v2921_v8 }
 0x984   : > { %29744 = vmatpush3.bf16.msra.mxu1 %v32225_v13  ;;  %26757 = vmatprep.mubr.msk.f32.mxu1 %vm32050_vm1, %v32051_v9 }
 0x985   : > { %29745 = vmatprep.subr.bf16.mxu1 %v32049_v4 }
 0x988   : > { %29747 = vmatpush3.bf16.msra.mxu1 %v32262_v32 }
 0x989   : > { %29784 = vmatprep.subr.bf16.mxu1 %v32049_v4 }
 0x98b   : > { %26758 = vmatmul.mubr.f32.vlgmr.msra.gmra.mrb[4].mxu1 %v2921_v8 }
 0x98c   : > { %29786 = vmatpush3.bf16.msra.mxu1 %v32217_v7  ;;  %26834 = vmatprep.mubr.msk.f32.mxu1 %vm32050_vm1, %v32051_v9 }
 0x98d   : > { %29787 = vmatprep.subr.bf16.mxu1 %v32049_v4 }
 0x990   : > { %29789 = vmatpush3.bf16.msra.mxu1 %v32251_v28 }
 0x991   : > { %29790 = vmatprep.subr.bf16.mxu1 %v32049_v4 }
 0x995   : > { %v3873_v31 = vpop.permute.xlu1 %3872 }
 0x996   : > { %v3875_v34 = vadd.f32 %v24866_v60, %v3873_v31 }
 0x998   : > { %31841 = vtanh.f32 %v3875_v34 }
 0x9a2   : > { %v31842_v35 = vpop.eup %31841 }
 0x9a3   : > { %v3877_v36 = vsub.f32 %v32457_v10, %v31842_v35  ;;  %v32616_v10 = vadd.f32 %v32454_v61, %v32555_v53 }
 0x9a5   : > { %3879 = vrot.lane.b32.xlu1 %v3877_v36, %s32054_s13 }
 0xa17   : > { %v3880_v43 = vpop.permute.xlu1 %3879 }
 0xa18   : > { %v3882_v44 = vmul.f32 %v31840_v5, %v3880_v43  ;;  %v24870_v43 = vld [vmem:[%s32106_s26 + $0x6] sm:$0x3] }
 0xa1a   : > { %3884 = vrot.lane.b32.xlu1 %v3882_v44, %s32053_s16 }
 0xa5e   : > { %v3333_v45 = vpop.f32.mrb[4].mxu1 }
 0xa5f   : > { %v31265_v46 = vadd.f32 %v32446_v0, %v3333_v45  ;;  %v26759_v47 = vpop.f32.mrb[5].mxu1 }
 0xa61   : > { %3345 = vrot.lane.b32.xlu0 %v31265_v46, %s32052_s15  ;;  %v3337_v50 = vadd.f32 %v31265_v46, %v32616_v10 }
 0xa63   : > { %v24864_v52 = vmul.f32 -1.442695, %v3337_v50 }
 0xa65   : > { %31843 = vpow2.f32 %v24864_v52 }
 0xa6f   : > { %v31844_v54 = vpop.eup %31843 }
 0xa70   : > { %v3341_v55 = vadd.f32 1.0, %v31844_v54 }
 0xa72   : > { %31845 = vrcp.f32 %v3341_v55 }
 0xa7c   : > { %v32619_v57 = vpop.eup %31845 }
 0xa8c   : > { %v3885_v48 = vpop.permute.xlu1 %3884 }
 0xa8d   : > { %v32610_v49 = vadd.f32 %v31842_v35, %v3885_v48 }
 0xa8f   : > { %3889 = vrot.lane.b32.xlu1 %v32610_v49, %s32052_s15 }
 0xad3   : > { %v3346_v58 = vpop.permute.xlu0 %3345 }
 0xad4   : > { %v3348_v59 = vmul.f32 %v32619_v57, %v3346_v58 }
 0xad6   : > { %3350 = vrot.lane.b32.xlu0 %v3348_v59, %s32052_s15 }
 0xb01   : > { %v3890_v60 = vpop.permute.xlu1 %3889 }
 0xb02   : > { %v3891_v62 = vsel %vm305_vm2, %v3890_v60, 0 }
 0xb03   : > { %v32624_v63 = vand.u32 4294901760, %v3891_v62 }
 0xb05   : > { %v3963_v53 = vsub.f32 %v3891_v62, %v32624_v63 }
 0xb07   : > { %v3964_v1 = vand.u32 4294901760, %v3963_v53 }
 0xb09   : > { %v3965_v2 = vsub.f32 %v3963_v53, %v3964_v1 }
 0xb0b   : > { %v3966_v5 = vand.u32 4294901760, %v3965_v2 }
 0xb0d   : > { %26835 = vmatmul.mubr.f32.vlgmr.msra.gmra.mrb[6].mxu1 %v3966_v5 }
 0xb0e   : > { %29792 = vmatpush3.bf16.msra.mxu1 %v32274_v51  ;;  %26845 = vmatprep.mubr.msk.f32.mxu1 %vm32050_vm1, %v32051_v9 }
 0xb0f   : > { %29793 = vmatprep.subr.bf16.mxu1 %v32049_v4 }
 0xb12   : > { %29795 = vmatpush3.bf16.msra.mxu1 %v32288_v56 }
 0xb13   : > { %29796 = vmatprep.subr.bf16.mxu1 %v32049_v4 }
 0xb15   : > { %26846 = vmatmul.mubr.f32.vlgmr.msra.gmra.mrb[6].mxu1 %v32624_v63 }
 0xb16   : > { %29798 = vmatpush3.bf16.msra.mxu1 %v32295_v18  ;;  %26856 = vmatprep.mubr.msk.f32.mxu1 %vm32050_vm1, %v32051_v9 }
 0xb17   : > { %29799 = vmatprep.subr.bf16.mxu1 %v32049_v4 }
 0xb1a   : > { %29801 = vmatpush3.bf16.msra.mxu1 %v32303_v21 }
 0xb1b   : > { %29802 = vmatprep.subr.bf16.mxu1 %v32049_v4 }
 0xb1d   : > { %26857 = vmatmul.mubr.f32.vlgmr.msra.gmra.mrb[6].mxu1 %v3963_v53 }
 0xb1e   : > { %29804 = vmatpush3.bf16.msra.mxu1 %v32217_v7  ;;  %26867 = vmatprep.mubr.msk.f32.mxu1 %vm32050_vm1, %v32051_v9 }
 0xb1f   : > { %29805 = vmatprep.subr.bf16.mxu1 %v32049_v4 }
 0xb22   : > { %29807 = vmatpush3.bf16.msra.mxu1 %v32251_v28 }
 0xb23   : > { %29808 = vmatprep.subr.bf16.mxu1 %v32049_v4 }
 0xb25   : > { %26868 = vmatmul.mubr.f32.vlgmr.msra.gmra.mrb[6].mxu1 %v3964_v1 }
 0xb26   : > { %29810 = vmatpush3.bf16.msra.mxu1 %v32323_v25  ;;  %26878 = vmatprep.mubr.msk.f32.mxu1 %vm32050_vm1, %v32051_v9 }
 0xb27   : > { %29811 = vmatprep.subr.bf16.mxu1 %v32049_v4 }
 0xb2a   : > { %29813 = vmatpush3.bf16.msra.mxu1 %v32329_v29 }
 0xb2b   : > { %29814 = vmatprep.subr.bf16.mxu1 %v32049_v4 }
 0xb2d   : > { %26879 = vmatmul.mubr.f32.vlgmr.msra.gmra.mrb[6].mxu1 %v32624_v63 }
 0xb2e   : > { %29816 = vmatpush3.bf16.msra.mxu1 %v32217_v7  ;;  %26889 = vmatprep.mubr.msk.f32.mxu1 %vm32050_vm1, %v32051_v9 }
 0xb2f   : > { %29817 = vmatprep.subr.bf16.mxu1 %v32049_v4 }
 0xb32   : > { %29819 = vmatpush3.bf16.msra.mxu1 %v32251_v28 }
 0xb33   : > { %29856 = vmatprep.subr.bf16.mxu1 %v32049_v4 }
 0xb35   : > { %26890 = vmatmul.mubr.f32.vlgmr.msra.gmra.mrb[6].mxu1 %v32624_v63 }
 0xb36   : > { %29858 = vmatpush3.bf16.msra.mxu1 %v32133_v12  ;;  %26966 = vmatprep.mubr.msk.f32.mxu1 %vm32050_vm1, %v32051_v9 }
 0xb37   : > { %29859 = vmatprep.subr.bf16.mxu1 %v32049_v4 }
 0xb3a   : > { %29861 = vmatpush3.bf16.msra.mxu1 %v32138_v19 }
 0xb3b   : > { %29862 = vmatprep.subr.bf16.mxu1 %v32049_v4 }
 0xb3d   : > { %26967 = vmatmul.mubr.f32.vlgmr.msra.gmra.mrb[8].mxu1 %v3966_v5 }
 0xb3e   : > { %29864 = vmatpush3.bf16.msra.mxu1 %v32143_v33  ;;  %26977 = vmatprep.mubr.msk.f32.mxu1 %vm32050_vm1, %v32051_v9 }
 0xb3f   : > { %29865 = vmatprep.subr.bf16.mxu1 %v32049_v4 }
 0xb42   : > { %29867 = vmatpush3.bf16.msra.mxu1 %v32146_v37 }
 0xb43   : > { %29868 = vmatprep.subr.bf16.mxu1 %v32049_v4 }
 0xb45   : > { %26978 = vmatmul.mubr.f32.vlgmr.msra.gmra.mrb[8].mxu1 %v32624_v63 }
 0xb46   : > { %29870 = vmatpush3.bf16.msra.mxu1 %v32152_v38  ;;  %26988 = vmatprep.mubr.msk.f32.mxu1 %vm32050_vm1, %v32051_v9 }
 0xb47   : > { %29871 = vmatprep.subr.bf16.mxu1 %v32049_v4 }
 0xb48   : > { %v3351_v42 = vpop.permute.xlu0 %3350 }
 0xb49   : > { %v3353_v11 = vadd.f32 %v32616_v10, %v3351_v42 }
 0xb4a   : > { %29873 = vmatpush3.bf16.msra.mxu1 %v32156_v39 }
 0xb4b   : > { %31847 = vtanh.f32 %v3353_v11  ;;  %29874 = vmatprep.subr.bf16.mxu1 %v32049_v4 }
 0xb4d   : > { %26989 = vmatmul.mubr.f32.vlgmr.msra.gmra.mrb[8].mxu1 %v3963_v53 }
 0xb4e   : > { %29876 = vmatpush3.bf16.msra.mxu1 %v32133_v12  ;;  %26999 = vmatprep.mubr.msk.f32.mxu1 %vm32050_vm1, %v32051_v9 }
 0xb4f   : > { %29877 = vmatprep.subr.bf16.mxu1 %v32049_v4 }
 0xb52   : > { %29879 = vmatpush3.bf16.msra.mxu1 %v32138_v19 }
 0xb53   : > { %29880 = vmatprep.subr.bf16.mxu1 %v32049_v4 }
 0xb55   : > { %v31848_v14 = vpop.eup %31847  ;;  %27000 = vmatmul.mubr.f32.vlgmr.msra.gmra.mrb[8].mxu1 %v3964_v1 }
 0xb56   : > { %29882 = vmatpush3.bf16.msra.mxu1 %v32168_v40  ;;  %v3355_v15 = vsub.f32 %v32560_v6, %v31848_v14  ;;  %27010 = vmatprep.mubr.msk.f32.mxu1 %vm32050_vm1, %v32051_v9 }
 0xb57   : > { %29883 = vmatprep.subr.bf16.mxu1 %v32049_v4 }
 0xb58   : > { %3357 = vrot.lane.b32.xlu0 %v3355_v15, %s32054_s13 }
 0xb5a   : > { %29885 = vmatpush3.bf16.msra.mxu1 %v32172_v41 }
 0xb5b   : > { %29886 = vmatprep.subr.bf16.mxu1 %v32049_v4 }
 0xb5d   : > { %27011 = vmatmul.mubr.f32.vlgmr.msra.gmra.mrb[8].mxu1 %v32624_v63 }
 0xb5e   : > { %29888 = vmatpush3.bf16.msra.mxu1 %v32133_v12  ;;  %27021 = vmatprep.mubr.msk.f32.mxu1 %vm32050_vm1, %v32051_v9 }
 0xb5f   : > { %29889 = vmatprep.subr.bf16.mxu1 %v32049_v4 }
 0xb62   : > { %29891 = vmatpush3.bf16.msra.mxu1 %v32138_v19 }
 0xb63   : > { %29928 = vmatprep.subr.bf16.mxu1 %v32049_v4 }
 0xb65   : > { %27022 = vmatmul.mubr.f32.vlgmr.msra.gmra.mrb[8].mxu1 %v32624_v63 }
 0xb66   : > { %29930 = vmatpush3.bf16.msra.mxu1 %v32225_v13  ;;  %27098 = vmatprep.mubr.msk.f32.mxu1 %vm32050_vm1, %v32051_v9 }
 0xb67   : > { %29931 = vmatprep.subr.bf16.mxu1 %v32049_v4 }
 0xb6a   : > { %29933 = vmatpush3.bf16.msra.mxu1 %v32262_v32 }
 0xb6b   : > { %29934 = vmatprep.subr.bf16.mxu1 %v32049_v4 }
 0xbca   : > { %v3358_v6 = vpop.permute.xlu0 %3357 }
 0xbcb   : > { %v3360_v8 = vmul.f32 %v32619_v57, %v3358_v6 }
 0xbcd   : > { %3362 = vrot.lane.b32.xlu0 %v3360_v8, %s32053_s16 }
 0xc08   : > { %v32710_v22 = vpop.f32.mrb[6].mxu1 }
 0xc09   : > { %v26891_v23 = vpop.f32.mrb[7].mxu1  ;;  %v31267_v15 = vadd.f32 %v32454_v61, %v32710_v22 }
 0xc38   : > { %v5383_v26 = vpop.f32.mrb[8].mxu1 }
 0xc39   : > { %v31269_v31 = vadd.f32 %v32715_v16, %v5383_v26  ;;  %v27023_v34 = vpop.f32.mrb[9].mxu1 }
 0xc3b   : > { %5395 = vrot.lane.b32.xlu1 %v31269_v31, %s32052_s15  ;;  %v5387_v44 = vadd.f32 %v31269_v31, %v24870_v43 }
 0xc3d   : > { %v24871_v45 = vmul.f32 -1.442695, %v5387_v44 }
 0xc3f   : > { %v3363_v35 = vpop.permute.xlu0 %3362  ;;  %31849 = vpow2.f32 %v24871_v45 }
 0xc40   : > { %v32719_v36 = vadd.f32 %v31848_v14, %v3363_v35 }
 0xc42   : > { %3367 = vrot.lane.b32.xlu0 %v32719_v36, %s32052_s15 }
 0xc49   : > { %v31850_v46 = vpop.eup %31849 }
 0xc4a   : > { %v5391_v47 = vadd.f32 1.0, %v31850_v46 }
 0xc4c   : > { %31851 = vrcp.f32 %v5391_v47 }
 0xc56   : > { %v31852_v48 = vpop.eup %31851 }
 0xcad   : > { %v5396_v10 = vpop.permute.xlu1 %5395 }
 0xcae   : > { %v5398_v50 = vmul.f32 %v31852_v48, %v5396_v10 }
 0xcb0   : > { %5400 = vrot.lane.b32.xlu1 %v5398_v50, %s32052_s15 }
 0xcb4   : > { %v3368_v52 = vpop.permute.xlu0 %3367 }
 0xcb5   : > { %24865 = vst.msk [vmem:[%s32111_s29 + $0x2] sm:$0x3] %vm1842_vm3, %v3368_v52  ;;  %v4378_v54 = vsel %vm305_vm2, %v3368_v52, 0 }
 0xcb6   : > { %v4449_v55 = vand.u32 4294901760, %v4378_v54 }
 0xcb8   : > { %v4450_v57 = vsub.f32 %v4378_v54, %v4449_v55 }
 0xcba   : > { %v4451_v58 = vand.u32 4294901760, %v4450_v57 }
 0xcbc   : > { %v4452_v59 = vsub.f32 %v4450_v57, %v4451_v58 }
 0xcbe   : > { %v4453_v60 = vand.u32 4294901760, %v4452_v59 }
 0xcc0   : > { %26901 = vmatmul.mubr.f32.vlgmr.msra.gmra.mrb[8].mxu0 %v4453_v60 }
 0xcc1   : > { %29828 = vmatpush3.bf16.msra.mxu0 %v32283_v3  ;;  %26911 = vmatprep.mubr.msk.f32.mxu0 %vm32050_vm1, %v32051_v9 }
 0xcc2   : > { %29829 = vmatprep.subr.bf16.mxu0 %v32049_v4 }
 0xcc5   : > { %29831 = vmatpush3.bf16.msra.mxu0 %v32291_v17 }
 0xcc6   : > { %29832 = vmatprep.subr.bf16.mxu0 %v32049_v4 }
 0xcc8   : > { %26912 = vmatmul.mubr.f32.vlgmr.msra.gmra.mrb[8].mxu0 %v4449_v55 }
 0xcc9   : > { %29834 = vmatpush3.bf16.msra.mxu0 %v32300_v20  ;;  %26922 = vmatprep.mubr.msk.f32.mxu0 %vm32050_vm1, %v32051_v9 }
 0xcca   : > { %29835 = vmatprep.subr.bf16.mxu0 %v32049_v4 }
 0xccd   : > { %29837 = vmatpush3.bf16.msra.mxu0 %v32307_v24 }
 0xcce   : > { %29838 = vmatprep.subr.bf16.mxu0 %v32049_v4 }
 0xcd0   : > { %26923 = vmatmul.mubr.f32.vlgmr.msra.gmra.mrb[8].mxu0 %v4450_v57 }
 0xcd1   : > { %29840 = vmatpush3.bf16.msra.mxu0 %v32225_v13  ;;  %26933 = vmatprep.mubr.msk.f32.mxu0 %vm32050_vm1, %v32051_v9 }
 0xcd2   : > { %29841 = vmatprep.subr.bf16.mxu0 %v32049_v4 }
 0xcd5   : > { %29843 = vmatpush3.bf16.msra.mxu0 %v32262_v32 }
 0xcd6   : > { %29844 = vmatprep.subr.bf16.mxu0 %v32049_v4 }
 0xcd8   : > { %26934 = vmatmul.mubr.f32.vlgmr.msra.gmra.mrb[8].mxu0 %v4451_v58 }
 0xcd9   : > { %29846 = vmatpush3.bf16.msra.mxu0 %v32326_v27  ;;  %26944 = vmatprep.mubr.msk.f32.mxu0 %vm32050_vm1, %v32051_v9 }
 0xcda   : > { %29847 = vmatprep.subr.bf16.mxu0 %v32049_v4 }
 0xcdd   : > { %29849 = vmatpush3.bf16.msra.mxu0 %v32334_v30 }
 0xcde   : > { %29850 = vmatprep.subr.bf16.mxu0 %v32049_v4 }
 0xce0   : > { %26945 = vmatmul.mubr.f32.vlgmr.msra.gmra.mrb[8].mxu0 %v4449_v55 }
 0xce1   : > { %29852 = vmatpush3.bf16.msra.mxu0 %v32225_v13  ;;  %26955 = vmatprep.mubr.msk.f32.mxu0 %vm32050_vm1, %v32051_v9 }
 0xce2   : > { %29853 = vmatprep.subr.bf16.mxu0 %v32049_v4 }
 0xce5   : > { %29855 = vmatpush3.bf16.msra.mxu0 %v32262_v32 }
 0xce6   : > { %29892 = vmatprep.subr.bf16.mxu0 %v32049_v4 }
 0xce8   : > { %26956 = vmatmul.mubr.f32.vlgmr.msra.gmra.mrb[8].mxu0 %v4449_v55 }
 0xce9   : > { %29894 = vmatpush3.bf16.msra.mxu0 %v32217_v7  ;;  %27032 = vmatprep.mubr.msk.f32.mxu0 %vm32050_vm1, %v32051_v9 }
 0xcea   : > { %29895 = vmatprep.subr.bf16.mxu0 %v32049_v4 }
 0xced   : > { %29897 = vmatpush3.bf16.msra.mxu0 %v32251_v28 }
 0xcee   : > { %29898 = vmatprep.subr.bf16.mxu0 %v32049_v4 }
 0xd22   : > { %v5401_v62 = vpop.permute.xlu1 %5400 }
 0xd23   : > { %v5403_v63 = vadd.f32 %v24870_v43, %v5401_v62 }
 0xd25   : > { %31853 = vtanh.f32 %v5403_v63 }
 0xd2f   : > { %v31854_v53 = vpop.eup %31853 }
 0xd30   : > { %v5405_v1 = vsub.f32 %v32610_v49, %v31854_v53 }
 0xd32   : > { %5407 = vrot.lane.b32.xlu1 %v5405_v1, %s32054_s13 }
 0xda4   : > { %v5408_v2 = vpop.permute.xlu1 %5407 }
 0xda5   : > { %v5410_v5 = vmul.f32 %v31852_v48, %v5408_v2 }
 0xda7   : > { %5412 = vrot.lane.b32.xlu1 %v5410_v5, %s32053_s16  ;;  %v24874_v5 = vld [vmem:[%s32106_s26 + $0x8] sm:$0x3] }
 0xdbb   : > { %v4861_v42 = vpop.f32.mrb[8].mxu0 }
 0xdbc   : > { %v31268_v11 = vadd.f32 %v32446_v0, %v4861_v42  ;;  %v26957_v14 = vpop.f32.mrb[9].mxu0 }
 0xdbe   : > { %4873 = vrot.lane.b32.xlu0 %v31268_v11, %s32052_s15  ;;  %v4865_v6 = vadd.f32 %v31268_v11, %v31267_v15 }
 0xdc0   : > { %v24868_v8 = vmul.f32 -1.442695, %v4865_v6 }
 0xdc2   : > { %31855 = vpow2.f32 %v24868_v8 }
 0xdcc   : > { %v31856_v26 = vpop.eup %31855 }
 0xdcd   : > { %v4869_v31 = vadd.f32 1.0, %v31856_v26 }
 0xdcf   : > { %31857 = vrcp.f32 %v4869_v31 }
 0xdd9   : > { %v32775_v34 = vpop.eup %31857 }
 0xe19   : > { %v5413_v23 = vpop.permute.xlu1 %5412 }
 0xe1a   : > { %v32771_v49 = vadd.f32 %v31854_v53, %v5413_v23 }
 0xe1c   : > { %5417 = vrot.lane.b32.xlu1 %v32771_v49, %s32052_s15 }
 0xe30   : > { %v4874_v0 = vpop.permute.xlu0 %4873 }
 0xe31   : > { %v4876_v35 = vmul.f32 %v32775_v34, %v4874_v0 }
 0xe33   : > { %4878 = vrot.lane.b32.xlu1 %v4876_v35, %s32052_s15 }
 0xe8e   : > { %v5418_v61 = vpop.permute.xlu1 %5417 }
 0xe8f   : > { %v5419_v22 = vsel %vm305_vm2, %v5418_v61, 0 }
 0xe90   : > { %v32780_v43 = vand.u32 4294901760, %v5419_v22 }
 0xe92   : > { %v5491_v44 = vsub.f32 %v5419_v22, %v32780_v43 }
 0xe94   : > { %v5492_v45 = vand.u32 4294901760, %v5491_v44 }
 0xe96   : > { %v5493_v46 = vsub.f32 %v5491_v44, %v5492_v45 }
 0xe98   : > { %v5494_v47 = vand.u32 4294901760, %v5493_v46 }
 0xe9a   : > { %27033 = vmatmul.mubr.f32.vlgmr.msra.gmra.mrb[10].mxu0 %v5494_v47 }
 0xe9b   : > { %29900 = vmatpush3.bf16.msra.mxu0 %v32274_v51  ;;  %27043 = vmatprep.mubr.msk.f32.mxu0 %vm32050_vm1, %v32051_v9 }
 0xe9c   : > { %29901 = vmatprep.subr.bf16.mxu0 %v32049_v4 }
 0xe9f   : > { %29903 = vmatpush3.bf16.msra.mxu0 %v32288_v56 }
 0xea0   : > { %29904 = vmatprep.subr.bf16.mxu0 %v32049_v4 }
 0xea2   : > { %27044 = vmatmul.mubr.f32.vlgmr.msra.gmra.mrb[10].mxu0 %v32780_v43 }
 0xea3   : > { %29906 = vmatpush3.bf16.msra.mxu0 %v32295_v18  ;;  %27054 = vmatprep.mubr.msk.f32.mxu0 %vm32050_vm1, %v32051_v9 }
 0xea4   : > { %29907 = vmatprep.subr.bf16.mxu0 %v32049_v4 }
 0xea5   : > { %v4879_v48 = vpop.permute.xlu1 %4878 }
 0xea6   : > { %v4881_v10 = vadd.f32 %v31267_v15, %v4879_v48  ;;  %v32924_v48 = vld [vmem:[%s34728_s4 + $0x2] ss:$0 sm:$0xff] }
 0xea7   : > { %29909 = vmatpush3.bf16.msra.mxu0 %v32303_v21 }
 0xea8   : > { %31859 = vtanh.f32 %v4881_v10  ;;  %29910 = vmatprep.subr.bf16.mxu0 %v32049_v4 }
 0xeaa   : > { %27055 = vmatmul.mubr.f32.vlgmr.msra.gmra.mrb[10].mxu0 %v5491_v44 }
 0xeab   : > { %29912 = vmatpush3.bf16.msra.mxu0 %v32217_v7  ;;  %27065 = vmatprep.mubr.msk.f32.mxu0 %vm32050_vm1, %v32051_v9 }
 0xeac   : > { %29913 = vmatprep.subr.bf16.mxu0 %v32049_v4 }
 0xeaf   : > { %29915 = vmatpush3.bf16.msra.mxu0 %v32251_v28 }
 0xeb0   : > { %29916 = vmatprep.subr.bf16.mxu0 %v32049_v4 }
 0xeb2   : > { %v32802_v50 = vpop.eup %31859  ;;  %27066 = vmatmul.mubr.f32.vlgmr.msra.gmra.mrb[10].mxu0 %v5492_v45 }
 0xeb3   : > { %29918 = vmatpush3.bf16.msra.mxu0 %v32323_v25  ;;  %v4883_v52 = vsub.f32 %v32719_v36, %v32802_v50  ;;  %27076 = vmatprep.mubr.msk.f32.mxu0 %vm32050_vm1, %v32051_v9 }
 0xeb4   : > { %29919 = vmatprep.subr.bf16.mxu0 %v32049_v4 }
 0xeb5   : > { %4885 = vrot.lane.b32.xlu1 %v4883_v52, %s32054_s13 }
 0xeb7   : > { %29921 = vmatpush3.bf16.msra.mxu0 %v32329_v29 }
 0xeb8   : > { %29922 = vmatprep.subr.bf16.mxu0 %v32049_v4 }
 0xeba   : > { %27077 = vmatmul.mubr.f32.vlgmr.msra.gmra.mrb[10].mxu0 %v32780_v43 }
 0xebb   : > { %29924 = vmatpush3.bf16.msra.mxu0 %v32217_v7  ;;  %27087 = vmatprep.mubr.msk.f32.mxu0 %vm32050_vm1, %v32051_v9 }
 0xebc   : > { %29925 = vmatprep.subr.bf16.mxu0 %v32049_v4 }
 0xebf   : > { %29927 = vmatpush3.bf16.msra.mxu0 %v32251_v28 }
 0xec0   : > { %29964 = vmatprep.subr.bf16.mxu0 %v32049_v4 }
 0xec2   : > { %27088 = vmatmul.mubr.f32.vlgmr.msra.gmra.mrb[10].mxu0 %v32780_v43 }
 0xec3   : > { %29966 = vmatpush3.bf16.msra.mxu0 %v32133_v12  ;;  %27164 = vmatprep.mubr.msk.f32.mxu0 %vm32050_vm1, %v32051_v9 }
 0xec4   : > { %29967 = vmatprep.subr.bf16.mxu0 %v32049_v4 }
 0xec7   : > { %29969 = vmatpush3.bf16.msra.mxu0 %v32138_v19 }
 0xec8   : > { %29970 = vmatprep.subr.bf16.mxu0 %v32049_v4 }
 0xeca   : > { %27165 = vmatmul.mubr.f32.vlgmr.msra.gmra.mrb[12].mxu0 %v5494_v47 }
 0xecb   : > { %29972 = vmatpush3.bf16.msra.mxu0 %v32143_v33  ;;  %27175 = vmatprep.mubr.msk.f32.mxu0 %vm32050_vm1, %v32051_v9 }
 0xecc   : > { %29973 = vmatprep.subr.bf16.mxu0 %v32049_v4 }
 0xecf   : > { %29975 = vmatpush3.bf16.msra.mxu0 %v32146_v37 }
 0xed0   : > { %29976 = vmatprep.subr.bf16.mxu0 %v32049_v4 }
 0xed2   : > { %27176 = vmatmul.mubr.f32.vlgmr.msra.gmra.mrb[12].mxu0 %v32780_v43 }
 0xed3   : > { %29978 = vmatpush3.bf16.msra.mxu0 %v32152_v38  ;;  %27186 = vmatprep.mubr.msk.f32.mxu0 %vm32050_vm1, %v32051_v9 }
 0xed4   : > { %29979 = vmatprep.subr.bf16.mxu0 %v32049_v4 }
 0xed7   : > { %29981 = vmatpush3.bf16.msra.mxu0 %v32156_v39 }
 0xed8   : > { %29982 = vmatprep.subr.bf16.mxu0 %v32049_v4 }
 0xeda   : > { %27187 = vmatmul.mubr.f32.vlgmr.msra.gmra.mrb[12].mxu0 %v5491_v44 }
 0xedb   : > { %29984 = vmatpush3.bf16.msra.mxu0 %v32133_v12  ;;  %27197 = vmatprep.mubr.msk.f32.mxu0 %vm32050_vm1, %v32051_v9 }
 0xedc   : > { %29985 = vmatprep.subr.bf16.mxu0 %v32049_v4 }
 0xedf   : > { %29987 = vmatpush3.bf16.msra.mxu0 %v32138_v19 }
 0xee0   : > { %29988 = vmatprep.subr.bf16.mxu0 %v32049_v4 }
 0xee2   : > { %27198 = vmatmul.mubr.f32.vlgmr.msra.gmra.mrb[12].mxu0 %v5492_v45 }
 0xee3   : > { %29990 = vmatpush3.bf16.msra.mxu0 %v32168_v40  ;;  %27208 = vmatprep.mubr.msk.f32.mxu0 %vm32050_vm1, %v32051_v9 }
 0xee4   : > { %29991 = vmatprep.subr.bf16.mxu0 %v32049_v4 }
 0xee7   : > { %29993 = vmatpush3.bf16.msra.mxu0 %v32172_v41 }
 0xee8   : > { %29994 = vmatprep.subr.bf16.mxu0 %v32049_v4 }
 0xeea   : > { %27209 = vmatmul.mubr.f32.vlgmr.msra.gmra.mrb[12].mxu0 %v32780_v43 }
 0xeeb   : > { %29996 = vmatpush3.bf16.msra.mxu0 %v32133_v12  ;;  %27219 = vmatprep.mubr.msk.f32.mxu0 %vm32050_vm1, %v32051_v9 }
 0xeec   : > { %29997 = vmatprep.subr.bf16.mxu0 %v32049_v4 }
 0xeef   : > { %29999 = vmatpush3.bf16.msra.mxu0 %v32138_v19 }
 0xef0   : > { %30036 = vmatprep.subr.bf16.mxu0 %v32049_v4 }
 0xef2   : > { %27220 = vmatmul.mubr.f32.vlgmr.msra.gmra.mrb[12].mxu0 %v32780_v43 }
 0xef3   : > { %30038 = vmatpush3.bf16.msra.mxu0 %v32225_v13  ;;  %27296 = vmatprep.mubr.msk.f32.mxu0 %vm32050_vm1, %v32051_v9 }
 0xef4   : > { %30039 = vmatprep.subr.bf16.mxu0 %v32049_v4 }
 0xef7   : > { %30041 = vmatpush3.bf16.msra.mxu0 %v32262_v32 }
 0xef8   : > { %30042 = vmatprep.subr.bf16.mxu0 %v32049_v4 }
 0xf27   : > { %v4886_v36 = vpop.permute.xlu1 %4885 }
 0xf28   : > { %v4888_v54 = vmul.f32 %v32775_v34, %v4886_v36 }
 0xf2a   : > { %4890 = vrot.lane.b32.xlu1 %v4888_v54, %s32053_s16 }
 0xf95   : > { %v32868_v55 = vpop.f32.mrb[10].mxu0 }
 0xf96   : > { %v27089_v57 = vpop.f32.mrb[11].mxu0 }
 0xf9c   : > { %v4891_v58 = vpop.permute.xlu1 %4890 }
 0xf9d   : > { %v32871_v59 = vadd.f32 %v32802_v50, %v4891_v58 }
 0xf9f   : > { %4895 = vrot.lane.b32.xlu1 %v32871_v59, %s32052_s15 }
 0xfc5   : > { %v6911_v60 = vpop.f32.mrb[12].mxu0 }
 0xfc6   : > { %v31272_v62 = vadd.f32 %v32715_v16, %v6911_v60  ;;  %v27221_v63 = vpop.f32.mrb[13].mxu0 }
 0xfc8   : > { %6923 = vrot.lane.b32.xlu0 %v31272_v62, %s32052_s15  ;;  %v6915_v11 = vadd.f32 %v31272_v62, %v24874_v5 }
 0xfca   : > { %v24875_v6 = vmul.f32 -1.442695, %v6915_v11 }
 0xfcc   : > { %31861 = vpow2.f32 %v24875_v6 }
 0xfd6   : > { %v31862_v23 = vpop.eup %31861 }
 0xfd7   : > { %v6919_v26 = vadd.f32 1.0, %v31862_v23 }
 0xfd9   : > { %31863 = vrcp.f32 %v6919_v26 }
 0xfe3   : > { %v31864_v31 = vpop.eup %31863 }
0x1011   : > { %v4896_v53 = vpop.permute.xlu1 %4895 }
0x1012   : > { %24869 = vst.msk [vmem:[%s32111_s29 + $0x4] sm:$0x3] %vm1842_vm3, %v4896_v53  ;;  %v5906_v1 = vsel %vm305_vm2, %v4896_v53, 0 }
0x1013   : > { %v5977_v2 = vand.u32 4294901760, %v5906_v1 }
0x1015   : > { %v5978_v42 = vsub.f32 %v5906_v1, %v5977_v2 }
0x1017   : > { %v5979_v14 = vand.u32 4294901760, %v5978_v42 }
0x1019   : > { %v5980_v15 = vsub.f32 %v5978_v42, %v5979_v14 }
0x101b   : > { %v5981_v8 = vand.u32 4294901760, %v5980_v15 }
0x101d   : > { %27099 = vmatmul.mubr.f32.vlgmr.msra.gmra.mrb[10].mxu1 %v5981_v8 }
0x101e   : > { %29936 = vmatpush3.bf16.msra.mxu1 %v32283_v3  ;;  %27109 = vmatprep.mubr.msk.f32.mxu1 %vm32050_vm1, %v32051_v9 }
0x101f   : > { %29937 = vmatprep.subr.bf16.mxu1 %v32049_v4 }
0x1022   : > { %29939 = vmatpush3.bf16.msra.mxu1 %v32291_v17 }
0x1023   : > { %29940 = vmatprep.subr.bf16.mxu1 %v32049_v4 }
0x1025   : > { %27110 = vmatmul.mubr.f32.vlgmr.msra.gmra.mrb[10].mxu1 %v5977_v2 }
0x1026   : > { %29942 = vmatpush3.bf16.msra.mxu1 %v32300_v20  ;;  %27120 = vmatprep.mubr.msk.f32.mxu1 %vm32050_vm1, %v32051_v9 }
0x1027   : > { %29943 = vmatprep.subr.bf16.mxu1 %v32049_v4 }
0x102a   : > { %29945 = vmatpush3.bf16.msra.mxu1 %v32307_v24 }
0x102b   : > { %29946 = vmatprep.subr.bf16.mxu1 %v32049_v4 }
0x102d   : > { %27121 = vmatmul.mubr.f32.vlgmr.msra.gmra.mrb[10].mxu1 %v5978_v42 }
0x102e   : > { %29948 = vmatpush3.bf16.msra.mxu1 %v32225_v13  ;;  %27131 = vmatprep.mubr.msk.f32.mxu1 %vm32050_vm1, %v32051_v9 }
0x102f   : > { %29949 = vmatprep.subr.bf16.mxu1 %v32049_v4 }
0x1032   : > { %29951 = vmatpush3.bf16.msra.mxu1 %v32262_v32 }
0x1033   : > { %29952 = vmatprep.subr.bf16.mxu1 %v32049_v4 }
0x1035   : > { %27132 = vmatmul.mubr.f32.vlgmr.msra.gmra.mrb[10].mxu1 %v5979_v14 }
0x1036   : > { %29954 = vmatpush3.bf16.msra.mxu1 %v32326_v27  ;;  %27142 = vmatprep.mubr.msk.f32.mxu1 %vm32050_vm1, %v32051_v9 }
0x1037   : > { %29955 = vmatprep.subr.bf16.mxu1 %v32049_v4 }
0x103a   : > { %v6924_v34 = vpop.permute.xlu0 %6923  ;;  %29957 = vmatpush3.bf16.msra.mxu1 %v32334_v30 }
0x103b   : > { %v6926_v0 = vmul.f32 %v31864_v31, %v6924_v34  ;;  %29958 = vmatprep.subr.bf16.mxu1 %v32049_v4 }
0x103d   : > { %6928 = vrot.lane.b32.xlu0 %v6926_v0, %s32052_s15  ;;  %27143 = vmatmul.mubr.f32.vlgmr.msra.gmra.mrb[10].mxu1 %v5977_v2 }
0x103e   : > { %29960 = vmatpush3.bf16.msra.mxu1 %v32225_v13  ;;  %27153 = vmatprep.mubr.msk.f32.mxu1 %vm32050_vm1, %v32051_v9 }
0x103f   : > { %29961 = vmatprep.subr.bf16.mxu1 %v32049_v4 }
0x1042   : > { %29963 = vmatpush3.bf16.msra.mxu1 %v32262_v32 }
0x1043   : > { %30000 = vmatprep.subr.bf16.mxu1 %v32049_v4 }
0x1045   : > { %27154 = vmatmul.mubr.f32.vlgmr.msra.gmra.mrb[10].mxu1 %v5977_v2 }
0x1046   : > { %30002 = vmatpush3.bf16.msra.mxu1 %v32217_v7  ;;  %27230 = vmatprep.mubr.msk.f32.mxu1 %vm32050_vm1, %v32051_v9 }
0x1047   : > { %30003 = vmatprep.subr.bf16.mxu1 %v32049_v4 }
0x104a   : > { %30005 = vmatpush3.bf16.msra.mxu1 %v32251_v28 }
0x104b   : > { %30006 = vmatprep.subr.bf16.mxu1 %v32049_v4 }
0x10af   : > { %v6929_v35 = vpop.permute.xlu0 %6928 }
0x10b0   : > { %v6931_v61 = vadd.f32 %v24874_v5, %v6929_v35 }
0x10b2   : > { %31865 = vtanh.f32 %v6931_v61 }
0x10bc   : > { %v31866_v22 = vpop.eup %31865 }
0x10bd   : > { %v6933_v43 = vsub.f32 %v32771_v49, %v31866_v22  ;;  %v32931_v49 = vld [vmem:[%s34728_s4 + $0x1] ss:$0 sm:$0xff] }
0x10be   : > { %v31270_v50 = vadd.f32 %v32931_v49, %v32868_v55 }
0x10bf   : > { %6935 = vrot.lane.b32.xlu0 %v6933_v43, %s32054_s13 }
0x1118   : > { %v6389_v44 = vpop.f32.mrb[10].mxu1 }
0x1119   : > { %v27155_v45 = vpop.f32.mrb[11].mxu1  ;;  %v31271_v10 = vadd.f32 %v32924_v48, %v6389_v44 }
0x111b   : > { %v6393_v52 = vadd.f32 %v31271_v10, %v31270_v50 }
0x111d   : > { %v24872_v36 = vmul.f32 -1.442695, %v6393_v52 }
0x111f   : > { %31867 = vpow2.f32 %v24872_v36 }
0x1129   : > { %v31868_v54 = vpop.eup %31867 }
0x112a   : > { %v6397_v57 = vadd.f32 1.0, %v31868_v54 }
0x112c   : > { %31869 = vrcp.f32 %v6397_v57 }
0x1131   : > { %v6936_v46 = vpop.permute.xlu0 %6935 }
0x1132   : > { %v6938_v47 = vmul.f32 %v31864_v31, %v6936_v46 }
0x1134   : > { %6940 = vrot.lane.b32.xlu0 %v6938_v47, %s32053_s16 }
0x1136   : > { %v32939_v62 = vpop.eup %31869 }
0x1138   : > { %6401 = vrot.lane.b32.xlu0 %v31271_v10, %s32052_s15 }
0x11a6   : > { %v6941_v58 = vpop.permute.xlu0 %6940 }
0x11a7   : > { %v32935_v60 = vadd.f32 %v31866_v22, %v6941_v58 }
0x11a9   : > { %6945 = vrot.lane.b32.xlu1 %v32935_v60, %s32052_s15 }
0x11aa   : > { %v6402_v63 = vpop.permute.xlu0 %6401 }
0x11ab   : > { %v6404_v53 = vmul.f32 %v32939_v62, %v6402_v63 }
0x11ad   : > { %6406 = vrot.lane.b32.xlu1 %v6404_v53, %s32052_s15 }
0x121b   : > { %v6946_v55 = vpop.permute.xlu1 %6945 }
0x121c   : > { %v6947_v1 = vsel %vm305_vm2, %v6946_v55, 0 }
0x121d   : > { %v32944_v2 = vand.u32 4294901760, %v6947_v1 }
0x121f   : > { %v7019_v5 = vsub.f32 %v6947_v1, %v32944_v2  ;;  %v6407_v42 = vpop.permute.xlu1 %6406 }
0x1220   : > { %v6409_v11 = vadd.f32 %v31270_v50, %v6407_v42 }
0x1221   : > { %v7020_v14 = vand.u32 4294901760, %v7019_v5 }
0x1222   : > { %31871 = vtanh.f32 %v6409_v11 }
0x1223   : > { %v7021_v15 = vsub.f32 %v7019_v5, %v7020_v14 }
0x1225   : > { %v7022_v6 = vand.u32 4294901760, %v7021_v15 }
0x1227   : > { %27231 = vmatmul.mubr.f32.vlgmr.msra.gmra.mrb[12].mxu1 %v7022_v6 }
0x1228   : > { %30008 = vmatpush3.bf16.msra.mxu1 %v32274_v51  ;;  %27241 = vmatprep.mubr.msk.f32.mxu1 %vm32050_vm1, %v32051_v9 }
0x1229   : > { %30009 = vmatprep.subr.bf16.mxu1 %v32049_v4 }
0x122c   : > { %v32951_v8 = vpop.eup %31871  ;;  %30011 = vmatpush3.bf16.msra.mxu1 %v32288_v56 }
0x122d   : > { %30012 = vmatprep.subr.bf16.mxu1 %v32049_v4  ;;  %v6411_v23 = vsub.f32 %v32871_v59, %v32951_v8 }
0x122f   : > { %27242 = vmatmul.mubr.f32.vlgmr.msra.gmra.mrb[12].mxu1 %v32944_v2  ;;  %6413 = vrot.lane.b32.xlu0 %v6411_v23, %s32054_s13 }
0x1230   : > { %30014 = vmatpush3.bf16.msra.mxu1 %v32295_v18  ;;  %27252 = vmatprep.mubr.msk.f32.mxu1 %vm32050_vm1, %v32051_v9 }
0x1231   : > { %30015 = vmatprep.subr.bf16.mxu1 %v32049_v4 }
0x1234   : > { %30017 = vmatpush3.bf16.msra.mxu1 %v32303_v21 }
0x1235   : > { %30018 = vmatprep.subr.bf16.mxu1 %v32049_v4 }
0x1237   : > { %27253 = vmatmul.mubr.f32.vlgmr.msra.gmra.mrb[12].mxu1 %v7019_v5 }
0x1238   : > { %30020 = vmatpush3.bf16.msra.mxu1 %v32217_v7  ;;  %27263 = vmatprep.mubr.msk.f32.mxu1 %vm32050_vm1, %v32051_v9 }
0x1239   : > { %30021 = vmatprep.subr.bf16.mxu1 %v32049_v4 }
0x123c   : > { %30023 = vmatpush3.bf16.msra.mxu1 %v32251_v28 }
0x123d   : > { %30024 = vmatprep.subr.bf16.mxu1 %v32049_v4 }
0x123f   : > { %27264 = vmatmul.mubr.f32.vlgmr.msra.gmra.mrb[12].mxu1 %v7020_v14 }
0x1240   : > { %30026 = vmatpush3.bf16.msra.mxu1 %v32323_v25  ;;  %27274 = vmatprep.mubr.msk.f32.mxu1 %vm32050_vm1, %v32051_v9 }
0x1241   : > { %30027 = vmatprep.subr.bf16.mxu1 %v32049_v4 }
0x1244   : > { %30029 = vmatpush3.bf16.msra.mxu1 %v32329_v29 }
0x1245   : > { %30030 = vmatprep.subr.bf16.mxu1 %v32049_v4 }
0x1247   : > { %27275 = vmatmul.mubr.f32.vlgmr.msra.gmra.mrb[12].mxu1 %v32944_v2 }
0x1248   : > { %30032 = vmatpush3.bf16.msra.mxu1 %v32217_v7  ;;  %27285 = vmatprep.mubr.msk.f32.mxu1 %vm32050_vm1, %v32051_v9 }
0x1249   : > { %30033 = vmatprep.subr.bf16.mxu1 %v32049_v4 }
0x124c   : > { %30035 = vmatpush3.bf16.msra.mxu1 %v32251_v28 }
0x124d   : > { %30072 = vmatprep.subr.bf16.mxu1 %v32049_v4 }
0x124f   : > { %27286 = vmatmul.mubr.f32.vlgmr.msra.gmra.mrb[12].mxu1 %v32944_v2 }
0x1250   : > { %30074 = vmatpush3.bf16.msra.mxu1 %v32133_v12  ;;  %27362 = vmatprep.mubr.msk.f32.mxu1 %vm32050_vm1, %v32051_v9 }
0x1251   : > { %30075 = vmatprep.subr.bf16.mxu1 %v32049_v4 }
0x1254   : > { %30077 = vmatpush3.bf16.msra.mxu1 %v32138_v19 }
0x1255   : > { %30078 = vmatprep.subr.bf16.mxu1 %v32049_v4 }
0x1257   : > { %27363 = vmatmul.mubr.f32.vlgmr.msra.gmra.mrb[14].mxu1 %v7022_v6 }
0x1258   : > { %30080 = vmatpush3.bf16.msra.mxu1 %v32143_v33  ;;  %27373 = vmatprep.mubr.msk.f32.mxu1 %vm32050_vm1, %v32051_v9 }
0x1259   : > { %30081 = vmatprep.subr.bf16.mxu1 %v32049_v4 }
0x125c   : > { %30083 = vmatpush3.bf16.msra.mxu1 %v32146_v37 }
0x125d   : > { %30084 = vmatprep.subr.bf16.mxu1 %v32049_v4 }
0x125f   : > { %27374 = vmatmul.mubr.f32.vlgmr.msra.gmra.mrb[14].mxu1 %v32944_v2 }
0x1260   : > { %30086 = vmatpush3.bf16.msra.mxu1 %v32152_v38  ;;  %27384 = vmatprep.mubr.msk.f32.mxu1 %vm32050_vm1, %v32051_v9 }
0x1261   : > { %30087 = vmatprep.subr.bf16.mxu1 %v32049_v4 }
0x1264   : > { %30089 = vmatpush3.bf16.msra.mxu1 %v32156_v39 }
0x1265   : > { %30090 = vmatprep.subr.bf16.mxu1 %v32049_v4 }
0x1267   : > { %27385 = vmatmul.mubr.f32.vlgmr.msra.gmra.mrb[14].mxu1 %v7019_v5 }
0x1268   : > { %30092 = vmatpush3.bf16.msra.mxu1 %v32133_v12  ;;  %27395 = vmatprep.mubr.msk.f32.mxu1 %vm32050_vm1, %v32051_v9 }
0x1269   : > { %30093 = vmatprep.subr.bf16.mxu1 %v32049_v4 }
0x126c   : > { %30095 = vmatpush3.bf16.msra.mxu1 %v32138_v19 }
0x126d   : > { %30096 = vmatprep.subr.bf16.mxu1 %v32049_v4 }
0x126f   : > { %27396 = vmatmul.mubr.f32.vlgmr.msra.gmra.mrb[14].mxu1 %v7020_v14 }
0x1270   : > { %30098 = vmatpush3.bf16.msra.mxu1 %v32168_v40  ;;  %27406 = vmatprep.mubr.msk.f32.mxu1 %vm32050_vm1, %v32051_v9 }
0x1271   : > { %30099 = vmatprep.subr.bf16.mxu1 %v32049_v4 }
0x1274   : > { %30101 = vmatpush3.bf16.msra.mxu1 %v32172_v41 }
0x1275   : > { %30102 = vmatprep.subr.bf16.mxu1 %v32049_v4 }
0x1277   : > { %27407 = vmatmul.mubr.f32.vlgmr.msra.gmra.mrb[14].mxu1 %v32944_v2 }
0x1278   : > { %30104 = vmatpush3.bf16.msra.mxu1 %v32133_v12  ;;  %27417 = vmatprep.mubr.msk.f32.mxu1 %vm32050_vm1, %v32051_v9 }
0x1279   : > { %30105 = vmatprep.subr.bf16.mxu1 %v32049_v4 }
0x127c   : > { %30107 = vmatpush3.bf16.msra.mxu1 %v32138_v19 }
0x127d   : > { %30144 = vmatprep.subr.bf16.mxu1 %v32049_v4 }
0x127f   : > { %27418 = vmatmul.mubr.f32.vlgmr.msra.gmra.mrb[14].mxu1 %v32944_v2 }
0x1280   : > { %30146 = vmatpush3.bf16.msra.mxu1 %v32225_v13  ;;  %27494 = vmatprep.mubr.msk.f32.mxu1 %vm32050_vm1, %v32051_v9 }
0x1281   : > { %30147 = vmatprep.subr.bf16.mxu1 %v32049_v4 }
0x1284   : > { %30149 = vmatpush3.bf16.msra.mxu1 %v32262_v32 }
0x1285   : > { %30150 = vmatprep.subr.bf16.mxu1 %v32049_v4 }
0x12a1   : > { %v6414_v59 = vpop.permute.xlu0 %6413 }
0x12a2   : > { %v6416_v26 = vmul.f32 %v32939_v62, %v6414_v59 }
0x12a4   : > { %6418 = vrot.lane.b32.xlu0 %v6416_v26, %s32053_s16 }
0x1316   : > { %v6419_v31 = vpop.permute.xlu0 %6418 }
0x1317   : > { %v33033_v34 = vadd.f32 %v32951_v8, %v6419_v31 }
0x1319   : > { %6423 = vrot.lane.b32.xlu0 %v33033_v34, %s32052_s15 }
0x1322   : > { %v33037_v0 = vpop.f32.mrb[12].mxu1 }
0x1323   : > { %v27287_v35 = vpop.f32.mrb[13].mxu1  ;;  %v31273_v8 = vadd.f32 %v32931_v49, %v33037_v0 }
0x1352   : > { %v8439_v61 = vpop.f32.mrb[14].mxu1 }
0x1353   : > { %v31275_v22 = vadd.f32 %v32715_v16, %v8439_v61  ;;  %v27419_v43 = vpop.f32.mrb[15].mxu1  ;;  %v24878_v16 = vld [vmem:[%s32106_s26 + $0xa] sm:$0x3] }
0x1355   : > { %8451 = vrot.lane.b32.xlu1 %v31275_v22, %s32052_s15  ;;  %v8443_v36 = vadd.f32 %v31275_v22, %v24878_v16 }
0x1357   : > { %v24879_v54 = vmul.f32 -1.442695, %v8443_v36 }
0x1359   : > { %31873 = vpow2.f32 %v24879_v54 }
0x1363   : > { %v31874_v57 = vpop.eup %31873 }
0x1364   : > { %v8447_v58 = vadd.f32 1.0, %v31874_v57 }
0x1366   : > { %31875 = vrcp.f32 %v8447_v58 }
0x1370   : > { %v31876_v62 = vpop.eup %31875 }
0x138b   : > { %v6424_v44 = vpop.permute.xlu0 %6423 }
0x138c   : > { %24873 = vst.msk [vmem:[%s32111_s29 + $0x6] sm:$0x3] %vm1842_vm3, %v6424_v44  ;;  %v7434_v45 = vsel %vm305_vm2, %v6424_v44, 0 }
0x138d   : > { %v7505_v46 = vand.u32 4294901760, %v7434_v45 }
0x138f   : > { %v7506_v47 = vsub.f32 %v7434_v45, %v7505_v46 }
0x1391   : > { %v7507_v10 = vand.u32 4294901760, %v7506_v47 }
0x1393   : > { %v7508_v50 = vsub.f32 %v7506_v47, %v7507_v10 }
0x1395   : > { %v7509_v52 = vand.u32 4294901760, %v7508_v50 }
0x1397   : > { %27297 = vmatmul.mubr.f32.vlgmr.msra.gmra.mrb[14].mxu0 %v7509_v52 }
0x1398   : > { %30044 = vmatpush3.bf16.msra.mxu0 %v32283_v3  ;;  %27307 = vmatprep.mubr.msk.f32.mxu0 %vm32050_vm1, %v32051_v9 }
0x1399   : > { %30045 = vmatprep.subr.bf16.mxu0 %v32049_v4 }
0x139c   : > { %30047 = vmatpush3.bf16.msra.mxu0 %v32291_v17 }
0x139d   : > { %30048 = vmatprep.subr.bf16.mxu0 %v32049_v4 }
0x139f   : > { %27308 = vmatmul.mubr.f32.vlgmr.msra.gmra.mrb[14].mxu0 %v7505_v46 }
0x13a0   : > { %30050 = vmatpush3.bf16.msra.mxu0 %v32300_v20  ;;  %27318 = vmatprep.mubr.msk.f32.mxu0 %vm32050_vm1, %v32051_v9 }
0x13a1   : > { %30051 = vmatprep.subr.bf16.mxu0 %v32049_v4 }
0x13a4   : > { %30053 = vmatpush3.bf16.msra.mxu0 %v32307_v24 }
0x13a5   : > { %30054 = vmatprep.subr.bf16.mxu0 %v32049_v4 }
0x13a7   : > { %27319 = vmatmul.mubr.f32.vlgmr.msra.gmra.mrb[14].mxu0 %v7506_v47 }
0x13a8   : > { %30056 = vmatpush3.bf16.msra.mxu0 %v32225_v13  ;;  %27329 = vmatprep.mubr.msk.f32.mxu0 %vm32050_vm1, %v32051_v9 }
0x13a9   : > { %30057 = vmatprep.subr.bf16.mxu0 %v32049_v4 }
0x13ac   : > { %30059 = vmatpush3.bf16.msra.mxu0 %v32262_v32 }
0x13ad   : > { %30060 = vmatprep.subr.bf16.mxu0 %v32049_v4 }
0x13af   : > { %27330 = vmatmul.mubr.f32.vlgmr.msra.gmra.mrb[14].mxu0 %v7507_v10 }
0x13b0   : > { %30062 = vmatpush3.bf16.msra.mxu0 %v32326_v27  ;;  %27340 = vmatprep.mubr.msk.f32.mxu0 %vm32050_vm1, %v32051_v9 }
0x13b1   : > { %30063 = vmatprep.subr.bf16.mxu0 %v32049_v4 }
0x13b4   : > { %30065 = vmatpush3.bf16.msra.mxu0 %v32334_v30 }
0x13b5   : > { %30066 = vmatprep.subr.bf16.mxu0 %v32049_v4 }
0x13b7   : > { %27341 = vmatmul.mubr.f32.vlgmr.msra.gmra.mrb[14].mxu0 %v7505_v46 }
0x13b8   : > { %30068 = vmatpush3.bf16.msra.mxu0 %v32225_v13  ;;  %27351 = vmatprep.mubr.msk.f32.mxu0 %vm32050_vm1, %v32051_v9 }
0x13b9   : > { %30069 = vmatprep.subr.bf16.mxu0 %v32049_v4 }
0x13bc   : > { %30071 = vmatpush3.bf16.msra.mxu0 %v32262_v32 }
0x13bd   : > { %30108 = vmatprep.subr.bf16.mxu0 %v32049_v4 }
0x13bf   : > { %27352 = vmatmul.mubr.f32.vlgmr.msra.gmra.mrb[14].mxu0 %v7505_v46 }
0x13c0   : > { %30110 = vmatpush3.bf16.msra.mxu0 %v32217_v7  ;;  %27428 = vmatprep.mubr.msk.f32.mxu0 %vm32050_vm1, %v32051_v9 }
0x13c1   : > { %30111 = vmatprep.subr.bf16.mxu0 %v32049_v4 }
0x13c4   : > { %30113 = vmatpush3.bf16.msra.mxu0 %v32251_v28 }
0x13c5   : > { %30114 = vmatprep.subr.bf16.mxu0 %v32049_v4 }
0x13c7   : > { %v8452_v63 = vpop.permute.xlu1 %8451 }
0x13c8   : > { %v8454_v53 = vmul.f32 %v31876_v62, %v8452_v63 }
0x13ca   : > { %8456 = vrot.lane.b32.xlu1 %v8454_v53, %s32052_s15 }
0x143c   : > { %v8457_v55 = vpop.permute.xlu1 %8456 }
0x143d   : > { %v8459_v1 = vadd.f32 %v24878_v16, %v8457_v55 }
0x143f   : > { %31877 = vtanh.f32 %v8459_v1  ;;  %v33196_v1 = vld [vmem:[%s34728_s4] ss:$0 sm:$0xff] }
0x1449   : > { %v31878_v2 = vpop.eup %31877 }
0x144a   : > { %v8461_v5 = vsub.f32 %v32935_v60, %v31878_v2 }
0x144c   : > { %8463 = vrot.lane.b32.xlu1 %v8461_v5, %s32054_s13 }
0x1492   : > { %v7917_v42 = vpop.f32.mrb[14].mxu0 }
0x1493   : > { %v27353_v11 = vpop.f32.mrb[15].mxu0  ;;  %v31274_v6 = vadd.f32 %v32924_v48, %v7917_v42 }
0x1495   : > { %v7921_v23 = vadd.f32 %v31274_v6, %v31273_v8 }
0x1497   : > { %v24876_v59 = vmul.f32 -1.442695, %v7921_v23 }
0x1499   : > { %31879 = vpow2.f32 %v24876_v59  ;;  %v24882_v59 = vld [vmem:[%s32106_s26 + $0xc] sm:$0x3] }
0x14a3   : > { %v31880_v26 = vpop.eup %31879 }
0x14a4   : > { %v7925_v60 = vadd.f32 1.0, %v31880_v26 }
0x14a6   : > { %31881 = vrcp.f32 %v7925_v60 }
0x14b0   : > { %v33093_v61 = vpop.eup %31881 }
0x14be   : > { %v8464_v14 = vpop.permute.xlu1 %8463 }
0x14bf   : > { %v8466_v15 = vmul.f32 %v31876_v62, %v8464_v14 }
0x14c1   : > { %8468 = vrot.lane.b32.xlu0 %v8466_v15, %s32053_s16 }
0x14c5   : > { %7929 = vrot.lane.b32.xlu0 %v31274_v6, %s32052_s15 }
0x1533   : > { %v8469_v31 = vpop.permute.xlu0 %8468 }
0x1534   : > { %v33089_v35 = vadd.f32 %v31878_v2, %v8469_v31 }
0x1536   : > { %8473 = vrot.lane.b32.xlu1 %v33089_v35, %s32052_s15 }
0x1537   : > { %v7930_v22 = vpop.permute.xlu0 %7929 }
0x1538   : > { %v7932_v43 = vmul.f32 %v33093_v61, %v7930_v22 }
0x153a   : > { %7934 = vrot.lane.b32.xlu1 %v7932_v43, %s32052_s15 }
0x15a8   : > { %v8474_v0 = vpop.permute.xlu1 %8473 }
0x15a9   : > { %v8475_v44 = vsel %vm305_vm2, %v8474_v0, 0 }
0x15aa   : > { %v33098_v45 = vand.u32 4294901760, %v8475_v44 }
0x15ac   : > { %v8547_v46 = vsub.f32 %v8475_v44, %v33098_v45  ;;  %v7935_v47 = vpop.permute.xlu1 %7934 }
0x15ad   : > { %v7937_v10 = vadd.f32 %v31273_v8, %v7935_v47 }
0x15ae   : > { %v8548_v50 = vand.u32 4294901760, %v8547_v46 }
0x15af   : > { %31883 = vtanh.f32 %v7937_v10 }
0x15b0   : > { %v8549_v52 = vsub.f32 %v8547_v46, %v8548_v50 }
0x15b2   : > { %v8550_v16 = vand.u32 4294901760, %v8549_v52 }
0x15b4   : > { %27429 = vmatmul.mubr.f32.vlgmr.msra.gmra.mrb[16].mxu0 %v8550_v16 }
0x15b5   : > { %30116 = vmatpush3.bf16.msra.mxu0 %v32274_v51  ;;  %27439 = vmatprep.mubr.msk.f32.mxu0 %vm32050_vm1, %v32051_v9 }
0x15b6   : > { %30117 = vmatprep.subr.bf16.mxu0 %v32049_v4 }
0x15b9   : > { %v33105_v36 = vpop.eup %31883  ;;  %30119 = vmatpush3.bf16.msra.mxu0 %v32288_v56 }
0x15ba   : > { %30120 = vmatprep.subr.bf16.mxu0 %v32049_v4  ;;  %v7939_v54 = vsub.f32 %v33033_v34, %v33105_v36 }
0x15bc   : > { %27440 = vmatmul.mubr.f32.vlgmr.msra.gmra.mrb[16].mxu0 %v33098_v45  ;;  %7941 = vrot.lane.b32.xlu0 %v7939_v54, %s32054_s13 }
0x15bd   : > { %30122 = vmatpush3.bf16.msra.mxu0 %v32295_v18  ;;  %27450 = vmatprep.mubr.msk.f32.mxu0 %vm32050_vm1, %v32051_v9 }
0x15be   : > { %30123 = vmatprep.subr.bf16.mxu0 %v32049_v4 }
0x15c1   : > { %30125 = vmatpush3.bf16.msra.mxu0 %v32303_v21 }
0x15c2   : > { %30126 = vmatprep.subr.bf16.mxu0 %v32049_v4 }
0x15c4   : > { %27451 = vmatmul.mubr.f32.vlgmr.msra.gmra.mrb[16].mxu0 %v8547_v46 }
0x15c5   : > { %30128 = vmatpush3.bf16.msra.mxu0 %v32217_v7  ;;  %27461 = vmatprep.mubr.msk.f32.mxu0 %vm32050_vm1, %v32051_v9 }
0x15c6   : > { %30129 = vmatprep.subr.bf16.mxu0 %v32049_v4 }
0x15c9   : > { %30131 = vmatpush3.bf16.msra.mxu0 %v32251_v28 }
0x15ca   : > { %30132 = vmatprep.subr.bf16.mxu0 %v32049_v4 }
0x15cc   : > { %27462 = vmatmul.mubr.f32.vlgmr.msra.gmra.mrb[16].mxu0 %v8548_v50 }
0x15cd   : > { %30134 = vmatpush3.bf16.msra.mxu0 %v32323_v25  ;;  %27472 = vmatprep.mubr.msk.f32.mxu0 %vm32050_vm1, %v32051_v9 }
0x15ce   : > { %30135 = vmatprep.subr.bf16.mxu0 %v32049_v4 }
0x15d1   : > { %30137 = vmatpush3.bf16.msra.mxu0 %v32329_v29 }
0x15d2   : > { %30138 = vmatprep.subr.bf16.mxu0 %v32049_v4 }
0x15d4   : > { %27473 = vmatmul.mubr.f32.vlgmr.msra.gmra.mrb[16].mxu0 %v33098_v45 }
0x15d5   : > { %30140 = vmatpush3.bf16.msra.mxu0 %v32217_v7  ;;  %27483 = vmatprep.mubr.msk.f32.mxu0 %vm32050_vm1, %v32051_v9 }
0x15d6   : > { %30141 = vmatprep.subr.bf16.mxu0 %v32049_v4 }
0x15d9   : > { %30143 = vmatpush3.bf16.msra.mxu0 %v32251_v28 }
0x15da   : > { %30180 = vmatprep.subr.bf16.mxu0 %v32049_v4 }
0x15dc   : > { %27484 = vmatmul.mubr.f32.vlgmr.msra.gmra.mrb[16].mxu0 %v33098_v45 }
0x15dd   : > { %30182 = vmatpush3.bf16.msra.mxu0 %v32133_v12  ;;  %27560 = vmatprep.mubr.msk.f32.mxu0 %vm32050_vm1, %v32051_v9 }
0x15de   : > { %30183 = vmatprep.subr.bf16.mxu0 %v32049_v4 }
0x15e1   : > { %30185 = vmatpush3.bf16.msra.mxu0 %v32138_v19 }
0x15e2   : > { %30186 = vmatprep.subr.bf16.mxu0 %v32049_v4 }
0x15e4   : > { %27561 = vmatmul.mubr.f32.vlgmr.msra.gmra.mrb[18].mxu0 %v8550_v16 }
0x15e5   : > { %30188 = vmatpush3.bf16.msra.mxu0 %v32143_v33  ;;  %27571 = vmatprep.mubr.msk.f32.mxu0 %vm32050_vm1, %v32051_v9 }
0x15e6   : > { %30189 = vmatprep.subr.bf16.mxu0 %v32049_v4 }
0x15e9   : > { %30191 = vmatpush3.bf16.msra.mxu0 %v32146_v37 }
0x15ea   : > { %30192 = vmatprep.subr.bf16.mxu0 %v32049_v4 }
0x15ec   : > { %27572 = vmatmul.mubr.f32.vlgmr.msra.gmra.mrb[18].mxu0 %v33098_v45 }
0x15ed   : > { %30194 = vmatpush3.bf16.msra.mxu0 %v32152_v38  ;;  %27582 = vmatprep.mubr.msk.f32.mxu0 %vm32050_vm1, %v32051_v9 }
0x15ee   : > { %30195 = vmatprep.subr.bf16.mxu0 %v32049_v4 }
0x15f1   : > { %30197 = vmatpush3.bf16.msra.mxu0 %v32156_v39 }
0x15f2   : > { %30198 = vmatprep.subr.bf16.mxu0 %v32049_v4 }
0x15f4   : > { %27583 = vmatmul.mubr.f32.vlgmr.msra.gmra.mrb[18].mxu0 %v8547_v46 }
0x15f5   : > { %30200 = vmatpush3.bf16.msra.mxu0 %v32133_v12  ;;  %27593 = vmatprep.mubr.msk.f32.mxu0 %vm32050_vm1, %v32051_v9 }
0x15f6   : > { %30201 = vmatprep.subr.bf16.mxu0 %v32049_v4 }
0x15f9   : > { %30203 = vmatpush3.bf16.msra.mxu0 %v32138_v19 }
0x15fa   : > { %30204 = vmatprep.subr.bf16.mxu0 %v32049_v4 }
0x15fc   : > { %27594 = vmatmul.mubr.f32.vlgmr.msra.gmra.mrb[18].mxu0 %v8548_v50 }
0x15fd   : > { %30206 = vmatpush3.bf16.msra.mxu0 %v32168_v40  ;;  %27604 = vmatprep.mubr.msk.f32.mxu0 %vm32050_vm1, %v32051_v9 }
0x15fe   : > { %30207 = vmatprep.subr.bf16.mxu0 %v32049_v4 }
0x1601   : > { %30209 = vmatpush3.bf16.msra.mxu0 %v32172_v41 }
0x1602   : > { %30210 = vmatprep.subr.bf16.mxu0 %v32049_v4 }
0x1604   : > { %27605 = vmatmul.mubr.f32.vlgmr.msra.gmra.mrb[18].mxu0 %v33098_v45 }
0x1605   : > { %30212 = vmatpush3.bf16.msra.mxu0 %v32133_v12  ;;  %27615 = vmatprep.mubr.msk.f32.mxu0 %vm32050_vm1, %v32051_v9 }
0x1606   : > { %30213 = vmatprep.subr.bf16.mxu0 %v32049_v4 }
0x1609   : > { %30215 = vmatpush3.bf16.msra.mxu0 %v32138_v19 }
0x160a   : > { %30252 = vmatprep.subr.bf16.mxu0 %v32049_v4 }
0x160c   : > { %27616 = vmatmul.mubr.f32.vlgmr.msra.gmra.mrb[18].mxu0 %v33098_v45 }
0x160d   : > { %30254 = vmatpush3.bf16.msra.mxu0 %v32225_v13  ;;  %27692 = vmatprep.mubr.msk.f32.mxu0 %vm32050_vm1, %v32051_v9 }
0x160e   : > { %30255 = vmatprep.subr.bf16.mxu0 %v32049_v4 }
0x1611   : > { %30257 = vmatpush3.bf16.msra.mxu0 %v32262_v32 }
0x1612   : > { %30258 = vmatprep.subr.bf16.mxu0 %v32049_v4 }
0x162e   : > { %v7942_v34 = vpop.permute.xlu0 %7941 }
0x162f   : > { %v7944_v57 = vmul.f32 %v33093_v61, %v7942_v34 }
0x1631   : > { %7946 = vrot.lane.b32.xlu0 %v7944_v57, %s32053_s16 }
0x16a3   : > { %v7947_v58 = vpop.permute.xlu0 %7946 }
0x16a4   : > { %v33187_v62 = vadd.f32 %v33105_v36, %v7947_v58 }
0x16a6   : > { %7951 = vrot.lane.b32.xlu0 %v33187_v62, %s32052_s15 }
0x16af   : > { %v33191_v63 = vpop.f32.mrb[16].mxu0 }
0x16b0   : > { %v27485_v53 = vpop.f32.mrb[17].mxu0  ;;  %v31276_v54 = vadd.f32 %v32931_v49, %v33191_v63 }
0x16df   : > { %v9967_v55 = vpop.f32.mrb[18].mxu0 }
0x16e0   : > { %v31278_v2 = vadd.f32 %v33196_v1, %v9967_v55  ;;  %v27617_v5 = vpop.f32.mrb[19].mxu0 }
0x16e2   : > { %9979 = vrot.lane.b32.xlu1 %v31278_v2, %s32052_s15  ;;  %v9971_v26 = vadd.f32 %v31278_v2, %v24882_v59 }
0x16e4   : > { %v24883_v60 = vmul.f32 -1.442695, %v9971_v26 }
0x16e6   : > { %31885 = vpow2.f32 %v24883_v60 }
0x16f0   : > { %v31886_v31 = vpop.eup %31885 }
0x16f1   : > { %v9975_v61 = vadd.f32 1.0, %v31886_v31 }
0x16f3   : > { %31887 = vrcp.f32 %v9975_v61 }
0x16fd   : > { %v31888_v22 = vpop.eup %31887 }
0x1718   : > { %v7952_v42 = vpop.permute.xlu0 %7951 }
0x1719   : > { %24877 = vst.msk [vmem:[%s32111_s29 + $0x8] sm:$0x3] %vm1842_vm3, %v7952_v42  ;;  %v8962_v11 = vsel %vm305_vm2, %v7952_v42, 0 }
0x171a   : > { %v9033_v14 = vand.u32 4294901760, %v8962_v11 }
0x171c   : > { %v9034_v15 = vsub.f32 %v8962_v11, %v9033_v14 }
0x171e   : > { %v9035_v6 = vand.u32 4294901760, %v9034_v15 }
0x1720   : > { %v9036_v8 = vsub.f32 %v9034_v15, %v9035_v6 }
0x1722   : > { %v9037_v23 = vand.u32 4294901760, %v9036_v8 }
0x1724   : > { %27495 = vmatmul.mubr.f32.vlgmr.msra.gmra.mrb[16].mxu1 %v9037_v23 }
0x1725   : > { %30152 = vmatpush3.bf16.msra.mxu1 %v32283_v3  ;;  %27505 = vmatprep.mubr.msk.f32.mxu1 %vm32050_vm1, %v32051_v9 }
0x1726   : > { %30153 = vmatprep.subr.bf16.mxu1 %v32049_v4 }
0x1729   : > { %30155 = vmatpush3.bf16.msra.mxu1 %v32291_v17 }
0x172a   : > { %30156 = vmatprep.subr.bf16.mxu1 %v32049_v4 }
0x172c   : > { %27506 = vmatmul.mubr.f32.vlgmr.msra.gmra.mrb[16].mxu1 %v9033_v14 }
0x172d   : > { %30158 = vmatpush3.bf16.msra.mxu1 %v32300_v20  ;;  %27516 = vmatprep.mubr.msk.f32.mxu1 %vm32050_vm1, %v32051_v9 }
0x172e   : > { %30159 = vmatprep.subr.bf16.mxu1 %v32049_v4 }
0x1731   : > { %30161 = vmatpush3.bf16.msra.mxu1 %v32307_v24 }
0x1732   : > { %30162 = vmatprep.subr.bf16.mxu1 %v32049_v4 }
0x1734   : > { %27517 = vmatmul.mubr.f32.vlgmr.msra.gmra.mrb[16].mxu1 %v9034_v15 }
0x1735   : > { %30164 = vmatpush3.bf16.msra.mxu1 %v32225_v13  ;;  %27527 = vmatprep.mubr.msk.f32.mxu1 %vm32050_vm1, %v32051_v9 }
0x1736   : > { %30165 = vmatprep.subr.bf16.mxu1 %v32049_v4 }
0x1739   : > { %30167 = vmatpush3.bf16.msra.mxu1 %v32262_v32 }
0x173a   : > { %30168 = vmatprep.subr.bf16.mxu1 %v32049_v4 }
0x173c   : > { %27528 = vmatmul.mubr.f32.vlgmr.msra.gmra.mrb[16].mxu1 %v9035_v6 }
0x173d   : > { %30170 = vmatpush3.bf16.msra.mxu1 %v32326_v27  ;;  %27538 = vmatprep.mubr.msk.f32.mxu1 %vm32050_vm1, %v32051_v9 }
0x173e   : > { %30171 = vmatprep.subr.bf16.mxu1 %v32049_v4 }
0x1741   : > { %30173 = vmatpush3.bf16.msra.mxu1 %v32334_v30 }
0x1742   : > { %30174 = vmatprep.subr.bf16.mxu1 %v32049_v4 }
0x1744   : > { %27539 = vmatmul.mubr.f32.vlgmr.msra.gmra.mrb[16].mxu1 %v9033_v14 }
0x1745   : > { %30176 = vmatpush3.bf16.msra.mxu1 %v32225_v13  ;;  %27549 = vmatprep.mubr.msk.f32.mxu1 %vm32050_vm1, %v32051_v9 }
0x1746   : > { %30177 = vmatprep.subr.bf16.mxu1 %v32049_v4 }
0x1749   : > { %30179 = vmatpush3.bf16.msra.mxu1 %v32262_v32 }
0x174a   : > { %30216 = vmatprep.subr.bf16.mxu1 %v32049_v4 }
0x174c   : > { %27550 = vmatmul.mubr.f32.vlgmr.msra.gmra.mrb[16].mxu1 %v9033_v14 }
0x174d   : > { %30218 = vmatpush3.bf16.msra.mxu1 %v32217_v7  ;;  %27626 = vmatprep.mubr.msk.f32.mxu1 %vm32050_vm1, %v32051_v9 }
0x174e   : > { %30219 = vmatprep.subr.bf16.mxu1 %v32049_v4 }
0x1751   : > { %30221 = vmatpush3.bf16.msra.mxu1 %v32251_v28 }
0x1752   : > { %30222 = vmatprep.subr.bf16.mxu1 %v32049_v4 }
0x1754   : > { %v9980_v43 = vpop.permute.xlu1 %9979 }
0x1755   : > { %v9982_v0 = vmul.f32 %v31888_v22, %v9980_v43 }
0x1757   : > { %9984 = vrot.lane.b32.xlu1 %v9982_v0, %s32052_s15 }
0x17c9   : > { %v9985_v44 = vpop.permute.xlu1 %9984 }
0x17ca   : > { %v9987_v45 = vadd.f32 %v24882_v59, %v9985_v44 }
0x17cc   : > { %31889 = vtanh.f32 %v9987_v45 }
0x17d6   : > { %v31890_v46 = vpop.eup %31889 }
0x17d7   : > { %v9989_v47 = vsub.f32 %v33089_v35, %v31890_v46 }
0x17d9   : > { %9991 = vrot.lane.b32.xlu1 %v9989_v47, %s32054_s13 }
0x181f   : > { %v9445_v10 = vpop.f32.mrb[16].mxu1 }
0x1820   : > { %v27551_v50 = vpop.f32.mrb[17].mxu1  ;;  %v31277_v36 = vadd.f32 %v32924_v48, %v9445_v10 }
0x1822   : > { %v9449_v34 = vadd.f32 %v31277_v36, %v31276_v54 }
0x1824   : > { %v24880_v57 = vmul.f32 -1.442695, %v9449_v34 }
0x1826   : > { %31891 = vpow2.f32 %v24880_v57 }
0x1830   : > { %v31892_v58 = vpop.eup %31891 }
0x1831   : > { %v9453_v35 = vadd.f32 1.0, %v31892_v58 }
0x1833   : > { %31893 = vrcp.f32 %v9453_v35 }
0x183d   : > { %v33252_v2 = vpop.eup %31893 }
0x184b   : > { %v9992_v52 = vpop.permute.xlu1 %9991 }
0x184c   : > { %v9994_v16 = vmul.f32 %v31888_v22, %v9992_v52 }
0x184e   : > { %9996 = vrot.lane.b32.xlu0 %v9994_v16, %s32053_s16 }
0x1852   : > { %9457 = vrot.lane.b32.xlu0 %v31277_v36, %s32052_s15 }
0x18c0   : > { %v9997_v53 = vpop.permute.xlu0 %9996 }
0x18c1   : > { %v33248_v55 = vadd.f32 %v31890_v46, %v9997_v53 }
0x18c3   : > { %10001 = vrot.lane.b32.xlu1 %v33248_v55, %s32052_s15 }
0x18c4   : > { %v9458_v48 = vpop.permute.xlu0 %9457 }
0x18c5   : > { %v9460_v5 = vmul.f32 %v33252_v2, %v9458_v48 }
0x18c7   : > { %9462 = vrot.lane.b32.xlu1 %v9460_v5, %s32052_s15 }
0x1935   : > { %v10002_v49 = vpop.permute.xlu1 %10001 }
0x1936   : > { %v10003_v63 = vsel %vm305_vm2, %v10002_v49, 0 }
0x1937   : > { %v33257_v42 = vand.u32 4294901760, %v10003_v63 }
0x1939   : > { %v10075_v11 = vsub.f32 %v10003_v63, %v33257_v42  ;;  %v9463_v14 = vpop.permute.xlu1 %9462 }
0x193a   : > { %v9465_v15 = vadd.f32 %v31276_v54, %v9463_v14  ;;  %v24886_v54 = vld [vmem:[%s32106_s26 + $0xe] sm:$0x3] }
0x193b   : > { %v10076_v6 = vand.u32 4294901760, %v10075_v11 }
0x193c   : > { %31895 = vtanh.f32 %v9465_v15 }
0x193d   : > { %v10077_v8 = vsub.f32 %v10075_v11, %v10076_v6 }
0x193f   : > { %v10078_v23 = vand.u32 4294901760, %v10077_v8  ;;  %v33401_v8 = vld [vmem:[%s34728_s4 + $0x2] ss:$0 sm:$0xff] }
0x1941   : > { %27627 = vmatmul.mubr.f32.vlgmr.msra.gmra.mrb[18].mxu1 %v10078_v23 }
0x1942   : > { %30224 = vmatpush3.bf16.msra.mxu1 %v32274_v51  ;;  %27637 = vmatprep.mubr.msk.f32.mxu1 %vm32050_vm1, %v32051_v9 }
0x1943   : > { %30225 = vmatprep.subr.bf16.mxu1 %v32049_v4 }
0x1946   : > { %v33264_v59 = vpop.eup %31895  ;;  %30227 = vmatpush3.bf16.msra.mxu1 %v32288_v56 }
0x1947   : > { %30228 = vmatprep.subr.bf16.mxu1 %v32049_v4  ;;  %v9467_v26 = vsub.f32 %v33187_v62, %v33264_v59 }
0x1949   : > { %27638 = vmatmul.mubr.f32.vlgmr.msra.gmra.mrb[18].mxu1 %v33257_v42  ;;  %9469 = vrot.lane.b32.xlu0 %v9467_v26, %s32054_s13 }
0x194a   : > { %30230 = vmatpush3.bf16.msra.mxu1 %v32295_v18  ;;  %27648 = vmatprep.mubr.msk.f32.mxu1 %vm32050_vm1, %v32051_v9 }
0x194b   : > { %30231 = vmatprep.subr.bf16.mxu1 %v32049_v4 }
0x194e   : > { %30233 = vmatpush3.bf16.msra.mxu1 %v32303_v21 }
0x194f   : > { %30234 = vmatprep.subr.bf16.mxu1 %v32049_v4 }
0x1951   : > { %27649 = vmatmul.mubr.f32.vlgmr.msra.gmra.mrb[18].mxu1 %v10075_v11 }
0x1952   : > { %30236 = vmatpush3.bf16.msra.mxu1 %v32217_v7  ;;  %27659 = vmatprep.mubr.msk.f32.mxu1 %vm32050_vm1, %v32051_v9 }
0x1953   : > { %30237 = vmatprep.subr.bf16.mxu1 %v32049_v4 }
0x1956   : > { %30239 = vmatpush3.bf16.msra.mxu1 %v32251_v28 }
0x1957   : > { %30240 = vmatprep.subr.bf16.mxu1 %v32049_v4 }
0x1959   : > { %27660 = vmatmul.mubr.f32.vlgmr.msra.gmra.mrb[18].mxu1 %v10076_v6 }
0x195a   : > { %30242 = vmatpush3.bf16.msra.mxu1 %v32323_v25  ;;  %27670 = vmatprep.mubr.msk.f32.mxu1 %vm32050_vm1, %v32051_v9 }
0x195b   : > { %30243 = vmatprep.subr.bf16.mxu1 %v32049_v4 }
0x195e   : > { %30245 = vmatpush3.bf16.msra.mxu1 %v32329_v29 }
0x195f   : > { %30246 = vmatprep.subr.bf16.mxu1 %v32049_v4 }
0x1961   : > { %27671 = vmatmul.mubr.f32.vlgmr.msra.gmra.mrb[18].mxu1 %v33257_v42 }
0x1962   : > { %30248 = vmatpush3.bf16.msra.mxu1 %v32217_v7  ;;  %27681 = vmatprep.mubr.msk.f32.mxu1 %vm32050_vm1, %v32051_v9 }
0x1963   : > { %30249 = vmatprep.subr.bf16.mxu1 %v32049_v4 }
0x1966   : > { %30251 = vmatpush3.bf16.msra.mxu1 %v32251_v28 }
0x1967   : > { %30288 = vmatprep.subr.bf16.mxu1 %v32049_v4 }
0x1969   : > { %27682 = vmatmul.mubr.f32.vlgmr.msra.gmra.mrb[18].mxu1 %v33257_v42 }
0x196a   : > { %30290 = vmatpush3.bf16.msra.mxu1 %v32133_v12  ;;  %27758 = vmatprep.mubr.msk.f32.mxu1 %vm32050_vm1, %v32051_v9 }
0x196b   : > { %30291 = vmatprep.subr.bf16.mxu1 %v32049_v4 }
0x196e   : > { %30293 = vmatpush3.bf16.msra.mxu1 %v32138_v19 }
0x196f   : > { %30294 = vmatprep.subr.bf16.mxu1 %v32049_v4 }
0x1971   : > { %27759 = vmatmul.mubr.f32.vlgmr.msra.gmra.mrb[20].mxu1 %v10078_v23 }
0x1972   : > { %30296 = vmatpush3.bf16.msra.mxu1 %v32143_v33  ;;  %27769 = vmatprep.mubr.msk.f32.mxu1 %vm32050_vm1, %v32051_v9 }
0x1973   : > { %30297 = vmatprep.subr.bf16.mxu1 %v32049_v4 }
0x1976   : > { %30299 = vmatpush3.bf16.msra.mxu1 %v32146_v37 }
0x1977   : > { %30300 = vmatprep.subr.bf16.mxu1 %v32049_v4 }
0x1979   : > { %27770 = vmatmul.mubr.f32.vlgmr.msra.gmra.mrb[20].mxu1 %v33257_v42 }
0x197a   : > { %30302 = vmatpush3.bf16.msra.mxu1 %v32152_v38  ;;  %27780 = vmatprep.mubr.msk.f32.mxu1 %vm32050_vm1, %v32051_v9 }
0x197b   : > { %30303 = vmatprep.subr.bf16.mxu1 %v32049_v4 }
0x197e   : > { %30305 = vmatpush3.bf16.msra.mxu1 %v32156_v39 }
0x197f   : > { %30306 = vmatprep.subr.bf16.mxu1 %v32049_v4 }
0x1981   : > { %27781 = vmatmul.mubr.f32.vlgmr.msra.gmra.mrb[20].mxu1 %v10075_v11 }
0x1982   : > { %30308 = vmatpush3.bf16.msra.mxu1 %v32133_v12  ;;  %27791 = vmatprep.mubr.msk.f32.mxu1 %vm32050_vm1, %v32051_v9 }
0x1983   : > { %30309 = vmatprep.subr.bf16.mxu1 %v32049_v4 }
0x1986   : > { %30311 = vmatpush3.bf16.msra.mxu1 %v32138_v19 }
0x1987   : > { %30312 = vmatprep.subr.bf16.mxu1 %v32049_v4 }
0x1989   : > { %27792 = vmatmul.mubr.f32.vlgmr.msra.gmra.mrb[20].mxu1 %v10076_v6 }
0x198a   : > { %30314 = vmatpush3.bf16.msra.mxu1 %v32168_v40  ;;  %27802 = vmatprep.mubr.msk.f32.mxu1 %vm32050_vm1, %v32051_v9 }
0x198b   : > { %30315 = vmatprep.subr.bf16.mxu1 %v32049_v4 }
0x198e   : > { %30317 = vmatpush3.bf16.msra.mxu1 %v32172_v41 }
0x198f   : > { %30318 = vmatprep.subr.bf16.mxu1 %v32049_v4 }
0x1991   : > { %27803 = vmatmul.mubr.f32.vlgmr.msra.gmra.mrb[20].mxu1 %v33257_v42 }
0x1992   : > { %30320 = vmatpush3.bf16.msra.mxu1 %v32133_v12  ;;  %27813 = vmatprep.mubr.msk.f32.mxu1 %vm32050_vm1, %v32051_v9 }
0x1993   : > { %30321 = vmatprep.subr.bf16.mxu1 %v32049_v4 }
0x1996   : > { %30323 = vmatpush3.bf16.msra.mxu1 %v32138_v19 }
0x1997   : > { %30360 = vmatprep.subr.bf16.mxu1 %v32049_v4 }
0x1999   : > { %27814 = vmatmul.mubr.f32.vlgmr.msra.gmra.mrb[20].mxu1 %v33257_v42 }
0x199a   : > { %30362 = vmatpush3.bf16.msra.mxu1 %v32225_v13  ;;  %27890 = vmatprep.mubr.msk.f32.mxu1 %vm32050_vm1, %v32051_v9 }
0x199b   : > { %30363 = vmatprep.subr.bf16.mxu1 %v32049_v4 }
0x199e   : > { %30365 = vmatpush3.bf16.msra.mxu1 %v32262_v32 }
0x199f   : > { %30366 = vmatprep.subr.bf16.mxu1 %v32049_v4 }
0x19bb   : > { %v9470_v62 = vpop.permute.xlu0 %9469 }
0x19bc   : > { %v9472_v60 = vmul.f32 %v33252_v2, %v9470_v62 }
0x19be   : > { %9474 = vrot.lane.b32.xlu1 %v9472_v60, %s32053_s16 }
0x1a30   : > { %v9475_v31 = vpop.permute.xlu1 %9474 }
0x1a31   : > { %v33346_v61 = vadd.f32 %v33264_v59, %v9475_v31 }
0x1a33   : > { %9479 = vrot.lane.b32.xlu1 %v33346_v61, %s32052_s15 }
0x1a3c   : > { %v33350_v22 = vpop.f32.mrb[18].mxu1 }
0x1a3d   : > { %v27683_v43 = vpop.f32.mrb[19].mxu1 }
0x1a6c   : > { %v11495_v0 = vpop.f32.mrb[20].mxu1 }
0x1a6d   : > { %v31281_v44 = vadd.f32 %v33196_v1, %v11495_v0  ;;  %v27815_v45 = vpop.f32.mrb[21].mxu1 }
0x1a6f   : > { %11507 = vrot.lane.b32.xlu0 %v31281_v44, %s32052_s15  ;;  %v11499_v34 = vadd.f32 %v31281_v44, %v24886_v54 }
0x1a71   : > { %v24887_v57 = vmul.f32 -1.442695, %v11499_v34 }
0x1a73   : > { %31897 = vpow2.f32 %v24887_v57 }
0x1a7d   : > { %v31898_v58 = vpop.eup %31897 }
0x1a7e   : > { %v11503_v35 = vadd.f32 1.0, %v31898_v58 }
0x1a80   : > { %31899 = vrcp.f32 %v11503_v35 }
0x1a8a   : > { %v31900_v53 = vpop.eup %31899 }
0x1aa5   : > { %v9480_v46 = vpop.permute.xlu1 %9479 }
0x1aa6   : > { %24881 = vst.msk [vmem:[%s32111_s29 + $0xa] sm:$0x3] %vm1842_vm3, %v9480_v46  ;;  %v10490_v47 = vsel %vm305_vm2, %v9480_v46, 0 }
0x1aa7   : > { %v10561_v10 = vand.u32 4294901760, %v10490_v47 }
0x1aa9   : > { %v10562_v50 = vsub.f32 %v10490_v47, %v10561_v10 }
0x1aab   : > { %v10563_v52 = vand.u32 4294901760, %v10562_v50 }
0x1aad   : > { %v10564_v16 = vsub.f32 %v10562_v50, %v10563_v52 }
0x1aaf   : > { %v10565_v36 = vand.u32 4294901760, %v10564_v16 }
0x1ab1   : > { %27693 = vmatmul.mubr.f32.vlgmr.msra.gmra.mrb[20].mxu0 %v10565_v36 }
0x1ab2   : > { %30260 = vmatpush3.bf16.msra.mxu0 %v32283_v3  ;;  %27703 = vmatprep.mubr.msk.f32.mxu0 %vm32050_vm1, %v32051_v9 }
0x1ab3   : > { %30261 = vmatprep.subr.bf16.mxu0 %v32049_v4 }
0x1ab6   : > { %30263 = vmatpush3.bf16.msra.mxu0 %v32291_v17 }
0x1ab7   : > { %30264 = vmatprep.subr.bf16.mxu0 %v32049_v4 }
0x1ab9   : > { %27704 = vmatmul.mubr.f32.vlgmr.msra.gmra.mrb[20].mxu0 %v10561_v10 }
0x1aba   : > { %30266 = vmatpush3.bf16.msra.mxu0 %v32300_v20  ;;  %27714 = vmatprep.mubr.msk.f32.mxu0 %vm32050_vm1, %v32051_v9 }
0x1abb   : > { %30267 = vmatprep.subr.bf16.mxu0 %v32049_v4 }
0x1abe   : > { %30269 = vmatpush3.bf16.msra.mxu0 %v32307_v24 }
0x1abf   : > { %30270 = vmatprep.subr.bf16.mxu0 %v32049_v4 }
0x1ac1   : > { %27715 = vmatmul.mubr.f32.vlgmr.msra.gmra.mrb[20].mxu0 %v10562_v50 }
0x1ac2   : > { %30272 = vmatpush3.bf16.msra.mxu0 %v32225_v13  ;;  %27725 = vmatprep.mubr.msk.f32.mxu0 %vm32050_vm1, %v32051_v9 }
0x1ac3   : > { %30273 = vmatprep.subr.bf16.mxu0 %v32049_v4 }
0x1ac6   : > { %30275 = vmatpush3.bf16.msra.mxu0 %v32262_v32 }
0x1ac7   : > { %30276 = vmatprep.subr.bf16.mxu0 %v32049_v4 }
0x1ac9   : > { %27726 = vmatmul.mubr.f32.vlgmr.msra.gmra.mrb[20].mxu0 %v10563_v52 }
0x1aca   : > { %30278 = vmatpush3.bf16.msra.mxu0 %v32326_v27  ;;  %27736 = vmatprep.mubr.msk.f32.mxu0 %vm32050_vm1, %v32051_v9 }
0x1acb   : > { %30279 = vmatprep.subr.bf16.mxu0 %v32049_v4 }
0x1ace   : > { %30281 = vmatpush3.bf16.msra.mxu0 %v32334_v30 }
0x1acf   : > { %30282 = vmatprep.subr.bf16.mxu0 %v32049_v4 }
0x1ad1   : > { %27737 = vmatmul.mubr.f32.vlgmr.msra.gmra.mrb[20].mxu0 %v10561_v10 }
0x1ad2   : > { %30284 = vmatpush3.bf16.msra.mxu0 %v32225_v13  ;;  %27747 = vmatprep.mubr.msk.f32.mxu0 %vm32050_vm1, %v32051_v9 }
0x1ad3   : > { %30285 = vmatprep.subr.bf16.mxu0 %v32049_v4 }
0x1ad6   : > { %30287 = vmatpush3.bf16.msra.mxu0 %v32262_v32 }
0x1ad7   : > { %30324 = vmatprep.subr.bf16.mxu0 %v32049_v4 }
0x1ad9   : > { %27748 = vmatmul.mubr.f32.vlgmr.msra.gmra.mrb[20].mxu0 %v10561_v10 }
0x1ada   : > { %30326 = vmatpush3.bf16.msra.mxu0 %v32217_v7  ;;  %27824 = vmatprep.mubr.msk.f32.mxu0 %vm32050_vm1, %v32051_v9 }
0x1adb   : > { %30327 = vmatprep.subr.bf16.mxu0 %v32049_v4 }
0x1ade   : > { %30329 = vmatpush3.bf16.msra.mxu0 %v32251_v28 }
0x1adf   : > { %30330 = vmatprep.subr.bf16.mxu0 %v32049_v4 }
0x1ae1   : > { %v11508_v2 = vpop.permute.xlu0 %11507 }
0x1ae2   : > { %v11510_v48 = vmul.f32 %v31900_v53, %v11508_v2 }
0x1ae4   : > { %11512 = vrot.lane.b32.xlu0 %v11510_v48, %s32052_s15 }
0x1b56   : > { %v11513_v5 = vpop.permute.xlu0 %11512 }
0x1b57   : > { %v11515_v49 = vadd.f32 %v24886_v54, %v11513_v5 }
0x1b59   : > { %31901 = vtanh.f32 %v11515_v49 }
0x1b63   : > { %v31902_v63 = vpop.eup %31901 }
0x1b64   : > { %v11517_v42 = vsub.f32 %v33248_v55, %v31902_v63  ;;  %v33408_v55 = vld [vmem:[%s34728_s4 + $0x1] ss:$0 sm:$0xff] }
0x1b65   : > { %v31279_v59 = vadd.f32 %v33408_v55, %v33350_v22 }
0x1b66   : > { %11519 = vrot.lane.b32.xlu1 %v11517_v42, %s32054_s13 }
0x1bac   : > { %v10973_v11 = vpop.f32.mrb[20].mxu0 }
0x1bad   : > { %v27749_v14 = vpop.f32.mrb[21].mxu0  ;;  %v31280_v23 = vadd.f32 %v33401_v8, %v10973_v11 }
0x1baf   : > { %v10977_v26 = vadd.f32 %v31280_v23, %v31279_v59 }
0x1bb1   : > { %v24884_v62 = vmul.f32 -1.442695, %v10977_v26 }
0x1bb3   : > { %31903 = vpow2.f32 %v24884_v62 }
0x1bbd   : > { %v31904_v60 = vpop.eup %31903 }
0x1bbe   : > { %v10981_v31 = vadd.f32 1.0, %v31904_v60 }
0x1bc0   : > { %31905 = vrcp.f32 %v10981_v31 }
0x1bca   : > { %v33416_v44 = vpop.eup %31905 }
0x1bd8   : > { %v11520_v15 = vpop.permute.xlu1 %11519 }
0x1bd9   : > { %v11522_v6 = vmul.f32 %v31900_v53, %v11520_v15 }
0x1bdb   : > { %11524 = vrot.lane.b32.xlu0 %v11522_v6, %s32053_s16 }
0x1bdf   : > { %10985 = vrot.lane.b32.xlu0 %v31280_v23, %s32052_s15 }
0x1c4d   : > { %v11525_v43 = vpop.permute.xlu0 %11524 }
0x1c4e   : > { %v33412_v0 = vadd.f32 %v31902_v63, %v11525_v43 }
0x1c50   : > { %11529 = vrot.lane.b32.xlu1 %v33412_v0, %s32052_s15 }
0x1c51   : > { %v10986_v45 = vpop.permute.xlu0 %10985 }
0x1c52   : > { %v10988_v46 = vmul.f32 %v33416_v44, %v10986_v45 }
0x1c54   : > { %10990 = vrot.lane.b32.xlu1 %v10988_v46, %s32052_s15 }
0x1cc2   : > { %v11530_v22 = vpop.permute.xlu1 %11529 }
0x1cc3   : > { %v11531_v47 = vsel %vm305_vm2, %v11530_v22, 0 }
0x1cc4   : > { %v33421_v10 = vand.u32 4294901760, %v11531_v47 }
0x1cc6   : > { %v11603_v50 = vsub.f32 %v11531_v47, %v33421_v10  ;;  %v10991_v52 = vpop.permute.xlu1 %10990 }
0x1cc7   : > { %v10993_v16 = vadd.f32 %v31279_v59, %v10991_v52 }
0x1cc8   : > { %v11604_v36 = vand.u32 4294901760, %v11603_v50 }
0x1cc9   : > { %31907 = vtanh.f32 %v10993_v16 }
0x1cca   : > { %v11605_v54 = vsub.f32 %v11603_v50, %v11604_v36 }
0x1ccc   : > { %v11606_v34 = vand.u32 4294901760, %v11605_v54 }
0x1cce   : > { %27825 = vmatmul.mubr.f32.vlgmr.msra.gmra.mrb[22].mxu0 %v11606_v34 }
0x1ccf   : > { %30332 = vmatpush3.bf16.msra.mxu0 %v32274_v51  ;;  %27835 = vmatprep.mubr.msk.f32.mxu0 %vm32050_vm1, %v32051_v9 }
0x1cd0   : > { %30333 = vmatprep.subr.bf16.mxu0 %v32049_v4 }
0x1cd3   : > { %v33428_v57 = vpop.eup %31907  ;;  %30335 = vmatpush3.bf16.msra.mxu0 %v32288_v56 }
0x1cd4   : > { %30336 = vmatprep.subr.bf16.mxu0 %v32049_v4  ;;  %v10995_v58 = vsub.f32 %v33346_v61, %v33428_v57 }
0x1cd6   : > { %27836 = vmatmul.mubr.f32.vlgmr.msra.gmra.mrb[22].mxu0 %v33421_v10  ;;  %10997 = vrot.lane.b32.xlu0 %v10995_v58, %s32054_s13 }
0x1cd7   : > { %30338 = vmatpush3.bf16.msra.mxu0 %v32295_v18  ;;  %27846 = vmatprep.mubr.msk.f32.mxu0 %vm32050_vm1, %v32051_v9 }
0x1cd8   : > { %30339 = vmatprep.subr.bf16.mxu0 %v32049_v4 }
0x1cdb   : > { %30341 = vmatpush3.bf16.msra.mxu0 %v32303_v21 }
0x1cdc   : > { %30342 = vmatprep.subr.bf16.mxu0 %v32049_v4 }
0x1cde   : > { %27847 = vmatmul.mubr.f32.vlgmr.msra.gmra.mrb[22].mxu0 %v11603_v50 }
0x1cdf   : > { %30344 = vmatpush3.bf16.msra.mxu0 %v32217_v7  ;;  %27857 = vmatprep.mubr.msk.f32.mxu0 %vm32050_vm1, %v32051_v9 }
0x1ce0   : > { %30345 = vmatprep.subr.bf16.mxu0 %v32049_v4 }
0x1ce3   : > { %30347 = vmatpush3.bf16.msra.mxu0 %v32251_v28 }
0x1ce4   : > { %30348 = vmatprep.subr.bf16.mxu0 %v32049_v4 }
0x1ce6   : > { %27858 = vmatmul.mubr.f32.vlgmr.msra.gmra.mrb[22].mxu0 %v11604_v36 }
0x1ce7   : > { %30350 = vmatpush3.bf16.msra.mxu0 %v32323_v25  ;;  %27868 = vmatprep.mubr.msk.f32.mxu0 %vm32050_vm1, %v32051_v9 }
0x1ce8   : > { %30351 = vmatprep.subr.bf16.mxu0 %v32049_v4 }
0x1ceb   : > { %30353 = vmatpush3.bf16.msra.mxu0 %v32329_v29 }
0x1cec   : > { %30354 = vmatprep.subr.bf16.mxu0 %v32049_v4 }
0x1cee   : > { %27869 = vmatmul.mubr.f32.vlgmr.msra.gmra.mrb[22].mxu0 %v33421_v10 }
0x1cef   : > { %30356 = vmatpush3.bf16.msra.mxu0 %v32217_v7  ;;  %27879 = vmatprep.mubr.msk.f32.mxu0 %vm32050_vm1, %v32051_v9 }
0x1cf0   : > { %30357 = vmatprep.subr.bf16.mxu0 %v32049_v4 }
0x1cf3   : > { %30359 = vmatpush3.bf16.msra.mxu0 %v32251_v28 }
0x1cf4   : > { %30396 = vmatprep.subr.bf16.mxu0 %v32049_v4 }
0x1cf6   : > { %27880 = vmatmul.mubr.f32.vlgmr.msra.gmra.mrb[22].mxu0 %v33421_v10 }
0x1cf7   : > { %30398 = vmatpush3.bf16.msra.mxu0 %v32133_v12  ;;  %27956 = vmatprep.mubr.msk.f32.mxu0 %vm32050_vm1, %v32051_v9 }
0x1cf8   : > { %30399 = vmatprep.subr.bf16.mxu0 %v32049_v4 }
0x1cfb   : > { %30401 = vmatpush3.bf16.msra.mxu0 %v32138_v19 }
0x1cfc   : > { %30402 = vmatprep.subr.bf16.mxu0 %v32049_v4 }
0x1cfe   : > { %27957 = vmatmul.mubr.f32.vlgmr.msra.gmra.mrb[24].mxu0 %v11606_v34 }
0x1cff   : > { %30404 = vmatpush3.bf16.msra.mxu0 %v32143_v33  ;;  %27967 = vmatprep.mubr.msk.f32.mxu0 %vm32050_vm1, %v32051_v9 }
0x1d00   : > { %30405 = vmatprep.subr.bf16.mxu0 %v32049_v4 }
0x1d03   : > { %30407 = vmatpush3.bf16.msra.mxu0 %v32146_v37 }
0x1d04   : > { %30408 = vmatprep.subr.bf16.mxu0 %v32049_v4 }
0x1d06   : > { %27968 = vmatmul.mubr.f32.vlgmr.msra.gmra.mrb[24].mxu0 %v33421_v10 }
0x1d07   : > { %30410 = vmatpush3.bf16.msra.mxu0 %v32152_v38  ;;  %27978 = vmatprep.mubr.msk.f32.mxu0 %vm32050_vm1, %v32051_v9 }
0x1d08   : > { %30411 = vmatprep.subr.bf16.mxu0 %v32049_v4 }
0x1d0b   : > { %30413 = vmatpush3.bf16.msra.mxu0 %v32156_v39 }
0x1d0c   : > { %30414 = vmatprep.subr.bf16.mxu0 %v32049_v4 }
0x1d0e   : > { %27979 = vmatmul.mubr.f32.vlgmr.msra.gmra.mrb[24].mxu0 %v11603_v50 }
0x1d0f   : > { %30416 = vmatpush3.bf16.msra.mxu0 %v32133_v12  ;;  %27989 = vmatprep.mubr.msk.f32.mxu0 %vm32050_vm1, %v32051_v9 }
0x1d10   : > { %30417 = vmatprep.subr.bf16.mxu0 %v32049_v4 }
0x1d13   : > { %30419 = vmatpush3.bf16.msra.mxu0 %v32138_v19 }
0x1d14   : > { %30420 = vmatprep.subr.bf16.mxu0 %v32049_v4 }
0x1d16   : > { %27990 = vmatmul.mubr.f32.vlgmr.msra.gmra.mrb[24].mxu0 %v11604_v36 }
0x1d17   : > { %30422 = vmatpush3.bf16.msra.mxu0 %v32168_v40  ;;  %28000 = vmatprep.mubr.msk.f32.mxu0 %vm32050_vm1, %v32051_v9 }
0x1d18   : > { %30423 = vmatprep.subr.bf16.mxu0 %v32049_v4 }
0x1d1b   : > { %30425 = vmatpush3.bf16.msra.mxu0 %v32172_v41 }
0x1d1c   : > { %30426 = vmatprep.subr.bf16.mxu0 %v32049_v4 }
0x1d1e   : > { %28001 = vmatmul.mubr.f32.vlgmr.msra.gmra.mrb[24].mxu0 %v33421_v10 }
0x1d1f   : > { %30428 = vmatpush3.bf16.msra.mxu0 %v32133_v12  ;;  %28011 = vmatprep.mubr.msk.f32.mxu0 %vm32050_vm1, %v32051_v9 }
0x1d20   : > { %30429 = vmatprep.subr.bf16.mxu0 %v32049_v4 }
0x1d23   : > { %30431 = vmatpush3.bf16.msra.mxu0 %v32138_v19 }
0x1d24   : > { %30468 = vmatprep.subr.bf16.mxu0 %v32049_v4 }
0x1d26   : > { %28012 = vmatmul.mubr.f32.vlgmr.msra.gmra.mrb[24].mxu0 %v33421_v10 }
0x1d27   : > { %30470 = vmatpush3.bf16.msra.mxu0 %v32225_v13  ;;  %28088 = vmatprep.mubr.msk.f32.mxu0 %vm32050_vm1, %v32051_v9 }
0x1d28   : > { %30471 = vmatprep.subr.bf16.mxu0 %v32049_v4 }
0x1d2b   : > { %30473 = vmatpush3.bf16.msra.mxu0 %v32262_v32 }
0x1d2c   : > { %30474 = vmatprep.subr.bf16.mxu0 %v32049_v4 }
0x1d48   : > { %v10998_v61 = vpop.permute.xlu0 %10997 }
0x1d49   : > { %v11000_v35 = vmul.f32 %v33416_v44, %v10998_v61 }
0x1d4b   : > { %11002 = vrot.lane.b32.xlu1 %v11000_v35, %s32053_s16 }
0x1dbd   : > { %v11003_v53 = vpop.permute.xlu1 %11002 }
0x1dbe   : > { %v33510_v2 = vadd.f32 %v33428_v57, %v11003_v53 }
0x1dc0   : > { %11007 = vrot.lane.b32.xlu0 %v33510_v2, %s32052_s15 }
0x1dc9   : > { %v33514_v48 = vpop.f32.mrb[22].mxu0 }
0x1dca   : > { %v27881_v5 = vpop.f32.mrb[23].mxu0  ;;  %v31282_v57 = vadd.f32 %v33408_v55, %v33514_v48 }
0x1df9   : > { %v13023_v49 = vpop.f32.mrb[24].mxu0 }
0x1dfa   : > { %v31284_v63 = vadd.f32 %v33196_v1, %v13023_v49  ;;  %v28013_v42 = vpop.f32.mrb[25].mxu0  ;;  %v24890_v1 = vld [vmem:[%s32106_s26 + $0x10] sm:$0x3] }
0x1dfc   : > { %13035 = vrot.lane.b32.xlu1 %v31284_v63, %s32052_s15  ;;  %v13027_v62 = vadd.f32 %v31284_v63, %v24890_v1 }
0x1dfe   : > { %v24891_v60 = vmul.f32 -1.442695, %v13027_v62 }
0x1e00   : > { %31909 = vpow2.f32 %v24891_v60 }
0x1e0a   : > { %v31910_v31 = vpop.eup %31909 }
0x1e0b   : > { %v13031_v43 = vadd.f32 1.0, %v31910_v31 }
0x1e0d   : > { %31911 = vrcp.f32 %v13031_v43 }
0x1e17   : > { %v31912_v44 = vpop.eup %31911 }
0x1e32   : > { %v11008_v11 = vpop.permute.xlu0 %11007 }
0x1e33   : > { %24885 = vst.msk [vmem:[%s32111_s29 + $0xc] sm:$0x3] %vm1842_vm3, %v11008_v11  ;;  %v12018_v14 = vsel %vm305_vm2, %v11008_v11, 0 }
0x1e34   : > { %v12089_v15 = vand.u32 4294901760, %v12018_v14 }
0x1e36   : > { %v12090_v6 = vsub.f32 %v12018_v14, %v12089_v15 }
0x1e38   : > { %v12091_v23 = vand.u32 4294901760, %v12090_v6 }
0x1e3a   : > { %v12092_v59 = vsub.f32 %v12090_v6, %v12091_v23 }
0x1e3c   : > { %v12093_v26 = vand.u32 4294901760, %v12092_v59 }
0x1e3e   : > { %27891 = vmatmul.mubr.f32.vlgmr.msra.gmra.mrb[22].mxu1 %v12093_v26 }
0x1e3f   : > { %30368 = vmatpush3.bf16.msra.mxu1 %v32283_v3  ;;  %27901 = vmatprep.mubr.msk.f32.mxu1 %vm32050_vm1, %v32051_v9 }
0x1e40   : > { %30369 = vmatprep.subr.bf16.mxu1 %v32049_v4 }
0x1e43   : > { %30371 = vmatpush3.bf16.msra.mxu1 %v32291_v17 }
0x1e44   : > { %30372 = vmatprep.subr.bf16.mxu1 %v32049_v4 }
0x1e46   : > { %27902 = vmatmul.mubr.f32.vlgmr.msra.gmra.mrb[22].mxu1 %v12089_v15 }
0x1e47   : > { %30374 = vmatpush3.bf16.msra.mxu1 %v32300_v20  ;;  %27912 = vmatprep.mubr.msk.f32.mxu1 %vm32050_vm1, %v32051_v9 }
0x1e48   : > { %30375 = vmatprep.subr.bf16.mxu1 %v32049_v4 }
0x1e4b   : > { %30377 = vmatpush3.bf16.msra.mxu1 %v32307_v24 }
0x1e4c   : > { %30378 = vmatprep.subr.bf16.mxu1 %v32049_v4 }
0x1e4e   : > { %27913 = vmatmul.mubr.f32.vlgmr.msra.gmra.mrb[22].mxu1 %v12090_v6 }
0x1e4f   : > { %30380 = vmatpush3.bf16.msra.mxu1 %v32225_v13  ;;  %27923 = vmatprep.mubr.msk.f32.mxu1 %vm32050_vm1, %v32051_v9 }
0x1e50   : > { %30381 = vmatprep.subr.bf16.mxu1 %v32049_v4 }
0x1e53   : > { %30383 = vmatpush3.bf16.msra.mxu1 %v32262_v32 }
0x1e54   : > { %30384 = vmatprep.subr.bf16.mxu1 %v32049_v4 }
0x1e56   : > { %27924 = vmatmul.mubr.f32.vlgmr.msra.gmra.mrb[22].mxu1 %v12091_v23 }
0x1e57   : > { %30386 = vmatpush3.bf16.msra.mxu1 %v32326_v27  ;;  %27934 = vmatprep.mubr.msk.f32.mxu1 %vm32050_vm1, %v32051_v9 }
0x1e58   : > { %30387 = vmatprep.subr.bf16.mxu1 %v32049_v4 }
0x1e5b   : > { %30389 = vmatpush3.bf16.msra.mxu1 %v32334_v30 }
0x1e5c   : > { %30390 = vmatprep.subr.bf16.mxu1 %v32049_v4 }
0x1e5e   : > { %27935 = vmatmul.mubr.f32.vlgmr.msra.gmra.mrb[22].mxu1 %v12089_v15 }
0x1e5f   : > { %30392 = vmatpush3.bf16.msra.mxu1 %v32225_v13  ;;  %27945 = vmatprep.mubr.msk.f32.mxu1 %vm32050_vm1, %v32051_v9 }
0x1e60   : > { %30393 = vmatprep.subr.bf16.mxu1 %v32049_v4 }
0x1e63   : > { %30395 = vmatpush3.bf16.msra.mxu1 %v32262_v32 }
0x1e64   : > { %30432 = vmatprep.subr.bf16.mxu1 %v32049_v4 }
0x1e66   : > { %27946 = vmatmul.mubr.f32.vlgmr.msra.gmra.mrb[22].mxu1 %v12089_v15 }
0x1e67   : > { %30434 = vmatpush3.bf16.msra.mxu1 %v32217_v7  ;;  %28022 = vmatprep.mubr.msk.f32.mxu1 %vm32050_vm1, %v32051_v9 }
0x1e68   : > { %30435 = vmatprep.subr.bf16.mxu1 %v32049_v4 }
0x1e6b   : > { %30437 = vmatpush3.bf16.msra.mxu1 %v32251_v28 }
0x1e6c   : > { %30438 = vmatprep.subr.bf16.mxu1 %v32049_v4 }
0x1e6e   : > { %v13036_v45 = vpop.permute.xlu1 %13035 }
0x1e6f   : > { %v13038_v46 = vmul.f32 %v31912_v44, %v13036_v45 }
0x1e71   : > { %13040 = vrot.lane.b32.xlu0 %v13038_v46, %s32052_s15 }
0x1ee3   : > { %v13041_v22 = vpop.permute.xlu0 %13040 }
0x1ee4   : > { %v13043_v47 = vadd.f32 %v24890_v1, %v13041_v22 }
0x1ee6   : > { %31913 = vtanh.f32 %v13043_v47  ;;  %v33673_v47 = vld [vmem:[%s34728_s4] ss:$0 sm:$0xff] }
0x1ef0   : > { %v31914_v10 = vpop.eup %31913 }
0x1ef1   : > { %v13045_v50 = vsub.f32 %v33412_v0, %v31914_v10 }
0x1ef3   : > { %13047 = vrot.lane.b32.xlu1 %v13045_v50, %s32054_s13 }
0x1f39   : > { %v12501_v52 = vpop.f32.mrb[22].mxu1 }
0x1f3a   : > { %v27947_v16 = vpop.f32.mrb[23].mxu1  ;;  %v31283_v34 = vadd.f32 %v33401_v8, %v12501_v52 }
0x1f3c   : > { %v12505_v58 = vadd.f32 %v31283_v34, %v31282_v57 }
0x1f3e   : > { %v24888_v61 = vmul.f32 -1.442695, %v12505_v58 }
0x1f40   : > { %31915 = vpow2.f32 %v24888_v61  ;;  %v24894_v61 = vld [vmem:[%s32106_s26 + $0x12] sm:$0x3] }
0x1f4a   : > { %v31916_v35 = vpop.eup %31915 }
0x1f4b   : > { %v12509_v0 = vadd.f32 1.0, %v31916_v35 }
0x1f4d   : > { %31917 = vrcp.f32 %v12509_v0 }
0x1f57   : > { %v33570_v49 = vpop.eup %31917 }
0x1f65   : > { %v13048_v36 = vpop.permute.xlu1 %13047 }
0x1f66   : > { %v13050_v54 = vmul.f32 %v31912_v44, %v13048_v36 }
0x1f68   : > { %13052 = vrot.lane.b32.xlu0 %v13050_v54, %s32053_s16 }
0x1f6c   : > { %12513 = vrot.lane.b32.xlu0 %v31283_v34, %s32052_s15 }
0x1fda   : > { %v13053_v53 = vpop.permute.xlu0 %13052 }
0x1fdb   : > { %v33566_v5 = vadd.f32 %v31914_v10, %v13053_v53 }
0x1fdd   : > { %13057 = vrot.lane.b32.xlu1 %v33566_v5, %s32052_s15 }
0x1fde   : > { %v12514_v63 = vpop.permute.xlu0 %12513 }
0x1fdf   : > { %v12516_v42 = vmul.f32 %v33570_v49, %v12514_v63 }
0x1fe1   : > { %12518 = vrot.lane.b32.xlu1 %v12516_v42, %s32052_s15 }
0x204f   : > { %v13058_v48 = vpop.permute.xlu1 %13057 }
0x2050   : > { %v13059_v11 = vsel %vm305_vm2, %v13058_v48, 0 }
0x2051   : > { %v33575_v14 = vand.u32 4294901760, %v13059_v11 }
0x2053   : > { %v13131_v15 = vsub.f32 %v13059_v11, %v33575_v14  ;;  %v12519_v6 = vpop.permute.xlu1 %12518 }
0x2054   : > { %v12521_v23 = vadd.f32 %v31282_v57, %v12519_v6 }
0x2055   : > { %v13132_v59 = vand.u32 4294901760, %v13131_v15 }
0x2056   : > { %31919 = vtanh.f32 %v12521_v23 }
0x2057   : > { %v13133_v26 = vsub.f32 %v13131_v15, %v13132_v59 }
0x2059   : > { %v13134_v1 = vand.u32 4294901760, %v13133_v26 }
0x205b   : > { %28023 = vmatmul.mubr.f32.vlgmr.msra.gmra.mrb[24].mxu1 %v13134_v1 }
0x205c   : > { %30440 = vmatpush3.bf16.msra.mxu1 %v32274_v51  ;;  %28033 = vmatprep.mubr.msk.f32.mxu1 %vm32050_vm1, %v32051_v9 }
0x205d   : > { %30441 = vmatprep.subr.bf16.mxu1 %v32049_v4 }
0x2060   : > { %v33582_v62 = vpop.eup %31919  ;;  %30443 = vmatpush3.bf16.msra.mxu1 %v32288_v56 }
0x2061   : > { %30444 = vmatprep.subr.bf16.mxu1 %v32049_v4  ;;  %v12523_v60 = vsub.f32 %v33510_v2, %v33582_v62 }
0x2063   : > { %28034 = vmatmul.mubr.f32.vlgmr.msra.gmra.mrb[24].mxu1 %v33575_v14  ;;  %12525 = vrot.lane.b32.xlu0 %v12523_v60, %s32054_s13 }
0x2064   : > { %30446 = vmatpush3.bf16.msra.mxu1 %v32295_v18  ;;  %28044 = vmatprep.mubr.msk.f32.mxu1 %vm32050_vm1, %v32051_v9 }
0x2065   : > { %30447 = vmatprep.subr.bf16.mxu1 %v32049_v4 }
0x2068   : > { %30449 = vmatpush3.bf16.msra.mxu1 %v32303_v21 }
0x2069   : > { %30450 = vmatprep.subr.bf16.mxu1 %v32049_v4 }
0x206b   : > { %28045 = vmatmul.mubr.f32.vlgmr.msra.gmra.mrb[24].mxu1 %v13131_v15 }
0x206c   : > { %30452 = vmatpush3.bf16.msra.mxu1 %v32217_v7  ;;  %28055 = vmatprep.mubr.msk.f32.mxu1 %vm32050_vm1, %v32051_v9 }
0x206d   : > { %30453 = vmatprep.subr.bf16.mxu1 %v32049_v4 }
0x2070   : > { %30455 = vmatpush3.bf16.msra.mxu1 %v32251_v28 }
0x2071   : > { %30456 = vmatprep.subr.bf16.mxu1 %v32049_v4 }
0x2073   : > { %28056 = vmatmul.mubr.f32.vlgmr.msra.gmra.mrb[24].mxu1 %v13132_v59 }
0x2074   : > { %30458 = vmatpush3.bf16.msra.mxu1 %v32323_v25  ;;  %28066 = vmatprep.mubr.msk.f32.mxu1 %vm32050_vm1, %v32051_v9 }
0x2075   : > { %30459 = vmatprep.subr.bf16.mxu1 %v32049_v4 }
0x2078   : > { %30461 = vmatpush3.bf16.msra.mxu1 %v32329_v29 }
0x2079   : > { %30462 = vmatprep.subr.bf16.mxu1 %v32049_v4 }
0x207b   : > { %28067 = vmatmul.mubr.f32.vlgmr.msra.gmra.mrb[24].mxu1 %v33575_v14 }
0x207c   : > { %30464 = vmatpush3.bf16.msra.mxu1 %v32217_v7  ;;  %28077 = vmatprep.mubr.msk.f32.mxu1 %vm32050_vm1, %v32051_v9 }
0x207d   : > { %30465 = vmatprep.subr.bf16.mxu1 %v32049_v4 }
0x2080   : > { %30467 = vmatpush3.bf16.msra.mxu1 %v32251_v28 }
0x2081   : > { %30504 = vmatprep.subr.bf16.mxu1 %v32049_v4 }
0x2083   : > { %28078 = vmatmul.mubr.f32.vlgmr.msra.gmra.mrb[24].mxu1 %v33575_v14 }
0x2084   : > { %30506 = vmatpush3.bf16.msra.mxu1 %v32133_v12  ;;  %28154 = vmatprep.mubr.msk.f32.mxu1 %vm32050_vm1, %v32051_v9 }
0x2085   : > { %30507 = vmatprep.subr.bf16.mxu1 %v32049_v4 }
0x2088   : > { %30509 = vmatpush3.bf16.msra.mxu1 %v32138_v19 }
0x2089   : > { %30510 = vmatprep.subr.bf16.mxu1 %v32049_v4 }
0x208b   : > { %28155 = vmatmul.mubr.f32.vlgmr.msra.gmra.mrb[26].mxu1 %v13134_v1 }
0x208c   : > { %30512 = vmatpush3.bf16.msra.mxu1 %v32143_v33  ;;  %28165 = vmatprep.mubr.msk.f32.mxu1 %vm32050_vm1, %v32051_v9 }
0x208d   : > { %30513 = vmatprep.subr.bf16.mxu1 %v32049_v4 }
0x2090   : > { %30515 = vmatpush3.bf16.msra.mxu1 %v32146_v37 }
0x2091   : > { %30516 = vmatprep.subr.bf16.mxu1 %v32049_v4 }
0x2093   : > { %28166 = vmatmul.mubr.f32.vlgmr.msra.gmra.mrb[26].mxu1 %v33575_v14 }
0x2094   : > { %30518 = vmatpush3.bf16.msra.mxu1 %v32152_v38  ;;  %28176 = vmatprep.mubr.msk.f32.mxu1 %vm32050_vm1, %v32051_v9 }
0x2095   : > { %30519 = vmatprep.subr.bf16.mxu1 %v32049_v4 }
0x2098   : > { %30521 = vmatpush3.bf16.msra.mxu1 %v32156_v39 }
0x2099   : > { %30522 = vmatprep.subr.bf16.mxu1 %v32049_v4 }
0x209b   : > { %28177 = vmatmul.mubr.f32.vlgmr.msra.gmra.mrb[26].mxu1 %v13131_v15 }
0x209c   : > { %30524 = vmatpush3.bf16.msra.mxu1 %v32133_v12  ;;  %28187 = vmatprep.mubr.msk.f32.mxu1 %vm32050_vm1, %v32051_v9 }
0x209d   : > { %30525 = vmatprep.subr.bf16.mxu1 %v32049_v4 }
0x20a0   : > { %30527 = vmatpush3.bf16.msra.mxu1 %v32138_v19 }
0x20a1   : > { %30528 = vmatprep.subr.bf16.mxu1 %v32049_v4 }
0x20a3   : > { %28188 = vmatmul.mubr.f32.vlgmr.msra.gmra.mrb[26].mxu1 %v13132_v59 }
0x20a4   : > { %30530 = vmatpush3.bf16.msra.mxu1 %v32168_v40  ;;  %28198 = vmatprep.mubr.msk.f32.mxu1 %vm32050_vm1, %v32051_v9 }
0x20a5   : > { %30531 = vmatprep.subr.bf16.mxu1 %v32049_v4 }
0x20a8   : > { %30533 = vmatpush3.bf16.msra.mxu1 %v32172_v41 }
0x20a9   : > { %30534 = vmatprep.subr.bf16.mxu1 %v32049_v4 }
0x20ab   : > { %28199 = vmatmul.mubr.f32.vlgmr.msra.gmra.mrb[26].mxu1 %v33575_v14 }
0x20ac   : > { %30536 = vmatpush3.bf16.msra.mxu1 %v32133_v12  ;;  %28209 = vmatprep.mubr.msk.f32.mxu1 %vm32050_vm1, %v32051_v9 }
0x20ad   : > { %30537 = vmatprep.subr.bf16.mxu1 %v32049_v4 }
0x20b0   : > { %30539 = vmatpush3.bf16.msra.mxu1 %v32138_v19 }
0x20b1   : > { %30576 = vmatprep.subr.bf16.mxu1 %v32049_v4 }
0x20b3   : > { %28210 = vmatmul.mubr.f32.vlgmr.msra.gmra.mrb[26].mxu1 %v33575_v14 }
0x20b4   : > { %30578 = vmatpush3.bf16.msra.mxu1 %v32225_v13  ;;  %28286 = vmatprep.mubr.msk.f32.mxu1 %vm32050_vm1, %v32051_v9 }
0x20b5   : > { %30579 = vmatprep.subr.bf16.mxu1 %v32049_v4 }
0x20b8   : > { %30581 = vmatpush3.bf16.msra.mxu1 %v32262_v32 }
0x20b9   : > { %30582 = vmatprep.subr.bf16.mxu1 %v32049_v4 }
0x20d5   : > { %v12526_v2 = vpop.permute.xlu0 %12525 }
0x20d6   : > { %v12528_v31 = vmul.f32 %v33570_v49, %v12526_v2 }
0x20d8   : > { %12530 = vrot.lane.b32.xlu1 %v12528_v31, %s32053_s16 }
0x214a   : > { %v12531_v43 = vpop.permute.xlu1 %12530 }
0x214b   : > { %v33664_v44 = vadd.f32 %v33582_v62, %v12531_v43 }
0x214d   : > { %12535 = vrot.lane.b32.xlu0 %v33664_v44, %s32052_s15 }
0x2156   : > { %v33668_v45 = vpop.f32.mrb[24].mxu1 }
0x2157   : > { %v28079_v46 = vpop.f32.mrb[25].mxu1  ;;  %v31285_v60 = vadd.f32 %v33408_v55, %v33668_v45 }
0x2186   : > { %v14551_v22 = vpop.f32.mrb[26].mxu1 }
0x2187   : > { %v31287_v10 = vadd.f32 %v33673_v47, %v14551_v22  ;;  %v28211_v50 = vpop.f32.mrb[27].mxu1 }
0x2189   : > { %14563 = vrot.lane.b32.xlu1 %v31287_v10, %s32052_s15  ;;  %v14555_v35 = vadd.f32 %v31287_v10, %v24894_v61 }
0x218b   : > { %v24895_v0 = vmul.f32 -1.442695, %v14555_v35 }
0x218d   : > { %31921 = vpow2.f32 %v24895_v0 }
0x2197   : > { %v31922_v53 = vpop.eup %31921 }
0x2198   : > { %v14559_v49 = vadd.f32 1.0, %v31922_v53 }
0x219a   : > { %31923 = vrcp.f32 %v14559_v49 }
0x21a4   : > { %v31924_v63 = vpop.eup %31923 }
0x21bf   : > { %v12536_v52 = vpop.permute.xlu0 %12535 }
0x21c0   : > { %24889 = vst.msk [vmem:[%s32111_s29 + $0xe] sm:$0x3] %vm1842_vm3, %v12536_v52  ;;  %v13546_v16 = vsel %vm305_vm2, %v12536_v52, 0 }
0x21c1   : > { %v13617_v36 = vand.u32 4294901760, %v13546_v16 }
0x21c3   : > { %v13618_v54 = vsub.f32 %v13546_v16, %v13617_v36 }
0x21c5   : > { %v13619_v34 = vand.u32 4294901760, %v13618_v54 }
0x21c7   : > { %v13620_v57 = vsub.f32 %v13618_v54, %v13619_v34 }
0x21c9   : > { %v13621_v58 = vand.u32 4294901760, %v13620_v57 }
0x21cb   : > { %28089 = vmatmul.mubr.f32.vlgmr.msra.gmra.mrb[26].mxu0 %v13621_v58 }
0x21cc   : > { %30476 = vmatpush3.bf16.msra.mxu0 %v32283_v3  ;;  %28099 = vmatprep.mubr.msk.f32.mxu0 %vm32050_vm1, %v32051_v9 }
0x21cd   : > { %30477 = vmatprep.subr.bf16.mxu0 %v32049_v4 }
0x21d0   : > { %30479 = vmatpush3.bf16.msra.mxu0 %v32291_v17 }
0x21d1   : > { %30480 = vmatprep.subr.bf16.mxu0 %v32049_v4 }
0x21d3   : > { %28100 = vmatmul.mubr.f32.vlgmr.msra.gmra.mrb[26].mxu0 %v13617_v36 }
0x21d4   : > { %30482 = vmatpush3.bf16.msra.mxu0 %v32300_v20  ;;  %28110 = vmatprep.mubr.msk.f32.mxu0 %vm32050_vm1, %v32051_v9 }
0x21d5   : > { %30483 = vmatprep.subr.bf16.mxu0 %v32049_v4 }
0x21d8   : > { %30485 = vmatpush3.bf16.msra.mxu0 %v32307_v24 }
0x21d9   : > { %30486 = vmatprep.subr.bf16.mxu0 %v32049_v4 }
0x21db   : > { %28111 = vmatmul.mubr.f32.vlgmr.msra.gmra.mrb[26].mxu0 %v13618_v54 }
0x21dc   : > { %30488 = vmatpush3.bf16.msra.mxu0 %v32225_v13  ;;  %28121 = vmatprep.mubr.msk.f32.mxu0 %vm32050_vm1, %v32051_v9 }
0x21dd   : > { %30489 = vmatprep.subr.bf16.mxu0 %v32049_v4 }
0x21e0   : > { %30491 = vmatpush3.bf16.msra.mxu0 %v32262_v32 }
0x21e1   : > { %30492 = vmatprep.subr.bf16.mxu0 %v32049_v4 }
0x21e3   : > { %28122 = vmatmul.mubr.f32.vlgmr.msra.gmra.mrb[26].mxu0 %v13619_v34 }
0x21e4   : > { %30494 = vmatpush3.bf16.msra.mxu0 %v32326_v27  ;;  %28132 = vmatprep.mubr.msk.f32.mxu0 %vm32050_vm1, %v32051_v9 }
0x21e5   : > { %30495 = vmatprep.subr.bf16.mxu0 %v32049_v4 }
0x21e8   : > { %30497 = vmatpush3.bf16.msra.mxu0 %v32334_v30 }
0x21e9   : > { %30498 = vmatprep.subr.bf16.mxu0 %v32049_v4 }
0x21eb   : > { %28133 = vmatmul.mubr.f32.vlgmr.msra.gmra.mrb[26].mxu0 %v13617_v36 }
0x21ec   : > { %30500 = vmatpush3.bf16.msra.mxu0 %v32225_v13  ;;  %28143 = vmatprep.mubr.msk.f32.mxu0 %vm32050_vm1, %v32051_v9 }
0x21ed   : > { %30501 = vmatprep.subr.bf16.mxu0 %v32049_v4 }
0x21f0   : > { %30503 = vmatpush3.bf16.msra.mxu0 %v32262_v32 }
0x21f1   : > { %30540 = vmatprep.subr.bf16.mxu0 %v32049_v4 }
0x21f3   : > { %28144 = vmatmul.mubr.f32.vlgmr.msra.gmra.mrb[26].mxu0 %v13617_v36 }
0x21f4   : > { %30542 = vmatpush3.bf16.msra.mxu0 %v32217_v7  ;;  %28220 = vmatprep.mubr.msk.f32.mxu0 %vm32050_vm1, %v32051_v9 }
0x21f5   : > { %30543 = vmatprep.subr.bf16.mxu0 %v32049_v4 }
0x21f8   : > { %30545 = vmatpush3.bf16.msra.mxu0 %v32251_v28 }
0x21f9   : > { %30546 = vmatprep.subr.bf16.mxu0 %v32049_v4 }
0x21fb   : > { %v14564_v42 = vpop.permute.xlu1 %14563 }
0x21fc   : > { %v14566_v48 = vmul.f32 %v31924_v63, %v14564_v42 }
0x21fe   : > { %14568 = vrot.lane.b32.xlu0 %v14566_v48, %s32052_s15 }
0x2270   : > { %v14569_v11 = vpop.permute.xlu0 %14568 }
0x2271   : > { %v14571_v14 = vadd.f32 %v24894_v61, %v14569_v11 }
0x2273   : > { %31925 = vtanh.f32 %v14571_v14 }
0x227d   : > { %v31926_v15 = vpop.eup %31925 }
0x227e   : > { %v14573_v6 = vsub.f32 %v33566_v5, %v31926_v15 }
0x2280   : > { %14575 = vrot.lane.b32.xlu1 %v14573_v6, %s32054_s13 }
0x22c6   : > { %v14029_v23 = vpop.f32.mrb[26].mxu0 }
0x22c7   : > { %v31286_v59 = vadd.f32 %v33401_v8, %v14029_v23  ;;  %v28145_v26 = vpop.f32.mrb[27].mxu0 }
0x22c9   : > { %14041 = vrot.lane.b32.xlu1 %v31286_v59, %s32052_s15  ;;  %v14033_v2 = vadd.f32 %v31286_v59, %v31285_v60 }
0x22cb   : > { %v24892_v31 = vmul.f32 -1.442695, %v14033_v2 }
0x22cd   : > { %31927 = vpow2.f32 %v24892_v31 }
0x22d7   : > { %v31928_v43 = vpop.eup %31927 }
0x22d8   : > { %v14037_v5 = vadd.f32 1.0, %v31928_v43 }
0x22da   : > { %31929 = vrcp.f32 %v14037_v5 }
0x22e4   : > { %v33725_v46 = vpop.eup %31929 }
0x22f2   : > { %v14576_v1 = vpop.permute.xlu1 %14575 }
0x22f3   : > { %v14578_v62 = vmul.f32 %v31924_v63, %v14576_v1 }
0x22f5   : > { %14580 = vrot.lane.b32.xlu0 %v14578_v62, %s32053_s16 }
0x233b   : > { %v14042_v22 = vpop.permute.xlu1 %14041 }
0x233c   : > { %v14044_v8 = vmul.f32 %v33725_v46, %v14042_v22 }
0x233e   : > { %14046 = vrot.lane.b32.xlu1 %v14044_v8, %s32052_s15 }
0x2367   : > { %v14581_v10 = vpop.permute.xlu0 %14580 }
0x2368   : > { %v33729_v50 = vadd.f32 %v31926_v15, %v14581_v10 }
0x236a   : > { %14585 = vrot.lane.b32.xlu0 %v33729_v50, %s32052_s15 }
0x23b0   : > { %v14047_v55 = vpop.permute.xlu1 %14046 }
0x23b1   : > { %v14049_v45 = vadd.f32 %v31285_v60, %v14047_v55  ;;  %v24898_v60 = vld [vmem:[%s32106_s26 + $0x14] sm:$0x3] }
0x23b3   : > { %31931 = vtanh.f32 %v14049_v45 }
0x23bd   : > { %v33733_v52 = vpop.eup %31931 }
0x23be   : > { %v14051_v16 = vsub.f32 %v33664_v44, %v33733_v52 }
0x23c0   : > { %14053 = vrot.lane.b32.xlu0 %v14051_v16, %s32054_s13 }
0x23dc   : > { %v14586_v36 = vpop.permute.xlu0 %14585 }
0x23dd   : > { %v14587_v54 = vsel %vm305_vm2, %v14586_v36, 0  ;;  %v33877_v36 = vld [vmem:[%s34728_s4 + $0x2] ss:$0 sm:$0xff] }
0x23de   : > { %v33739_v34 = vand.u32 4294901760, %v14587_v54 }
0x23e0   : > { %v14659_v57 = vsub.f32 %v14587_v54, %v33739_v34 }
0x23e2   : > { %v14660_v58 = vand.u32 4294901760, %v14659_v57 }
0x23e4   : > { %v14661_v61 = vsub.f32 %v14659_v57, %v14660_v58 }
0x23e6   : > { %v14662_v35 = vand.u32 4294901760, %v14661_v61 }
0x23e8   : > { %28221 = vmatmul.mubr.f32.vlgmr.msra.gmra.mrb[28].mxu0 %v14662_v35 }
0x23e9   : > { %30548 = vmatpush3.bf16.msra.mxu0 %v32274_v51  ;;  %28231 = vmatprep.mubr.msk.f32.mxu0 %vm32050_vm1, %v32051_v9 }
0x23ea   : > { %30549 = vmatprep.subr.bf16.mxu0 %v32049_v4 }
0x23ed   : > { %30551 = vmatpush3.bf16.msra.mxu0 %v32288_v56 }
0x23ee   : > { %30552 = vmatprep.subr.bf16.mxu0 %v32049_v4 }
0x23f0   : > { %28232 = vmatmul.mubr.f32.vlgmr.msra.gmra.mrb[28].mxu0 %v33739_v34 }
0x23f1   : > { %30554 = vmatpush3.bf16.msra.mxu0 %v32295_v18  ;;  %28242 = vmatprep.mubr.msk.f32.mxu0 %vm32050_vm1, %v32051_v9 }
0x23f2   : > { %30555 = vmatprep.subr.bf16.mxu0 %v32049_v4 }
0x23f5   : > { %30557 = vmatpush3.bf16.msra.mxu0 %v32303_v21 }
0x23f6   : > { %30558 = vmatprep.subr.bf16.mxu0 %v32049_v4 }
0x23f8   : > { %28243 = vmatmul.mubr.f32.vlgmr.msra.gmra.mrb[28].mxu0 %v14659_v57 }
0x23f9   : > { %30560 = vmatpush3.bf16.msra.mxu0 %v32217_v7  ;;  %28253 = vmatprep.mubr.msk.f32.mxu0 %vm32050_vm1, %v32051_v9 }
0x23fa   : > { %30561 = vmatprep.subr.bf16.mxu0 %v32049_v4 }
0x23fd   : > { %30563 = vmatpush3.bf16.msra.mxu0 %v32251_v28 }
0x23fe   : > { %30564 = vmatprep.subr.bf16.mxu0 %v32049_v4 }
0x2400   : > { %28254 = vmatmul.mubr.f32.vlgmr.msra.gmra.mrb[28].mxu0 %v14660_v58 }
0x2401   : > { %30566 = vmatpush3.bf16.msra.mxu0 %v32323_v25  ;;  %28264 = vmatprep.mubr.msk.f32.mxu0 %vm32050_vm1, %v32051_v9 }
0x2402   : > { %30567 = vmatprep.subr.bf16.mxu0 %v32049_v4 }
0x2405   : > { %30569 = vmatpush3.bf16.msra.mxu0 %v32329_v29 }
0x2406   : > { %30570 = vmatprep.subr.bf16.mxu0 %v32049_v4 }
0x2408   : > { %28265 = vmatmul.mubr.f32.vlgmr.msra.gmra.mrb[28].mxu0 %v33739_v34 }
0x2409   : > { %30572 = vmatpush3.bf16.msra.mxu0 %v32217_v7  ;;  %28275 = vmatprep.mubr.msk.f32.mxu0 %vm32050_vm1, %v32051_v9 }
0x240a   : > { %30573 = vmatprep.subr.bf16.mxu0 %v32049_v4 }
0x240d   : > { %30575 = vmatpush3.bf16.msra.mxu0 %v32251_v28 }
0x240e   : > { %30612 = vmatprep.subr.bf16.mxu0 %v32049_v4 }
0x2410   : > { %28276 = vmatmul.mubr.f32.vlgmr.msra.gmra.mrb[28].mxu0 %v33739_v34 }
0x2411   : > { %30614 = vmatpush3.bf16.msra.mxu0 %v32133_v12  ;;  %28352 = vmatprep.mubr.msk.f32.mxu0 %vm32050_vm1, %v32051_v9 }
0x2412   : > { %30615 = vmatprep.subr.bf16.mxu0 %v32049_v4 }
0x2415   : > { %30617 = vmatpush3.bf16.msra.mxu0 %v32138_v19 }
0x2416   : > { %30618 = vmatprep.subr.bf16.mxu0 %v32049_v4 }
0x2418   : > { %28353 = vmatmul.mubr.f32.vlgmr.msra.gmra.mrb[30].mxu0 %v14662_v35 }
0x2419   : > { %30620 = vmatpush3.bf16.msra.mxu0 %v32143_v33  ;;  %28363 = vmatprep.mubr.msk.f32.mxu0 %vm32050_vm1, %v32051_v9 }
0x241a   : > { %30621 = vmatprep.subr.bf16.mxu0 %v32049_v4 }
0x241d   : > { %30623 = vmatpush3.bf16.msra.mxu0 %v32146_v37 }
0x241e   : > { %30624 = vmatprep.subr.bf16.mxu0 %v32049_v4 }
0x2420   : > { %28364 = vmatmul.mubr.f32.vlgmr.msra.gmra.mrb[30].mxu0 %v33739_v34 }
0x2421   : > { %30626 = vmatpush3.bf16.msra.mxu0 %v32152_v38  ;;  %28374 = vmatprep.mubr.msk.f32.mxu0 %vm32050_vm1, %v32051_v9 }
0x2422   : > { %30627 = vmatprep.subr.bf16.mxu0 %v32049_v4 }
0x2425   : > { %30629 = vmatpush3.bf16.msra.mxu0 %v32156_v39 }
0x2426   : > { %30630 = vmatprep.subr.bf16.mxu0 %v32049_v4 }
0x2428   : > { %28375 = vmatmul.mubr.f32.vlgmr.msra.gmra.mrb[30].mxu0 %v14659_v57  ;;  %v33884_v57 = vld [vmem:[%s34728_s4 + $0x1] ss:$0 sm:$0xff] }
0x2429   : > { %30632 = vmatpush3.bf16.msra.mxu0 %v32133_v12  ;;  %28385 = vmatprep.mubr.msk.f32.mxu0 %vm32050_vm1, %v32051_v9 }
0x242a   : > { %30633 = vmatprep.subr.bf16.mxu0 %v32049_v4 }
0x242d   : > { %30635 = vmatpush3.bf16.msra.mxu0 %v32138_v19 }
0x242e   : > { %30636 = vmatprep.subr.bf16.mxu0 %v32049_v4 }
0x2430   : > { %28386 = vmatmul.mubr.f32.vlgmr.msra.gmra.mrb[30].mxu0 %v14660_v58 }
0x2431   : > { %30638 = vmatpush3.bf16.msra.mxu0 %v32168_v40  ;;  %28396 = vmatprep.mubr.msk.f32.mxu0 %vm32050_vm1, %v32051_v9 }
0x2432   : > { %30639 = vmatprep.subr.bf16.mxu0 %v32049_v4  ;;  %v14054_v44 = vpop.permute.xlu0 %14053 }
0x2433   : > { %v14056_v0 = vmul.f32 %v33725_v46, %v14054_v44 }
0x2435   : > { %30641 = vmatpush3.bf16.msra.mxu0 %v32172_v41  ;;  %14058 = vrot.lane.b32.xlu1 %v14056_v0, %s32053_s16 }
0x2436   : > { %30642 = vmatprep.subr.bf16.mxu0 %v32049_v4 }
0x2438   : > { %28397 = vmatmul.mubr.f32.vlgmr.msra.gmra.mrb[30].mxu0 %v33739_v34 }
0x2439   : > { %30644 = vmatpush3.bf16.msra.mxu0 %v32133_v12  ;;  %28407 = vmatprep.mubr.msk.f32.mxu0 %vm32050_vm1, %v32051_v9 }
0x243a   : > { %30645 = vmatprep.subr.bf16.mxu0 %v32049_v4 }
0x243d   : > { %30647 = vmatpush3.bf16.msra.mxu0 %v32138_v19 }
0x243e   : > { %30684 = vmatprep.subr.bf16.mxu0 %v32049_v4 }
0x2440   : > { %28408 = vmatmul.mubr.f32.vlgmr.msra.gmra.mrb[30].mxu0 %v33739_v34 }
0x2441   : > { %30686 = vmatpush3.bf16.msra.mxu0 %v32225_v13  ;;  %28484 = vmatprep.mubr.msk.f32.mxu0 %vm32050_vm1, %v32051_v9 }
0x2442   : > { %30687 = vmatprep.subr.bf16.mxu0 %v32049_v4 }
0x2445   : > { %30689 = vmatpush3.bf16.msra.mxu0 %v32262_v32 }
0x2446   : > { %30690 = vmatprep.subr.bf16.mxu0 %v32049_v4 }
0x24a7   : > { %v14059_v53 = vpop.permute.xlu1 %14058 }
0x24a8   : > { %v33823_v49 = vadd.f32 %v33733_v52, %v14059_v53 }
0x24aa   : > { %14063 = vrot.lane.b32.xlu0 %v33823_v49, %s32052_s15 }
0x24e3   : > { %v33827_v63 = vpop.f32.mrb[28].mxu0 }
0x24e4   : > { %v28277_v42 = vpop.f32.mrb[29].mxu0 }
0x2513   : > { %v16079_v48 = vpop.f32.mrb[30].mxu0 }
0x2514   : > { %v31290_v11 = vadd.f32 %v33673_v47, %v16079_v48  ;;  %v28409_v14 = vpop.f32.mrb[31].mxu0 }
0x2516   : > { %16091 = vrot.lane.b32.xlu1 %v31290_v11, %s32052_s15  ;;  %v16083_v2 = vadd.f32 %v31290_v11, %v24898_v60 }
0x2518   : > { %v24899_v31 = vmul.f32 -1.442695, %v16083_v2 }
0x251a   : > { %31933 = vpow2.f32 %v24899_v31 }
0x251c   : > { %v14064_v15 = vpop.permute.xlu0 %14063 }
0x251d   : > { %24893 = vst.msk [vmem:[%s32111_s29 + $0x10] sm:$0x3] %vm1842_vm3, %v14064_v15  ;;  %v15074_v6 = vsel %vm305_vm2, %v14064_v15, 0 }
0x251e   : > { %v15145_v23 = vand.u32 4294901760, %v15074_v6 }
0x2520   : > { %v15146_v59 = vsub.f32 %v15074_v6, %v15145_v23 }
0x2522   : > { %v15147_v26 = vand.u32 4294901760, %v15146_v59 }
0x2524   : > { %v15148_v1 = vsub.f32 %v15146_v59, %v15147_v26  ;;  %v31934_v43 = vpop.eup %31933 }
0x2525   : > { %v16087_v5 = vadd.f32 1.0, %v31934_v43 }
0x2526   : > { %v15149_v62 = vand.u32 4294901760, %v15148_v1 }
0x2527   : > { %31935 = vrcp.f32 %v16087_v5 }
0x2528   : > { %28287 = vmatmul.mubr.f32.vlgmr.msra.gmra.mrb[28].mxu1 %v15149_v62 }
0x2529   : > { %30584 = vmatpush3.bf16.msra.mxu1 %v32283_v3  ;;  %28297 = vmatprep.mubr.msk.f32.mxu1 %vm32050_vm1, %v32051_v9 }
0x252a   : > { %30585 = vmatprep.subr.bf16.mxu1 %v32049_v4 }
0x252d   : > { %30587 = vmatpush3.bf16.msra.mxu1 %v32291_v17 }
0x252e   : > { %30588 = vmatprep.subr.bf16.mxu1 %v32049_v4 }
0x2530   : > { %28298 = vmatmul.mubr.f32.vlgmr.msra.gmra.mrb[28].mxu1 %v15145_v23 }
0x2531   : > { %30590 = vmatpush3.bf16.msra.mxu1 %v32300_v20  ;;  %28308 = vmatprep.mubr.msk.f32.mxu1 %vm32050_vm1, %v32051_v9  ;;  %v31936_v46 = vpop.eup %31935 }
0x2532   : > { %30591 = vmatprep.subr.bf16.mxu1 %v32049_v4 }
0x2535   : > { %30593 = vmatpush3.bf16.msra.mxu1 %v32307_v24 }
0x2536   : > { %30594 = vmatprep.subr.bf16.mxu1 %v32049_v4 }
0x2538   : > { %28309 = vmatmul.mubr.f32.vlgmr.msra.gmra.mrb[28].mxu1 %v15146_v59 }
0x2539   : > { %30596 = vmatpush3.bf16.msra.mxu1 %v32225_v13  ;;  %28319 = vmatprep.mubr.msk.f32.mxu1 %vm32050_vm1, %v32051_v9 }
0x253a   : > { %30597 = vmatprep.subr.bf16.mxu1 %v32049_v4 }
0x253d   : > { %30599 = vmatpush3.bf16.msra.mxu1 %v32262_v32 }
0x253e   : > { %30600 = vmatprep.subr.bf16.mxu1 %v32049_v4 }
0x2540   : > { %28320 = vmatmul.mubr.f32.vlgmr.msra.gmra.mrb[28].mxu1 %v15147_v26 }
0x2541   : > { %30602 = vmatpush3.bf16.msra.mxu1 %v32326_v27  ;;  %28330 = vmatprep.mubr.msk.f32.mxu1 %vm32050_vm1, %v32051_v9 }
0x2542   : > { %30603 = vmatprep.subr.bf16.mxu1 %v32049_v4 }
0x2545   : > { %30605 = vmatpush3.bf16.msra.mxu1 %v32334_v30 }
0x2546   : > { %30606 = vmatprep.subr.bf16.mxu1 %v32049_v4 }
0x2548   : > { %28331 = vmatmul.mubr.f32.vlgmr.msra.gmra.mrb[28].mxu1 %v15145_v23 }
0x2549   : > { %30608 = vmatpush3.bf16.msra.mxu1 %v32225_v13  ;;  %28341 = vmatprep.mubr.msk.f32.mxu1 %vm32050_vm1, %v32051_v9 }
0x254a   : > { %30609 = vmatprep.subr.bf16.mxu1 %v32049_v4 }
0x254d   : > { %30611 = vmatpush3.bf16.msra.mxu1 %v32262_v32 }
0x254e   : > { %30648 = vmatprep.subr.bf16.mxu1 %v32049_v4 }
0x2550   : > { %28342 = vmatmul.mubr.f32.vlgmr.msra.gmra.mrb[28].mxu1 %v15145_v23 }
0x2551   : > { %30650 = vmatpush3.bf16.msra.mxu1 %v32217_v7  ;;  %28418 = vmatprep.mubr.msk.f32.mxu1 %vm32050_vm1, %v32051_v9 }
0x2552   : > { %30651 = vmatprep.subr.bf16.mxu1 %v32049_v4 }
0x2555   : > { %30653 = vmatpush3.bf16.msra.mxu1 %v32251_v28 }
0x2556   : > { %30654 = vmatprep.subr.bf16.mxu1 %v32049_v4 }
0x2588   : > { %v16092_v22 = vpop.permute.xlu1 %16091 }
0x2589   : > { %v16094_v8 = vmul.f32 %v31936_v46, %v16092_v22 }
0x258b   : > { %16096 = vrot.lane.b32.xlu0 %v16094_v8, %s32052_s15 }
0x25fd   : > { %v16097_v10 = vpop.permute.xlu0 %16096 }
0x25fe   : > { %v16099_v55 = vadd.f32 %v24898_v60, %v16097_v10 }
0x2600   : > { %31937 = vtanh.f32 %v16099_v55 }
0x260a   : > { %v31938_v45 = vpop.eup %31937 }
0x260b   : > { %v16101_v52 = vsub.f32 %v33729_v50, %v31938_v45  ;;  %v31288_v50 = vadd.f32 %v33884_v57, %v33827_v63 }
0x260d   : > { %16103 = vrot.lane.b32.xlu1 %v16101_v52, %s32054_s13 }
0x2623   : > { %v15557_v16 = vpop.f32.mrb[28].mxu1 }
0x2624   : > { %v31289_v54 = vadd.f32 %v33877_v36, %v15557_v16  ;;  %v28343_v34 = vpop.f32.mrb[29].mxu1 }
0x2626   : > { %15569 = vrot.lane.b32.xlu1 %v31289_v54, %s32052_s15  ;;  %v15561_v58 = vadd.f32 %v31289_v54, %v31288_v50 }
0x2628   : > { %v24896_v61 = vmul.f32 -1.442695, %v15561_v58 }
0x262a   : > { %31939 = vpow2.f32 %v24896_v61 }
0x2634   : > { %v31940_v0 = vpop.eup %31939 }
0x2635   : > { %v15565_v53 = vadd.f32 1.0, %v31940_v0 }
0x2637   : > { %31941 = vrcp.f32 %v15565_v53 }
0x2641   : > { %v31942_v42 = vpop.eup %31941 }
0x267f   : > { %v16104_v35 = vpop.permute.xlu1 %16103 }
0x2680   : > { %v16106_v44 = vmul.f32 %v31936_v46, %v16104_v35 }
0x2682   : > { %16108 = vrot.lane.b32.xlu0 %v16106_v44, %s32053_s16 }
0x2698   : > { %v15570_v48 = vpop.permute.xlu1 %15569 }
0x2699   : > { %v15572_v11 = vmul.f32 %v31942_v42, %v15570_v48 }
0x269b   : > { %15574 = vrot.lane.b32.xlu1 %v15572_v11, %s32052_s15 }
0x26f4   : > { %v16109_v14 = vpop.permute.xlu0 %16108 }
0x26f5   : > { %v33890_v15 = vadd.f32 %v31938_v45, %v16109_v14 }
0x26f7   : > { %16113 = vrot.lane.b32.xlu0 %v33890_v15, %s32052_s15 }
0x270d   : > { %v15575_v63 = vpop.permute.xlu1 %15574 }
0x270e   : > { %v15577_v6 = vadd.f32 %v31288_v50, %v15575_v63 }
0x2710   : > { %31943 = vtanh.f32 %v15577_v6 }
0x271a   : > { %v33894_v23 = vpop.eup %31943 }
0x271b   : > { %v15579_v59 = vsub.f32 %v33823_v49, %v33894_v23 }
0x271d   : > { %15581 = vrot.lane.b32.xlu0 %v15579_v59, %s32054_s13 }
0x2769   : > { %v16114_v26 = vpop.permute.xlu0 %16113 }
0x276a   : > { %v16115_v1 = vsel %vm305_vm2, %v16114_v26, 0 }
0x276b   : > { %v33900_v62 = vand.u32 4294901760, %v16115_v1 }
0x276d   : > { %v16187_v60 = vsub.f32 %v16115_v1, %v33900_v62 }
0x276f   : > { %v16188_v2 = vand.u32 4294901760, %v16187_v60 }
0x2771   : > { %v16189_v31 = vsub.f32 %v16187_v60, %v16188_v2 }
0x2773   : > { %v16190_v43 = vand.u32 4294901760, %v16189_v31 }
0x2775   : > { %28419 = vmatmul.mubr.f32.vlgmr.msra.gmra.mrb[30].mxu1 %v16190_v43 }
0x2776   : > { %30656 = vmatpush3.bf16.msra.mxu1 %v32274_v51  ;;  %28429 = vmatprep.mubr.msk.f32.mxu1 %vm32050_vm1, %v32051_v9 }
0x2777   : > { %30657 = vmatprep.subr.bf16.mxu1 %v32049_v4 }
0x277a   : > { %30659 = vmatpush3.bf16.msra.mxu1 %v32288_v56 }
0x277b   : > { %30660 = vmatprep.subr.bf16.mxu1 %v32049_v4 }
0x277d   : > { %28430 = vmatmul.mubr.f32.vlgmr.msra.gmra.mrb[30].mxu1 %v33900_v62 }
0x277e   : > { %30662 = vmatpush3.bf16.msra.mxu1 %v32295_v18  ;;  %28440 = vmatprep.mubr.msk.f32.mxu1 %vm32050_vm1, %v32051_v9 }
0x277f   : > { %30663 = vmatprep.subr.bf16.mxu1 %v32049_v4 }
0x2782   : > { %30665 = vmatpush3.bf16.msra.mxu1 %v32303_v21 }
0x2783   : > { %30666 = vmatprep.subr.bf16.mxu1 %v32049_v4 }
0x2785   : > { %28441 = vmatmul.mubr.f32.vlgmr.msra.gmra.mrb[30].mxu1 %v16187_v60 }
0x2786   : > { %30668 = vmatpush3.bf16.msra.mxu1 %v32217_v7  ;;  %28451 = vmatprep.mubr.msk.f32.mxu1 %vm32050_vm1, %v32051_v9 }
0x2787   : > { %30669 = vmatprep.subr.bf16.mxu1 %v32049_v4 }
0x278a   : > { %30671 = vmatpush3.bf16.msra.mxu1 %v32251_v28 }
0x278b   : > { %30672 = vmatprep.subr.bf16.mxu1 %v32049_v4 }
0x278d   : > { %28452 = vmatmul.mubr.f32.vlgmr.msra.gmra.mrb[30].mxu1 %v16188_v2 }
0x278e   : > { %30674 = vmatpush3.bf16.msra.mxu1 %v32323_v25  ;;  %28462 = vmatprep.mubr.msk.f32.mxu1 %vm32050_vm1, %v32051_v9 }
0x278f   : > { %30675 = vmatprep.subr.bf16.mxu1 %v32049_v4  ;;  %v15582_v49 = vpop.permute.xlu0 %15581 }
0x2790   : > { %v15584_v5 = vmul.f32 %v31942_v42, %v15582_v49 }
0x2792   : > { %30677 = vmatpush3.bf16.msra.mxu1 %v32329_v29  ;;  %15586 = vrot.lane.b32.xlu1 %v15584_v5, %s32053_s16 }
0x2793   : > { %30678 = vmatprep.subr.bf16.mxu1 %v32049_v4 }
0x2795   : > { %28463 = vmatmul.mubr.f32.vlgmr.msra.gmra.mrb[30].mxu1 %v33900_v62 }
0x2796   : > { %30680 = vmatpush3.bf16.msra.mxu1 %v32217_v7  ;;  %28473 = vmatprep.mubr.msk.f32.mxu1 %vm32050_vm1, %v32051_v9 }
0x2797   : > { %30681 = vmatprep.subr.bf16.mxu1 %v32049_v4 }
0x279a   : > { %30683 = vmatpush3.bf16.msra.mxu1 %v32251_v28 }
0x279b   : > { %30720 = vmatprep.subr.bf16.mxu1 %v32049_v4 }
0x279d   : > { %28474 = vmatmul.mubr.f32.vlgmr.msra.gmra.mrb[30].mxu1 %v33900_v62 }
0x279e   : > { %30722 = vmatpush3.bf16.msra.mxu1 %v32133_v12  ;;  %28550 = vmatprep.mubr.msk.f32.mxu1 %vm32050_vm1, %v32051_v9 }
0x279f   : > { %30723 = vmatprep.subr.bf16.mxu1 %v32049_v4 }
0x27a2   : > { %30725 = vmatpush3.bf16.msra.mxu1 %v32138_v19 }
0x27a3   : > { %30726 = vmatprep.subr.bf16.mxu1 %v32049_v4 }
0x27a5   : > { %28551 = vmatmul.mubr.f32.vlgmr.msra.gmra.mrb[32].mxu1 %v16190_v43 }
0x27a6   : > { %30728 = vmatpush3.bf16.msra.mxu1 %v32143_v33  ;;  %28561 = vmatprep.mubr.msk.f32.mxu1 %vm32050_vm1, %v32051_v9 }
0x27a7   : > { %30729 = vmatprep.subr.bf16.mxu1 %v32049_v4 }
0x27aa   : > { %30731 = vmatpush3.bf16.msra.mxu1 %v32146_v37 }
0x27ab   : > { %30732 = vmatprep.subr.bf16.mxu1 %v32049_v4 }
0x27ad   : > { %28562 = vmatmul.mubr.f32.vlgmr.msra.gmra.mrb[32].mxu1 %v33900_v62 }
0x27ae   : > { %30734 = vmatpush3.bf16.msra.mxu1 %v32152_v38  ;;  %28572 = vmatprep.mubr.msk.f32.mxu1 %vm32050_vm1, %v32051_v9 }
0x27af   : > { %30735 = vmatprep.subr.bf16.mxu1 %v32049_v4 }
0x27b2   : > { %30737 = vmatpush3.bf16.msra.mxu1 %v32156_v39 }
0x27b3   : > { %30738 = vmatprep.subr.bf16.mxu1 %v32049_v4 }
0x27b5   : > { %28573 = vmatmul.mubr.f32.vlgmr.msra.gmra.mrb[32].mxu1 %v16187_v60 }
0x27b6   : > { %30740 = vmatpush3.bf16.msra.mxu1 %v32133_v12  ;;  %28583 = vmatprep.mubr.msk.f32.mxu1 %vm32050_vm1, %v32051_v9 }
0x27b7   : > { %30741 = vmatprep.subr.bf16.mxu1 %v32049_v4 }
0x27ba   : > { %30743 = vmatpush3.bf16.msra.mxu1 %v32138_v19 }
0x27bb   : > { %30744 = vmatprep.subr.bf16.mxu1 %v32049_v4 }
0x27bd   : > { %28584 = vmatmul.mubr.f32.vlgmr.msra.gmra.mrb[32].mxu1 %v16188_v2 }
0x27be   : > { %30746 = vmatpush3.bf16.msra.mxu1 %v32168_v40  ;;  %28594 = vmatprep.mubr.msk.f32.mxu1 %vm32050_vm1, %v32051_v9 }
0x27bf   : > { %30747 = vmatprep.subr.bf16.mxu1 %v32049_v4 }
0x27c2   : > { %30749 = vmatpush3.bf16.msra.mxu1 %v32172_v41 }
0x27c3   : > { %30750 = vmatprep.subr.bf16.mxu1 %v32049_v4 }
0x27c5   : > { %28595 = vmatmul.mubr.f32.vlgmr.msra.gmra.mrb[32].mxu1 %v33900_v62 }
0x27c6   : > { %30752 = vmatpush3.bf16.msra.mxu1 %v32133_v12  ;;  %28605 = vmatprep.mubr.msk.f32.mxu1 %vm32050_vm1, %v32051_v9 }
0x27c7   : > { %30753 = vmatprep.subr.bf16.mxu1 %v32049_v4 }
0x27ca   : > { %30755 = vmatpush3.bf16.msra.mxu1 %v32138_v19 }
0x27cb   : > { %30792 = vmatprep.subr.bf16.mxu1 %v32049_v4 }
0x27cd   : > { %28606 = vmatmul.mubr.f32.vlgmr.msra.gmra.mrb[32].mxu1 %v33900_v62 }
0x27ce   : > { %30794 = vmatpush3.bf16.msra.mxu1 %v32225_v13  ;;  %28682 = vmatprep.mubr.msk.f32.mxu1 %vm32050_vm1, %v32051_v9 }
0x27cf   : > { %30795 = vmatprep.subr.bf16.mxu1 %v32049_v4 }
0x27d2   : > { %30797 = vmatpush3.bf16.msra.mxu1 %v32262_v32 }
0x27d3   : > { %30798 = vmatprep.subr.bf16.mxu1 %v32049_v4 }
0x2804   : > { %v15587_v46 = vpop.permute.xlu1 %15586 }
0x2805   : > { %v33983_v22 = vadd.f32 %v33894_v23, %v15587_v46 }
0x2807   : > { %15591 = vrot.lane.b32.xlu0 %v33983_v22, %s32052_s15 }
0x2870   : > { %v33987_v8 = vpop.f32.mrb[30].mxu1 }
0x2871   : > { %v28475_v10 = vpop.f32.mrb[31].mxu1  ;;  %v31291_v60 = vadd.f32 %v33884_v57, %v33987_v8 }
0x2879   : > { %v15592_v55 = vpop.permute.xlu0 %15591 }
0x287a   : > { %24897 = vst.msk [vmem:[%s32111_s29 + $0x12] sm:$0x3] %vm1842_vm3, %v15592_v55  ;;  %v16602_v45 = vsel %vm305_vm2, %v15592_v55, 0 }
0x287b   : > { %v16673_v52 = vand.u32 4294901760, %v16602_v45 }
0x287d   : > { %v16674_v16 = vsub.f32 %v16602_v45, %v16673_v52 }
0x287f   : > { %v16675_v54 = vand.u32 4294901760, %v16674_v16 }
0x2881   : > { %v16676_v34 = vsub.f32 %v16674_v16, %v16675_v54 }
0x2883   : > { %v16677_v50 = vand.u32 4294901760, %v16676_v34 }
0x2885   : > { %28485 = vmatmul.mubr.f32.vlgmr.msra.gmra.mrb[32].mxu0 %v16677_v50 }
0x2886   : > { %30692 = vmatpush3.bf16.msra.mxu0 %v32283_v3  ;;  %28495 = vmatprep.mubr.msk.f32.mxu0 %vm32050_vm1, %v32051_v9 }
0x2887   : > { %30693 = vmatprep.subr.bf16.mxu0 %v32049_v4 }
0x288a   : > { %30695 = vmatpush3.bf16.msra.mxu0 %v32291_v17 }
0x288b   : > { %30696 = vmatprep.subr.bf16.mxu0 %v32049_v4 }
0x288d   : > { %28496 = vmatmul.mubr.f32.vlgmr.msra.gmra.mrb[32].mxu0 %v16673_v52 }
0x288e   : > { %30698 = vmatpush3.bf16.msra.mxu0 %v32300_v20  ;;  %28506 = vmatprep.mubr.msk.f32.mxu0 %vm32050_vm1, %v32051_v9 }
0x288f   : > { %30699 = vmatprep.subr.bf16.mxu0 %v32049_v4 }
0x2892   : > { %30701 = vmatpush3.bf16.msra.mxu0 %v32307_v24 }
0x2893   : > { %30702 = vmatprep.subr.bf16.mxu0 %v32049_v4 }
0x2895   : > { %28507 = vmatmul.mubr.f32.vlgmr.msra.gmra.mrb[32].mxu0 %v16674_v16 }
0x2896   : > { %30704 = vmatpush3.bf16.msra.mxu0 %v32225_v13  ;;  %28517 = vmatprep.mubr.msk.f32.mxu0 %vm32050_vm1, %v32051_v9 }
0x2897   : > { %30705 = vmatprep.subr.bf16.mxu0 %v32049_v4 }
0x289a   : > { %30707 = vmatpush3.bf16.msra.mxu0 %v32262_v32 }
0x289b   : > { %30708 = vmatprep.subr.bf16.mxu0 %v32049_v4 }
0x289d   : > { %28518 = vmatmul.mubr.f32.vlgmr.msra.gmra.mrb[32].mxu0 %v16675_v54 }
0x289e   : > { %30710 = vmatpush3.bf16.msra.mxu0 %v32326_v27  ;;  %28528 = vmatprep.mubr.msk.f32.mxu0 %vm32050_vm1, %v32051_v9 }
0x289f   : > { %30711 = vmatprep.subr.bf16.mxu0 %v32049_v4 }
0x28a0   : > { %v17607_v58 = vpop.f32.mrb[32].mxu1 }
0x28a1   : > { %v31293_v61 = vadd.f32 %v33673_v47, %v17607_v58  ;;  %v28607_v35 = vpop.f32.mrb[33].mxu1  ;;  %v24902_v47 = vld [vmem:[%s32106_s26 + $0x16] sm:$0x3] }
0x28a2   : > { %30713 = vmatpush3.bf16.msra.mxu0 %v32334_v30 }
0x28a3   : > { %17619 = vrot.lane.b32.xlu1 %v31293_v61, %s32052_s15  ;;  %30714 = vmatprep.subr.bf16.mxu0 %v32049_v4  ;;  %v17611_v44 = vadd.f32 %v31293_v61, %v24902_v47 }
0x28a5   : > { %28529 = vmatmul.mubr.f32.vlgmr.msra.gmra.mrb[32].mxu0 %v16673_v52  ;;  %v24903_v0 = vmul.f32 -1.442695, %v17611_v44 }
0x28a6   : > { %30716 = vmatpush3.bf16.msra.mxu0 %v32225_v13  ;;  %28539 = vmatprep.mubr.msk.f32.mxu0 %vm32050_vm1, %v32051_v9 }
0x28a7   : > { %30717 = vmatprep.subr.bf16.mxu0 %v32049_v4  ;;  %31945 = vpow2.f32 %v24903_v0 }
0x28aa   : > { %30719 = vmatpush3.bf16.msra.mxu0 %v32262_v32 }
0x28ab   : > { %30756 = vmatprep.subr.bf16.mxu0 %v32049_v4 }
0x28ad   : > { %28540 = vmatmul.mubr.f32.vlgmr.msra.gmra.mrb[32].mxu0 %v16673_v52 }
0x28ae   : > { %30758 = vmatpush3.bf16.msra.mxu0 %v32217_v7  ;;  %28616 = vmatprep.mubr.msk.f32.mxu0 %vm32050_vm1, %v32051_v9 }
0x28af   : > { %30759 = vmatprep.subr.bf16.mxu0 %v32049_v4 }
0x28b1   : > { %v31946_v53 = vpop.eup %31945 }
0x28b2   : > { %30761 = vmatpush3.bf16.msra.mxu0 %v32251_v28  ;;  %v17615_v42 = vadd.f32 1.0, %v31946_v53 }
0x28b3   : > { %30762 = vmatprep.subr.bf16.mxu0 %v32049_v4 }
0x28b4   : > { %31947 = vrcp.f32 %v17615_v42 }
0x28be   : > { %v31948_v48 = vpop.eup %31947 }
0x2915   : > { %v17620_v11 = vpop.permute.xlu1 %17619 }
0x2916   : > { %v17622_v14 = vmul.f32 %v31948_v48, %v17620_v11 }
0x2918   : > { %17624 = vrot.lane.b32.xlu0 %v17622_v14, %s32052_s15 }
0x2980   : > { %v17085_v63 = vpop.f32.mrb[32].mxu0 }
0x2981   : > { %v31292_v6 = vadd.f32 %v33877_v36, %v17085_v63  ;;  %v28541_v23 = vpop.f32.mrb[33].mxu0 }
0x2983   : > { %17097 = vrot.lane.b32.xlu0 %v31292_v6, %s32052_s15  ;;  %v17089_v2 = vadd.f32 %v31292_v6, %v31291_v60 }
0x2985   : > { %v24900_v31 = vmul.f32 -1.442695, %v17089_v2  ;;  %v34179_v2 = vld [vmem:[%s34728_s4] ss:$0 sm:$0xff] }
0x298a   : > { %v17625_v59 = vpop.permute.xlu0 %17624 }
0x298b   : > { %v17627_v26 = vadd.f32 %v24902_v47, %v17625_v59 }
0x298d   : > { %31949 = vtanh.f32 %v17627_v26 }
0x298e   : > { %31951 = vpow2.f32 %v24900_v31 }
0x2997   : > { %v31950_v1 = vpop.eup %31949 }
0x2998   : > { %v17629_v62 = vsub.f32 %v33890_v15, %v31950_v1  ;;  %v31952_v43 = vpop.eup %31951 }
0x2999   : > { %v17093_v49 = vadd.f32 1.0, %v31952_v43 }
0x299a   : > { %17631 = vrot.lane.b32.xlu1 %v17629_v62, %s32054_s13 }
0x299b   : > { %31953 = vrcp.f32 %v17093_v49  ;;  %v24906_v49 = vld [vmem:[%s32106_s26 + $0x18] sm:$0x3] }
0x29a5   : > { %v31954_v5 = vpop.eup %31953 }
0x29f5   : > { %v17098_v46 = vpop.permute.xlu0 %17097 }
0x29f6   : > { %v17100_v10 = vmul.f32 %v31954_v5, %v17098_v46 }
0x29f8   : > { %17102 = vrot.lane.b32.xlu0 %v17100_v10, %s32052_s15 }
0x2a0c   : > { %v17632_v55 = vpop.permute.xlu1 %17631 }
0x2a0d   : > { %v17634_v45 = vmul.f32 %v31948_v48, %v17632_v55 }
0x2a0f   : > { %17636 = vrot.lane.b32.xlu1 %v17634_v45, %s32053_s16 }
0x2a6a   : > { %v17103_v15 = vpop.permute.xlu0 %17102 }
0x2a6b   : > { %v17105_v52 = vadd.f32 %v31291_v60, %v17103_v15 }
0x2a6d   : > { %31955 = vtanh.f32 %v17105_v52 }
0x2a77   : > { %v34040_v16 = vpop.eup %31955 }
0x2a78   : > { %v17107_v8 = vsub.f32 %v33983_v22, %v34040_v16 }
0x2a7a   : > { %17109 = vrot.lane.b32.xlu0 %v17107_v8, %s32054_s13 }
0x2a81   : > { %v17637_v54 = vpop.permute.xlu1 %17636 }
0x2a82   : > { %v34045_v34 = vadd.f32 %v31950_v1, %v17637_v54 }
0x2a84   : > { %17641 = vrot.lane.b32.xlu1 %v34045_v34, %s32052_s15 }
0x2aec   : > { %v17110_v50 = vpop.permute.xlu0 %17109 }
0x2aed   : > { %v17112_v58 = vmul.f32 %v31954_v5, %v17110_v50 }
0x2aef   : > { %17114 = vrot.lane.b32.xlu1 %v17112_v58, %s32053_s16 }
0x2af6   : > { %v17642_v61 = vpop.permute.xlu1 %17641 }
0x2af7   : > { %v17643_v35 = vsel %vm305_vm2, %v17642_v61, 0 }
0x2af8   : > { %v34051_v47 = vand.u32 4294901760, %v17643_v35 }
0x2afa   : > { %v17715_v44 = vsub.f32 %v17643_v35, %v34051_v47 }
0x2afc   : > { %v17716_v22 = vand.u32 4294901760, %v17715_v44 }
0x2afe   : > { %v17717_v0 = vsub.f32 %v17715_v44, %v17716_v22 }
0x2b00   : > { %v17718_v53 = vand.u32 4294901760, %v17717_v0 }
0x2b02   : > { %28617 = vmatmul.mubr.f32.vlgmr.msra.gmra.mrb[34].mxu0 %v17718_v53 }
0x2b03   : > { %30764 = vmatpush3.bf16.msra.mxu0 %v32274_v51  ;;  %28627 = vmatprep.mubr.msk.f32.mxu0 %vm32050_vm1, %v32051_v9 }
0x2b04   : > { %30765 = vmatprep.subr.bf16.mxu0 %v32049_v4 }
0x2b07   : > { %30767 = vmatpush3.bf16.msra.mxu0 %v32288_v56 }
0x2b08   : > { %30768 = vmatprep.subr.bf16.mxu0 %v32049_v4 }
0x2b0a   : > { %28628 = vmatmul.mubr.f32.vlgmr.msra.gmra.mrb[34].mxu0 %v34051_v47 }
0x2b0b   : > { %30770 = vmatpush3.bf16.msra.mxu0 %v32295_v18  ;;  %28638 = vmatprep.mubr.msk.f32.mxu0 %vm32050_vm1, %v32051_v9 }
0x2b0c   : > { %30771 = vmatprep.subr.bf16.mxu0 %v32049_v4 }
0x2b0f   : > { %30773 = vmatpush3.bf16.msra.mxu0 %v32303_v21 }
0x2b10   : > { %30774 = vmatprep.subr.bf16.mxu0 %v32049_v4 }
0x2b12   : > { %28639 = vmatmul.mubr.f32.vlgmr.msra.gmra.mrb[34].mxu0 %v17715_v44 }
0x2b13   : > { %30776 = vmatpush3.bf16.msra.mxu0 %v32217_v7  ;;  %28649 = vmatprep.mubr.msk.f32.mxu0 %vm32050_vm1, %v32051_v9 }
0x2b14   : > { %30777 = vmatprep.subr.bf16.mxu0 %v32049_v4 }
0x2b17   : > { %30779 = vmatpush3.bf16.msra.mxu0 %v32251_v28 }
0x2b18   : > { %30780 = vmatprep.subr.bf16.mxu0 %v32049_v4 }
0x2b1a   : > { %28650 = vmatmul.mubr.f32.vlgmr.msra.gmra.mrb[34].mxu0 %v17716_v22 }
0x2b1b   : > { %30782 = vmatpush3.bf16.msra.mxu0 %v32323_v25  ;;  %28660 = vmatprep.mubr.msk.f32.mxu0 %vm32050_vm1, %v32051_v9 }
0x2b1c   : > { %30783 = vmatprep.subr.bf16.mxu0 %v32049_v4 }
0x2b1f   : > { %30785 = vmatpush3.bf16.msra.mxu0 %v32329_v29 }
0x2b20   : > { %30786 = vmatprep.subr.bf16.mxu0 %v32049_v4 }
0x2b22   : > { %28661 = vmatmul.mubr.f32.vlgmr.msra.gmra.mrb[34].mxu0 %v34051_v47 }
0x2b23   : > { %30788 = vmatpush3.bf16.msra.mxu0 %v32217_v7  ;;  %28671 = vmatprep.mubr.msk.f32.mxu0 %vm32050_vm1, %v32051_v9 }
0x2b24   : > { %30789 = vmatprep.subr.bf16.mxu0 %v32049_v4 }
0x2b27   : > { %30791 = vmatpush3.bf16.msra.mxu0 %v32251_v28 }
0x2b28   : > { %30828 = vmatprep.subr.bf16.mxu0 %v32049_v4 }
0x2b2a   : > { %28672 = vmatmul.mubr.f32.vlgmr.msra.gmra.mrb[34].mxu0 %v34051_v47 }
0x2b2b   : > { %30830 = vmatpush3.bf16.msra.mxu0 %v32133_v12  ;;  %28748 = vmatprep.mubr.msk.f32.mxu0 %vm32050_vm1, %v32051_v9 }
0x2b2c   : > { %30831 = vmatprep.subr.bf16.mxu0 %v32049_v4 }
0x2b2f   : > { %30833 = vmatpush3.bf16.msra.mxu0 %v32138_v19 }
0x2b30   : > { %30834 = vmatprep.subr.bf16.mxu0 %v32049_v4 }
0x2b32   : > { %28749 = vmatmul.mubr.f32.vlgmr.msra.gmra.mrb[36].mxu0 %v17718_v53 }
0x2b33   : > { %30836 = vmatpush3.bf16.msra.mxu0 %v32143_v33  ;;  %28759 = vmatprep.mubr.msk.f32.mxu0 %vm32050_vm1, %v32051_v9 }
0x2b34   : > { %30837 = vmatprep.subr.bf16.mxu0 %v32049_v4 }
0x2b37   : > { %30839 = vmatpush3.bf16.msra.mxu0 %v32146_v37 }
0x2b38   : > { %30840 = vmatprep.subr.bf16.mxu0 %v32049_v4 }
0x2b3a   : > { %28760 = vmatmul.mubr.f32.vlgmr.msra.gmra.mrb[36].mxu0 %v34051_v47 }
0x2b3b   : > { %30842 = vmatpush3.bf16.msra.mxu0 %v32152_v38  ;;  %28770 = vmatprep.mubr.msk.f32.mxu0 %vm32050_vm1, %v32051_v9 }
0x2b3c   : > { %30843 = vmatprep.subr.bf16.mxu0 %v32049_v4 }
0x2b3f   : > { %30845 = vmatpush3.bf16.msra.mxu0 %v32156_v39 }
0x2b40   : > { %30846 = vmatprep.subr.bf16.mxu0 %v32049_v4 }
0x2b42   : > { %28771 = vmatmul.mubr.f32.vlgmr.msra.gmra.mrb[36].mxu0 %v17715_v44 }
0x2b43   : > { %30848 = vmatpush3.bf16.msra.mxu0 %v32133_v12  ;;  %28781 = vmatprep.mubr.msk.f32.mxu0 %vm32050_vm1, %v32051_v9 }
0x2b44   : > { %30849 = vmatprep.subr.bf16.mxu0 %v32049_v4 }
0x2b47   : > { %30851 = vmatpush3.bf16.msra.mxu0 %v32138_v19 }
0x2b48   : > { %30852 = vmatprep.subr.bf16.mxu0 %v32049_v4 }
0x2b4a   : > { %28782 = vmatmul.mubr.f32.vlgmr.msra.gmra.mrb[36].mxu0 %v17716_v22 }
0x2b4b   : > { %30854 = vmatpush3.bf16.msra.mxu0 %v32168_v40  ;;  %28792 = vmatprep.mubr.msk.f32.mxu0 %vm32050_vm1, %v32051_v9 }
0x2b4c   : > { %30855 = vmatprep.subr.bf16.mxu0 %v32049_v4 }
0x2b4f   : > { %30857 = vmatpush3.bf16.msra.mxu0 %v32172_v41 }
0x2b50   : > { %30858 = vmatprep.subr.bf16.mxu0 %v32049_v4 }
0x2b52   : > { %28793 = vmatmul.mubr.f32.vlgmr.msra.gmra.mrb[36].mxu0 %v34051_v47 }
0x2b53   : > { %30860 = vmatpush3.bf16.msra.mxu0 %v32133_v12  ;;  %28803 = vmatprep.mubr.msk.f32.mxu0 %vm32050_vm1, %v32051_v9 }
0x2b54   : > { %30861 = vmatprep.subr.bf16.mxu0 %v32049_v4 }
0x2b57   : > { %30863 = vmatpush3.bf16.msra.mxu0 %v32138_v19 }
0x2b58   : > { %30900 = vmatprep.subr.bf16.mxu0 %v32049_v4 }
0x2b5a   : > { %28804 = vmatmul.mubr.f32.vlgmr.msra.gmra.mrb[36].mxu0 %v34051_v47 }
0x2b5b   : > { %30902 = vmatpush3.bf16.msra.mxu0 %v32225_v13  ;;  %28880 = vmatprep.mubr.msk.f32.mxu0 %vm32050_vm1, %v32051_v9 }
0x2b5c   : > { %30903 = vmatprep.subr.bf16.mxu0 %v32049_v4 }
0x2b5f   : > { %30905 = vmatpush3.bf16.msra.mxu0 %v32262_v32 }
0x2b60   : > { %30906 = vmatprep.subr.bf16.mxu0 %v32049_v4 }
0x2b61   : > { %v17115_v42 = vpop.permute.xlu1 %17114 }
0x2b62   : > { %v34133_v48 = vadd.f32 %v34040_v16, %v17115_v42 }
0x2b64   : > { %17119 = vrot.lane.b32.xlu0 %v34133_v48, %s32052_s15 }
0x2bd6   : > { %v17120_v11 = vpop.permute.xlu0 %17119 }
0x2bd7   : > { %24901 = vst.msk [vmem:[%s32111_s29 + $0x14] sm:$0x3] %vm1842_vm3, %v17120_v11  ;;  %v18130_v14 = vsel %vm305_vm2, %v17120_v11, 0 }
0x2bd8   : > { %v18201_v63 = vand.u32 4294901760, %v18130_v14 }
0x2bda   : > { %v18202_v6 = vsub.f32 %v18130_v14, %v18201_v63 }
0x2bdc   : > { %v18203_v23 = vand.u32 4294901760, %v18202_v6 }
0x2bde   : > { %v18204_v59 = vsub.f32 %v18202_v6, %v18203_v23 }
0x2be0   : > { %v18205_v26 = vand.u32 4294901760, %v18204_v59 }
0x2be2   : > { %28683 = vmatmul.mubr.f32.vlgmr.msra.gmra.mrb[34].mxu1 %v18205_v26 }
0x2be3   : > { %30800 = vmatpush3.bf16.msra.mxu1 %v32283_v3  ;;  %28693 = vmatprep.mubr.msk.f32.mxu1 %vm32050_vm1, %v32051_v9 }
0x2be4   : > { %30801 = vmatprep.subr.bf16.mxu1 %v32049_v4 }
0x2be7   : > { %30803 = vmatpush3.bf16.msra.mxu1 %v32291_v17 }
0x2be8   : > { %30804 = vmatprep.subr.bf16.mxu1 %v32049_v4 }
0x2bea   : > { %28694 = vmatmul.mubr.f32.vlgmr.msra.gmra.mrb[34].mxu1 %v18201_v63 }
0x2beb   : > { %30806 = vmatpush3.bf16.msra.mxu1 %v32300_v20  ;;  %28704 = vmatprep.mubr.msk.f32.mxu1 %vm32050_vm1, %v32051_v9 }
0x2bec   : > { %30807 = vmatprep.subr.bf16.mxu1 %v32049_v4 }
0x2bef   : > { %30809 = vmatpush3.bf16.msra.mxu1 %v32307_v24 }
0x2bf0   : > { %30810 = vmatprep.subr.bf16.mxu1 %v32049_v4 }
0x2bf2   : > { %28705 = vmatmul.mubr.f32.vlgmr.msra.gmra.mrb[34].mxu1 %v18202_v6 }
0x2bf3   : > { %30812 = vmatpush3.bf16.msra.mxu1 %v32225_v13  ;;  %28715 = vmatprep.mubr.msk.f32.mxu1 %vm32050_vm1, %v32051_v9 }
0x2bf4   : > { %30813 = vmatprep.subr.bf16.mxu1 %v32049_v4 }
0x2bf7   : > { %30815 = vmatpush3.bf16.msra.mxu1 %v32262_v32 }
0x2bf8   : > { %30816 = vmatprep.subr.bf16.mxu1 %v32049_v4 }
0x2bfa   : > { %28716 = vmatmul.mubr.f32.vlgmr.msra.gmra.mrb[34].mxu1 %v18203_v23 }
0x2bfb   : > { %30818 = vmatpush3.bf16.msra.mxu1 %v32326_v27  ;;  %28726 = vmatprep.mubr.msk.f32.mxu1 %vm32050_vm1, %v32051_v9 }
0x2bfc   : > { %30819 = vmatprep.subr.bf16.mxu1 %v32049_v4 }
0x2bfd   : > { %v18126_v1 = vpop.f32.mrb[34].mxu0 }
0x2bfe   : > { %v28673_v62 = vpop.f32.mrb[35].mxu0  ;;  %v31294_v47 = vadd.f32 %v33884_v57, %v18126_v1 }
0x2bff   : > { %30821 = vmatpush3.bf16.msra.mxu1 %v32334_v30 }
0x2c00   : > { %30822 = vmatprep.subr.bf16.mxu1 %v32049_v4 }
0x2c02   : > { %28727 = vmatmul.mubr.f32.vlgmr.msra.gmra.mrb[34].mxu1 %v18201_v63 }
0x2c03   : > { %30824 = vmatpush3.bf16.msra.mxu1 %v32225_v13  ;;  %28737 = vmatprep.mubr.msk.f32.mxu1 %vm32050_vm1, %v32051_v9 }
0x2c04   : > { %30825 = vmatprep.subr.bf16.mxu1 %v32049_v4 }
0x2c07   : > { %30827 = vmatpush3.bf16.msra.mxu1 %v32262_v32 }
0x2c08   : > { %30864 = vmatprep.subr.bf16.mxu1 %v32049_v4 }
0x2c0a   : > { %28738 = vmatmul.mubr.f32.vlgmr.msra.gmra.mrb[34].mxu1 %v18201_v63 }
0x2c0b   : > { %30866 = vmatpush3.bf16.msra.mxu1 %v32217_v7  ;;  %28814 = vmatprep.mubr.msk.f32.mxu1 %vm32050_vm1, %v32051_v9 }
0x2c0c   : > { %30867 = vmatprep.subr.bf16.mxu1 %v32049_v4 }
0x2c0f   : > { %30869 = vmatpush3.bf16.msra.mxu1 %v32251_v28 }
0x2c10   : > { %30870 = vmatprep.subr.bf16.mxu1 %v32049_v4 }
0x2c2d   : > { %v19135_v60 = vpop.f32.mrb[36].mxu0 }
0x2c2e   : > { %v31296_v31 = vadd.f32 %v34179_v2, %v19135_v60  ;;  %v28805_v43 = vpop.f32.mrb[37].mxu0 }
0x2c30   : > { %19147 = vrot.lane.b32.xlu1 %v31296_v31, %s32052_s15  ;;  %v19139_v5 = vadd.f32 %v31296_v31, %v24906_v49 }
0x2c32   : > { %v24907_v46 = vmul.f32 -1.442695, %v19139_v5 }
0x2c34   : > { %31957 = vpow2.f32 %v24907_v46 }
0x2c3e   : > { %v31958_v10 = vpop.eup %31957 }
0x2c3f   : > { %v19143_v55 = vadd.f32 1.0, %v31958_v10 }
0x2c41   : > { %31959 = vrcp.f32 %v19143_v55 }
0x2c4b   : > { %v31960_v45 = vpop.eup %31959 }
0x2ca2   : > { %v19148_v15 = vpop.permute.xlu1 %19147 }
0x2ca3   : > { %v19150_v52 = vmul.f32 %v31960_v45, %v19148_v15 }
0x2ca5   : > { %19152 = vrot.lane.b32.xlu0 %v19150_v52, %s32052_s15 }
0x2cdd   : > { %v18613_v16 = vpop.f32.mrb[34].mxu1 }
0x2cde   : > { %v31295_v8 = vadd.f32 %v33877_v36, %v18613_v16  ;;  %v28739_v54 = vpop.f32.mrb[35].mxu1 }
0x2ce0   : > { %18625 = vrot.lane.b32.xlu1 %v31295_v8, %s32052_s15  ;;  %v18617_v44 = vadd.f32 %v31295_v8, %v31294_v47 }
0x2ce2   : > { %v24904_v22 = vmul.f32 -1.442695, %v18617_v44 }
0x2d17   : > { %v19153_v50 = vpop.permute.xlu0 %19152 }
0x2d18   : > { %v19155_v58 = vadd.f32 %v24906_v49, %v19153_v50 }
0x2d1a   : > { %31961 = vtanh.f32 %v19155_v58 }
0x2d1b   : > { %31963 = vpow2.f32 %v24904_v22  ;;  %v24910_v22 = vld [vmem:[%s32106_s26 + $0x1a] sm:$0x3] }
0x2d24   : > { %v31962_v61 = vpop.eup %31961 }
0x2d25   : > { %v19157_v35 = vsub.f32 %v34045_v34, %v31962_v61  ;;  %v31964_v0 = vpop.eup %31963 }
0x2d26   : > { %v18621_v53 = vadd.f32 1.0, %v31964_v0 }
0x2d27   : > { %19159 = vrot.lane.b32.xlu0 %v19157_v35, %s32054_s13 }
0x2d28   : > { %31965 = vrcp.f32 %v18621_v53 }
0x2d32   : > { %v31966_v36 = vpop.eup %31965 }
0x2d52   : > { %v18626_v42 = vpop.permute.xlu1 %18625 }
0x2d53   : > { %v18628_v11 = vmul.f32 %v31966_v36, %v18626_v42 }
0x2d55   : > { %18630 = vrot.lane.b32.xlu1 %v18628_v11, %s32052_s15 }
0x2d99   : > { %v19160_v14 = vpop.permute.xlu0 %19159 }
0x2d9a   : > { %v19162_v63 = vmul.f32 %v31960_v45, %v19160_v14 }
0x2d9c   : > { %19164 = vrot.lane.b32.xlu0 %v19162_v63, %s32053_s16 }
0x2dc7   : > { %v18631_v34 = vpop.permute.xlu1 %18630 }
0x2dc8   : > { %v18633_v6 = vadd.f32 %v31294_v47, %v18631_v34 }
0x2dca   : > { %31967 = vtanh.f32 %v18633_v6  ;;  %v34331_v6 = vld [vmem:[%s34728_s4 + $0x2] ss:$0 sm:$0xff] }
0x2dd4   : > { %v31968_v23 = vpop.eup %31967 }
0x2dd5   : > { %v18635_v57 = vsub.f32 %v34133_v48, %v31968_v23 }
0x2dd7   : > { %18637 = vrot.lane.b32.xlu1 %v18635_v57, %s32054_s13 }
0x2e0e   : > { %v19165_v59 = vpop.permute.xlu0 %19164 }
0x2e0f   : > { %v34194_v26 = vadd.f32 %v31962_v61, %v19165_v59  ;;  %v34338_v59 = vld [vmem:[%s34728_s4 + $0x1] ss:$0 sm:$0xff] }
0x2e11   : > { %19169 = vrot.lane.b32.xlu0 %v34194_v26, %s32052_s15 }
0x2e49   : > { %v18638_v1 = vpop.permute.xlu1 %18637 }
0x2e4a   : > { %v18640_v62 = vmul.f32 %v31966_v36, %v18638_v1 }
0x2e4c   : > { %18642 = vrot.lane.b32.xlu1 %v18640_v62, %s32053_s16 }
0x2e83   : > { %v19170_v60 = vpop.permute.xlu0 %19169 }
0x2e84   : > { %v19171_v31 = vsel %vm305_vm2, %v19170_v60, 0 }
0x2e85   : > { %v34200_v43 = vand.u32 4294901760, %v19171_v31 }
0x2e87   : > { %v19243_v49 = vsub.f32 %v19171_v31, %v34200_v43 }
0x2e89   : > { %v19244_v48 = vand.u32 4294901760, %v19243_v49 }
0x2e8b   : > { %v19245_v5 = vsub.f32 %v19243_v49, %v19244_v48 }
0x2e8d   : > { %v19246_v46 = vand.u32 4294901760, %v19245_v5 }
0x2e8f   : > { %28815 = vmatmul.mubr.f32.vlgmr.msra.gmra.mrb[36].mxu1 %v19246_v46 }
0x2e90   : > { %30872 = vmatpush3.bf16.msra.mxu1 %v32274_v51  ;;  %28825 = vmatprep.mubr.msk.f32.mxu1 %vm32050_vm1, %v32051_v9 }
0x2e91   : > { %30873 = vmatprep.subr.bf16.mxu1 %v32049_v4 }
0x2e94   : > { %30875 = vmatpush3.bf16.msra.mxu1 %v32288_v56 }
0x2e95   : > { %30876 = vmatprep.subr.bf16.mxu1 %v32049_v4 }
0x2e97   : > { %28826 = vmatmul.mubr.f32.vlgmr.msra.gmra.mrb[36].mxu1 %v34200_v43 }
0x2e98   : > { %30878 = vmatpush3.bf16.msra.mxu1 %v32295_v18  ;;  %28836 = vmatprep.mubr.msk.f32.mxu1 %vm32050_vm1, %v32051_v9 }
0x2e99   : > { %30879 = vmatprep.subr.bf16.mxu1 %v32049_v4 }
0x2e9c   : > { %30881 = vmatpush3.bf16.msra.mxu1 %v32303_v21 }
0x2e9d   : > { %30882 = vmatprep.subr.bf16.mxu1 %v32049_v4 }
0x2e9f   : > { %28837 = vmatmul.mubr.f32.vlgmr.msra.gmra.mrb[36].mxu1 %v19243_v49 }
0x2ea0   : > { %30884 = vmatpush3.bf16.msra.mxu1 %v32217_v7  ;;  %28847 = vmatprep.mubr.msk.f32.mxu1 %vm32050_vm1, %v32051_v9 }
0x2ea1   : > { %30885 = vmatprep.subr.bf16.mxu1 %v32049_v4 }
0x2ea4   : > { %30887 = vmatpush3.bf16.msra.mxu1 %v32251_v28 }
0x2ea5   : > { %30888 = vmatprep.subr.bf16.mxu1 %v32049_v4 }
0x2ea7   : > { %28848 = vmatmul.mubr.f32.vlgmr.msra.gmra.mrb[36].mxu1 %v19244_v48 }
0x2ea8   : > { %30890 = vmatpush3.bf16.msra.mxu1 %v32323_v25  ;;  %28858 = vmatprep.mubr.msk.f32.mxu1 %vm32050_vm1, %v32051_v9 }
0x2ea9   : > { %30891 = vmatprep.subr.bf16.mxu1 %v32049_v4 }
0x2eac   : > { %30893 = vmatpush3.bf16.msra.mxu1 %v32329_v29 }
0x2ead   : > { %30894 = vmatprep.subr.bf16.mxu1 %v32049_v4 }
0x2eaf   : > { %28859 = vmatmul.mubr.f32.vlgmr.msra.gmra.mrb[36].mxu1 %v34200_v43 }
0x2eb0   : > { %30896 = vmatpush3.bf16.msra.mxu1 %v32217_v7  ;;  %28869 = vmatprep.mubr.msk.f32.mxu1 %vm32050_vm1, %v32051_v9 }
0x2eb1   : > { %30897 = vmatprep.subr.bf16.mxu1 %v32049_v4 }
0x2eb4   : > { %30899 = vmatpush3.bf16.msra.mxu1 %v32251_v28 }
0x2eb5   : > { %30936 = vmatprep.subr.bf16.mxu1 %v32049_v4 }
0x2eb7   : > { %28870 = vmatmul.mubr.f32.vlgmr.msra.gmra.mrb[36].mxu1 %v34200_v43 }
0x2eb8   : > { %30938 = vmatpush3.bf16.msra.mxu1 %v32133_v12  ;;  %28946 = vmatprep.mubr.msk.f32.mxu1 %vm32050_vm1, %v32051_v9 }
0x2eb9   : > { %30939 = vmatprep.subr.bf16.mxu1 %v32049_v4 }
0x2ebc   : > { %30941 = vmatpush3.bf16.msra.mxu1 %v32138_v19 }
0x2ebd   : > { %30942 = vmatprep.subr.bf16.mxu1 %v32049_v4 }
0x2ebe   : > { %v18643_v10 = vpop.permute.xlu1 %18642 }
0x2ebf   : > { %28947 = vmatmul.mubr.f32.vlgmr.msra.gmra.mrb[38].mxu1 %v19246_v46  ;;  %v34242_v55 = vadd.f32 %v31968_v23, %v18643_v10 }
0x2ec0   : > { %30944 = vmatpush3.bf16.msra.mxu1 %v32143_v33  ;;  %28957 = vmatprep.mubr.msk.f32.mxu1 %vm32050_vm1, %v32051_v9 }
0x2ec1   : > { %30945 = vmatprep.subr.bf16.mxu1 %v32049_v4  ;;  %18647 = vrot.lane.b32.xlu0 %v34242_v55, %s32052_s15 }
0x2ec4   : > { %30947 = vmatpush3.bf16.msra.mxu1 %v32146_v37 }
0x2ec5   : > { %30948 = vmatprep.subr.bf16.mxu1 %v32049_v4 }
0x2ec7   : > { %28958 = vmatmul.mubr.f32.vlgmr.msra.gmra.mrb[38].mxu1 %v34200_v43 }
0x2ec8   : > { %30950 = vmatpush3.bf16.msra.mxu1 %v32152_v38  ;;  %28968 = vmatprep.mubr.msk.f32.mxu1 %vm32050_vm1, %v32051_v9 }
0x2ec9   : > { %30951 = vmatprep.subr.bf16.mxu1 %v32049_v4 }
0x2ecc   : > { %30953 = vmatpush3.bf16.msra.mxu1 %v32156_v39 }
0x2ecd   : > { %30954 = vmatprep.subr.bf16.mxu1 %v32049_v4 }
0x2ecf   : > { %28969 = vmatmul.mubr.f32.vlgmr.msra.gmra.mrb[38].mxu1 %v19243_v49 }
0x2ed0   : > { %30956 = vmatpush3.bf16.msra.mxu1 %v32133_v12  ;;  %28979 = vmatprep.mubr.msk.f32.mxu1 %vm32050_vm1, %v32051_v9 }
0x2ed1   : > { %30957 = vmatprep.subr.bf16.mxu1 %v32049_v4 }
0x2ed4   : > { %30959 = vmatpush3.bf16.msra.mxu1 %v32138_v19 }
0x2ed5   : > { %30960 = vmatprep.subr.bf16.mxu1 %v32049_v4 }
0x2ed7   : > { %28980 = vmatmul.mubr.f32.vlgmr.msra.gmra.mrb[38].mxu1 %v19244_v48 }
0x2ed8   : > { %30962 = vmatpush3.bf16.msra.mxu1 %v32168_v40  ;;  %28990 = vmatprep.mubr.msk.f32.mxu1 %vm32050_vm1, %v32051_v9 }
0x2ed9   : > { %30963 = vmatprep.subr.bf16.mxu1 %v32049_v4 }
0x2edc   : > { %30965 = vmatpush3.bf16.msra.mxu1 %v32172_v41 }
0x2edd   : > { %30966 = vmatprep.subr.bf16.mxu1 %v32049_v4 }
0x2edf   : > { %28991 = vmatmul.mubr.f32.vlgmr.msra.gmra.mrb[38].mxu1 %v34200_v43 }
0x2ee0   : > { %30968 = vmatpush3.bf16.msra.mxu1 %v32133_v12  ;;  %29001 = vmatprep.mubr.msk.f32.mxu1 %vm32050_vm1, %v32051_v9 }
0x2ee1   : > { %30969 = vmatprep.subr.bf16.mxu1 %v32049_v4 }
0x2ee4   : > { %30971 = vmatpush3.bf16.msra.mxu1 %v32138_v19 }
0x2ee5   : > { %31008 = vmatprep.subr.bf16.mxu1 %v32049_v4 }
0x2ee7   : > { %29002 = vmatmul.mubr.f32.vlgmr.msra.gmra.mrb[38].mxu1 %v34200_v43 }
0x2ee8   : > { %31010 = vmatpush3.bf16.msra.mxu1 %v32225_v13  ;;  %29078 = vmatprep.mubr.msk.f32.mxu1 %vm32050_vm1, %v32051_v9 }
0x2ee9   : > { %31011 = vmatprep.subr.bf16.mxu1 %v32049_v4 }
0x2eec   : > { %31013 = vmatpush3.bf16.msra.mxu1 %v32262_v32 }
0x2eed   : > { %31014 = vmatprep.subr.bf16.mxu1 %v32049_v4 }
0x2f33   : > { %v18648_v45 = vpop.permute.xlu0 %18647 }
0x2f34   : > { %24905 = vst.msk [vmem:[%s32111_s29 + $0x16] sm:$0x3] %vm1842_vm3, %v18648_v45  ;;  %v19658_v15 = vsel %vm305_vm2, %v18648_v45, 0 }
0x2f35   : > { %v19729_v52 = vand.u32 4294901760, %v19658_v15 }
0x2f37   : > { %v19730_v16 = vsub.f32 %v19658_v15, %v19729_v52 }
0x2f39   : > { %v19731_v8 = vand.u32 4294901760, %v19730_v16 }
0x2f3b   : > { %v19732_v54 = vsub.f32 %v19730_v16, %v19731_v8 }
0x2f3d   : > { %v19733_v50 = vand.u32 4294901760, %v19732_v54 }
0x2f3f   : > { %28881 = vmatmul.mubr.f32.vlgmr.msra.gmra.mrb[38].mxu0 %v19733_v50 }
0x2f40   : > { %30908 = vmatpush3.bf16.msra.mxu0 %v32283_v3  ;;  %28891 = vmatprep.mubr.msk.f32.mxu0 %vm32050_vm1, %v32051_v9 }
0x2f41   : > { %30909 = vmatprep.subr.bf16.mxu0 %v32049_v4 }
0x2f44   : > { %30911 = vmatpush3.bf16.msra.mxu0 %v32291_v17 }
0x2f45   : > { %30912 = vmatprep.subr.bf16.mxu0 %v32049_v4 }
0x2f47   : > { %28892 = vmatmul.mubr.f32.vlgmr.msra.gmra.mrb[38].mxu0 %v19729_v52 }
0x2f48   : > { %30914 = vmatpush3.bf16.msra.mxu0 %v32300_v20  ;;  %28902 = vmatprep.mubr.msk.f32.mxu0 %vm32050_vm1, %v32051_v9 }
0x2f49   : > { %30915 = vmatprep.subr.bf16.mxu0 %v32049_v4 }
0x2f4c   : > { %30917 = vmatpush3.bf16.msra.mxu0 %v32307_v24 }
0x2f4d   : > { %30918 = vmatprep.subr.bf16.mxu0 %v32049_v4 }
0x2f4f   : > { %28903 = vmatmul.mubr.f32.vlgmr.msra.gmra.mrb[38].mxu0 %v19730_v16 }
0x2f50   : > { %30920 = vmatpush3.bf16.msra.mxu0 %v32225_v13  ;;  %28913 = vmatprep.mubr.msk.f32.mxu0 %vm32050_vm1, %v32051_v9 }
0x2f51   : > { %30921 = vmatprep.subr.bf16.mxu0 %v32049_v4 }
0x2f54   : > { %30923 = vmatpush3.bf16.msra.mxu0 %v32262_v32 }
0x2f55   : > { %30924 = vmatprep.subr.bf16.mxu0 %v32049_v4 }
0x2f57   : > { %28914 = vmatmul.mubr.f32.vlgmr.msra.gmra.mrb[38].mxu0 %v19731_v8 }
0x2f58   : > { %30926 = vmatpush3.bf16.msra.mxu0 %v32326_v27  ;;  %28924 = vmatprep.mubr.msk.f32.mxu0 %vm32050_vm1, %v32051_v9 }
0x2f59   : > { %30927 = vmatprep.subr.bf16.mxu0 %v32049_v4 }
0x2f5c   : > { %30929 = vmatpush3.bf16.msra.mxu0 %v32334_v30 }
0x2f5d   : > { %30930 = vmatprep.subr.bf16.mxu0 %v32049_v4 }
0x2f5f   : > { %28925 = vmatmul.mubr.f32.vlgmr.msra.gmra.mrb[38].mxu0 %v19729_v52 }
0x2f60   : > { %30932 = vmatpush3.bf16.msra.mxu0 %v32225_v13  ;;  %28935 = vmatprep.mubr.msk.f32.mxu0 %vm32050_vm1, %v32051_v9 }
0x2f61   : > { %30933 = vmatprep.subr.bf16.mxu0 %v32049_v4 }
0x2f64   : > { %30935 = vmatpush3.bf16.msra.mxu0 %v32262_v32 }
0x2f65   : > { %30972 = vmatprep.subr.bf16.mxu0 %v32049_v4 }
0x2f67   : > { %28936 = vmatmul.mubr.f32.vlgmr.msra.gmra.mrb[38].mxu0 %v19729_v52 }
0x2f68   : > { %30974 = vmatpush3.bf16.msra.mxu0 %v32217_v7  ;;  %29012 = vmatprep.mubr.msk.f32.mxu0 %vm32050_vm1, %v32051_v9 }
0x2f69   : > { %30975 = vmatprep.subr.bf16.mxu0 %v32049_v4 }
0x2f6c   : > { %30977 = vmatpush3.bf16.msra.mxu0 %v32251_v28 }
0x2f6d   : > { %30978 = vmatprep.subr.bf16.mxu0 %v32049_v4 }
0x2f8a   : > { %v19654_v58 = vpop.f32.mrb[36].mxu1 }
0x2f8b   : > { %v28871_v61 = vpop.f32.mrb[37].mxu1  ;;  %v31297_v1 = vadd.f32 %v34338_v59, %v19654_v58 }
0x2fba   : > { %v20663_v35 = vpop.f32.mrb[38].mxu1 }
0x2fbb   : > { %v31299_v47 = vadd.f32 %v34179_v2, %v20663_v35  ;;  %v29003_v44 = vpop.f32.mrb[39].mxu1 }
0x2fbd   : > { %20675 = vrot.lane.b32.xlu1 %v31299_v47, %s32052_s15  ;;  %v20667_v0 = vadd.f32 %v31299_v47, %v24910_v22 }
0x2fbf   : > { %v24911_v53 = vmul.f32 -1.442695, %v20667_v0 }
0x2fc1   : > { %31969 = vpow2.f32 %v24911_v53 }
0x2fcb   : > { %v31970_v36 = vpop.eup %31969 }
0x2fcc   : > { %v20671_v42 = vadd.f32 1.0, %v31970_v36 }
0x2fce   : > { %31971 = vrcp.f32 %v20671_v42 }
0x2fd8   : > { %v31972_v11 = vpop.eup %31971 }
0x302f   : > { %v20676_v14 = vpop.permute.xlu1 %20675 }
0x3030   : > { %v20678_v63 = vmul.f32 %v31972_v11, %v20676_v14 }
0x3032   : > { %20680 = vrot.lane.b32.xlu0 %v20678_v63, %s32052_s15 }
0x303a   : > { %v20141_v34 = vpop.f32.mrb[38].mxu0 }
0x303b   : > { %v31298_v23 = vadd.f32 %v34331_v6, %v20141_v34  ;;  %v28937_v57 = vpop.f32.mrb[39].mxu0 }
0x303d   : > { %20153 = vrot.lane.b32.xlu1 %v31298_v23, %s32052_s15  ;;  %v20145_v62 = vadd.f32 %v31298_v23, %v31297_v1 }
0x303f   : > { %v24908_v60 = vmul.f32 -1.442695, %v20145_v62 }
0x3041   : > { %31973 = vpow2.f32 %v24908_v60 }
0x304b   : > { %v31974_v31 = vpop.eup %31973 }
0x304c   : > { %v20149_v43 = vadd.f32 1.0, %v31974_v31 }
0x304e   : > { %31975 = vrcp.f32 %v20149_v43 }
0x3058   : > { %v31976_v5 = vpop.eup %31975 }
0x30a4   : > { %v20681_v49 = vpop.permute.xlu0 %20680 }
0x30a5   : > { %v20683_v48 = vadd.f32 %v24910_v22, %v20681_v49 }
0x30a7   : > { %31977 = vtanh.f32 %v20683_v48 }
0x30af   : > { %v20154_v46 = vpop.permute.xlu1 %20153 }
0x30b0   : > { %v20156_v10 = vmul.f32 %v31976_v5, %v20154_v46  ;;  %v24914_v46 = vld [vmem:[%s32106_s26 + $0x1c] sm:$0x3] }
0x30b1   : > { %v31978_v45 = vpop.eup %31977 }
0x30b2   : > { %v20685_v15 = vsub.f32 %v34194_v26, %v31978_v45  ;;  %20158 = vrot.lane.b32.xlu0 %v20156_v10, %s32052_s15 }
0x30b4   : > { %20687 = vrot.lane.b32.xlu1 %v20685_v15, %s32054_s13 }
0x3124   : > { %v20159_v52 = vpop.permute.xlu0 %20158 }
0x3125   : > { %v20161_v16 = vadd.f32 %v31297_v1, %v20159_v52 }
0x3126   : > { %v20688_v8 = vpop.permute.xlu1 %20687 }
0x3127   : > { %v20690_v54 = vmul.f32 %v31972_v11, %v20688_v8  ;;  %31979 = vtanh.f32 %v20161_v16 }
0x3129   : > { %20692 = vrot.lane.b32.xlu0 %v20690_v54, %s32053_s16 }
0x3131   : > { %v31980_v50 = vpop.eup %31979 }
0x3132   : > { %v20163_v58 = vsub.f32 %v34242_v55, %v31980_v50 }
0x3134   : > { %20165 = vrot.lane.b32.xlu1 %v20163_v58, %s32054_s13 }
0x319b   : > { %v20693_v61 = vpop.permute.xlu0 %20692 }
0x319c   : > { %v34347_v35 = vadd.f32 %v31978_v45, %v20693_v61 }
0x319e   : > { %20697 = vrot.lane.b32.xlu0 %v34347_v35, %s32052_s15 }
0x31a6   : > { %v20166_v26 = vpop.permute.xlu1 %20165 }
0x31a7   : > { %v20168_v47 = vmul.f32 %v31976_v5, %v20166_v26 }
0x31a9   : > { %20170 = vrot.lane.b32.xlu1 %v20168_v47, %s32053_s16 }
0x3210   : > { %v20698_v44 = vpop.permute.xlu0 %20697 }
0x3211   : > { %v20699_v22 = vsel %vm305_vm2, %v20698_v44, 0 }
0x3212   : > { %v34353_v0 = vand.u32 4294901760, %v20699_v22 }
0x3214   : > { %v20771_v53 = vsub.f32 %v20699_v22, %v34353_v0 }
0x3216   : > { %v20772_v55 = vand.u32 4294901760, %v20771_v53 }
0x3218   : > { %v20773_v36 = vsub.f32 %v20771_v53, %v20772_v55 }
0x321a   : > { %v20774_v42 = vand.u32 4294901760, %v20773_v36 }
0x321b   : > { %v20171_v11 = vpop.permute.xlu1 %20170 }
0x321c   : > { %29013 = vmatmul.mubr.f32.vlgmr.msra.gmra.mrb[40].mxu0 %v20774_v42  ;;  %v34356_v14 = vadd.f32 %v31980_v50, %v20171_v11 }
0x321d   : > { %30980 = vmatpush3.bf16.msra.mxu0 %v32274_v51  ;;  %29023 = vmatprep.mubr.msk.f32.mxu0 %vm32050_vm1, %v32051_v9 }
0x321e   : > { %30981 = vmatprep.subr.bf16.mxu0 %v32049_v4  ;;  %20175 = vrot.lane.b32.xlu0 %v34356_v14, %s32052_s15 }
0x3221   : > { %30983 = vmatpush3.bf16.msra.mxu0 %v32288_v56 }
0x3222   : > { %30984 = vmatprep.subr.bf16.mxu0 %v32049_v4 }
0x3224   : > { %29024 = vmatmul.mubr.f32.vlgmr.msra.gmra.mrb[40].mxu0 %v34353_v0 }
0x3225   : > { %30986 = vmatpush3.bf16.msra.mxu0 %v32295_v18  ;;  %29034 = vmatprep.mubr.msk.f32.mxu0 %vm32050_vm1, %v32051_v9 }
0x3226   : > { %30987 = vmatprep.subr.bf16.mxu0 %v32049_v4 }
0x3229   : > { %30989 = vmatpush3.bf16.msra.mxu0 %v32303_v21 }
0x322a   : > { %30990 = vmatprep.subr.bf16.mxu0 %v32049_v4 }
0x322c   : > { %29035 = vmatmul.mubr.f32.vlgmr.msra.gmra.mrb[40].mxu0 %v20771_v53 }
0x322d   : > { %30992 = vmatpush3.bf16.msra.mxu0 %v32217_v7  ;;  %29045 = vmatprep.mubr.msk.f32.mxu0 %vm32050_vm1, %v32051_v9 }
0x322e   : > { %30993 = vmatprep.subr.bf16.mxu0 %v32049_v4 }
0x3231   : > { %30995 = vmatpush3.bf16.msra.mxu0 %v32251_v28 }
0x3232   : > { %30996 = vmatprep.subr.bf16.mxu0 %v32049_v4 }
0x3234   : > { %29046 = vmatmul.mubr.f32.vlgmr.msra.gmra.mrb[40].mxu0 %v20772_v55 }
0x3235   : > { %30998 = vmatpush3.bf16.msra.mxu0 %v32323_v25  ;;  %29056 = vmatprep.mubr.msk.f32.mxu0 %vm32050_vm1, %v32051_v9 }
0x3236   : > { %30999 = vmatprep.subr.bf16.mxu0 %v32049_v4 }
0x3239   : > { %31001 = vmatpush3.bf16.msra.mxu0 %v32329_v29 }
0x323a   : > { %31002 = vmatprep.subr.bf16.mxu0 %v32049_v4 }
0x323c   : > { %29057 = vmatmul.mubr.f32.vlgmr.msra.gmra.mrb[40].mxu0 %v34353_v0 }
0x323d   : > { %31004 = vmatpush3.bf16.msra.mxu0 %v32217_v7  ;;  %29067 = vmatprep.mubr.msk.f32.mxu0 %vm32050_vm1, %v32051_v9 }
0x323e   : > { %31005 = vmatprep.subr.bf16.mxu0 %v32049_v4 }
0x3241   : > { %31007 = vmatpush3.bf16.msra.mxu0 %v32251_v28 }
0x3242   : > { %31044 = vmatprep.subr.bf16.mxu0 %v32049_v4 }
0x3244   : > { %29068 = vmatmul.mubr.f32.vlgmr.msra.gmra.mrb[40].mxu0 %v34353_v0 }
0x3245   : > { %31046 = vmatpush3.bf16.msra.mxu0 %v32133_v12  ;;  %29144 = vmatprep.mubr.msk.f32.mxu0 %vm32050_vm1, %v32051_v9 }
0x3246   : > { %31047 = vmatprep.subr.bf16.mxu0 %v32049_v4 }
0x3249   : > { %31049 = vmatpush3.bf16.msra.mxu0 %v32138_v19 }
0x324a   : > { %31050 = vmatprep.subr.bf16.mxu0 %v32049_v4 }
0x324c   : > { %29145 = vmatmul.mubr.f32.vlgmr.msra.gmra.mrb[42].mxu0 %v20774_v42 }
0x324d   : > { %31052 = vmatpush3.bf16.msra.mxu0 %v32143_v33  ;;  %29155 = vmatprep.mubr.msk.f32.mxu0 %vm32050_vm1, %v32051_v9 }
0x324e   : > { %31053 = vmatprep.subr.bf16.mxu0 %v32049_v4 }
0x3251   : > { %31055 = vmatpush3.bf16.msra.mxu0 %v32146_v37 }
0x3252   : > { %31056 = vmatprep.subr.bf16.mxu0 %v32049_v4 }
0x3254   : > { %29156 = vmatmul.mubr.f32.vlgmr.msra.gmra.mrb[42].mxu0 %v34353_v0 }
0x3255   : > { %31058 = vmatpush3.bf16.msra.mxu0 %v32152_v38  ;;  %29166 = vmatprep.mubr.msk.f32.mxu0 %vm32050_vm1, %v32051_v9 }
0x3256   : > { %31059 = vmatprep.subr.bf16.mxu0 %v32049_v4 }
0x3259   : > { %31061 = vmatpush3.bf16.msra.mxu0 %v32156_v39 }
0x325a   : > { %31062 = vmatprep.subr.bf16.mxu0 %v32049_v4 }
0x325c   : > { %29167 = vmatmul.mubr.f32.vlgmr.msra.gmra.mrb[42].mxu0 %v20771_v53 }
0x325d   : > { %31064 = vmatpush3.bf16.msra.mxu0 %v32133_v12  ;;  %29177 = vmatprep.mubr.msk.f32.mxu0 %vm32050_vm1, %v32051_v9 }
0x325e   : > { %31065 = vmatprep.subr.bf16.mxu0 %v32049_v4 }
0x3261   : > { %31067 = vmatpush3.bf16.msra.mxu0 %v32138_v19 }
0x3262   : > { %31068 = vmatprep.subr.bf16.mxu0 %v32049_v4 }
0x3264   : > { %29178 = vmatmul.mubr.f32.vlgmr.msra.gmra.mrb[42].mxu0 %v20772_v55 }
0x3265   : > { %31070 = vmatpush3.bf16.msra.mxu0 %v32168_v40  ;;  %29188 = vmatprep.mubr.msk.f32.mxu0 %vm32050_vm1, %v32051_v9 }
0x3266   : > { %31071 = vmatprep.subr.bf16.mxu0 %v32049_v4 }
0x3269   : > { %31073 = vmatpush3.bf16.msra.mxu0 %v32172_v41 }
0x326a   : > { %31074 = vmatprep.subr.bf16.mxu0 %v32049_v4 }
0x326c   : > { %29189 = vmatmul.mubr.f32.vlgmr.msra.gmra.mrb[42].mxu0 %v34353_v0 }
0x326d   : > { %31076 = vmatpush3.bf16.msra.mxu0 %v32133_v12  ;;  %29199 = vmatprep.mubr.msk.f32.mxu0 %vm32050_vm1, %v32051_v9 }
0x326e   : > { %31077 = vmatprep.subr.bf16.mxu0 %v32049_v4 }
0x3271   : > { %31079 = vmatpush3.bf16.msra.mxu0 %v32138_v19 }
0x3272   : > { %31116 = vmatprep.subr.bf16.mxu0 %v32049_v4 }
0x3274   : > { %29200 = vmatmul.mubr.f32.vlgmr.msra.gmra.mrb[42].mxu0 %v34353_v0 }
0x3275   : > { %31118 = vmatpush3.bf16.msra.mxu0 %v32225_v13  ;;  %29276 = vmatprep.mubr.msk.f32.mxu0 %vm32050_vm1, %v32051_v9 }
0x3276   : > { %31119 = vmatprep.subr.bf16.mxu0 %v32049_v4 }
0x3279   : > { %31121 = vmatpush3.bf16.msra.mxu0 %v32262_v32 }
0x327a   : > { %31122 = vmatprep.subr.bf16.mxu0 %v32049_v4 }
0x3290   : > { %v20176_v63 = vpop.permute.xlu0 %20175 }
0x3291   : > { %24909 = vst.msk [vmem:[%s32111_s29 + $0x18] sm:$0x3] %vm1842_vm3, %v20176_v63  ;;  %v21186_v34 = vsel %vm305_vm2, %v20176_v63, 0 }
0x3292   : > { %v21257_v23 = vand.u32 4294901760, %v21186_v34 }
0x3294   : > { %v21258_v57 = vsub.f32 %v21186_v34, %v21257_v23 }
0x3296   : > { %v21259_v1 = vand.u32 4294901760, %v21258_v57 }
0x3298   : > { %v21260_v62 = vsub.f32 %v21258_v57, %v21259_v1 }
0x329a   : > { %v21261_v60 = vand.u32 4294901760, %v21260_v62 }
0x329c   : > { %29079 = vmatmul.mubr.f32.vlgmr.msra.gmra.mrb[40].mxu1 %v21261_v60 }
0x329d   : > { %31016 = vmatpush3.bf16.msra.mxu1 %v32283_v3  ;;  %29089 = vmatprep.mubr.msk.f32.mxu1 %vm32050_vm1, %v32051_v9 }
0x329e   : > { %31017 = vmatprep.subr.bf16.mxu1 %v32049_v4 }
0x32a1   : > { %31019 = vmatpush3.bf16.msra.mxu1 %v32291_v17 }
0x32a2   : > { %31020 = vmatprep.subr.bf16.mxu1 %v32049_v4 }
0x32a4   : > { %29090 = vmatmul.mubr.f32.vlgmr.msra.gmra.mrb[40].mxu1 %v21257_v23 }
0x32a5   : > { %31022 = vmatpush3.bf16.msra.mxu1 %v32300_v20  ;;  %29100 = vmatprep.mubr.msk.f32.mxu1 %vm32050_vm1, %v32051_v9 }
0x32a6   : > { %31023 = vmatprep.subr.bf16.mxu1 %v32049_v4 }
0x32a9   : > { %31025 = vmatpush3.bf16.msra.mxu1 %v32307_v24 }
0x32aa   : > { %31026 = vmatprep.subr.bf16.mxu1 %v32049_v4 }
0x32ac   : > { %29101 = vmatmul.mubr.f32.vlgmr.msra.gmra.mrb[40].mxu1 %v21258_v57 }
0x32ad   : > { %31028 = vmatpush3.bf16.msra.mxu1 %v32225_v13  ;;  %29111 = vmatprep.mubr.msk.f32.mxu1 %vm32050_vm1, %v32051_v9 }
0x32ae   : > { %31029 = vmatprep.subr.bf16.mxu1 %v32049_v4 }
0x32b1   : > { %31031 = vmatpush3.bf16.msra.mxu1 %v32262_v32 }
0x32b2   : > { %31032 = vmatprep.subr.bf16.mxu1 %v32049_v4 }
0x32b4   : > { %29112 = vmatmul.mubr.f32.vlgmr.msra.gmra.mrb[40].mxu1 %v21259_v1 }
0x32b5   : > { %31034 = vmatpush3.bf16.msra.mxu1 %v32326_v27  ;;  %29122 = vmatprep.mubr.msk.f32.mxu1 %vm32050_vm1, %v32051_v9 }
0x32b6   : > { %31035 = vmatprep.subr.bf16.mxu1 %v32049_v4 }
0x32b9   : > { %31037 = vmatpush3.bf16.msra.mxu1 %v32334_v30 }
0x32ba   : > { %31038 = vmatprep.subr.bf16.mxu1 %v32049_v4 }
0x32bc   : > { %29123 = vmatmul.mubr.f32.vlgmr.msra.gmra.mrb[40].mxu1 %v21257_v23 }
0x32bd   : > { %31040 = vmatpush3.bf16.msra.mxu1 %v32225_v13  ;;  %29133 = vmatprep.mubr.msk.f32.mxu1 %vm32050_vm1, %v32051_v9 }
0x32be   : > { %31041 = vmatprep.subr.bf16.mxu1 %v32049_v4 }
0x32c1   : > { %31043 = vmatpush3.bf16.msra.mxu1 %v32262_v32 }
0x32c2   : > { %31080 = vmatprep.subr.bf16.mxu1 %v32049_v4 }
0x32c4   : > { %29134 = vmatmul.mubr.f32.vlgmr.msra.gmra.mrb[40].mxu1 %v21257_v23 }
0x32c5   : > { %31082 = vmatpush3.bf16.msra.mxu1 %v32217_v7  ;;  %29210 = vmatprep.mubr.msk.f32.mxu1 %vm32050_vm1, %v32051_v9 }
0x32c6   : > { %31083 = vmatprep.subr.bf16.mxu1 %v32049_v4 }
0x32c9   : > { %31085 = vmatpush3.bf16.msra.mxu1 %v32251_v28 }
0x32ca   : > { %31086 = vmatprep.subr.bf16.mxu1 %v32049_v4 }
0x3317   : > { %v21182_v31 = vpop.f32.mrb[40].mxu0 }
0x3318   : > { %v29069_v43 = vpop.f32.mrb[41].mxu0 }
0x3347   : > { %v22191_v49 = vpop.f32.mrb[42].mxu0 }
0x3348   : > { %v31302_v48 = vadd.f32 %v34179_v2, %v22191_v49  ;;  %v29201_v5 = vpop.f32.mrb[43].mxu0  ;;  %v31300_v2 = vadd.f32 %v34338_v59, %v21182_v31 }
0x334a   : > { %22203 = vrot.lane.b32.xlu1 %v31302_v48, %s32052_s15  ;;  %v22195_v52 = vadd.f32 %v31302_v48, %v24914_v46 }
0x334c   : > { %v24915_v16 = vmul.f32 -1.442695, %v22195_v52 }
0x334e   : > { %31981 = vpow2.f32 %v24915_v16 }
0x3358   : > { %v31982_v8 = vpop.eup %31981 }
0x3359   : > { %v22199_v54 = vadd.f32 1.0, %v31982_v8 }
0x335b   : > { %31983 = vrcp.f32 %v22199_v54 }
0x3365   : > { %v31984_v50 = vpop.eup %31983 }
0x3397   : > { %v21669_v10 = vpop.f32.mrb[40].mxu1 }
0x3398   : > { %v31301_v45 = vadd.f32 %v34331_v6, %v21669_v10  ;;  %v29135_v15 = vpop.f32.mrb[41].mxu1 }
0x339a   : > { %21681 = vrot.lane.b32.xlu0 %v31301_v45, %s32052_s15  ;;  %v21673_v26 = vadd.f32 %v31301_v45, %v31300_v2 }
0x339c   : > { %v24912_v47 = vmul.f32 -1.442695, %v21673_v26 }
0x339e   : > { %31985 = vpow2.f32 %v24912_v47 }
0x33a8   : > { %v31986_v44 = vpop.eup %31985 }
0x33a9   : > { %v21677_v22 = vadd.f32 1.0, %v31986_v44  ;;  %v24918_v44 = vld [vmem:[%s32106_s26 + $0x1e] sm:$0x3] }
0x33ab   : > { %31987 = vrcp.f32 %v21677_v22 }
0x33b5   : > { %v31988_v0 = vpop.eup %31987 }
0x33bc   : > { %v22204_v58 = vpop.permute.xlu1 %22203 }
0x33bd   : > { %v22206_v61 = vmul.f32 %v31984_v50, %v22204_v58 }
0x33bf   : > { %22208 = vrot.lane.b32.xlu1 %v22206_v61, %s32052_s15 }
0x340c   : > { %v21682_v53 = vpop.permute.xlu0 %21681 }
0x340d   : > { %v21684_v55 = vmul.f32 %v31988_v0, %v21682_v53 }
0x340f   : > { %21686 = vrot.lane.b32.xlu0 %v21684_v55, %s32052_s15 }
0x3431   : > { %v22209_v36 = vpop.permute.xlu1 %22208 }
0x3432   : > { %v22211_v42 = vadd.f32 %v24914_v46, %v22209_v36 }
0x3434   : > { %31989 = vtanh.f32 %v22211_v42 }
0x343e   : > { %v31990_v11 = vpop.eup %31989 }
0x343f   : > { %v22213_v63 = vsub.f32 %v34347_v35, %v31990_v11 }
0x3441   : > { %22215 = vrot.lane.b32.xlu1 %v22213_v63, %s32054_s13 }
0x3481   : > { %v21687_v34 = vpop.permute.xlu0 %21686 }
0x3482   : > { %v21689_v23 = vadd.f32 %v31300_v2, %v21687_v34 }
0x3484   : > { %31991 = vtanh.f32 %v21689_v23 }
0x348e   : > { %v31992_v57 = vpop.eup %31991 }
0x348f   : > { %v21691_v1 = vsub.f32 %v34356_v14, %v31992_v57 }
0x3491   : > { %21693 = vrot.lane.b32.xlu0 %v21691_v1, %s32054_s13 }
0x34b3   : > { %v22216_v62 = vpop.permute.xlu1 %22215 }
0x34b4   : > { %v22218_v60 = vmul.f32 %v31984_v50, %v22216_v62 }
0x34b6   : > { %22220 = vrot.lane.b32.xlu1 %v22218_v60, %s32053_s16 }
0x3503   : > { %v21694_v31 = vpop.permute.xlu0 %21693 }
0x3504   : > { %v21696_v43 = vmul.f32 %v31988_v0, %v21694_v31 }
0x3506   : > { %21698 = vrot.lane.b32.xlu0 %v21696_v43, %s32053_s16 }
0x3528   : > { %v22221_v49 = vpop.permute.xlu1 %22220 }
0x3529   : > { %v34491_v35 = vadd.f32 %v31990_v11, %v22221_v49 }
0x352b   : > { %22225 = vrot.lane.b32.xlu1 %v34491_v35, %s32052_s15 }
0x3578   : > { %v21699_v48 = vpop.permute.xlu0 %21698 }
0x3579   : > { %v34495_v5 = vadd.f32 %v31992_v57, %v21699_v48 }
0x357b   : > { %21703 = vrot.lane.b32.xlu0 %v34495_v5, %s32052_s15 }
0x359d   : > { %v22226_v14 = vpop.permute.xlu1 %22225 }
0x359e   : > { %v22227_v46 = vsel %vm305_vm2, %v22226_v14, 0 }
0x359f   : > { %v34500_v10 = vand.u32 4294901760, %v22227_v46 }
0x35a1   : > { %v22299_v45 = vsub.f32 %v22227_v46, %v34500_v10 }
0x35a3   : > { %v22300_v15 = vand.u32 4294901760, %v22299_v45 }
0x35a5   : > { %v22301_v52 = vsub.f32 %v22299_v45, %v22300_v15 }
0x35a7   : > { %v22302_v16 = vand.u32 4294901760, %v22301_v52 }
0x35a9   : > { %29211 = vmatmul.mubr.f32.vlgmr.msra.gmra.mrb[42].mxu1 %v22302_v16 }
0x35aa   : > { %31088 = vmatpush3.bf16.msra.mxu1 %v32274_v51  ;;  %29221 = vmatprep.mubr.msk.f32.mxu1 %vm32050_vm1, %v32051_v9 }
0x35ab   : > { %31089 = vmatprep.subr.bf16.mxu1 %v32049_v4 }
0x35ae   : > { %31091 = vmatpush3.bf16.msra.mxu1 %v32288_v56 }
0x35af   : > { %31092 = vmatprep.subr.bf16.mxu1 %v32049_v4 }
0x35b1   : > { %29222 = vmatmul.mubr.f32.vlgmr.msra.gmra.mrb[42].mxu1 %v34500_v10 }
0x35b2   : > { %31094 = vmatpush3.bf16.msra.mxu1 %v32295_v18  ;;  %29232 = vmatprep.mubr.msk.f32.mxu1 %vm32050_vm1, %v32051_v9 }
0x35b3   : > { %31095 = vmatprep.subr.bf16.mxu1 %v32049_v4 }
0x35b6   : > { %31097 = vmatpush3.bf16.msra.mxu1 %v32303_v21 }
0x35b7   : > { %31098 = vmatprep.subr.bf16.mxu1 %v32049_v4 }
0x35b9   : > { %29233 = vmatmul.mubr.f32.vlgmr.msra.gmra.mrb[42].mxu1 %v22299_v45 }
0x35ba   : > { %31100 = vmatpush3.bf16.msra.mxu1 %v32217_v7  ;;  %29243 = vmatprep.mubr.msk.f32.mxu1 %vm32050_vm1, %v32051_v9 }
0x35bb   : > { %31101 = vmatprep.subr.bf16.mxu1 %v32049_v4 }
0x35be   : > { %31103 = vmatpush3.bf16.msra.mxu1 %v32251_v28 }
0x35bf   : > { %31104 = vmatprep.subr.bf16.mxu1 %v32049_v4 }
0x35c1   : > { %29244 = vmatmul.mubr.f32.vlgmr.msra.gmra.mrb[42].mxu1 %v22300_v15 }
0x35c2   : > { %31106 = vmatpush3.bf16.msra.mxu1 %v32323_v25  ;;  %29254 = vmatprep.mubr.msk.f32.mxu1 %vm32050_vm1, %v32051_v9 }
0x35c3   : > { %31107 = vmatprep.subr.bf16.mxu1 %v32049_v4 }
0x35c6   : > { %31109 = vmatpush3.bf16.msra.mxu1 %v32329_v29 }
0x35c7   : > { %31110 = vmatprep.subr.bf16.mxu1 %v32049_v4 }
0x35c9   : > { %29255 = vmatmul.mubr.f32.vlgmr.msra.gmra.mrb[42].mxu1 %v34500_v10 }
0x35ca   : > { %31112 = vmatpush3.bf16.msra.mxu1 %v32217_v7  ;;  %29265 = vmatprep.mubr.msk.f32.mxu1 %vm32050_vm1, %v32051_v9 }
0x35cb   : > { %31113 = vmatprep.subr.bf16.mxu1 %v32049_v4 }
0x35ce   : > { %31115 = vmatpush3.bf16.msra.mxu1 %v32251_v28 }
0x35cf   : > { %31152 = vmatprep.subr.bf16.mxu1 %v32049_v4 }
0x35d1   : > { %29266 = vmatmul.mubr.f32.vlgmr.msra.gmra.mrb[42].mxu1 %v34500_v10 }
0x35d2   : > { %31154 = vmatpush3.bf16.msra.mxu1 %v32133_v12  ;;  %29342 = vmatprep.mubr.msk.f32.mxu1 %vm32050_vm1, %v32051_v9 }
0x35d3   : > { %31155 = vmatprep.subr.bf16.mxu1 %v32049_v4 }
0x35d6   : > { %31157 = vmatpush3.bf16.msra.mxu1 %v32138_v19 }
0x35d7   : > { %31158 = vmatprep.subr.bf16.mxu1 %v32049_v4 }
0x35d9   : > { %29343 = vmatmul.mubr.f32.vlgmr.msra.gmra.mrb[44].mxu1 %v22302_v16 }
0x35da   : > { %31160 = vmatpush3.bf16.msra.mxu1 %v32143_v33  ;;  %29353 = vmatprep.mubr.msk.f32.mxu1 %vm32050_vm1, %v32051_v9 }
0x35db   : > { %31161 = vmatprep.subr.bf16.mxu1 %v32049_v4 }
0x35de   : > { %31163 = vmatpush3.bf16.msra.mxu1 %v32146_v37 }
0x35df   : > { %31164 = vmatprep.subr.bf16.mxu1 %v32049_v4 }
0x35e1   : > { %29354 = vmatmul.mubr.f32.vlgmr.msra.gmra.mrb[44].mxu1 %v34500_v10 }
0x35e2   : > { %31166 = vmatpush3.bf16.msra.mxu1 %v32152_v38  ;;  %29364 = vmatprep.mubr.msk.f32.mxu1 %vm32050_vm1, %v32051_v9 }
0x35e3   : > { %31167 = vmatprep.subr.bf16.mxu1 %v32049_v4 }
0x35e6   : > { %31169 = vmatpush3.bf16.msra.mxu1 %v32156_v39 }
0x35e7   : > { %31170 = vmatprep.subr.bf16.mxu1 %v32049_v4 }
0x35e9   : > { %29365 = vmatmul.mubr.f32.vlgmr.msra.gmra.mrb[44].mxu1 %v22299_v45 }
0x35ea   : > { %31172 = vmatpush3.bf16.msra.mxu1 %v32133_v12  ;;  %29375 = vmatprep.mubr.msk.f32.mxu1 %vm32050_vm1, %v32051_v9 }
0x35eb   : > { %31173 = vmatprep.subr.bf16.mxu1 %v32049_v4 }
0x35ed   : > { %v21704_v33 = vpop.permute.xlu0 %21703 }
0x35ee   : > { %31175 = vmatpush3.bf16.msra.mxu1 %v32138_v19  ;;  %24913 = vst.msk [vmem:[%s32111_s29 + $0x1a] sm:$0x3] %vm1842_vm3, %v21704_v33  ;;  %v22714_v37 = vsel %vm305_vm2, %v21704_v33, 0 }
0x35ef   : > { %31176 = vmatprep.subr.bf16.mxu1 %v32049_v4  ;;  %v22785_v38 = vand.u32 4294901760, %v22714_v37 }
0x35f1   : > { %29376 = vmatmul.mubr.f32.vlgmr.msra.gmra.mrb[44].mxu1 %v22300_v15  ;;  %v22786_v39 = vsub.f32 %v22714_v37, %v22785_v38 }
0x35f2   : > { %31178 = vmatpush3.bf16.msra.mxu1 %v32168_v40  ;;  %29386 = vmatprep.mubr.msk.f32.mxu1 %vm32050_vm1, %v32051_v9 }
0x35f3   : > { %v22787_v8 = vand.u32 4294901760, %v22786_v39  ;;  %31179 = vmatprep.subr.bf16.mxu1 %v32049_v4 }
0x35f5   : > { %v22788_v54 = vsub.f32 %v22786_v39, %v22787_v8 }
0x35f6   : > { %31181 = vmatpush3.bf16.msra.mxu1 %v32172_v41  ;;  %v32023_v41 = vld [vmem:[%s34728_s4] ss:$0 sm:$0xff] }
0x35f7   : > { %31182 = vmatprep.subr.bf16.mxu1 %v32049_v4  ;;  %v22789_v50 = vand.u32 4294901760, %v22788_v54 }
0x35f9   : > { %29387 = vmatmul.mubr.f32.vlgmr.msra.gmra.mrb[44].mxu1 %v34500_v10  ;;  %29277 = vmatmul.mubr.f32.vlgmr.msra.gmra.mrb[44].mxu0 %v22789_v50 }
0x35fa   : > { %31184 = vmatpush3.bf16.msra.mxu1 %v32133_v12  ;;  %29397 = vmatprep.mubr.msk.f32.mxu1 %vm32050_vm1, %v32051_v9 }
0x35fb   : > { %31185 = vmatprep.subr.bf16.mxu1 %v32049_v4  ;;  %31124 = vmatpush3.bf16.msra.mxu0 %v32283_v3 }
0x35fc   : > { %31125 = vmatprep.subr.bf16.mxu0 %v32049_v4  ;;  %29287 = vmatprep.mubr.msk.f32.mxu0 %vm32050_vm1, %v32051_v9 }
0x35fe   : > { %31187 = vmatpush3.bf16.msra.mxu1 %v32138_v19 }
0x35ff   : > { %31127 = vmatpush3.bf16.msra.mxu0 %v32291_v17  ;;  %31224 = vmatprep.subr.bf16.mxu1 %v32049_v4 }
0x3600   : > { %31128 = vmatprep.subr.bf16.mxu0 %v32049_v4 }
0x3601   : > { %29398 = vmatmul.mubr.f32.vlgmr.msra.gmra.mrb[44].mxu1 %v34500_v10 }
0x3602   : > { %29288 = vmatmul.mubr.f32.vlgmr.msra.gmra.mrb[44].mxu0 %v22785_v38  ;;  %31226 = vmatpush3.bf16.msra.mxu1 %v32225_v13 }
0x3603   : > { %31130 = vmatpush3.bf16.msra.mxu0 %v32300_v20  ;;  %29298 = vmatprep.mubr.msk.f32.mxu0 %vm32050_vm1, %v32051_v9 }
0x3604   : > { %31131 = vmatprep.subr.bf16.mxu0 %v32049_v4  ;;  %31227 = vmatprep.subr.bf16.mxu1 %v32049_v4 }
0x3605   : > { %29474 = vmatprep.mubr.msk.f32.mxu1 %vm32050_vm1, %v32051_v9 }
0x3606   : > { %31229 = vmatpush3.bf16.msra.mxu1 %v32262_v32 }
0x3607   : > { %31133 = vmatpush3.bf16.msra.mxu0 %v32307_v24  ;;  %31230 = vmatprep.subr.bf16.mxu1 %v32049_v4 }
0x3608   : > { %31134 = vmatprep.subr.bf16.mxu0 %v32049_v4 }
0x360a   : > { %29299 = vmatmul.mubr.f32.vlgmr.msra.gmra.mrb[44].mxu0 %v22786_v39 }
0x360b   : > { %31136 = vmatpush3.bf16.msra.mxu0 %v32225_v13  ;;  %29309 = vmatprep.mubr.msk.f32.mxu0 %vm32050_vm1, %v32051_v9 }
0x360c   : > { %31137 = vmatprep.subr.bf16.mxu0 %v32049_v4 }
0x360f   : > { %31139 = vmatpush3.bf16.msra.mxu0 %v32262_v32 }
0x3610   : > { %31140 = vmatprep.subr.bf16.mxu0 %v32049_v4 }
0x3612   : > { %29310 = vmatmul.mubr.f32.vlgmr.msra.gmra.mrb[44].mxu0 %v22787_v8 }
0x3613   : > { %31142 = vmatpush3.bf16.msra.mxu0 %v32326_v27  ;;  %29320 = vmatprep.mubr.msk.f32.mxu0 %vm32050_vm1, %v32051_v9 }
0x3614   : > { %31143 = vmatprep.subr.bf16.mxu0 %v32049_v4 }
0x3617   : > { %31145 = vmatpush3.bf16.msra.mxu0 %v32334_v30 }
0x3618   : > { %31146 = vmatprep.subr.bf16.mxu0 %v32049_v4 }
0x361a   : > { %29321 = vmatmul.mubr.f32.vlgmr.msra.gmra.mrb[44].mxu0 %v22785_v38 }
0x361b   : > { %31148 = vmatpush3.bf16.msra.mxu0 %v32225_v13  ;;  %29331 = vmatprep.mubr.msk.f32.mxu0 %vm32050_vm1, %v32051_v9 }
0x361c   : > { %31149 = vmatprep.subr.bf16.mxu0 %v32049_v4 }
0x361f   : > { %31151 = vmatpush3.bf16.msra.mxu0 %v32262_v32 }
0x3620   : > { %31188 = vmatprep.subr.bf16.mxu0 %v32049_v4 }
0x3622   : > { %29332 = vmatmul.mubr.f32.vlgmr.msra.gmra.mrb[44].mxu0 %v22785_v38 }
0x3623   : > { %31190 = vmatpush3.bf16.msra.mxu0 %v32217_v7  ;;  %29408 = vmatprep.mubr.msk.f32.mxu0 %vm32050_vm1, %v32051_v9 }
0x3624   : > { %31191 = vmatprep.subr.bf16.mxu0 %v32049_v4 }
0x3627   : > { %31193 = vmatpush3.bf16.msra.mxu0 %v32251_v28 }
0x3628   : > { %31194 = vmatprep.subr.bf16.mxu0 %v32049_v4 }
0x36a4   : > { %v22710_v12 = vpop.f32.mrb[42].mxu1 }
0x36a5   : > { %v29267_v19 = vpop.f32.mrb[43].mxu1  ;;  %v31303_v36 = vadd.f32 %v34338_v59, %v22710_v12 }
0x36d4   : > { %v23719_v40 = vpop.f32.mrb[44].mxu1 }
0x36d5   : > { %v31305_v58 = vadd.f32 %v32023_v41, %v23719_v40  ;;  %v29399_v61 = vpop.f32.mrb[45].mxu1 }
0x36d7   : > { %23731 = vrot.lane.b32.xlu0 %v31305_v58, %s32052_s15  ;;  %v23723_v22 = vadd.f32 %v31305_v58, %v24918_v44 }
0x36d9   : > { %v24919_v0 = vmul.f32 -1.442695, %v23723_v22 }
0x36db   : > { %31993 = vpow2.f32 %v24919_v0 }
0x36e5   : > { %v31994_v53 = vpop.eup %31993 }
0x36e6   : > { %v23727_v55 = vadd.f32 1.0, %v31994_v53 }
0x36e8   : > { %31995 = vrcp.f32 %v23727_v55 }
0x36f2   : > { %v31996_v11 = vpop.eup %31995 }
0x36f5   : > { %v23197_v2 = vpop.f32.mrb[44].mxu0 }
0x36f6   : > { %v31304_v26 = vadd.f32 %v34331_v6, %v23197_v2  ;;  %v29333_v47 = vpop.f32.mrb[45].mxu0 }
0x36f8   : > { %23209 = vrot.lane.b32.xlu1 %v31304_v26, %s32052_s15  ;;  %v23201_v42 = vadd.f32 %v31304_v26, %v31303_v36 }
0x36fa   : > { %v24916_v23 = vmul.f32 -1.442695, %v23201_v42 }
0x36fc   : > { %31997 = vpow2.f32 %v24916_v23 }
0x3706   : > { %v31998_v57 = vpop.eup %31997 }
0x3707   : > { %v23205_v1 = vadd.f32 1.0, %v31998_v57 }
0x3709   : > { %31999 = vrcp.f32 %v23205_v1 }
0x3713   : > { %v32000_v62 = vpop.eup %31999 }
0x3749   : > { %v23732_v63 = vpop.permute.xlu0 %23731 }
0x374a   : > { %v23734_v34 = vmul.f32 %v31996_v11, %v23732_v63 }
0x374c   : > { %23736 = vrot.lane.b32.xlu0 %v23734_v34, %s32052_s15 }
0x376a   : > { %v23210_v60 = vpop.permute.xlu1 %23209 }
0x376b   : > { %v23212_v31 = vmul.f32 %v32000_v62, %v23210_v60 }
0x376d   : > { %23214 = vrot.lane.b32.xlu1 %v23212_v31, %s32052_s15 }
0x37be   : > { %v23737_v43 = vpop.permute.xlu0 %23736 }
0x37bf   : > { %v23739_v49 = vadd.f32 %v24918_v44, %v23737_v43 }
0x37c1   : > { %32001 = vtanh.f32 %v23739_v49 }
0x37cb   : > { %v32002_v48 = vpop.eup %32001 }
0x37cc   : > { %v23741_v14 = vsub.f32 %v34491_v35, %v32002_v48 }
0x37ce   : > { %23743 = vrot.lane.b32.xlu0 %v23741_v14, %s32054_s13 }
0x37df   : > { %v23215_v46 = vpop.permute.xlu1 %23214 }
0x37e0   : > { %v23217_v10 = vadd.f32 %v31303_v36, %v23215_v46 }
0x37e2   : > { %32003 = vtanh.f32 %v23217_v10 }
0x37ec   : > { %v32004_v45 = vpop.eup %32003 }
0x37ed   : > { %v23219_v15 = vsub.f32 %v34495_v5, %v32004_v45 }
0x37ef   : > { %23221 = vrot.lane.b32.xlu1 %v23219_v15, %s32054_s13 }
0x3840   : > { %v23744_v52 = vpop.permute.xlu0 %23743 }
0x3841   : > { %v23746_v16 = vmul.f32 %v31996_v11, %v23744_v52 }
0x3843   : > { %23748 = vrot.lane.b32.xlu0 %v23746_v16, %s32053_s16 }
0x3861   : > { %v23222_v33 = vpop.permute.xlu1 %23221 }
0x3862   : > { %v23224_v37 = vmul.f32 %v32000_v62, %v23222_v33 }
0x3864   : > { %23226 = vrot.lane.b32.xlu1 %v23224_v37, %s32053_s16 }
0x38b5   : > { %v23749_v38 = vpop.permute.xlu0 %23748 }
0x38b6   : > { %v23751_v35 = vadd.f32 %v32002_v48, %v23749_v38 }
0x38b8   : > { %23753 = vrot.lane.b32.xlu0 %v23751_v35, %s32052_s15 }
0x38d6   : > { %v23227_v39 = vpop.permute.xlu1 %23226 }
0x38d7   : > { %v34637_v8 = vadd.f32 %v32004_v45, %v23227_v39 }
0x38d9   : > { %23231 = vrot.lane.b32.xlu1 %v34637_v8, %s32052_s15 }
0x392a   : > { %v23754_v5 = vpop.permute.xlu0 %23753 }
0x392b   : > { %v23755_v54 = vsel %vm305_vm2, %v23754_v5, 0  ;;  %24765 = vst.msk [vmem:[#allocation2] sm:$0x3] %vm1842_vm3, %v23754_v5 }
0x392c   : > { %v23826_v50 = vand.u32 4294901760, %v23755_v54 }
0x392e   : > { %v23827_v12 = vsub.f32 %v23755_v54, %v23826_v50 }
0x3930   : > { %v23828_v19 = vand.u32 4294901760, %v23827_v12 }
0x3932   : > { %v23829_v40 = vsub.f32 %v23827_v12, %v23828_v19 }
0x3934   : > { %v23830_v41 = vand.u32 4294901760, %v23829_v40 }
0x3936   : > { %29409 = vmatmul.mubr.f32.vlgmr.msra.gmra.mrb[46].mxu0 %v23830_v41 }
0x3937   : > { %31196 = vmatpush3.bf16.msra.mxu0 %v32274_v51  ;;  %29419 = vmatprep.mubr.msk.f32.mxu0 %vm32050_vm1, %v32051_v9 }
0x3938   : > { %31197 = vmatprep.subr.bf16.mxu0 %v32049_v4 }
0x393b   : > { %31199 = vmatpush3.bf16.msra.mxu0 %v32288_v56 }
0x393c   : > { %31200 = vmatprep.subr.bf16.mxu0 %v32049_v4 }
0x393e   : > { %29420 = vmatmul.mubr.f32.vlgmr.msra.gmra.mrb[46].mxu0 %v23826_v50 }
0x393f   : > { %31202 = vmatpush3.bf16.msra.mxu0 %v32295_v18  ;;  %29430 = vmatprep.mubr.msk.f32.mxu0 %vm32050_vm1, %v32051_v9 }
0x3940   : > { %31203 = vmatprep.subr.bf16.mxu0 %v32049_v4 }
0x3943   : > { %31205 = vmatpush3.bf16.msra.mxu0 %v32303_v21 }
0x3944   : > { %31206 = vmatprep.subr.bf16.mxu0 %v32049_v4 }
0x3946   : > { %29431 = vmatmul.mubr.f32.vlgmr.msra.gmra.mrb[46].mxu0 %v23827_v12 }
0x3947   : > { %31208 = vmatpush3.bf16.msra.mxu0 %v32217_v7  ;;  %29441 = vmatprep.mubr.msk.f32.mxu0 %vm32050_vm1, %v32051_v9 }
0x3948   : > { %31209 = vmatprep.subr.bf16.mxu0 %v32049_v4 }
0x394b   : > { %31211 = vmatpush3.bf16.msra.mxu0 %v32251_v28  ;;  %v23232_v51 = vpop.permute.xlu1 %23231 }
0x394c   : > { %31212 = vmatprep.subr.bf16.mxu0 %v32049_v4  ;;  %24917 = vst.msk [vmem:[%s32111_s29 + $0x1c] sm:$0x3] %vm1842_vm3, %v23232_v51  ;;  %v24242_v56 = vsel %vm305_vm2, %v23232_v51, 0 }
0x394d   : > { %v24313_v18 = vand.u32 4294901760, %v24242_v56 }
0x394e   : > { %29442 = vmatmul.mubr.f32.vlgmr.msra.gmra.mrb[46].mxu0 %v23828_v19 }
0x394f   : > { %31214 = vmatpush3.bf16.msra.mxu0 %v32323_v25  ;;  %v24314_v21 = vsub.f32 %v24242_v56, %v24313_v18  ;;  %29452 = vmatprep.mubr.msk.f32.mxu0 %vm32050_vm1, %v32051_v9 }
0x3950   : > { %31215 = vmatprep.subr.bf16.mxu0 %v32049_v4 }
0x3951   : > { %v24315_v58 = vand.u32 4294901760, %v24314_v21 }
0x3953   : > { %v24316_v61 = vsub.f32 %v24314_v21, %v24315_v58  ;;  %31217 = vmatpush3.bf16.msra.mxu0 %v32329_v29 }
0x3954   : > { %31218 = vmatprep.subr.bf16.mxu0 %v32049_v4 }
0x3955   : > { %v24317_v2 = vand.u32 4294901760, %v24316_v61 }
0x3956   : > { %29453 = vmatmul.mubr.f32.vlgmr.msra.gmra.mrb[46].mxu0 %v23826_v50 }
0x3957   : > { %31220 = vmatpush3.bf16.msra.mxu0 %v32217_v7  ;;  %29463 = vmatprep.mubr.msk.f32.mxu0 %vm32050_vm1, %v32051_v9 }
0x3958   : > { %31221 = vmatprep.subr.bf16.mxu0 %v32049_v4  ;;  %29475 = vmatmul.mubr.f32.vlgmr.msra.gmra.mrb[46].mxu1 %v24317_v2 }
0x3959   : > { %31232 = vmatpush3.bf16.msra.mxu1 %v32283_v3  ;;  %29485 = vmatprep.mubr.msk.f32.mxu1 %vm32050_vm1, %v32051_v9 }
0x395a   : > { %31233 = vmatprep.subr.bf16.mxu1 %v32049_v4 }
0x395b   : > { %31223 = vmatpush3.bf16.msra.mxu0 %v32251_v28 }
0x395d   : > { %31235 = vmatpush3.bf16.msra.mxu1 %v32291_v17 }
0x395e   : > { %29464 = vmatmul.mubr.f32.vlgmr.msra.gmra.mrb[46].mxu0 %v23826_v50  ;;  %31236 = vmatprep.subr.bf16.mxu1 %v32049_v4 }
0x3960   : > { %29486 = vmatmul.mubr.f32.vlgmr.msra.gmra.mrb[46].mxu1 %v24313_v18 }
0x3961   : > { %31238 = vmatpush3.bf16.msra.mxu1 %v32300_v20  ;;  %29496 = vmatprep.mubr.msk.f32.mxu1 %vm32050_vm1, %v32051_v9 }
0x3962   : > { %31239 = vmatprep.subr.bf16.mxu1 %v32049_v4 }
0x3965   : > { %31241 = vmatpush3.bf16.msra.mxu1 %v32307_v24 }
0x3966   : > { %31242 = vmatprep.subr.bf16.mxu1 %v32049_v4 }
0x3968   : > { %29497 = vmatmul.mubr.f32.vlgmr.msra.gmra.mrb[46].mxu1 %v24314_v21 }
0x3969   : > { %31244 = vmatpush3.bf16.msra.mxu1 %v32225_v13  ;;  %29507 = vmatprep.mubr.msk.f32.mxu1 %vm32050_vm1, %v32051_v9 }
0x396a   : > { %31245 = vmatprep.subr.bf16.mxu1 %v32049_v4 }
0x396d   : > { %31247 = vmatpush3.bf16.msra.mxu1 %v32262_v32 }
0x396e   : > { %31248 = vmatprep.subr.bf16.mxu1 %v32049_v4 }
0x3970   : > { %29508 = vmatmul.mubr.f32.vlgmr.msra.gmra.mrb[46].mxu1 %v24315_v58 }
0x3971   : > { %31250 = vmatpush3.bf16.msra.mxu1 %v32326_v27  ;;  %29518 = vmatprep.mubr.msk.f32.mxu1 %vm32050_vm1, %v32051_v9 }
0x3972   : > { %31251 = vmatprep.subr.bf16.mxu1 %v32049_v4 }
0x3975   : > { %31253 = vmatpush3.bf16.msra.mxu1 %v32334_v30 }
0x3976   : > { %31254 = vmatprep.subr.bf16.mxu1 %v32049_v4 }
0x3978   : > { %29519 = vmatmul.mubr.f32.vlgmr.msra.gmra.mrb[46].mxu1 %v24313_v18 }
0x3979   : > { %31256 = vmatpush3.bf16.msra.mxu1 %v32225_v13  ;;  %29529 = vmatprep.mubr.msk.f32.mxu1 %vm32050_vm1, %v32051_v9 }
0x397a   : > { %31257 = vmatprep.subr.bf16.mxu1 %v32049_v4 }
0x397d   : > { %31259 = vmatpush3.bf16.msra.mxu1 %v32262_v32 }
0x3980   : > { %29530 = vmatmul.mubr.f32.vlgmr.msra.gmra.mrb[46].mxu1 %v24313_v18 }
0x3a31   : > { %v24238_v7 = vpop.f32.mrb[46].mxu0 }
0x3a32   : > { %v29465_v28 = vpop.f32.mrb[47].mxu0  ;;  %v31306_v24 = vadd.f32 %v34338_v59, %v24238_v7 }
0x3a53   : > { %v24725_v3 = vpop.f32.mrb[46].mxu1 }
0x3a54   : > { %v31307_v17 = vadd.f32 %v34331_v6, %v24725_v3  ;;  %v29531_v20 = vpop.f32.mrb[47].mxu1 }
0x3a56   : > { %24737 = vrot.lane.b32.xlu1 %v31307_v17, %s32052_s15  ;;  %v24729_v25 = vadd.f32 %v31307_v17, %v31306_v24 }
0x3a58   : > { %v24920_v13 = vmul.f32 -1.442695, %v24729_v25 }
0x3a5a   : > { %32005 = vpow2.f32 %v24920_v13 }
0x3a64   : > { %v32006_v27 = vpop.eup %32005 }
0x3a65   : > { %v24733_v9 = vadd.f32 1.0, %v32006_v27 }
0x3a67   : > { %32007 = vrcp.f32 %v24733_v9 }
0x3a71   : > { %v32008_v4 = vpop.eup %32007 }
0x3ac8   : > { %v24738_v29 = vpop.permute.xlu1 %24737 }
0x3ac9   : > { %v24740_v32 = vmul.f32 %v32008_v4, %v24738_v29 }
0x3acb   : > { %24742 = vrot.lane.b32.xlu0 %v24740_v32, %s32052_s15 }
0x3b3d   : > { %v24743_v30 = vpop.permute.xlu0 %24742 }
0x3b3e   : > { %v24745_v26 = vadd.f32 %v31306_v24, %v24743_v30 }
0x3b40   : > { %32009 = vtanh.f32 %v24745_v26 }
0x3b4a   : > { %v32010_v6 = vpop.eup %32009 }
0x3b4b   : > { %v24747_v47 = vsub.f32 %v34637_v8, %v32010_v6 }
0x3b4d   : > { %24749 = vrot.lane.b32.xlu1 %v24747_v47, %s32054_s13 }
0x3bbf   : > { %v24750_v59 = vpop.permute.xlu1 %24749 }
0x3bc0   : > { %v24752_v44 = vmul.f32 %v32008_v4, %v24750_v59 }
0x3bc2   : > { %24754 = vrot.lane.b32.xlu0 %v24752_v44, %s32053_s16 }
0x3c34   : > { %v24755_v22 = vpop.permute.xlu0 %24754 }
0x3c35   : > { %v24757_v0 = vadd.f32 %v32010_v6, %v24755_v22 }
0x3c37   : > { %24759 = vrot.lane.b32.xlu1 %v24757_v0, %s32052_s15 }
0x3ca9   : > { %v24760_v53 = vpop.permute.xlu1 %24759 }
0x3caa   : > { %24921 = vst.msk [vmem:[%s32111_s29 + $0x1e] sm:$0x3] %vm1842_vm3, %v24760_v53  ;;  %24766 = vst.msk [vmem:[#allocation2 + $0x2] sm:$0x3] %vm1842_vm3, %v24760_v53 }
0x3cab PF: > { %s15_s20 = sadd.s32 1, %s32046_s20   ;;  %s34730_s18 = smov %s32042_s19 }
0x3cac   : > { %p12_p6 = scmp.ge.s32.totalorder %s15_s20, 4   ;;  %s34731_s19 = smov %s34733_s21 }
0x3cae   :  { %14 = sbr.rel (!%p12_p6) target bundleno = 2 (0x2), region = 107 }

</bundles_post_ra>
